<compile_context>
chip_gen: v7x
topology: tpu7x:2x2x1
jax: 0.10.0
libtpu: 0.0.40
codegen_flags: <defaults>
</compile_context>

<pallas_src>
import functools

import jax
import jax.numpy as jnp
from jax.experimental import pallas as pl
from jax.experimental.pallas import tpu as pltpu

# ---------------- configuration ----------------
B        = 2          # batch
C_IN     = 3          # image channels
IN_RES   = 64         # incoming image resolution
IMG_RES  = 32         # ViT "img_resolution"
PATCH    = 8          # patch size
GRID     = IMG_RES // PATCH
NP       = GRID * GRID            # 16 patch tokens
N_TOK    = NP + 1                 # + cls token
D        = 32                     # embed_dim
HEADS    = 2
DH       = D // HEADS
MLP      = 4 * D
DEPTH    = 12
HOOKS    = (2, 5, 8, 11)
N_HOOKS  = len(HOOKS) + 1         # + hook_patch
K_PATCH  = C_IN * PATCH * PATCH   # flattened patch length (192)

# sublane-aligned padded token layout (per image):
#   row 0 : cls token
#   rows 1..7 : zero pad (masked out as attention keys)
#   rows 8..23: the 16 patch tokens
PAD_START = 8
N_PAD     = PAD_START + NP        # 24 rows per image (multiple of 8)
N_STACK   = B * N_PAD             # 48 rows: both images stacked on sublanes

IMAGENET_MEAN = jnp.array([0.485, 0.456, 0.406], jnp.float32)
IMAGENET_STD  = jnp.array([0.229, 0.224, 0.225], jnp.float32)


# ---------------- fused Pallas kernel ----------------
def _dino_fused_kernel(patches_ref, pe_w, base, mask,
                       wqkv, bqkv, wproj, vecd, wf1, bf1, wf2,
                       hooks_ref,
                       *, depth, heads, head_dim, hook_layers, eps=1e-6):
    """Whole DINO ViT trunk (both batch elements stacked on sublanes),
    entirely in VMEM: patch-embed (norm/bias/pos folded host-side),
    `depth` pre-LN blocks, AddReadout written at hook layers."""
    scale = 1.0 / (head_dim ** 0.5)

    def layernorm(x, g, b):
        mu = jnp.mean(x, axis=-1, keepdims=True)
        var = jnp.mean(jnp.square(x - mu), axis=-1, keepdims=True)
        return (x - mu) * jax.lax.rsqrt(var + eps) * g + b

    def write_hook(slot, x):
        # AddReadout(start_index=1): patch tokens + cls token per image.
        parts = []
        for b in range(B):
            o = b * N_PAD
            parts.append(x[o + PAD_START:o + PAD_START + NP, :] + x[o:o + 1, :])
        hooks_ref[slot] = jnp.concatenate(parts, axis=0)     # (B*NP, D)

    def layer(l, x):
        vec = vecd[l]                                        # (6, D)
        g1, b1, bp = vec[0:1], vec[1:2], vec[2:3]
        g2, b2, bf2 = vec[3:4], vec[4:5], vec[5:6]

        # ---- multi-head self-attention (fused QKV, lane-concat heads) ----
        xn = layernorm(x, g1, b1)
        qkv = jnp.dot(xn, wqkv[l], preferred_element_type=jnp.float32) + bqkv[l]
        heads_out = []
        for h in range(heads):
            qh = qkv[:, h * head_dim:(h + 1) * head_dim]
            kh = qkv[:, D + h * head_dim:D + (h + 1) * head_dim]
            vh = qkv[:, 2 * D + h * head_dim:2 * D + (h + 1) * head_dim]
            # q @ k^T via dot_general (transpose fused into the MXU operand)
            s = jax.lax.dot_general(qh, kh, (((1,), (1,)), ((), ())),
                                    preferred_element_type=jnp.float32)
            s = s * scale + mask[...]
            s = s - jnp.max(s, axis=-1, keepdims=True)
            p = jnp.exp(s)
            p = p / jnp.sum(p, axis=-1, keepdims=True)
            heads_out.append(jnp.dot(p, vh, preferred_element_type=jnp.float32))
        o = jnp.concatenate(heads_out, axis=-1)              # (N_STACK, D)
        x = x + jnp.dot(o, wproj[l], preferred_element_type=jnp.float32) + bp

        # ---- MLP ----
        xn2 = layernorm(x, g2, b2)
        h1 = jnp.dot(xn2, wf1[l], preferred_element_type=jnp.float32) + bf1[l]
        # TODO(synk): timm's Mlp uses exact (erf) GELU; tanh approximation used here.
        h1 = jax.nn.gelu(h1, approximate=True)
        x = x + jnp.dot(h1, wf2[l], preferred_element_type=jnp.float32) + bf2
        return x

    # --- patch embedding: norm folded into pe_w; bias + pos + cls in `base`;
    #     pad / cls rows of the patch input are zero so they contribute 0. ---
    x = base[...] + jnp.dot(patches_ref[...], pe_w[...],
                            preferred_element_type=jnp.float32)   # (N_STACK, D)
    write_hook(0, x)                                              # hook_patch

    # rolled depth loop, unrolled only at hook boundaries
    prev = 0
    for slot, hl in enumerate(hook_layers, start=1):
        x = jax.lax.fori_loop(prev, hl + 1, layer, x)
        write_hook(slot, x)
        prev = hl + 1
    # layers after the last hook do not influence any returned activation.


_WEIGHT_ORDER = ('pe_w', 'base', 'mask', 'wqkv', 'bqkv', 'wproj',
                 'vecd', 'wf1', 'bf1', 'wf2')


def dino_fused(patches, pp):
    """Single pallas_call, single grid step: all weights resident in VMEM,
    both batch elements processed together (best on single-TC v5e/v6e;
    on v7x a batch grid axis could be reintroduced and benchmarked)."""
    weights = [pp[n] for n in _WEIGHT_ORDER]
    inputs = [patches] + weights
    in_specs = [pl.BlockSpec(a.shape, lambda i, nd=a.ndim: (0,) * nd)
                for a in inputs]
    kern = functools.partial(_dino_fused_kernel, depth=DEPTH, heads=HEADS,
                             head_dim=DH, hook_layers=HOOKS)
    return pl.pallas_call(
        kern,
        out_shape=jax.ShapeDtypeStruct((N_HOOKS, B * NP, D), jnp.float32),
        grid=(1,),
        in_specs=in_specs,
        out_specs=pl.BlockSpec((N_HOOKS, B * NP, D), lambda i: (0, 0, 0)),
        compiler_params=pltpu.CompilerParams(dimension_semantics=("arbitrary",)),
    )(*inputs)


# ---------------- parameters (deterministic synthetic init) ----------------
def init_params(key):
    keys = iter(jax.random.split(key, 8 + DEPTH * 4))

    def nrm(shape):
        return 0.02 * jax.random.normal(next(keys), shape, dtype=jnp.float32)

    p = {
        'pe_w': nrm((K_PATCH, D)),                 # conv patch-embed as matmul
        'pe_b': jnp.zeros((1, D), jnp.float32),
        'cls':  nrm((1, 1, D)),
        'pos':  nrm((1, N_TOK, D)),
        'blocks': [],
    }
    for _ in range(DEPTH):
        p['blocks'].append(dict(
            g1=jnp.ones((1, D), jnp.float32),  b1=jnp.zeros((1, D), jnp.float32),
            wqkv=nrm((D, 3 * D)),              bqkv=jnp.zeros((1, 3 * D), jnp.float32),
            wproj=nrm((D, D)),                 bproj=jnp.zeros((1, D), jnp.float32),
            g2=jnp.ones((1, D), jnp.float32),  b2=jnp.zeros((1, D), jnp.float32),
            wfc1=nrm((D, MLP)),                bfc1=jnp.zeros((1, MLP), jnp.float32),
            wfc2=nrm((MLP, D)),                bfc2=jnp.zeros((1, D), jnp.float32),
        ))
    return p


def prepare_params(p):
    """One-time host-side transforms (NOT per-call work):
       * fold ImageNet normalization into the patch-embedding weights,
       * fold patch-embed bias + positional embedding + cls token into a
         sublane-aligned `base` token tensor (pad rows zero),
       * precompute the block-diagonal / pad-key attention mask,
       * stack the 12 layers; coalesce per-layer (1,D) vectors into one array."""
    mean_row = jnp.repeat(IMAGENET_MEAN, PATCH * PATCH).reshape(1, K_PATCH)
    istd_row = (1.0 / jnp.repeat(IMAGENET_STD, PATCH * PATCH)).reshape(1, K_PATCH)
    pe_w = istd_row.reshape(K_PATCH, 1) * p['pe_w']
    pe_b = p['pe_b'] - (mean_row * istd_row) @ p['pe_w']       # (1, D)

    pos = p['pos'].reshape(N_TOK, D)
    cls = p['cls'].reshape(1, D)
    base_one = jnp.zeros((N_PAD, D), jnp.float32)
    base_one = base_one.at[0:1].set(cls + pos[0:1])
    base_one = base_one.at[PAD_START:PAD_START + NP].set(pos[1:] + pe_b)
    base = jnp.tile(base_one, (B, 1))                          # (N_STACK, D)

    # attention mask: keys must belong to the same image and be cls/patch rows
    rows = jnp.arange(N_STACK)[:, None]
    cols = jnp.arange(N_STACK)[None, :]
    same = (rows // N_PAD) == (cols // N_PAD)
    cmod = cols % N_PAD
    valid = (cmod == 0) | (cmod >= PAD_START)
    mask = jnp.where(same & valid, 0.0, -1e30).astype(jnp.float32)

    blocks = p['blocks']

    def stack(name):
        return jnp.stack([bp[name] for bp in blocks])

    vecd = jnp.stack([jnp.concatenate(
        [bp['g1'], bp['b1'], bp['bproj'], bp['g2'], bp['b2'], bp['bfc2']], axis=0)
        for bp in blocks])                                     # (DEPTH, 6, D)

    return {
        'pe_w': pe_w, 'base': base, 'mask': mask,
        'wqkv': stack('wqkv'), 'bqkv': stack('bqkv'),
        'wproj': stack('wproj'), 'vecd': vecd,
        'wf1': stack('wfc1'), 'bf1': stack('bfc1'), 'wf2': stack('wfc2'),
    }


# ---------------- forward (thin XLA glue + single kernel call) ----------------
def _patchify(x):
    """[B,3,R,R] -> [B, NP, C*P*P] with (c, ph, pw) flattening (matches Conv2d)."""
    b = x.shape[0]
    x = x.reshape(b, C_IN, GRID, PATCH, GRID, PATCH)
    x = jnp.transpose(x, (0, 2, 4, 1, 3, 5))          # (B, gh, gw, C, P, P)
    return x.reshape(b, NP, K_PATCH)


def dino_forward(x, pp):
    b = x.shape[0]
    # F.interpolate(mode='area') with integer factor == average pooling.
    f = IN_RES // IMG_RES
    x = x.reshape(b, C_IN, IMG_RES, f, IMG_RES, f).mean(axis=(3, 5))
    patches = _patchify(x)                             # (B, NP, K_PATCH)

    # scatter into the sublane-aligned padded token layout (zeros at cls/pad rows)
    padded = jnp.zeros((b, N_PAD, K_PATCH), jnp.float32)
    padded = padded.at[:, PAD_START:PAD_START + NP].set(patches)
    padded = padded.reshape(b * N_PAD, K_PATCH)        # (N_STACK, K_PATCH)

    hooks = dino_fused(padded, pp)                     # (N_HOOKS, B*NP, D)

    # AddReadout already applied in-kernel; single fused transpose for all hooks.
    hooks = hooks.reshape(N_HOOKS, b, NP, D)
    hooks_t = jnp.transpose(hooks, (0, 1, 3, 2))       # (N_HOOKS, B, D, NP)
    return {str(i): hooks_t[i] for i in range(N_HOOKS)}


# ---------------- main ----------------
if __name__ == "__main__":
    key = jax.random.PRNGKey(0)
    x = jax.random.uniform(key, (B, C_IN, IN_RES, IN_RES), dtype=jnp.float32)  # in [0,1]
    params = prepare_params(init_params(jax.random.PRNGKey(42)))

    fwd = jax.jit(dino_forward)
    feats = fwd(x, params)
    jax.block_until_ready(feats)

    assert set(feats.keys()) == {'0', '1', '2', '3', '4'}
    for v in feats.values():
        assert v.shape == (B, D, NP)
        assert bool(jnp.all(jnp.isfinite(v)))
    print("KERNEL_OK")
</pallas_src>

<mosaic_0001>
module attributes {stable_mosaic.version = 11 : i64} {
  func.func @_dino_fused_kernel(%arg0: i32, %arg1: memref<48x192xf32, #tpu.memory_space<vmem>>, %arg2: memref<192x32xf32, #tpu.memory_space<vmem>>, %arg3: memref<48x32xf32, #tpu.memory_space<vmem>>, %arg4: memref<48x48xf32, #tpu.memory_space<vmem>>, %arg5: memref<12x32x96xf32, #tpu.memory_space<vmem>>, %arg6: memref<12x1x96xf32, #tpu.memory_space<vmem>>, %arg7: memref<12x32x32xf32, #tpu.memory_space<vmem>>, %arg8: memref<12x6x32xf32, #tpu.memory_space<vmem>>, %arg9: memref<12x32x128xf32, #tpu.memory_space<vmem>>, %arg10: memref<12x1x128xf32, #tpu.memory_space<vmem>>, %arg11: memref<12x128x32xf32, #tpu.memory_space<vmem>>, %arg12: memref<5x32x32xf32, #tpu.memory_space<vmem>>) attributes {dimension_semantics = [#tpu.dimension_semantics<arbitrary>], iteration_bounds = array<i64: 1>, scalar_prefetch = 0 : i64, scratch_operands = 0 : i64, tpu.core_type = #tpu.core_type<tc>, window_params = [{pipeline_mode = #tpu.pipeline_mode<synchronous>, transform_indices = @transform_0, window_bounds = array<i64: 48, 192>}, {pipeline_mode = #tpu.pipeline_mode<synchronous>, transform_indices = @transform_1, window_bounds = array<i64: 192, 32>}, {pipeline_mode = #tpu.pipeline_mode<synchronous>, transform_indices = @transform_2, window_bounds = array<i64: 48, 32>}, {pipeline_mode = #tpu.pipeline_mode<synchronous>, transform_indices = @transform_3, window_bounds = array<i64: 48, 48>}, {pipeline_mode = #tpu.pipeline_mode<synchronous>, transform_indices = @transform_4, window_bounds = array<i64: 12, 32, 96>}, {pipeline_mode = #tpu.pipeline_mode<synchronous>, transform_indices = @transform_5, window_bounds = array<i64: 12, 1, 96>}, {pipeline_mode = #tpu.pipeline_mode<synchronous>, transform_indices = @transform_6, window_bounds = array<i64: 12, 32, 32>}, {pipeline_mode = #tpu.pipeline_mode<synchronous>, transform_indices = @transform_7, window_bounds = array<i64: 12, 6, 32>}, {pipeline_mode = #tpu.pipeline_mode<synchronous>, transform_indices = @transform_8, window_bounds = array<i64: 12, 32, 128>}, {pipeline_mode = #tpu.pipeline_mode<synchronous>, transform_indices = @transform_9, window_bounds = array<i64: 12, 1, 128>}, {pipeline_mode = #tpu.pipeline_mode<synchronous>, transform_indices = @transform_10, window_bounds = array<i64: 12, 128, 32>}, {pipeline_mode = #tpu.pipeline_mode<synchronous>, transform_indices = @transform_11, window_bounds = array<i64: 5, 32, 32>}]} {
    %c0 = arith.constant 0 : index
    %c0_0 = arith.constant 0 : index
    %0 = vector.load %arg3[%c0, %c0_0] : memref<48x32xf32, #tpu.memory_space<vmem>>, vector<48x32xf32>
    %c0_1 = arith.constant 0 : index
    %c0_2 = arith.constant 0 : index
    %1 = vector.load %arg1[%c0_1, %c0_2] : memref<48x192xf32, #tpu.memory_space<vmem>>, vector<48x192xf32>
    %c0_3 = arith.constant 0 : index
    %c0_4 = arith.constant 0 : index
    %2 = vector.load %arg2[%c0_3, %c0_4] : memref<192x32xf32, #tpu.memory_space<vmem>>, vector<192x32xf32>
    %cst = arith.constant dense<0.000000e+00> : vector<48x32xf32>
    %3 = tpu.matmul %1, %2, %cst {dimension_numbers = #tpu.dot_dimension_numbers<[1], [0], [0], [1], [0, 0, 1, 1], [], []>} : vector<48x192xf32>, vector<192x32xf32>, vector<48x32xf32> -> vector<48x32xf32>
    %4 = arith.addf %0, %3 : vector<48x32xf32>
    %5 = vector.extract_strided_slice %4 {offsets = [8, 0], sizes = [16, 32], strides = [1, 1]} : vector<48x32xf32> to vector<16x32xf32>
    %6 = vector.extract_strided_slice %4 {offsets = [0, 0], sizes = [1, 32], strides = [1, 1]} : vector<48x32xf32> to vector<1x32xf32>
    %7 = vector.broadcast %6 : vector<1x32xf32> to vector<16x32xf32>
    %8 = arith.addf %5, %7 : vector<16x32xf32>
    %9 = vector.extract_strided_slice %4 {offsets = [32, 0], sizes = [16, 32], strides = [1, 1]} : vector<48x32xf32> to vector<16x32xf32>
    %10 = vector.extract_strided_slice %4 {offsets = [24, 0], sizes = [1, 32], strides = [1, 1]} : vector<48x32xf32> to vector<1x32xf32>
    %11 = vector.broadcast %10 : vector<1x32xf32> to vector<16x32xf32>
    %12 = arith.addf %9, %11 : vector<16x32xf32>
    %13 = tpu.concatenate %8, %12 in 0 : vector<16x32xf32>, vector<16x32xf32> -> vector<32x32xf32>
    %c0_5 = arith.constant 0 : index
    %c0_6 = arith.constant 0 : index
    %c0_7 = arith.constant 0 : index
    %14 = vector.load %arg12[%c0_5, %c0_6, %c0_7] : memref<5x32x32xf32, #tpu.memory_space<vmem>>, vector<1x32x32xf32>
    %15 = vector.shape_cast %14 : vector<1x32x32xf32> to vector<32x32xf32>
    %16 = vector.shape_cast %13 : vector<32x32xf32> to vector<1x32x32xf32>
    tpu.vector_store %arg12[%c0_5, %c0_6, %c0_7], %16 {strides = array<i32>} : memref<5x32x32xf32, #tpu.memory_space<vmem>>, vector<1x32x32xf32>,
    %c0_i32 = arith.constant 0 : i32
    %c3_i32 = arith.constant 3 : i32
    %17 = arith.addi %c0_i32, %c3_i32 : i32
    %c1_i32 = arith.constant 1 : i32
    %18 = scf.for %arg13 = %c0_i32 to %17 step %c1_i32 iter_args(%arg14 = %4) -> (vector<48x32xf32>)  : i32 {
      %73 = arith.index_cast %arg13 : i32 to index
      %c0_27 = arith.constant 0 : index
      %c0_28 = arith.constant 0 : index
      %74 = vector.load %arg8[%73, %c0_27, %c0_28] : memref<12x6x32xf32, #tpu.memory_space<vmem>>, vector<1x6x32xf32>
      %75 = vector.shape_cast %74 : vector<1x6x32xf32> to vector<6x32xf32>
      %76 = vector.extract_strided_slice %75 {offsets = [0, 0], sizes = [1, 32], strides = [1, 1]} : vector<6x32xf32> to vector<1x32xf32>
      %77 = vector.extract_strided_slice %75 {offsets = [1, 0], sizes = [1, 32], strides = [1, 1]} : vector<6x32xf32> to vector<1x32xf32>
      %78 = vector.extract_strided_slice %75 {offsets = [2, 0], sizes = [1, 32], strides = [1, 1]} : vector<6x32xf32> to vector<1x32xf32>
      %79 = vector.extract_strided_slice %75 {offsets = [3, 0], sizes = [1, 32], strides = [1, 1]} : vector<6x32xf32> to vector<1x32xf32>
      %80 = vector.extract_strided_slice %75 {offsets = [4, 0], sizes = [1, 32], strides = [1, 1]} : vector<6x32xf32> to vector<1x32xf32>
      %81 = vector.extract_strided_slice %75 {offsets = [5, 0], sizes = [1, 32], strides = [1, 1]} : vector<6x32xf32> to vector<1x32xf32>
      %cst_29 = arith.constant dense<0.000000e+00> : vector<48xf32>
      %82 = vector.multi_reduction <add>, %arg14, %cst_29 [1] : vector<48x32xf32> to vector<48xf32>
      %83 = vector.shape_cast %82 : vector<48xf32> to vector<48x1xf32>
      %cst_30 = arith.constant 3.200000e+01 : f32
      %84 = vector.broadcast %cst_30 : f32 to vector<48x1xf32>
      %85 = arith.divf %83, %84 : vector<48x1xf32>
      %86 = vector.broadcast %85 : vector<48x1xf32> to vector<48x32xf32>
      %87 = arith.subf %arg14, %86 : vector<48x32xf32>
      %88 = arith.mulf %87, %87 : vector<48x32xf32>
      %cst_31 = arith.constant dense<0.000000e+00> : vector<48xf32>
      %89 = vector.multi_reduction <add>, %88, %cst_31 [1] : vector<48x32xf32> to vector<48xf32>
      %90 = vector.shape_cast %89 : vector<48xf32> to vector<48x1xf32>
      %cst_32 = arith.constant 3.200000e+01 : f32
      %91 = vector.broadcast %cst_32 : f32 to vector<48x1xf32>
      %92 = arith.divf %90, %91 : vector<48x1xf32>
      %93 = vector.broadcast %85 : vector<48x1xf32> to vector<48x32xf32>
      %94 = arith.subf %arg14, %93 : vector<48x32xf32>
      %cst_33 = arith.constant 9.99999997E-7 : f32
      %95 = vector.broadcast %cst_33 : f32 to vector<48x1xf32>
      %96 = arith.addf %92, %95 : vector<48x1xf32>
      %97 = math.rsqrt %96 : vector<48x1xf32>
      %98 = vector.broadcast %97 : vector<48x1xf32> to vector<48x32xf32>
      %99 = arith.mulf %94, %98 : vector<48x32xf32>
      %100 = vector.broadcast %76 : vector<1x32xf32> to vector<48x32xf32>
      %101 = arith.mulf %99, %100 : vector<48x32xf32>
      %102 = vector.broadcast %77 : vector<1x32xf32> to vector<48x32xf32>
      %103 = arith.addf %101, %102 : vector<48x32xf32>
      %104 = arith.index_cast %arg13 : i32 to index
      %c0_34 = arith.constant 0 : index
      %c0_35 = arith.constant 0 : index
      %105 = vector.load %arg5[%104, %c0_34, %c0_35] : memref<12x32x96xf32, #tpu.memory_space<vmem>>, vector<1x32x96xf32>
      %106 = vector.shape_cast %105 : vector<1x32x96xf32> to vector<32x96xf32>
      %cst_36 = arith.constant dense<0.000000e+00> : vector<48x96xf32>
      %107 = tpu.matmul %103, %106, %cst_36 {dimension_numbers = #tpu.dot_dimension_numbers<[1], [0], [0], [1], [0, 0, 1, 1], [], []>} : vector<48x32xf32>, vector<32x96xf32>, vector<48x96xf32> -> vector<48x96xf32>
      %108 = arith.index_cast %arg13 : i32 to index
      %c0_37 = arith.constant 0 : index
      %c0_38 = arith.constant 0 : index
      %109 = vector.load %arg6[%108, %c0_37, %c0_38] : memref<12x1x96xf32, #tpu.memory_space<vmem>>, vector<1x1x96xf32>
      %110 = vector.shape_cast %109 : vector<1x1x96xf32> to vector<1x96xf32>
      %111 = vector.broadcast %110 : vector<1x96xf32> to vector<48x96xf32>
      %112 = arith.addf %107, %111 : vector<48x96xf32>
      %113 = vector.extract_strided_slice %112 {offsets = [0, 0], sizes = [48, 16], strides = [1, 1]} : vector<48x96xf32> to vector<48x16xf32>
      %114 = vector.extract_strided_slice %112 {offsets = [0, 32], sizes = [48, 16], strides = [1, 1]} : vector<48x96xf32> to vector<48x16xf32>
      %115 = vector.extract_strided_slice %112 {offsets = [0, 64], sizes = [48, 16], strides = [1, 1]} : vector<48x96xf32> to vector<48x16xf32>
      %cst_39 = arith.constant dense<0.000000e+00> : vector<48x48xf32>
      %116 = tpu.matmul %113, %114, %cst_39 {dimension_numbers = #tpu.dot_dimension_numbers<[1], [1], [0], [0], [0, 0, 1, 0], [], []>} : vector<48x16xf32>, vector<48x16xf32>, vector<48x48xf32> -> vector<48x48xf32>
      %cst_40 = arith.constant 2.500000e-01 : f32
      %117 = vector.broadcast %cst_40 : f32 to vector<48x48xf32>
      %118 = arith.mulf %116, %117 : vector<48x48xf32>
      %c0_41 = arith.constant 0 : index
      %c0_42 = arith.constant 0 : index
      %119 = vector.load %arg4[%c0_41, %c0_42] : memref<48x48xf32, #tpu.memory_space<vmem>>, vector<48x48xf32>
      %120 = arith.addf %118, %119 : vector<48x48xf32>
      %cst_43 = arith.constant dense<0xFF800000> : vector<48xf32>
      %121 = vector.multi_reduction <maximumf>, %120, %cst_43 [1] : vector<48x48xf32> to vector<48xf32>
      %122 = vector.shape_cast %121 : vector<48xf32> to vector<48x1xf32>
      %123 = vector.broadcast %122 : vector<48x1xf32> to vector<48x48xf32>
      %124 = arith.subf %120, %123 : vector<48x48xf32>
      %125 = math.exp %124 : vector<48x48xf32>
      %cst_44 = arith.constant dense<0.000000e+00> : vector<48xf32>
      %126 = vector.multi_reduction <add>, %125, %cst_44 [1] : vector<48x48xf32> to vector<48xf32>
      %127 = vector.shape_cast %126 : vector<48xf32> to vector<48x1xf32>
      %128 = vector.broadcast %127 : vector<48x1xf32> to vector<48x48xf32>
      %129 = arith.divf %125, %128 : vector<48x48xf32>
      %cst_45 = arith.constant dense<0.000000e+00> : vector<48x16xf32>
      %130 = tpu.matmul %129, %115, %cst_45 {dimension_numbers = #tpu.dot_dimension_numbers<[1], [0], [0], [1], [0, 0, 1, 1], [], []>} : vector<48x48xf32>, vector<48x16xf32>, vector<48x16xf32> -> vector<48x16xf32>
      %131 = vector.extract_strided_slice %112 {offsets = [0, 16], sizes = [48, 16], strides = [1, 1]} : vector<48x96xf32> to vector<48x16xf32>
      %132 = vector.extract_strided_slice %112 {offsets = [0, 48], sizes = [48, 16], strides = [1, 1]} : vector<48x96xf32> to vector<48x16xf32>
      %133 = vector.extract_strided_slice %112 {offsets = [0, 80], sizes = [48, 16], strides = [1, 1]} : vector<48x96xf32> to vector<48x16xf32>
      %cst_46 = arith.constant dense<0.000000e+00> : vector<48x48xf32>
      %134 = tpu.matmul %131, %132, %cst_46 {dimension_numbers = #tpu.dot_dimension_numbers<[1], [1], [0], [0], [0, 0, 1, 0], [], []>} : vector<48x16xf32>, vector<48x16xf32>, vector<48x48xf32> -> vector<48x48xf32>
      %cst_47 = arith.constant 2.500000e-01 : f32
      %135 = vector.broadcast %cst_47 : f32 to vector<48x48xf32>
      %136 = arith.mulf %134, %135 : vector<48x48xf32>
      %c0_48 = arith.constant 0 : index
      %c0_49 = arith.constant 0 : index
      %137 = vector.load %arg4[%c0_48, %c0_49] : memref<48x48xf32, #tpu.memory_space<vmem>>, vector<48x48xf32>
      %138 = arith.addf %136, %137 : vector<48x48xf32>
      %cst_50 = arith.constant dense<0xFF800000> : vector<48xf32>
      %139 = vector.multi_reduction <maximumf>, %138, %cst_50 [1] : vector<48x48xf32> to vector<48xf32>
      %140 = vector.shape_cast %139 : vector<48xf32> to vector<48x1xf32>
      %141 = vector.broadcast %140 : vector<48x1xf32> to vector<48x48xf32>
      %142 = arith.subf %138, %141 : vector<48x48xf32>
      %143 = math.exp %142 : vector<48x48xf32>
      %cst_51 = arith.constant dense<0.000000e+00> : vector<48xf32>
      %144 = vector.multi_reduction <add>, %143, %cst_51 [1] : vector<48x48xf32> to vector<48xf32>
      %145 = vector.shape_cast %144 : vector<48xf32> to vector<48x1xf32>
      %146 = vector.broadcast %145 : vector<48x1xf32> to vector<48x48xf32>
      %147 = arith.divf %143, %146 : vector<48x48xf32>
      %cst_52 = arith.constant dense<0.000000e+00> : vector<48x16xf32>
      %148 = tpu.matmul %147, %133, %cst_52 {dimension_numbers = #tpu.dot_dimension_numbers<[1], [0], [0], [1], [0, 0, 1, 1], [], []>} : vector<48x48xf32>, vector<48x16xf32>, vector<48x16xf32> -> vector<48x16xf32>
      %149 = tpu.concatenate %130, %148 in 1 : vector<48x16xf32>, vector<48x16xf32> -> vector<48x32xf32>
      %150 = arith.index_cast %arg13 : i32 to index
      %c0_53 = arith.constant 0 : index
      %c0_54 = arith.constant 0 : index
      %151 = vector.load %arg7[%150, %c0_53, %c0_54] : memref<12x32x32xf32, #tpu.memory_space<vmem>>, vector<1x32x32xf32>
      %152 = vector.shape_cast %151 : vector<1x32x32xf32> to vector<32x32xf32>
      %cst_55 = arith.constant dense<0.000000e+00> : vector<48x32xf32>
      %153 = tpu.matmul %149, %152, %cst_55 {dimension_numbers = #tpu.dot_dimension_numbers<[1], [0], [0], [1], [0, 0, 1, 1], [], []>} : vector<48x32xf32>, vector<32x32xf32>, vector<48x32xf32> -> vector<48x32xf32>
      %154 = arith.addf %arg14, %153 : vector<48x32xf32>
      %155 = vector.broadcast %78 : vector<1x32xf32> to vector<48x32xf32>
      %156 = arith.addf %154, %155 : vector<48x32xf32>
      %cst_56 = arith.constant dense<0.000000e+00> : vector<48xf32>
      %157 = vector.multi_reduction <add>, %156, %cst_56 [1] : vector<48x32xf32> to vector<48xf32>
      %158 = vector.shape_cast %157 : vector<48xf32> to vector<48x1xf32>
      %cst_57 = arith.constant 3.200000e+01 : f32
      %159 = vector.broadcast %cst_57 : f32 to vector<48x1xf32>
      %160 = arith.divf %158, %159 : vector<48x1xf32>
      %161 = vector.broadcast %160 : vector<48x1xf32> to vector<48x32xf32>
      %162 = arith.subf %156, %161 : vector<48x32xf32>
      %163 = arith.mulf %162, %162 : vector<48x32xf32>
      %cst_58 = arith.constant dense<0.000000e+00> : vector<48xf32>
      %164 = vector.multi_reduction <add>, %163, %cst_58 [1] : vector<48x32xf32> to vector<48xf32>
      %165 = vector.shape_cast %164 : vector<48xf32> to vector<48x1xf32>
      %cst_59 = arith.constant 3.200000e+01 : f32
      %166 = vector.broadcast %cst_59 : f32 to vector<48x1xf32>
      %167 = arith.divf %165, %166 : vector<48x1xf32>
      %168 = vector.broadcast %160 : vector<48x1xf32> to vector<48x32xf32>
      %169 = arith.subf %156, %168 : vector<48x32xf32>
      %cst_60 = arith.constant 9.99999997E-7 : f32
      %170 = vector.broadcast %cst_60 : f32 to vector<48x1xf32>
      %171 = arith.addf %167, %170 : vector<48x1xf32>
      %172 = math.rsqrt %171 : vector<48x1xf32>
      %173 = vector.broadcast %172 : vector<48x1xf32> to vector<48x32xf32>
      %174 = arith.mulf %169, %173 : vector<48x32xf32>
      %175 = vector.broadcast %79 : vector<1x32xf32> to vector<48x32xf32>
      %176 = arith.mulf %174, %175 : vector<48x32xf32>
      %177 = vector.broadcast %80 : vector<1x32xf32> to vector<48x32xf32>
      %178 = arith.addf %176, %177 : vector<48x32xf32>
      %179 = arith.index_cast %arg13 : i32 to index
      %c0_61 = arith.constant 0 : index
      %c0_62 = arith.constant 0 : index
      %180 = vector.load %arg9[%179, %c0_61, %c0_62] : memref<12x32x128xf32, #tpu.memory_space<vmem>>, vector<1x32x128xf32>
      %181 = vector.shape_cast %180 : vector<1x32x128xf32> to vector<32x128xf32>
      %cst_63 = arith.constant dense<0.000000e+00> : vector<48x128xf32>
      %182 = tpu.matmul %178, %181, %cst_63 {dimension_numbers = #tpu.dot_dimension_numbers<[1], [0], [0], [1], [0, 0, 1, 1], [], []>} : vector<48x32xf32>, vector<32x128xf32>, vector<48x128xf32> -> vector<48x128xf32>
      %183 = arith.index_cast %arg13 : i32 to index
      %c0_64 = arith.constant 0 : index
      %c0_65 = arith.constant 0 : index
      %184 = vector.load %arg10[%183, %c0_64, %c0_65] : memref<12x1x128xf32, #tpu.memory_space<vmem>>, vector<1x1x128xf32>
      %185 = vector.shape_cast %184 : vector<1x1x128xf32> to vector<1x128xf32>
      %186 = vector.broadcast %185 : vector<1x128xf32> to vector<48x128xf32>
      %187 = arith.addf %182, %186 : vector<48x128xf32>
      %188 = arith.mulf %187, %187 : vector<48x128xf32>
      %189 = arith.mulf %187, %188 : vector<48x128xf32>
      %cst_66 = arith.constant 4.471500e-02 : f32
      %190 = vector.broadcast %cst_66 : f32 to vector<48x128xf32>
      %191 = arith.mulf %190, %189 : vector<48x128xf32>
      %192 = arith.addf %187, %191 : vector<48x128xf32>
      %cst_67 = arith.constant 0.797884583 : f32
      %193 = vector.broadcast %cst_67 : f32 to vector<48x128xf32>
      %194 = arith.mulf %193, %192 : vector<48x128xf32>
      %195 = math.tanh %194 : vector<48x128xf32>
      %cst_68 = arith.constant 1.000000e+00 : f32
      %196 = vector.broadcast %cst_68 : f32 to vector<48x128xf32>
      %197 = arith.addf %196, %195 : vector<48x128xf32>
      %cst_69 = arith.constant 5.000000e-01 : f32
      %198 = vector.broadcast %cst_69 : f32 to vector<48x128xf32>
      %199 = arith.mulf %198, %197 : vector<48x128xf32>
      %200 = arith.mulf %187, %199 : vector<48x128xf32>
      %201 = arith.index_cast %arg13 : i32 to index
      %c0_70 = arith.constant 0 : index
      %c0_71 = arith.constant 0 : index
      %202 = vector.load %arg11[%201, %c0_70, %c0_71] : memref<12x128x32xf32, #tpu.memory_space<vmem>>, vector<1x128x32xf32>
      %203 = vector.shape_cast %202 : vector<1x128x32xf32> to vector<128x32xf32>
      %cst_72 = arith.constant dense<0.000000e+00> : vector<48x32xf32>
      %204 = tpu.matmul %200, %203, %cst_72 {dimension_numbers = #tpu.dot_dimension_numbers<[1], [0], [0], [1], [0, 0, 1, 1], [], []>} : vector<48x128xf32>, vector<128x32xf32>, vector<48x32xf32> -> vector<48x32xf32>
      %205 = arith.addf %156, %204 : vector<48x32xf32>
      %206 = vector.broadcast %81 : vector<1x32xf32> to vector<48x32xf32>
      %207 = arith.addf %205, %206 : vector<48x32xf32>
      scf.yield %207 : vector<48x32xf32>
    }
    %c3_i32_8 = arith.constant 3 : i32
    %19 = vector.extract_strided_slice %18 {offsets = [8, 0], sizes = [16, 32], strides = [1, 1]} : vector<48x32xf32> to vector<16x32xf32>
    %20 = vector.extract_strided_slice %18 {offsets = [0, 0], sizes = [1, 32], strides = [1, 1]} : vector<48x32xf32> to vector<1x32xf32>
    %21 = vector.broadcast %20 : vector<1x32xf32> to vector<16x32xf32>
    %22 = arith.addf %19, %21 : vector<16x32xf32>
    %23 = vector.extract_strided_slice %18 {offsets = [32, 0], sizes = [16, 32], strides = [1, 1]} : vector<48x32xf32> to vector<16x32xf32>
    %24 = vector.extract_strided_slice %18 {offsets = [24, 0], sizes = [1, 32], strides = [1, 1]} : vector<48x32xf32> to vector<1x32xf32>
    %25 = vector.broadcast %24 : vector<1x32xf32> to vector<16x32xf32>
    %26 = arith.addf %23, %25 : vector<16x32xf32>
    %27 = tpu.concatenate %22, %26 in 0 : vector<16x32xf32>, vector<16x32xf32> -> vector<32x32xf32>
    %c1 = arith.constant 1 : index
    %c0_9 = arith.constant 0 : index
    %c0_10 = arith.constant 0 : index
    %28 = vector.load %arg12[%c1, %c0_9, %c0_10] : memref<5x32x32xf32, #tpu.memory_space<vmem>>, vector<1x32x32xf32>
    %29 = vector.shape_cast %28 : vector<1x32x32xf32> to vector<32x32xf32>
    %30 = vector.shape_cast %27 : vector<32x32xf32> to vector<1x32x32xf32>
    tpu.vector_store %arg12[%c1, %c0_9, %c0_10], %30 {strides = array<i32>} : memref<5x32x32xf32, #tpu.memory_space<vmem>>, vector<1x32x32xf32>,
    %c3_i32_11 = arith.constant 3 : i32
    %c3_i32_12 = arith.constant 3 : i32
    %31 = arith.addi %c3_i32_11, %c3_i32_12 : i32
    %c1_i32_13 = arith.constant 1 : i32
    %32 = scf.for %arg13 = %c3_i32_11 to %31 step %c1_i32_13 iter_args(%arg14 = %18) -> (vector<48x32xf32>)  : i32 {
      %73 = arith.index_cast %arg13 : i32 to index
      %c0_27 = arith.constant 0 : index
      %c0_28 = arith.constant 0 : index
      %74 = vector.load %arg8[%73, %c0_27, %c0_28] : memref<12x6x32xf32, #tpu.memory_space<vmem>>, vector<1x6x32xf32>
      %75 = vector.shape_cast %74 : vector<1x6x32xf32> to vector<6x32xf32>
      %76 = vector.extract_strided_slice %75 {offsets = [0, 0], sizes = [1, 32], strides = [1, 1]} : vector<6x32xf32> to vector<1x32xf32>
      %77 = vector.extract_strided_slice %75 {offsets = [1, 0], sizes = [1, 32], strides = [1, 1]} : vector<6x32xf32> to vector<1x32xf32>
      %78 = vector.extract_strided_slice %75 {offsets = [2, 0], sizes = [1, 32], strides = [1, 1]} : vector<6x32xf32> to vector<1x32xf32>
      %79 = vector.extract_strided_slice %75 {offsets = [3, 0], sizes = [1, 32], strides = [1, 1]} : vector<6x32xf32> to vector<1x32xf32>
      %80 = vector.extract_strided_slice %75 {offsets = [4, 0], sizes = [1, 32], strides = [1, 1]} : vector<6x32xf32> to vector<1x32xf32>
      %81 = vector.extract_strided_slice %75 {offsets = [5, 0], sizes = [1, 32], strides = [1, 1]} : vector<6x32xf32> to vector<1x32xf32>
      %cst_29 = arith.constant dense<0.000000e+00> : vector<48xf32>
      %82 = vector.multi_reduction <add>, %arg14, %cst_29 [1] : vector<48x32xf32> to vector<48xf32>
      %83 = vector.shape_cast %82 : vector<48xf32> to vector<48x1xf32>
      %cst_30 = arith.constant 3.200000e+01 : f32
      %84 = vector.broadcast %cst_30 : f32 to vector<48x1xf32>
      %85 = arith.divf %83, %84 : vector<48x1xf32>
      %86 = vector.broadcast %85 : vector<48x1xf32> to vector<48x32xf32>
      %87 = arith.subf %arg14, %86 : vector<48x32xf32>
      %88 = arith.mulf %87, %87 : vector<48x32xf32>
      %cst_31 = arith.constant dense<0.000000e+00> : vector<48xf32>
      %89 = vector.multi_reduction <add>, %88, %cst_31 [1] : vector<48x32xf32> to vector<48xf32>
      %90 = vector.shape_cast %89 : vector<48xf32> to vector<48x1xf32>
      %cst_32 = arith.constant 3.200000e+01 : f32
      %91 = vector.broadcast %cst_32 : f32 to vector<48x1xf32>
      %92 = arith.divf %90, %91 : vector<48x1xf32>
      %93 = vector.broadcast %85 : vector<48x1xf32> to vector<48x32xf32>
      %94 = arith.subf %arg14, %93 : vector<48x32xf32>
      %cst_33 = arith.constant 9.99999997E-7 : f32
      %95 = vector.broadcast %cst_33 : f32 to vector<48x1xf32>
      %96 = arith.addf %92, %95 : vector<48x1xf32>
      %97 = math.rsqrt %96 : vector<48x1xf32>
      %98 = vector.broadcast %97 : vector<48x1xf32> to vector<48x32xf32>
      %99 = arith.mulf %94, %98 : vector<48x32xf32>
      %100 = vector.broadcast %76 : vector<1x32xf32> to vector<48x32xf32>
      %101 = arith.mulf %99, %100 : vector<48x32xf32>
      %102 = vector.broadcast %77 : vector<1x32xf32> to vector<48x32xf32>
      %103 = arith.addf %101, %102 : vector<48x32xf32>
      %104 = arith.index_cast %arg13 : i32 to index
      %c0_34 = arith.constant 0 : index
      %c0_35 = arith.constant 0 : index
      %105 = vector.load %arg5[%104, %c0_34, %c0_35] : memref<12x32x96xf32, #tpu.memory_space<vmem>>, vector<1x32x96xf32>
      %106 = vector.shape_cast %105 : vector<1x32x96xf32> to vector<32x96xf32>
      %cst_36 = arith.constant dense<0.000000e+00> : vector<48x96xf32>
      %107 = tpu.matmul %103, %106, %cst_36 {dimension_numbers = #tpu.dot_dimension_numbers<[1], [0], [0], [1], [0, 0, 1, 1], [], []>} : vector<48x32xf32>, vector<32x96xf32>, vector<48x96xf32> -> vector<48x96xf32>
      %108 = arith.index_cast %arg13 : i32 to index
      %c0_37 = arith.constant 0 : index
      %c0_38 = arith.constant 0 : index
      %109 = vector.load %arg6[%108, %c0_37, %c0_38] : memref<12x1x96xf32, #tpu.memory_space<vmem>>, vector<1x1x96xf32>
      %110 = vector.shape_cast %109 : vector<1x1x96xf32> to vector<1x96xf32>
      %111 = vector.broadcast %110 : vector<1x96xf32> to vector<48x96xf32>
      %112 = arith.addf %107, %111 : vector<48x96xf32>
      %113 = vector.extract_strided_slice %112 {offsets = [0, 0], sizes = [48, 16], strides = [1, 1]} : vector<48x96xf32> to vector<48x16xf32>
      %114 = vector.extract_strided_slice %112 {offsets = [0, 32], sizes = [48, 16], strides = [1, 1]} : vector<48x96xf32> to vector<48x16xf32>
      %115 = vector.extract_strided_slice %112 {offsets = [0, 64], sizes = [48, 16], strides = [1, 1]} : vector<48x96xf32> to vector<48x16xf32>
      %cst_39 = arith.constant dense<0.000000e+00> : vector<48x48xf32>
      %116 = tpu.matmul %113, %114, %cst_39 {dimension_numbers = #tpu.dot_dimension_numbers<[1], [1], [0], [0], [0, 0, 1, 0], [], []>} : vector<48x16xf32>, vector<48x16xf32>, vector<48x48xf32> -> vector<48x48xf32>
      %cst_40 = arith.constant 2.500000e-01 : f32
      %117 = vector.broadcast %cst_40 : f32 to vector<48x48xf32>
      %118 = arith.mulf %116, %117 : vector<48x48xf32>
      %c0_41 = arith.constant 0 : index
      %c0_42 = arith.constant 0 : index
      %119 = vector.load %arg4[%c0_41, %c0_42] : memref<48x48xf32, #tpu.memory_space<vmem>>, vector<48x48xf32>
      %120 = arith.addf %118, %119 : vector<48x48xf32>
      %cst_43 = arith.constant dense<0xFF800000> : vector<48xf32>
      %121 = vector.multi_reduction <maximumf>, %120, %cst_43 [1] : vector<48x48xf32> to vector<48xf32>
      %122 = vector.shape_cast %121 : vector<48xf32> to vector<48x1xf32>
      %123 = vector.broadcast %122 : vector<48x1xf32> to vector<48x48xf32>
      %124 = arith.subf %120, %123 : vector<48x48xf32>
      %125 = math.exp %124 : vector<48x48xf32>
      %cst_44 = arith.constant dense<0.000000e+00> : vector<48xf32>
      %126 = vector.multi_reduction <add>, %125, %cst_44 [1] : vector<48x48xf32> to vector<48xf32>
      %127 = vector.shape_cast %126 : vector<48xf32> to vector<48x1xf32>
      %128 = vector.broadcast %127 : vector<48x1xf32> to vector<48x48xf32>
      %129 = arith.divf %125, %128 : vector<48x48xf32>
      %cst_45 = arith.constant dense<0.000000e+00> : vector<48x16xf32>
      %130 = tpu.matmul %129, %115, %cst_45 {dimension_numbers = #tpu.dot_dimension_numbers<[1], [0], [0], [1], [0, 0, 1, 1], [], []>} : vector<48x48xf32>, vector<48x16xf32>, vector<48x16xf32> -> vector<48x16xf32>
      %131 = vector.extract_strided_slice %112 {offsets = [0, 16], sizes = [48, 16], strides = [1, 1]} : vector<48x96xf32> to vector<48x16xf32>
      %132 = vector.extract_strided_slice %112 {offsets = [0, 48], sizes = [48, 16], strides = [1, 1]} : vector<48x96xf32> to vector<48x16xf32>
      %133 = vector.extract_strided_slice %112 {offsets = [0, 80], sizes = [48, 16], strides = [1, 1]} : vector<48x96xf32> to vector<48x16xf32>
      %cst_46 = arith.constant dense<0.000000e+00> : vector<48x48xf32>
      %134 = tpu.matmul %131, %132, %cst_46 {dimension_numbers = #tpu.dot_dimension_numbers<[1], [1], [0], [0], [0, 0, 1, 0], [], []>} : vector<48x16xf32>, vector<48x16xf32>, vector<48x48xf32> -> vector<48x48xf32>
      %cst_47 = arith.constant 2.500000e-01 : f32
      %135 = vector.broadcast %cst_47 : f32 to vector<48x48xf32>
      %136 = arith.mulf %134, %135 : vector<48x48xf32>
      %c0_48 = arith.constant 0 : index
      %c0_49 = arith.constant 0 : index
      %137 = vector.load %arg4[%c0_48, %c0_49] : memref<48x48xf32, #tpu.memory_space<vmem>>, vector<48x48xf32>
      %138 = arith.addf %136, %137 : vector<48x48xf32>
      %cst_50 = arith.constant dense<0xFF800000> : vector<48xf32>
      %139 = vector.multi_reduction <maximumf>, %138, %cst_50 [1] : vector<48x48xf32> to vector<48xf32>
      %140 = vector.shape_cast %139 : vector<48xf32> to vector<48x1xf32>
      %141 = vector.broadcast %140 : vector<48x1xf32> to vector<48x48xf32>
      %142 = arith.subf %138, %141 : vector<48x48xf32>
      %143 = math.exp %142 : vector<48x48xf32>
      %cst_51 = arith.constant dense<0.000000e+00> : vector<48xf32>
      %144 = vector.multi_reduction <add>, %143, %cst_51 [1] : vector<48x48xf32> to vector<48xf32>
      %145 = vector.shape_cast %144 : vector<48xf32> to vector<48x1xf32>
      %146 = vector.broadcast %145 : vector<48x1xf32> to vector<48x48xf32>
      %147 = arith.divf %143, %146 : vector<48x48xf32>
      %cst_52 = arith.constant dense<0.000000e+00> : vector<48x16xf32>
      %148 = tpu.matmul %147, %133, %cst_52 {dimension_numbers = #tpu.dot_dimension_numbers<[1], [0], [0], [1], [0, 0, 1, 1], [], []>} : vector<48x48xf32>, vector<48x16xf32>, vector<48x16xf32> -> vector<48x16xf32>
      %149 = tpu.concatenate %130, %148 in 1 : vector<48x16xf32>, vector<48x16xf32> -> vector<48x32xf32>
      %150 = arith.index_cast %arg13 : i32 to index
      %c0_53 = arith.constant 0 : index
      %c0_54 = arith.constant 0 : index
      %151 = vector.load %arg7[%150, %c0_53, %c0_54] : memref<12x32x32xf32, #tpu.memory_space<vmem>>, vector<1x32x32xf32>
      %152 = vector.shape_cast %151 : vector<1x32x32xf32> to vector<32x32xf32>
      %cst_55 = arith.constant dense<0.000000e+00> : vector<48x32xf32>
      %153 = tpu.matmul %149, %152, %cst_55 {dimension_numbers = #tpu.dot_dimension_numbers<[1], [0], [0], [1], [0, 0, 1, 1], [], []>} : vector<48x32xf32>, vector<32x32xf32>, vector<48x32xf32> -> vector<48x32xf32>
      %154 = arith.addf %arg14, %153 : vector<48x32xf32>
      %155 = vector.broadcast %78 : vector<1x32xf32> to vector<48x32xf32>
      %156 = arith.addf %154, %155 : vector<48x32xf32>
      %cst_56 = arith.constant dense<0.000000e+00> : vector<48xf32>
      %157 = vector.multi_reduction <add>, %156, %cst_56 [1] : vector<48x32xf32> to vector<48xf32>
      %158 = vector.shape_cast %157 : vector<48xf32> to vector<48x1xf32>
      %cst_57 = arith.constant 3.200000e+01 : f32
      %159 = vector.broadcast %cst_57 : f32 to vector<48x1xf32>
      %160 = arith.divf %158, %159 : vector<48x1xf32>
      %161 = vector.broadcast %160 : vector<48x1xf32> to vector<48x32xf32>
      %162 = arith.subf %156, %161 : vector<48x32xf32>
      %163 = arith.mulf %162, %162 : vector<48x32xf32>
      %cst_58 = arith.constant dense<0.000000e+00> : vector<48xf32>
      %164 = vector.multi_reduction <add>, %163, %cst_58 [1] : vector<48x32xf32> to vector<48xf32>
      %165 = vector.shape_cast %164 : vector<48xf32> to vector<48x1xf32>
      %cst_59 = arith.constant 3.200000e+01 : f32
      %166 = vector.broadcast %cst_59 : f32 to vector<48x1xf32>
      %167 = arith.divf %165, %166 : vector<48x1xf32>
      %168 = vector.broadcast %160 : vector<48x1xf32> to vector<48x32xf32>
      %169 = arith.subf %156, %168 : vector<48x32xf32>
      %cst_60 = arith.constant 9.99999997E-7 : f32
      %170 = vector.broadcast %cst_60 : f32 to vector<48x1xf32>
      %171 = arith.addf %167, %170 : vector<48x1xf32>
      %172 = math.rsqrt %171 : vector<48x1xf32>
      %173 = vector.broadcast %172 : vector<48x1xf32> to vector<48x32xf32>
      %174 = arith.mulf %169, %173 : vector<48x32xf32>
      %175 = vector.broadcast %79 : vector<1x32xf32> to vector<48x32xf32>
      %176 = arith.mulf %174, %175 : vector<48x32xf32>
      %177 = vector.broadcast %80 : vector<1x32xf32> to vector<48x32xf32>
      %178 = arith.addf %176, %177 : vector<48x32xf32>
      %179 = arith.index_cast %arg13 : i32 to index
      %c0_61 = arith.constant 0 : index
      %c0_62 = arith.constant 0 : index
      %180 = vector.load %arg9[%179, %c0_61, %c0_62] : memref<12x32x128xf32, #tpu.memory_space<vmem>>, vector<1x32x128xf32>
      %181 = vector.shape_cast %180 : vector<1x32x128xf32> to vector<32x128xf32>
      %cst_63 = arith.constant dense<0.000000e+00> : vector<48x128xf32>
      %182 = tpu.matmul %178, %181, %cst_63 {dimension_numbers = #tpu.dot_dimension_numbers<[1], [0], [0], [1], [0, 0, 1, 1], [], []>} : vector<48x32xf32>, vector<32x128xf32>, vector<48x128xf32> -> vector<48x128xf32>
      %183 = arith.index_cast %arg13 : i32 to index
      %c0_64 = arith.constant 0 : index
      %c0_65 = arith.constant 0 : index
      %184 = vector.load %arg10[%183, %c0_64, %c0_65] : memref<12x1x128xf32, #tpu.memory_space<vmem>>, vector<1x1x128xf32>
      %185 = vector.shape_cast %184 : vector<1x1x128xf32> to vector<1x128xf32>
      %186 = vector.broadcast %185 : vector<1x128xf32> to vector<48x128xf32>
      %187 = arith.addf %182, %186 : vector<48x128xf32>
      %188 = arith.mulf %187, %187 : vector<48x128xf32>
      %189 = arith.mulf %187, %188 : vector<48x128xf32>
      %cst_66 = arith.constant 4.471500e-02 : f32
      %190 = vector.broadcast %cst_66 : f32 to vector<48x128xf32>
      %191 = arith.mulf %190, %189 : vector<48x128xf32>
      %192 = arith.addf %187, %191 : vector<48x128xf32>
      %cst_67 = arith.constant 0.797884583 : f32
      %193 = vector.broadcast %cst_67 : f32 to vector<48x128xf32>
      %194 = arith.mulf %193, %192 : vector<48x128xf32>
      %195 = math.tanh %194 : vector<48x128xf32>
      %cst_68 = arith.constant 1.000000e+00 : f32
      %196 = vector.broadcast %cst_68 : f32 to vector<48x128xf32>
      %197 = arith.addf %196, %195 : vector<48x128xf32>
      %cst_69 = arith.constant 5.000000e-01 : f32
      %198 = vector.broadcast %cst_69 : f32 to vector<48x128xf32>
      %199 = arith.mulf %198, %197 : vector<48x128xf32>
      %200 = arith.mulf %187, %199 : vector<48x128xf32>
      %201 = arith.index_cast %arg13 : i32 to index
      %c0_70 = arith.constant 0 : index
      %c0_71 = arith.constant 0 : index
      %202 = vector.load %arg11[%201, %c0_70, %c0_71] : memref<12x128x32xf32, #tpu.memory_space<vmem>>, vector<1x128x32xf32>
      %203 = vector.shape_cast %202 : vector<1x128x32xf32> to vector<128x32xf32>
      %cst_72 = arith.constant dense<0.000000e+00> : vector<48x32xf32>
      %204 = tpu.matmul %200, %203, %cst_72 {dimension_numbers = #tpu.dot_dimension_numbers<[1], [0], [0], [1], [0, 0, 1, 1], [], []>} : vector<48x128xf32>, vector<128x32xf32>, vector<48x32xf32> -> vector<48x32xf32>
      %205 = arith.addf %156, %204 : vector<48x32xf32>
      %206 = vector.broadcast %81 : vector<1x32xf32> to vector<48x32xf32>
      %207 = arith.addf %205, %206 : vector<48x32xf32>
      scf.yield %207 : vector<48x32xf32>
    }
    %c3_i32_14 = arith.constant 3 : i32
    %33 = vector.extract_strided_slice %32 {offsets = [8, 0], sizes = [16, 32], strides = [1, 1]} : vector<48x32xf32> to vector<16x32xf32>
    %34 = vector.extract_strided_slice %32 {offsets = [0, 0], sizes = [1, 32], strides = [1, 1]} : vector<48x32xf32> to vector<1x32xf32>
    %35 = vector.broadcast %34 : vector<1x32xf32> to vector<16x32xf32>
    %36 = arith.addf %33, %35 : vector<16x32xf32>
    %37 = vector.extract_strided_slice %32 {offsets = [32, 0], sizes = [16, 32], strides = [1, 1]} : vector<48x32xf32> to vector<16x32xf32>
    %38 = vector.extract_strided_slice %32 {offsets = [24, 0], sizes = [1, 32], strides = [1, 1]} : vector<48x32xf32> to vector<1x32xf32>
    %39 = vector.broadcast %38 : vector<1x32xf32> to vector<16x32xf32>
    %40 = arith.addf %37, %39 : vector<16x32xf32>
    %41 = tpu.concatenate %36, %40 in 0 : vector<16x32xf32>, vector<16x32xf32> -> vector<32x32xf32>
    %c2 = arith.constant 2 : index
    %c0_15 = arith.constant 0 : index
    %c0_16 = arith.constant 0 : index
    %42 = vector.load %arg12[%c2, %c0_15, %c0_16] : memref<5x32x32xf32, #tpu.memory_space<vmem>>, vector<1x32x32xf32>
    %43 = vector.shape_cast %42 : vector<1x32x32xf32> to vector<32x32xf32>
    %44 = vector.shape_cast %41 : vector<32x32xf32> to vector<1x32x32xf32>
    tpu.vector_store %arg12[%c2, %c0_15, %c0_16], %44 {strides = array<i32>} : memref<5x32x32xf32, #tpu.memory_space<vmem>>, vector<1x32x32xf32>,
    %c6_i32 = arith.constant 6 : i32
    %c3_i32_17 = arith.constant 3 : i32
    %45 = arith.addi %c6_i32, %c3_i32_17 : i32
    %c1_i32_18 = arith.constant 1 : i32
    %46 = scf.for %arg13 = %c6_i32 to %45 step %c1_i32_18 iter_args(%arg14 = %32) -> (vector<48x32xf32>)  : i32 {
      %73 = arith.index_cast %arg13 : i32 to index
      %c0_27 = arith.constant 0 : index
      %c0_28 = arith.constant 0 : index
      %74 = vector.load %arg8[%73, %c0_27, %c0_28] : memref<12x6x32xf32, #tpu.memory_space<vmem>>, vector<1x6x32xf32>
      %75 = vector.shape_cast %74 : vector<1x6x32xf32> to vector<6x32xf32>
      %76 = vector.extract_strided_slice %75 {offsets = [0, 0], sizes = [1, 32], strides = [1, 1]} : vector<6x32xf32> to vector<1x32xf32>
      %77 = vector.extract_strided_slice %75 {offsets = [1, 0], sizes = [1, 32], strides = [1, 1]} : vector<6x32xf32> to vector<1x32xf32>
      %78 = vector.extract_strided_slice %75 {offsets = [2, 0], sizes = [1, 32], strides = [1, 1]} : vector<6x32xf32> to vector<1x32xf32>
      %79 = vector.extract_strided_slice %75 {offsets = [3, 0], sizes = [1, 32], strides = [1, 1]} : vector<6x32xf32> to vector<1x32xf32>
      %80 = vector.extract_strided_slice %75 {offsets = [4, 0], sizes = [1, 32], strides = [1, 1]} : vector<6x32xf32> to vector<1x32xf32>
      %81 = vector.extract_strided_slice %75 {offsets = [5, 0], sizes = [1, 32], strides = [1, 1]} : vector<6x32xf32> to vector<1x32xf32>
      %cst_29 = arith.constant dense<0.000000e+00> : vector<48xf32>
      %82 = vector.multi_reduction <add>, %arg14, %cst_29 [1] : vector<48x32xf32> to vector<48xf32>
      %83 = vector.shape_cast %82 : vector<48xf32> to vector<48x1xf32>
      %cst_30 = arith.constant 3.200000e+01 : f32
      %84 = vector.broadcast %cst_30 : f32 to vector<48x1xf32>
      %85 = arith.divf %83, %84 : vector<48x1xf32>
      %86 = vector.broadcast %85 : vector<48x1xf32> to vector<48x32xf32>
      %87 = arith.subf %arg14, %86 : vector<48x32xf32>
      %88 = arith.mulf %87, %87 : vector<48x32xf32>
      %cst_31 = arith.constant dense<0.000000e+00> : vector<48xf32>
      %89 = vector.multi_reduction <add>, %88, %cst_31 [1] : vector<48x32xf32> to vector<48xf32>
      %90 = vector.shape_cast %89 : vector<48xf32> to vector<48x1xf32>
      %cst_32 = arith.constant 3.200000e+01 : f32
      %91 = vector.broadcast %cst_32 : f32 to vector<48x1xf32>
      %92 = arith.divf %90, %91 : vector<48x1xf32>
      %93 = vector.broadcast %85 : vector<48x1xf32> to vector<48x32xf32>
      %94 = arith.subf %arg14, %93 : vector<48x32xf32>
      %cst_33 = arith.constant 9.99999997E-7 : f32
      %95 = vector.broadcast %cst_33 : f32 to vector<48x1xf32>
      %96 = arith.addf %92, %95 : vector<48x1xf32>
      %97 = math.rsqrt %96 : vector<48x1xf32>
      %98 = vector.broadcast %97 : vector<48x1xf32> to vector<48x32xf32>
      %99 = arith.mulf %94, %98 : vector<48x32xf32>
      %100 = vector.broadcast %76 : vector<1x32xf32> to vector<48x32xf32>
      %101 = arith.mulf %99, %100 : vector<48x32xf32>
      %102 = vector.broadcast %77 : vector<1x32xf32> to vector<48x32xf32>
      %103 = arith.addf %101, %102 : vector<48x32xf32>
      %104 = arith.index_cast %arg13 : i32 to index
      %c0_34 = arith.constant 0 : index
      %c0_35 = arith.constant 0 : index
      %105 = vector.load %arg5[%104, %c0_34, %c0_35] : memref<12x32x96xf32, #tpu.memory_space<vmem>>, vector<1x32x96xf32>
      %106 = vector.shape_cast %105 : vector<1x32x96xf32> to vector<32x96xf32>
      %cst_36 = arith.constant dense<0.000000e+00> : vector<48x96xf32>
      %107 = tpu.matmul %103, %106, %cst_36 {dimension_numbers = #tpu.dot_dimension_numbers<[1], [0], [0], [1], [0, 0, 1, 1], [], []>} : vector<48x32xf32>, vector<32x96xf32>, vector<48x96xf32> -> vector<48x96xf32>
      %108 = arith.index_cast %arg13 : i32 to index
      %c0_37 = arith.constant 0 : index
      %c0_38 = arith.constant 0 : index
      %109 = vector.load %arg6[%108, %c0_37, %c0_38] : memref<12x1x96xf32, #tpu.memory_space<vmem>>, vector<1x1x96xf32>
      %110 = vector.shape_cast %109 : vector<1x1x96xf32> to vector<1x96xf32>
      %111 = vector.broadcast %110 : vector<1x96xf32> to vector<48x96xf32>
      %112 = arith.addf %107, %111 : vector<48x96xf32>
      %113 = vector.extract_strided_slice %112 {offsets = [0, 0], sizes = [48, 16], strides = [1, 1]} : vector<48x96xf32> to vector<48x16xf32>
      %114 = vector.extract_strided_slice %112 {offsets = [0, 32], sizes = [48, 16], strides = [1, 1]} : vector<48x96xf32> to vector<48x16xf32>
      %115 = vector.extract_strided_slice %112 {offsets = [0, 64], sizes = [48, 16], strides = [1, 1]} : vector<48x96xf32> to vector<48x16xf32>
      %cst_39 = arith.constant dense<0.000000e+00> : vector<48x48xf32>
      %116 = tpu.matmul %113, %114, %cst_39 {dimension_numbers = #tpu.dot_dimension_numbers<[1], [1], [0], [0], [0, 0, 1, 0], [], []>} : vector<48x16xf32>, vector<48x16xf32>, vector<48x48xf32> -> vector<48x48xf32>
      %cst_40 = arith.constant 2.500000e-01 : f32
      %117 = vector.broadcast %cst_40 : f32 to vector<48x48xf32>
      %118 = arith.mulf %116, %117 : vector<48x48xf32>
      %c0_41 = arith.constant 0 : index
      %c0_42 = arith.constant 0 : index
      %119 = vector.load %arg4[%c0_41, %c0_42] : memref<48x48xf32, #tpu.memory_space<vmem>>, vector<48x48xf32>
      %120 = arith.addf %118, %119 : vector<48x48xf32>
      %cst_43 = arith.constant dense<0xFF800000> : vector<48xf32>
      %121 = vector.multi_reduction <maximumf>, %120, %cst_43 [1] : vector<48x48xf32> to vector<48xf32>
      %122 = vector.shape_cast %121 : vector<48xf32> to vector<48x1xf32>
      %123 = vector.broadcast %122 : vector<48x1xf32> to vector<48x48xf32>
      %124 = arith.subf %120, %123 : vector<48x48xf32>
      %125 = math.exp %124 : vector<48x48xf32>
      %cst_44 = arith.constant dense<0.000000e+00> : vector<48xf32>
      %126 = vector.multi_reduction <add>, %125, %cst_44 [1] : vector<48x48xf32> to vector<48xf32>
      %127 = vector.shape_cast %126 : vector<48xf32> to vector<48x1xf32>
      %128 = vector.broadcast %127 : vector<48x1xf32> to vector<48x48xf32>
      %129 = arith.divf %125, %128 : vector<48x48xf32>
      %cst_45 = arith.constant dense<0.000000e+00> : vector<48x16xf32>
      %130 = tpu.matmul %129, %115, %cst_45 {dimension_numbers = #tpu.dot_dimension_numbers<[1], [0], [0], [1], [0, 0, 1, 1], [], []>} : vector<48x48xf32>, vector<48x16xf32>, vector<48x16xf32> -> vector<48x16xf32>
      %131 = vector.extract_strided_slice %112 {offsets = [0, 16], sizes = [48, 16], strides = [1, 1]} : vector<48x96xf32> to vector<48x16xf32>
      %132 = vector.extract_strided_slice %112 {offsets = [0, 48], sizes = [48, 16], strides = [1, 1]} : vector<48x96xf32> to vector<48x16xf32>
      %133 = vector.extract_strided_slice %112 {offsets = [0, 80], sizes = [48, 16], strides = [1, 1]} : vector<48x96xf32> to vector<48x16xf32>
      %cst_46 = arith.constant dense<0.000000e+00> : vector<48x48xf32>
      %134 = tpu.matmul %131, %132, %cst_46 {dimension_numbers = #tpu.dot_dimension_numbers<[1], [1], [0], [0], [0, 0, 1, 0], [], []>} : vector<48x16xf32>, vector<48x16xf32>, vector<48x48xf32> -> vector<48x48xf32>
      %cst_47 = arith.constant 2.500000e-01 : f32
      %135 = vector.broadcast %cst_47 : f32 to vector<48x48xf32>
      %136 = arith.mulf %134, %135 : vector<48x48xf32>
      %c0_48 = arith.constant 0 : index
      %c0_49 = arith.constant 0 : index
      %137 = vector.load %arg4[%c0_48, %c0_49] : memref<48x48xf32, #tpu.memory_space<vmem>>, vector<48x48xf32>
      %138 = arith.addf %136, %137 : vector<48x48xf32>
      %cst_50 = arith.constant dense<0xFF800000> : vector<48xf32>
      %139 = vector.multi_reduction <maximumf>, %138, %cst_50 [1] : vector<48x48xf32> to vector<48xf32>
      %140 = vector.shape_cast %139 : vector<48xf32> to vector<48x1xf32>
      %141 = vector.broadcast %140 : vector<48x1xf32> to vector<48x48xf32>
      %142 = arith.subf %138, %141 : vector<48x48xf32>
      %143 = math.exp %142 : vector<48x48xf32>
      %cst_51 = arith.constant dense<0.000000e+00> : vector<48xf32>
      %144 = vector.multi_reduction <add>, %143, %cst_51 [1] : vector<48x48xf32> to vector<48xf32>
      %145 = vector.shape_cast %144 : vector<48xf32> to vector<48x1xf32>
      %146 = vector.broadcast %145 : vector<48x1xf32> to vector<48x48xf32>
      %147 = arith.divf %143, %146 : vector<48x48xf32>
      %cst_52 = arith.constant dense<0.000000e+00> : vector<48x16xf32>
      %148 = tpu.matmul %147, %133, %cst_52 {dimension_numbers = #tpu.dot_dimension_numbers<[1], [0], [0], [1], [0, 0, 1, 1], [], []>} : vector<48x48xf32>, vector<48x16xf32>, vector<48x16xf32> -> vector<48x16xf32>
      %149 = tpu.concatenate %130, %148 in 1 : vector<48x16xf32>, vector<48x16xf32> -> vector<48x32xf32>
      %150 = arith.index_cast %arg13 : i32 to index
      %c0_53 = arith.constant 0 : index
      %c0_54 = arith.constant 0 : index
      %151 = vector.load %arg7[%150, %c0_53, %c0_54] : memref<12x32x32xf32, #tpu.memory_space<vmem>>, vector<1x32x32xf32>
      %152 = vector.shape_cast %151 : vector<1x32x32xf32> to vector<32x32xf32>
      %cst_55 = arith.constant dense<0.000000e+00> : vector<48x32xf32>
      %153 = tpu.matmul %149, %152, %cst_55 {dimension_numbers = #tpu.dot_dimension_numbers<[1], [0], [0], [1], [0, 0, 1, 1], [], []>} : vector<48x32xf32>, vector<32x32xf32>, vector<48x32xf32> -> vector<48x32xf32>
      %154 = arith.addf %arg14, %153 : vector<48x32xf32>
      %155 = vector.broadcast %78 : vector<1x32xf32> to vector<48x32xf32>
      %156 = arith.addf %154, %155 : vector<48x32xf32>
      %cst_56 = arith.constant dense<0.000000e+00> : vector<48xf32>
      %157 = vector.multi_reduction <add>, %156, %cst_56 [1] : vector<48x32xf32> to vector<48xf32>
      %158 = vector.shape_cast %157 : vector<48xf32> to vector<48x1xf32>
      %cst_57 = arith.constant 3.200000e+01 : f32
      %159 = vector.broadcast %cst_57 : f32 to vector<48x1xf32>
      %160 = arith.divf %158, %159 : vector<48x1xf32>
      %161 = vector.broadcast %160 : vector<48x1xf32> to vector<48x32xf32>
      %162 = arith.subf %156, %161 : vector<48x32xf32>
      %163 = arith.mulf %162, %162 : vector<48x32xf32>
      %cst_58 = arith.constant dense<0.000000e+00> : vector<48xf32>
      %164 = vector.multi_reduction <add>, %163, %cst_58 [1] : vector<48x32xf32> to vector<48xf32>
      %165 = vector.shape_cast %164 : vector<48xf32> to vector<48x1xf32>
      %cst_59 = arith.constant 3.200000e+01 : f32
      %166 = vector.broadcast %cst_59 : f32 to vector<48x1xf32>
      %167 = arith.divf %165, %166 : vector<48x1xf32>
      %168 = vector.broadcast %160 : vector<48x1xf32> to vector<48x32xf32>
      %169 = arith.subf %156, %168 : vector<48x32xf32>
      %cst_60 = arith.constant 9.99999997E-7 : f32
      %170 = vector.broadcast %cst_60 : f32 to vector<48x1xf32>
      %171 = arith.addf %167, %170 : vector<48x1xf32>
      %172 = math.rsqrt %171 : vector<48x1xf32>
      %173 = vector.broadcast %172 : vector<48x1xf32> to vector<48x32xf32>
      %174 = arith.mulf %169, %173 : vector<48x32xf32>
      %175 = vector.broadcast %79 : vector<1x32xf32> to vector<48x32xf32>
      %176 = arith.mulf %174, %175 : vector<48x32xf32>
      %177 = vector.broadcast %80 : vector<1x32xf32> to vector<48x32xf32>
      %178 = arith.addf %176, %177 : vector<48x32xf32>
      %179 = arith.index_cast %arg13 : i32 to index
      %c0_61 = arith.constant 0 : index
      %c0_62 = arith.constant 0 : index
      %180 = vector.load %arg9[%179, %c0_61, %c0_62] : memref<12x32x128xf32, #tpu.memory_space<vmem>>, vector<1x32x128xf32>
      %181 = vector.shape_cast %180 : vector<1x32x128xf32> to vector<32x128xf32>
      %cst_63 = arith.constant dense<0.000000e+00> : vector<48x128xf32>
      %182 = tpu.matmul %178, %181, %cst_63 {dimension_numbers = #tpu.dot_dimension_numbers<[1], [0], [0], [1], [0, 0, 1, 1], [], []>} : vector<48x32xf32>, vector<32x128xf32>, vector<48x128xf32> -> vector<48x128xf32>
      %183 = arith.index_cast %arg13 : i32 to index
      %c0_64 = arith.constant 0 : index
      %c0_65 = arith.constant 0 : index
      %184 = vector.load %arg10[%183, %c0_64, %c0_65] : memref<12x1x128xf32, #tpu.memory_space<vmem>>, vector<1x1x128xf32>
      %185 = vector.shape_cast %184 : vector<1x1x128xf32> to vector<1x128xf32>
      %186 = vector.broadcast %185 : vector<1x128xf32> to vector<48x128xf32>
      %187 = arith.addf %182, %186 : vector<48x128xf32>
      %188 = arith.mulf %187, %187 : vector<48x128xf32>
      %189 = arith.mulf %187, %188 : vector<48x128xf32>
      %cst_66 = arith.constant 4.471500e-02 : f32
      %190 = vector.broadcast %cst_66 : f32 to vector<48x128xf32>
      %191 = arith.mulf %190, %189 : vector<48x128xf32>
      %192 = arith.addf %187, %191 : vector<48x128xf32>
      %cst_67 = arith.constant 0.797884583 : f32
      %193 = vector.broadcast %cst_67 : f32 to vector<48x128xf32>
      %194 = arith.mulf %193, %192 : vector<48x128xf32>
      %195 = math.tanh %194 : vector<48x128xf32>
      %cst_68 = arith.constant 1.000000e+00 : f32
      %196 = vector.broadcast %cst_68 : f32 to vector<48x128xf32>
      %197 = arith.addf %196, %195 : vector<48x128xf32>
      %cst_69 = arith.constant 5.000000e-01 : f32
      %198 = vector.broadcast %cst_69 : f32 to vector<48x128xf32>
      %199 = arith.mulf %198, %197 : vector<48x128xf32>
      %200 = arith.mulf %187, %199 : vector<48x128xf32>
      %201 = arith.index_cast %arg13 : i32 to index
      %c0_70 = arith.constant 0 : index
      %c0_71 = arith.constant 0 : index
      %202 = vector.load %arg11[%201, %c0_70, %c0_71] : memref<12x128x32xf32, #tpu.memory_space<vmem>>, vector<1x128x32xf32>
      %203 = vector.shape_cast %202 : vector<1x128x32xf32> to vector<128x32xf32>
      %cst_72 = arith.constant dense<0.000000e+00> : vector<48x32xf32>
      %204 = tpu.matmul %200, %203, %cst_72 {dimension_numbers = #tpu.dot_dimension_numbers<[1], [0], [0], [1], [0, 0, 1, 1], [], []>} : vector<48x128xf32>, vector<128x32xf32>, vector<48x32xf32> -> vector<48x32xf32>
      %205 = arith.addf %156, %204 : vector<48x32xf32>
      %206 = vector.broadcast %81 : vector<1x32xf32> to vector<48x32xf32>
      %207 = arith.addf %205, %206 : vector<48x32xf32>
      scf.yield %207 : vector<48x32xf32>
    }
    %c3_i32_19 = arith.constant 3 : i32
    %47 = vector.extract_strided_slice %46 {offsets = [8, 0], sizes = [16, 32], strides = [1, 1]} : vector<48x32xf32> to vector<16x32xf32>
    %48 = vector.extract_strided_slice %46 {offsets = [0, 0], sizes = [1, 32], strides = [1, 1]} : vector<48x32xf32> to vector<1x32xf32>
    %49 = vector.broadcast %48 : vector<1x32xf32> to vector<16x32xf32>
    %50 = arith.addf %47, %49 : vector<16x32xf32>
    %51 = vector.extract_strided_slice %46 {offsets = [32, 0], sizes = [16, 32], strides = [1, 1]} : vector<48x32xf32> to vector<16x32xf32>
    %52 = vector.extract_strided_slice %46 {offsets = [24, 0], sizes = [1, 32], strides = [1, 1]} : vector<48x32xf32> to vector<1x32xf32>
    %53 = vector.broadcast %52 : vector<1x32xf32> to vector<16x32xf32>
    %54 = arith.addf %51, %53 : vector<16x32xf32>
    %55 = tpu.concatenate %50, %54 in 0 : vector<16x32xf32>, vector<16x32xf32> -> vector<32x32xf32>
    %c3 = arith.constant 3 : index
    %c0_20 = arith.constant 0 : index
    %c0_21 = arith.constant 0 : index
    %56 = vector.load %arg12[%c3, %c0_20, %c0_21] : memref<5x32x32xf32, #tpu.memory_space<vmem>>, vector<1x32x32xf32>
    %57 = vector.shape_cast %56 : vector<1x32x32xf32> to vector<32x32xf32>
    %58 = vector.shape_cast %55 : vector<32x32xf32> to vector<1x32x32xf32>
    tpu.vector_store %arg12[%c3, %c0_20, %c0_21], %58 {strides = array<i32>} : memref<5x32x32xf32, #tpu.memory_space<vmem>>, vector<1x32x32xf32>,
    %c9_i32 = arith.constant 9 : i32
    %c3_i32_22 = arith.constant 3 : i32
    %59 = arith.addi %c9_i32, %c3_i32_22 : i32
    %c1_i32_23 = arith.constant 1 : i32
    %60 = scf.for %arg13 = %c9_i32 to %59 step %c1_i32_23 iter_args(%arg14 = %46) -> (vector<48x32xf32>)  : i32 {
      %73 = arith.index_cast %arg13 : i32 to index
      %c0_27 = arith.constant 0 : index
      %c0_28 = arith.constant 0 : index
      %74 = vector.load %arg8[%73, %c0_27, %c0_28] : memref<12x6x32xf32, #tpu.memory_space<vmem>>, vector<1x6x32xf32>
      %75 = vector.shape_cast %74 : vector<1x6x32xf32> to vector<6x32xf32>
      %76 = vector.extract_strided_slice %75 {offsets = [0, 0], sizes = [1, 32], strides = [1, 1]} : vector<6x32xf32> to vector<1x32xf32>
      %77 = vector.extract_strided_slice %75 {offsets = [1, 0], sizes = [1, 32], strides = [1, 1]} : vector<6x32xf32> to vector<1x32xf32>
      %78 = vector.extract_strided_slice %75 {offsets = [2, 0], sizes = [1, 32], strides = [1, 1]} : vector<6x32xf32> to vector<1x32xf32>
      %79 = vector.extract_strided_slice %75 {offsets = [3, 0], sizes = [1, 32], strides = [1, 1]} : vector<6x32xf32> to vector<1x32xf32>
      %80 = vector.extract_strided_slice %75 {offsets = [4, 0], sizes = [1, 32], strides = [1, 1]} : vector<6x32xf32> to vector<1x32xf32>
      %81 = vector.extract_strided_slice %75 {offsets = [5, 0], sizes = [1, 32], strides = [1, 1]} : vector<6x32xf32> to vector<1x32xf32>
      %cst_29 = arith.constant dense<0.000000e+00> : vector<48xf32>
      %82 = vector.multi_reduction <add>, %arg14, %cst_29 [1] : vector<48x32xf32> to vector<48xf32>
      %83 = vector.shape_cast %82 : vector<48xf32> to vector<48x1xf32>
      %cst_30 = arith.constant 3.200000e+01 : f32
      %84 = vector.broadcast %cst_30 : f32 to vector<48x1xf32>
      %85 = arith.divf %83, %84 : vector<48x1xf32>
      %86 = vector.broadcast %85 : vector<48x1xf32> to vector<48x32xf32>
      %87 = arith.subf %arg14, %86 : vector<48x32xf32>
      %88 = arith.mulf %87, %87 : vector<48x32xf32>
      %cst_31 = arith.constant dense<0.000000e+00> : vector<48xf32>
      %89 = vector.multi_reduction <add>, %88, %cst_31 [1] : vector<48x32xf32> to vector<48xf32>
      %90 = vector.shape_cast %89 : vector<48xf32> to vector<48x1xf32>
      %cst_32 = arith.constant 3.200000e+01 : f32
      %91 = vector.broadcast %cst_32 : f32 to vector<48x1xf32>
      %92 = arith.divf %90, %91 : vector<48x1xf32>
      %93 = vector.broadcast %85 : vector<48x1xf32> to vector<48x32xf32>
      %94 = arith.subf %arg14, %93 : vector<48x32xf32>
      %cst_33 = arith.constant 9.99999997E-7 : f32
      %95 = vector.broadcast %cst_33 : f32 to vector<48x1xf32>
      %96 = arith.addf %92, %95 : vector<48x1xf32>
      %97 = math.rsqrt %96 : vector<48x1xf32>
      %98 = vector.broadcast %97 : vector<48x1xf32> to vector<48x32xf32>
      %99 = arith.mulf %94, %98 : vector<48x32xf32>
      %100 = vector.broadcast %76 : vector<1x32xf32> to vector<48x32xf32>
      %101 = arith.mulf %99, %100 : vector<48x32xf32>
      %102 = vector.broadcast %77 : vector<1x32xf32> to vector<48x32xf32>
      %103 = arith.addf %101, %102 : vector<48x32xf32>
      %104 = arith.index_cast %arg13 : i32 to index
      %c0_34 = arith.constant 0 : index
      %c0_35 = arith.constant 0 : index
      %105 = vector.load %arg5[%104, %c0_34, %c0_35] : memref<12x32x96xf32, #tpu.memory_space<vmem>>, vector<1x32x96xf32>
      %106 = vector.shape_cast %105 : vector<1x32x96xf32> to vector<32x96xf32>
      %cst_36 = arith.constant dense<0.000000e+00> : vector<48x96xf32>
      %107 = tpu.matmul %103, %106, %cst_36 {dimension_numbers = #tpu.dot_dimension_numbers<[1], [0], [0], [1], [0, 0, 1, 1], [], []>} : vector<48x32xf32>, vector<32x96xf32>, vector<48x96xf32> -> vector<48x96xf32>
      %108 = arith.index_cast %arg13 : i32 to index
      %c0_37 = arith.constant 0 : index
      %c0_38 = arith.constant 0 : index
      %109 = vector.load %arg6[%108, %c0_37, %c0_38] : memref<12x1x96xf32, #tpu.memory_space<vmem>>, vector<1x1x96xf32>
      %110 = vector.shape_cast %109 : vector<1x1x96xf32> to vector<1x96xf32>
      %111 = vector.broadcast %110 : vector<1x96xf32> to vector<48x96xf32>
      %112 = arith.addf %107, %111 : vector<48x96xf32>
      %113 = vector.extract_strided_slice %112 {offsets = [0, 0], sizes = [48, 16], strides = [1, 1]} : vector<48x96xf32> to vector<48x16xf32>
      %114 = vector.extract_strided_slice %112 {offsets = [0, 32], sizes = [48, 16], strides = [1, 1]} : vector<48x96xf32> to vector<48x16xf32>
      %115 = vector.extract_strided_slice %112 {offsets = [0, 64], sizes = [48, 16], strides = [1, 1]} : vector<48x96xf32> to vector<48x16xf32>
      %cst_39 = arith.constant dense<0.000000e+00> : vector<48x48xf32>
      %116 = tpu.matmul %113, %114, %cst_39 {dimension_numbers = #tpu.dot_dimension_numbers<[1], [1], [0], [0], [0, 0, 1, 0], [], []>} : vector<48x16xf32>, vector<48x16xf32>, vector<48x48xf32> -> vector<48x48xf32>
      %cst_40 = arith.constant 2.500000e-01 : f32
      %117 = vector.broadcast %cst_40 : f32 to vector<48x48xf32>
      %118 = arith.mulf %116, %117 : vector<48x48xf32>
      %c0_41 = arith.constant 0 : index
      %c0_42 = arith.constant 0 : index
      %119 = vector.load %arg4[%c0_41, %c0_42] : memref<48x48xf32, #tpu.memory_space<vmem>>, vector<48x48xf32>
      %120 = arith.addf %118, %119 : vector<48x48xf32>
      %cst_43 = arith.constant dense<0xFF800000> : vector<48xf32>
      %121 = vector.multi_reduction <maximumf>, %120, %cst_43 [1] : vector<48x48xf32> to vector<48xf32>
      %122 = vector.shape_cast %121 : vector<48xf32> to vector<48x1xf32>
      %123 = vector.broadcast %122 : vector<48x1xf32> to vector<48x48xf32>
      %124 = arith.subf %120, %123 : vector<48x48xf32>
      %125 = math.exp %124 : vector<48x48xf32>
      %cst_44 = arith.constant dense<0.000000e+00> : vector<48xf32>
      %126 = vector.multi_reduction <add>, %125, %cst_44 [1] : vector<48x48xf32> to vector<48xf32>
      %127 = vector.shape_cast %126 : vector<48xf32> to vector<48x1xf32>
      %128 = vector.broadcast %127 : vector<48x1xf32> to vector<48x48xf32>
      %129 = arith.divf %125, %128 : vector<48x48xf32>
      %cst_45 = arith.constant dense<0.000000e+00> : vector<48x16xf32>
      %130 = tpu.matmul %129, %115, %cst_45 {dimension_numbers = #tpu.dot_dimension_numbers<[1], [0], [0], [1], [0, 0, 1, 1], [], []>} : vector<48x48xf32>, vector<48x16xf32>, vector<48x16xf32> -> vector<48x16xf32>
      %131 = vector.extract_strided_slice %112 {offsets = [0, 16], sizes = [48, 16], strides = [1, 1]} : vector<48x96xf32> to vector<48x16xf32>
      %132 = vector.extract_strided_slice %112 {offsets = [0, 48], sizes = [48, 16], strides = [1, 1]} : vector<48x96xf32> to vector<48x16xf32>
      %133 = vector.extract_strided_slice %112 {offsets = [0, 80], sizes = [48, 16], strides = [1, 1]} : vector<48x96xf32> to vector<48x16xf32>
      %cst_46 = arith.constant dense<0.000000e+00> : vector<48x48xf32>
      %134 = tpu.matmul %131, %132, %cst_46 {dimension_numbers = #tpu.dot_dimension_numbers<[1], [1], [0], [0], [0, 0, 1, 0], [], []>} : vector<48x16xf32>, vector<48x16xf32>, vector<48x48xf32> -> vector<48x48xf32>
      %cst_47 = arith.constant 2.500000e-01 : f32
      %135 = vector.broadcast %cst_47 : f32 to vector<48x48xf32>
      %136 = arith.mulf %134, %135 : vector<48x48xf32>
      %c0_48 = arith.constant 0 : index
      %c0_49 = arith.constant 0 : index
      %137 = vector.load %arg4[%c0_48, %c0_49] : memref<48x48xf32, #tpu.memory_space<vmem>>, vector<48x48xf32>
      %138 = arith.addf %136, %137 : vector<48x48xf32>
      %cst_50 = arith.constant dense<0xFF800000> : vector<48xf32>
      %139 = vector.multi_reduction <maximumf>, %138, %cst_50 [1] : vector<48x48xf32> to vector<48xf32>
      %140 = vector.shape_cast %139 : vector<48xf32> to vector<48x1xf32>
      %141 = vector.broadcast %140 : vector<48x1xf32> to vector<48x48xf32>
      %142 = arith.subf %138, %141 : vector<48x48xf32>
      %143 = math.exp %142 : vector<48x48xf32>
      %cst_51 = arith.constant dense<0.000000e+00> : vector<48xf32>
      %144 = vector.multi_reduction <add>, %143, %cst_51 [1] : vector<48x48xf32> to vector<48xf32>
      %145 = vector.shape_cast %144 : vector<48xf32> to vector<48x1xf32>
      %146 = vector.broadcast %145 : vector<48x1xf32> to vector<48x48xf32>
      %147 = arith.divf %143, %146 : vector<48x48xf32>
      %cst_52 = arith.constant dense<0.000000e+00> : vector<48x16xf32>
      %148 = tpu.matmul %147, %133, %cst_52 {dimension_numbers = #tpu.dot_dimension_numbers<[1], [0], [0], [1], [0, 0, 1, 1], [], []>} : vector<48x48xf32>, vector<48x16xf32>, vector<48x16xf32> -> vector<48x16xf32>
      %149 = tpu.concatenate %130, %148 in 1 : vector<48x16xf32>, vector<48x16xf32> -> vector<48x32xf32>
      %150 = arith.index_cast %arg13 : i32 to index
      %c0_53 = arith.constant 0 : index
      %c0_54 = arith.constant 0 : index
      %151 = vector.load %arg7[%150, %c0_53, %c0_54] : memref<12x32x32xf32, #tpu.memory_space<vmem>>, vector<1x32x32xf32>
      %152 = vector.shape_cast %151 : vector<1x32x32xf32> to vector<32x32xf32>
      %cst_55 = arith.constant dense<0.000000e+00> : vector<48x32xf32>
      %153 = tpu.matmul %149, %152, %cst_55 {dimension_numbers = #tpu.dot_dimension_numbers<[1], [0], [0], [1], [0, 0, 1, 1], [], []>} : vector<48x32xf32>, vector<32x32xf32>, vector<48x32xf32> -> vector<48x32xf32>
      %154 = arith.addf %arg14, %153 : vector<48x32xf32>
      %155 = vector.broadcast %78 : vector<1x32xf32> to vector<48x32xf32>
      %156 = arith.addf %154, %155 : vector<48x32xf32>
      %cst_56 = arith.constant dense<0.000000e+00> : vector<48xf32>
      %157 = vector.multi_reduction <add>, %156, %cst_56 [1] : vector<48x32xf32> to vector<48xf32>
      %158 = vector.shape_cast %157 : vector<48xf32> to vector<48x1xf32>
      %cst_57 = arith.constant 3.200000e+01 : f32
      %159 = vector.broadcast %cst_57 : f32 to vector<48x1xf32>
      %160 = arith.divf %158, %159 : vector<48x1xf32>
      %161 = vector.broadcast %160 : vector<48x1xf32> to vector<48x32xf32>
      %162 = arith.subf %156, %161 : vector<48x32xf32>
      %163 = arith.mulf %162, %162 : vector<48x32xf32>
      %cst_58 = arith.constant dense<0.000000e+00> : vector<48xf32>
      %164 = vector.multi_reduction <add>, %163, %cst_58 [1] : vector<48x32xf32> to vector<48xf32>
      %165 = vector.shape_cast %164 : vector<48xf32> to vector<48x1xf32>
      %cst_59 = arith.constant 3.200000e+01 : f32
      %166 = vector.broadcast %cst_59 : f32 to vector<48x1xf32>
      %167 = arith.divf %165, %166 : vector<48x1xf32>
      %168 = vector.broadcast %160 : vector<48x1xf32> to vector<48x32xf32>
      %169 = arith.subf %156, %168 : vector<48x32xf32>
      %cst_60 = arith.constant 9.99999997E-7 : f32
      %170 = vector.broadcast %cst_60 : f32 to vector<48x1xf32>
      %171 = arith.addf %167, %170 : vector<48x1xf32>
      %172 = math.rsqrt %171 : vector<48x1xf32>
      %173 = vector.broadcast %172 : vector<48x1xf32> to vector<48x32xf32>
      %174 = arith.mulf %169, %173 : vector<48x32xf32>
      %175 = vector.broadcast %79 : vector<1x32xf32> to vector<48x32xf32>
      %176 = arith.mulf %174, %175 : vector<48x32xf32>
      %177 = vector.broadcast %80 : vector<1x32xf32> to vector<48x32xf32>
      %178 = arith.addf %176, %177 : vector<48x32xf32>
      %179 = arith.index_cast %arg13 : i32 to index
      %c0_61 = arith.constant 0 : index
      %c0_62 = arith.constant 0 : index
      %180 = vector.load %arg9[%179, %c0_61, %c0_62] : memref<12x32x128xf32, #tpu.memory_space<vmem>>, vector<1x32x128xf32>
      %181 = vector.shape_cast %180 : vector<1x32x128xf32> to vector<32x128xf32>
      %cst_63 = arith.constant dense<0.000000e+00> : vector<48x128xf32>
      %182 = tpu.matmul %178, %181, %cst_63 {dimension_numbers = #tpu.dot_dimension_numbers<[1], [0], [0], [1], [0, 0, 1, 1], [], []>} : vector<48x32xf32>, vector<32x128xf32>, vector<48x128xf32> -> vector<48x128xf32>
      %183 = arith.index_cast %arg13 : i32 to index
      %c0_64 = arith.constant 0 : index
      %c0_65 = arith.constant 0 : index
      %184 = vector.load %arg10[%183, %c0_64, %c0_65] : memref<12x1x128xf32, #tpu.memory_space<vmem>>, vector<1x1x128xf32>
      %185 = vector.shape_cast %184 : vector<1x1x128xf32> to vector<1x128xf32>
      %186 = vector.broadcast %185 : vector<1x128xf32> to vector<48x128xf32>
      %187 = arith.addf %182, %186 : vector<48x128xf32>
      %188 = arith.mulf %187, %187 : vector<48x128xf32>
      %189 = arith.mulf %187, %188 : vector<48x128xf32>
      %cst_66 = arith.constant 4.471500e-02 : f32
      %190 = vector.broadcast %cst_66 : f32 to vector<48x128xf32>
      %191 = arith.mulf %190, %189 : vector<48x128xf32>
      %192 = arith.addf %187, %191 : vector<48x128xf32>
      %cst_67 = arith.constant 0.797884583 : f32
      %193 = vector.broadcast %cst_67 : f32 to vector<48x128xf32>
      %194 = arith.mulf %193, %192 : vector<48x128xf32>
      %195 = math.tanh %194 : vector<48x128xf32>
      %cst_68 = arith.constant 1.000000e+00 : f32
      %196 = vector.broadcast %cst_68 : f32 to vector<48x128xf32>
      %197 = arith.addf %196, %195 : vector<48x128xf32>
      %cst_69 = arith.constant 5.000000e-01 : f32
      %198 = vector.broadcast %cst_69 : f32 to vector<48x128xf32>
      %199 = arith.mulf %198, %197 : vector<48x128xf32>
      %200 = arith.mulf %187, %199 : vector<48x128xf32>
      %201 = arith.index_cast %arg13 : i32 to index
      %c0_70 = arith.constant 0 : index
      %c0_71 = arith.constant 0 : index
      %202 = vector.load %arg11[%201, %c0_70, %c0_71] : memref<12x128x32xf32, #tpu.memory_space<vmem>>, vector<1x128x32xf32>
      %203 = vector.shape_cast %202 : vector<1x128x32xf32> to vector<128x32xf32>
      %cst_72 = arith.constant dense<0.000000e+00> : vector<48x32xf32>
      %204 = tpu.matmul %200, %203, %cst_72 {dimension_numbers = #tpu.dot_dimension_numbers<[1], [0], [0], [1], [0, 0, 1, 1], [], []>} : vector<48x128xf32>, vector<128x32xf32>, vector<48x32xf32> -> vector<48x32xf32>
      %205 = arith.addf %156, %204 : vector<48x32xf32>
      %206 = vector.broadcast %81 : vector<1x32xf32> to vector<48x32xf32>
      %207 = arith.addf %205, %206 : vector<48x32xf32>
      scf.yield %207 : vector<48x32xf32>
    }
    %c3_i32_24 = arith.constant 3 : i32
    %61 = vector.extract_strided_slice %60 {offsets = [8, 0], sizes = [16, 32], strides = [1, 1]} : vector<48x32xf32> to vector<16x32xf32>
    %62 = vector.extract_strided_slice %60 {offsets = [0, 0], sizes = [1, 32], strides = [1, 1]} : vector<48x32xf32> to vector<1x32xf32>
    %63 = vector.broadcast %62 : vector<1x32xf32> to vector<16x32xf32>
    %64 = arith.addf %61, %63 : vector<16x32xf32>
    %65 = vector.extract_strided_slice %60 {offsets = [32, 0], sizes = [16, 32], strides = [1, 1]} : vector<48x32xf32> to vector<16x32xf32>
    %66 = vector.extract_strided_slice %60 {offsets = [24, 0], sizes = [1, 32], strides = [1, 1]} : vector<48x32xf32> to vector<1x32xf32>
    %67 = vector.broadcast %66 : vector<1x32xf32> to vector<16x32xf32>
    %68 = arith.addf %65, %67 : vector<16x32xf32>
    %69 = tpu.concatenate %64, %68 in 0 : vector<16x32xf32>, vector<16x32xf32> -> vector<32x32xf32>
    %c4 = arith.constant 4 : index
    %c0_25 = arith.constant 0 : index
    %c0_26 = arith.constant 0 : index
    %70 = vector.load %arg12[%c4, %c0_25, %c0_26] : memref<5x32x32xf32, #tpu.memory_space<vmem>>, vector<1x32x32xf32>
    %71 = vector.shape_cast %70 : vector<1x32x32xf32> to vector<32x32xf32>
    %72 = vector.shape_cast %69 : vector<32x32xf32> to vector<1x32x32xf32>
    tpu.vector_store %arg12[%c4, %c0_25, %c0_26], %72 {strides = array<i32>} : memref<5x32x32xf32, #tpu.memory_space<vmem>>, vector<1x32x32xf32>,
    return
  }
  func.func @transform_0(%arg0: i32) -> (i32, i32) {
    %c0_i32 = arith.constant 0 : i32
    %c0_i32_0 = arith.constant 0 : i32
    %c0_i32_1 = arith.constant 0 : i32
    return %c0_i32, %c0_i32_0 : i32, i32
  }
  func.func @transform_1(%arg0: i32) -> (i32, i32) {
    %c0_i32 = arith.constant 0 : i32
    %c0_i32_0 = arith.constant 0 : i32
    %c0_i32_1 = arith.constant 0 : i32
    return %c0_i32, %c0_i32_0 : i32, i32
  }
  func.func @transform_2(%arg0: i32) -> (i32, i32) {
    %c0_i32 = arith.constant 0 : i32
    %c0_i32_0 = arith.constant 0 : i32
    %c0_i32_1 = arith.constant 0 : i32
    return %c0_i32, %c0_i32_0 : i32, i32
  }
  func.func @transform_3(%arg0: i32) -> (i32, i32) {
    %c0_i32 = arith.constant 0 : i32
    %c0_i32_0 = arith.constant 0 : i32
    %c0_i32_1 = arith.constant 0 : i32
    return %c0_i32, %c0_i32_0 : i32, i32
  }
  func.func @transform_4(%arg0: i32) -> (i32, i32, i32) {
    %c0_i32 = arith.constant 0 : i32
    %c0_i32_0 = arith.constant 0 : i32
    %c0_i32_1 = arith.constant 0 : i32
    %c0_i32_2 = arith.constant 0 : i32
    return %c0_i32, %c0_i32_0, %c0_i32_1 : i32, i32, i32
  }
  func.func @transform_5(%arg0: i32) -> (i32, i32, i32) {
    %c0_i32 = arith.constant 0 : i32
    %c0_i32_0 = arith.constant 0 : i32
    %c0_i32_1 = arith.constant 0 : i32
    %c0_i32_2 = arith.constant 0 : i32
    return %c0_i32, %c0_i32_0, %c0_i32_1 : i32, i32, i32
  }
  func.func @transform_6(%arg0: i32) -> (i32, i32, i32) {
    %c0_i32 = arith.constant 0 : i32
    %c0_i32_0 = arith.constant 0 : i32
    %c0_i32_1 = arith.constant 0 : i32
    %c0_i32_2 = arith.constant 0 : i32
    return %c0_i32, %c0_i32_0, %c0_i32_1 : i32, i32, i32
  }
  func.func @transform_7(%arg0: i32) -> (i32, i32, i32) {
    %c0_i32 = arith.constant 0 : i32
    %c0_i32_0 = arith.constant 0 : i32
    %c0_i32_1 = arith.constant 0 : i32
    %c0_i32_2 = arith.constant 0 : i32
    return %c0_i32, %c0_i32_0, %c0_i32_1 : i32, i32, i32
  }
  func.func @transform_8(%arg0: i32) -> (i32, i32, i32) {
    %c0_i32 = arith.constant 0 : i32
    %c0_i32_0 = arith.constant 0 : i32
    %c0_i32_1 = arith.constant 0 : i32
    %c0_i32_2 = arith.constant 0 : i32
    return %c0_i32, %c0_i32_0, %c0_i32_1 : i32, i32, i32
  }
  func.func @transform_9(%arg0: i32) -> (i32, i32, i32) {
    %c0_i32 = arith.constant 0 : i32
    %c0_i32_0 = arith.constant 0 : i32
    %c0_i32_1 = arith.constant 0 : i32
    %c0_i32_2 = arith.constant 0 : i32
    return %c0_i32, %c0_i32_0, %c0_i32_1 : i32, i32, i32
  }
  func.func @transform_10(%arg0: i32) -> (i32, i32, i32) {
    %c0_i32 = arith.constant 0 : i32
    %c0_i32_0 = arith.constant 0 : i32
    %c0_i32_1 = arith.constant 0 : i32
    %c0_i32_2 = arith.constant 0 : i32
    return %c0_i32, %c0_i32_0, %c0_i32_1 : i32, i32, i32
  }
  func.func @transform_11(%arg0: i32) -> (i32, i32, i32) {
    %c0_i32 = arith.constant 0 : i32
    %c0_i32_0 = arith.constant 0 : i32
    %c0_i32_1 = arith.constant 0 : i32
    %c0_i32_2 = arith.constant 0 : i32
    return %c0_i32, %c0_i32_0, %c0_i32_1 : i32, i32, i32
  }
}

</mosaic_0001>

<bundles_post_ra>
// kernel: dino_forward.1
= control target key start
LH: loop header
LB: loop body
LE: loop exit
PB: predicated region body
PF: predicated region fallthrough
CT: control target
= control target key end

     0   :  { %v9440_v0 = vmov 0.0|0.0   ;;  %vm80_vm0 = vcmask 523264   ;;  %v200_v49 = vlaneseq  ;;  %vm212_vm1 = vcmask 261120   ;;  %s9716_s29 = smov 0   ;;  %s11629_s3 = inlined_call_operand.vmem [shape: f32[48,48], index: 3, kind: input, shape index: {}]   ;;  %s11630_s4 = inlined_call_operand.vmem [shape: f32[12,32,96], index: 4, kind: input, shape index: {}]   ;;  %s11631_s5 = inlined_call_operand.vmem [shape: f32[12,1,96], index: 5, kind: input, shape index: {}]   ;;  %s11632_s6 = inlined_call_operand.vmem [shape: f32[12,32,32], index: 6, kind: input, shape index: {}]   ;;  %s11633_s7 = inlined_call_operand.vmem [shape: f32[12,6,32], index: 7, kind: input, shape index: {}]   ;;  %s11634_s8 = inlined_call_operand.vmem [shape: f32[12,32,128], index: 8, kind: input, shape index: {}]   ;;  %s11635_s9 = inlined_call_operand.vmem [shape: f32[12,1,128], index: 9, kind: input, shape index: {}]   ;;  %s11636_s10 = inlined_call_operand.vmem [shape: f32[12,128,32], index: 10, kind: input, shape index: {}]   ;;  %s11637_s1 = inlined_call_operand.vmem [shape: f32[192,32], index: 1, kind: input, shape index: {}]   ;;  %s11638_s0 = inlined_call_operand.vmem [shape: f32[48,192], index: 0, kind: input, shape index: {}]   ;;  %s11639_s2 = inlined_call_operand.vmem [shape: f32[48,32], index: 2, kind: input, shape index: {}]   ;;  %s11640_s11 = inlined_call_operand.vmem [shape: f32[5,32,32], index: 11, kind: output, shape index: {}]  }
   0x1   :  { %7863 = vmatprep.subr.bf16.mxu0 %v9440_v0  ;;  %8363 = vmatprep.subr.bf16.mxu1 %v9440_v0  ;;  %v56_v1 = vld [vmem:[%s11637_s1] sm:$0xff]  ;;  %v57_v2 = vld [vmem:[%s11637_s1 + $0x8] sm:$0xff]  ;;  %v58_v3 = vld [vmem:[%s11637_s1 + $0x10] sm:$0xff] }
   0x2   :  { %v7864_v4 = vpack.c.bf16 %v57_v2, %v56_v1  ;;  %v59_v5 = vld [vmem:[%s11637_s1 + $0x18] sm:$0xff]  ;;  %v60_v7 = vld [vmem:[%s11637_s1 + $0x20] sm:$0xff]  ;;  %v61_v8 = vld [vmem:[%s11637_s1 + $0x28] sm:$0xff]  ;;  %v9663_v50 = vshrl.u32 %v200_v49, 7 }
   0x3   :  { %v7867_v6 = vpack.c.bf16 %v59_v5, %v58_v3  ;;  %v7870_v9 = vpack.c.bf16 %v61_v8, %v60_v7  ;;  %v62_v10 = vld [vmem:[%s11637_s1 + $0x30] sm:$0xff]  ;;  %v63_v11 = vld [vmem:[%s11637_s1 + $0x38] sm:$0xff]  ;;  %v45_v12 = vld [vmem:[%s11638_s0 + $0x8] sm:$0xff] }
   0x4   :  { %7865 = vmatpush1.bf16.msra.mxu0 %v7864_v4  ;;  %8375 = vmatpush1.bf16.msra.mxu1 %v7864_v4  ;;  %v51_v13 = vld [vmem:[%s11638_s0 + $0x38] sm:$0xff]  ;;  %v7873_v14 = vpack.c.bf16 %v63_v11, %v62_v10  ;;  %v64_v15 = vld [vmem:[%s11637_s1 + $0x40] sm:$0xff]  ;;  %v65_v16 = vld [vmem:[%s11637_s1 + $0x48] sm:$0xff]  ;;  %v9672_v56 = vsub.s32 0, %v9663_v50 }
   0x5   :  { %7866 = vmatprep.subr.bf16.mxu0 %v9440_v0  ;;  %8364 = vmatprep.subr.bf16.mxu1 %v9440_v0  ;;  %v7876_v17 = vpack.c.bf16 %v65_v16, %v64_v15  ;;  %v66_v18 = vld [vmem:[%s11637_s1 + $0x50] sm:$0xff]  ;;  %v67_v19 = vld [vmem:[%s11637_s1 + $0x58] sm:$0xff]  ;;  %v68_v21 = vld [vmem:[%s11637_s1 + $0x60] sm:$0xff] }
   0x6   :  { %6501 = vmatprep.mubr.msk.f32.mxu0 %vm80_vm0, %v45_v12  ;;  %6504 = vmatprep.mubr.msk.f32.mxu1 %vm80_vm0, %v51_v13  ;;  %v7879_v20 = vpack.c.bf16 %v67_v19, %v66_v18  ;;  %v69_v22 = vld [vmem:[%s11637_s1 + $0x68] sm:$0xff]  ;;  %v70_v24 = vld [vmem:[%s11637_s1 + $0x70] sm:$0xff]  ;;  %v71_v25 = vld [vmem:[%s11637_s1 + $0x78] sm:$0xff] }
   0x7   :  { %v7882_v23 = vpack.c.bf16 %v69_v22, %v68_v21  ;;  %v7885_v26 = vpack.c.bf16 %v71_v25, %v70_v24  ;;  %v72_v27 = vld [vmem:[%s11637_s1 + $0x80] sm:$0xff]  ;;  %v73_v28 = vld [vmem:[%s11637_s1 + $0x88] sm:$0xff]  ;;  %v74_v30 = vld [vmem:[%s11637_s1 + $0x90] sm:$0xff] }
   0x8   :  { %7868 = vmatpush1.bf16.msra.mxu0 %v7867_v6  ;;  %8376 = vmatpush1.bf16.msra.mxu1 %v7867_v6  ;;  %v7888_v29 = vpack.c.bf16 %v73_v28, %v72_v27  ;;  %v75_v31 = vld [vmem:[%s11637_s1 + $0x98] sm:$0xff]  ;;  %v76_v33 = vld [vmem:[%s11637_s1 + $0xa0] sm:$0xff]  ;;  %v77_v34 = vld [vmem:[%s11637_s1 + $0xa8] sm:$0xff] }
   0x9   :  { %7869 = vmatprep.subr.bf16.mxu0 %v9440_v0  ;;  %8365 = vmatprep.subr.bf16.mxu1 %v9440_v0  ;;  %v7891_v32 = vpack.c.bf16 %v75_v31, %v74_v30  ;;  %v7894_v35 = vpack.c.bf16 %v77_v34, %v76_v33  ;;  %v78_v36 = vld [vmem:[%s11637_s1 + $0xb0] sm:$0xff]  ;;  %v79_v37 = vld [vmem:[%s11637_s1 + $0xb8] sm:$0xff]  ;;  %v44_v39 = vld [vmem:[%s11638_s0] sm:$0xff] }
   0xa   :  { %v7897_v38 = vpack.c.bf16 %v79_v37, %v78_v36  ;;  %v50_v40 = vld [vmem:[%s11638_s0 + $0x30] sm:$0xff]  ;;  %v47_v41 = vld [vmem:[%s11638_s0 + $0x18] sm:$0xff]  ;;  %v53_v42 = vld [vmem:[%s11638_s0 + $0x48] sm:$0xff] }
   0xb   :  { %v46_v43 = vld [vmem:[%s11638_s0 + $0x10] sm:$0xff]  ;;  %v52_v44 = vld [vmem:[%s11638_s0 + $0x40] sm:$0xff]  ;;  %v49_v45 = vld [vmem:[%s11638_s0 + $0x28] sm:$0xff] }
   0xc   :  { %7871 = vmatpush1.bf16.msra.mxu0 %v7870_v9  ;;  %8377 = vmatpush1.bf16.msra.mxu1 %v7870_v9  ;;  %v55_v46 = vld [vmem:[%s11638_s0 + $0x58] sm:$0xff]  ;;  %v48_v47 = vld [vmem:[%s11638_s0 + $0x20] sm:$0xff]  ;;  %v54_v48 = vld [vmem:[%s11638_s0 + $0x50] sm:$0xff] }
   0xd   :  { %7872 = vmatprep.subr.bf16.mxu0 %v9440_v0  ;;  %8366 = vmatprep.subr.bf16.mxu1 %v9440_v0  ;;  %v38_v51 = vld [vmem:[%s11639_s2] sm:$0xff]  ;;  %v41_v52 = vld [vmem:[%s11639_s2 + $0x18] sm:$0xff]  ;;  %v39_v60 = vld [vmem:[%s11639_s2 + $0x8] sm:$0xff] }
   0xe   :  { %v42_v61 = vld [vmem:[%s11639_s2 + $0x20] sm:$0xff]  ;;  %v40_v6 = vld [vmem:[%s11639_s2 + $0x10] sm:$0xff]  ;;  %v43_v7 = vld [vmem:[%s11639_s2 + $0x28] sm:$0xff] }
  0x10   :  { %7874 = vmatpush1.bf16.msra.mxu0 %v7873_v14  ;;  %8378 = vmatpush1.bf16.msra.mxu1 %v7873_v14 }
  0x11   :  { %7875 = vmatprep.subr.bf16.mxu0 %v9440_v0  ;;  %8367 = vmatprep.subr.bf16.mxu1 %v9440_v0 }
  0x14   :  { %7877 = vmatpush1.bf16.msra.mxu0 %v7876_v17  ;;  %8379 = vmatpush1.bf16.msra.mxu1 %v7876_v17 }
  0x15   :  { %7878 = vmatprep.subr.bf16.mxu0 %v9440_v0  ;;  %8368 = vmatprep.subr.bf16.mxu1 %v9440_v0 }
  0x18   :  { %7880 = vmatpush1.bf16.msra.mxu0 %v7879_v20  ;;  %8380 = vmatpush1.bf16.msra.mxu1 %v7879_v20 }
  0x19   :  { %7881 = vmatprep.subr.bf16.mxu0 %v9440_v0  ;;  %8369 = vmatprep.subr.bf16.mxu1 %v9440_v0 }
  0x1c   :  { %7883 = vmatpush1.bf16.msra.mxu0 %v7882_v23  ;;  %8381 = vmatpush1.bf16.msra.mxu1 %v7882_v23 }
  0x1d   :  { %7884 = vmatprep.subr.bf16.mxu0 %v9440_v0  ;;  %8370 = vmatprep.subr.bf16.mxu1 %v9440_v0 }
  0x20   :  { %7886 = vmatpush1.bf16.msra.mxu0 %v7885_v26  ;;  %8382 = vmatpush1.bf16.msra.mxu1 %v7885_v26 }
  0x21   :  { %7887 = vmatprep.subr.bf16.mxu0 %v9440_v0  ;;  %8371 = vmatprep.subr.bf16.mxu1 %v9440_v0 }
  0x24   :  { %7889 = vmatpush1.bf16.msra.mxu0 %v7888_v29  ;;  %8383 = vmatpush1.bf16.msra.mxu1 %v7888_v29 }
  0x25   :  { %7890 = vmatprep.subr.bf16.mxu0 %v9440_v0  ;;  %8372 = vmatprep.subr.bf16.mxu1 %v9440_v0 }
  0x28   :  { %7892 = vmatpush1.bf16.msra.mxu0 %v7891_v32  ;;  %8384 = vmatpush1.bf16.msra.mxu1 %v7891_v32 }
  0x29   :  { %7893 = vmatprep.subr.bf16.mxu0 %v9440_v0  ;;  %8373 = vmatprep.subr.bf16.mxu1 %v9440_v0 }
  0x2c   :  { %7895 = vmatpush1.bf16.msra.mxu0 %v7894_v35  ;;  %8385 = vmatpush1.bf16.msra.mxu1 %v7894_v35 }
  0x2d   :  { %7896 = vmatprep.subr.bf16.mxu0 %v9440_v0  ;;  %8374 = vmatprep.subr.bf16.mxu1 %v9440_v0 }
  0x30   :  { %7898 = vmatpush1.bf16.msra.mxu0 %v7897_v38  ;;  %8386 = vmatpush1.bf16.msra.mxu1 %v7897_v38 }
  0x33   :  { %164 = vmatmul.mubr.f32.vlgmr.msra.gmra.mrb[0].mxu0 %v44_v39  ;;  %179 = vmatmul.mubr.f32.vlgmr.msra.gmra.mrb[0].mxu1 %v50_v40 }
  0x34   :  { %6502 = vmatprep.mubr.msk.f32.mxu0 %vm80_vm0, %v47_v41  ;;  %6505 = vmatprep.mubr.msk.f32.mxu1 %vm80_vm0, %v53_v42 }
  0x37   :  { %169 = vmatmul.mubr.f32.gmra.mrb[2].mxu0 %v46_v43  ;;  %184 = vmatmul.mubr.f32.gmra.mrb[2].mxu1 %v52_v44 }
  0x38   :  { %6503 = vmatprep.mubr.msk.f32.mxu0 %vm80_vm0, %v49_v45  ;;  %6506 = vmatprep.mubr.msk.f32.mxu1 %vm80_vm0, %v55_v46 }
  0x3b   :  { %174 = vmatmul.mubr.f32.gmra.mrb[4].mxu0 %v48_v47  ;;  %189 = vmatmul.mubr.f32.gmra.mrb[4].mxu1 %v54_v48 }
 0x106   :  { %v165_v53 = vpop.f32.mrb[0].mxu0  ;;  %v180_v54 = vpop.f32.mrb[0].mxu1 }
 0x107   :  { %v194_v55 = vadd.f32 %v165_v53, %v38_v51   ;;  %v197_v57 = vadd.f32 %v180_v54, %v41_v52   ;;  %v167_v58 = vpop.f32.mrb[1].mxu0  ;;  %v182_v59 = vpop.f32.mrb[1].mxu1 }
 0x109   :  { %v203_v0 = vrot.slane %v194_v55, %v9672_v56  ;;  %v209_v1 = vrot.slane %v197_v57, %v9672_v56 }
 0x10a   :  { %v170_v62 = vpop.f32.mrb[2].mxu0  ;;  %v185_v63 = vpop.f32.mrb[2].mxu1 }
 0x10b   :  { %v195_v2 = vadd.f32 %v170_v62, %v39_v60   ;;  %v198_v3 = vadd.f32 %v185_v63, %v42_v61   ;;  %v172_v4 = vpop.f32.mrb[3].mxu0  ;;  %v187_v5 = vpop.f32.mrb[3].mxu1 }
 0x10d   :  { %v204_v8 = vadd.f32 %v203_v0, %v195_v2  ;;  %v210_v9 = vadd.f32 %v209_v1, %v198_v3 }
 0x10e   :  { %v175_v10 = vpop.f32.mrb[4].mxu0  ;;  %v190_v11 = vpop.f32.mrb[4].mxu1 }
 0x10f   :  { %213 = vst.msk [vmem:[%s11640_s11] sm:$0xff] %vm212_vm1, %v204_v8  ;;  %215 = vst.msk [vmem:[%s11640_s11 + $0x10] sm:$0xff] %vm212_vm1, %v210_v9  ;;  %v196_v12 = vadd.f32 %v175_v10, %v40_v6   ;;  %v199_v13 = vadd.f32 %v190_v11, %v43_v7   ;;  %v177_v14 = vpop.f32.mrb[5].mxu0  ;;  %v192_v15 = vpop.f32.mrb[5].mxu1 }
 0x111   :  { %v205_v16 = vadd.f32 %v203_v0, %v196_v12  ;;  %v211_v17 = vadd.f32 %v209_v1, %v199_v13 }
 0x113   :  { %214 = vst.msk [vmem:[%s11640_s11 + $0x8] sm:$0xff] %vm212_vm1, %v205_v16  ;;  %216 = vst.msk [vmem:[%s11640_s11 + $0x18] sm:$0xff] %vm212_vm1, %v211_v17 }
 0x114 LB: > { %v232_v18 = vsel %vm212_vm1, %v9350_v55, 0.0  ;;  %v238_v19 = vsel %vm212_vm1, %v9342_v12, 0.0  ;;  %v235_v20 = vsel %vm212_vm1, %v9346_v2, 0.0  ;;  %v241_v21 = vsel %vm212_vm1, %v9338_v57, 0.0  ;;  %s9788_s30 = sshll.u32 %s9354_s29, 5  ;;  %s6507_s15 = sshll.u32 %s9354_s29, 3  ;;  %s9354_s29 = sphi %s9716_s29, %s222_s29   ;;  %v9350_v55 = vphi %v194_v55, %v11648_v55   ;;  %v9346_v2 = vphi %v195_v2, %v11647_v2   ;;  %v9342_v12 = vphi %v196_v12, %v11646_v12   ;;  %v9338_v57 = vphi %v197_v57, %v11645_v57   ;;  %v9334_v3 = vphi %v198_v3, %v11644_v3   ;;  %v9330_v13 = vphi %v199_v13, %v11643_v13  }
 0x115   : > { %233 = vadd.xlane.f32.xlu0 %v232_v18  ;;  %239 = vadd.xlane.f32.xlu1 %v238_v19  ;;  %v244_v22 = vsel %vm212_vm1, %v9334_v3, 0.0  ;;  %v247_v23 = vsel %vm212_vm1, %v9330_v13, 0.0  ;;  %s332_s14 = scalar_lea.vmem %s11630_s4, %s9788_s30  ;;  %s9798_s17 = scalar_lea.vmem %s11633_s7, %s6507_s15  ;;  %vm476_vm2 = vcmask 130048   ;;  %vm614_vm4 = vcmask 392192  }
 0x116   : > { %v333_v58 = vld [vmem:[%s332_s14] sm:$0xff]  ;;  %v334_v59 = vld [vmem:[%s332_s14 + $0x8] sm:$0xff]  ;;  %v335_v61 = vld [vmem:[%s332_s14 + $0x10] sm:$0xff]  ;;  %s337_s19 = scalar_lea.vmem %s11631_s5, %s9354_s29  ;;  %s9441_s20 = smov 96  }
 0x117   : > { %v7899_v60 = vpack.c.bf16 %v334_v59, %v333_v58  ;;  %v336_v62 = vld [vmem:[%s332_s14 + $0x18] sm:$0xff]  ;;  %v9801_v19 = vld [vmem:[%s9798_s17] sm:$0x3f]  ;;  %vm9857_vm3 = vmpackc.low %vm476_vm2, %vm476_vm2  ;;  %s9442_s15 = smov 64   ;;  %s9443_s0 = smov 80  }
 0x118   : > { %v7903_v63 = vpack.c.bf16 %v336_v62, %v335_v61  ;;  %s9444_s16 = smov 112   ;;  %s9445_s1 = smov 48  }
 0x119   : > { %236 = vadd.xlane.f32.xlu0 %v235_v20  ;;  %242 = vadd.xlane.f32.xlu1 %v241_v21  ;;  %v9804_v21 = vsub.s32 1, %v9663_v50  ;;  %s9446_s21 = smov 16   ;;  %s1426_s24 = scalar_lea.vmem %s11634_s8, %s9788_s30 }
 0x11a   : > { %7900 = vmatprep.subr.bf16.mxu0 %v7899_v60  ;;  %s1431_s28 = scalar_lea.vmem %s11635_s9, %s9354_s29 }
 0x11b   : > { %7902 = vmatpush3.bf16.msra.mxu0 %v7899_v60 }
 0x11c   : > { %7904 = vmatprep.subr.bf16.mxu0 %v7903_v63 }
 0x11d   : > { %245 = vadd.xlane.f32.xlu0 %v244_v22  ;;  %248 = vadd.xlane.f32.xlu1 %v247_v23  ;;  %v314_v23 = vrot.slane %v9801_v19, %v9672_v56 }
 0x11f   : > { %7906 = vmatpush3.bf16.msra.mxu0 %v7903_v63 }
 0x1a2   : > { %v234_v24 = vpop.xlane.xlu0 %233  ;;  %v240_v25 = vpop.xlane.xlu1 %239 }
 0x1a3   : > { %v251_v26 = vmul.f32 0.03125, %v234_v24  ;;  %v253_v27 = vmul.f32 0.03125, %v240_v25 }
 0x1a5   : > { %v9752_v28 = vsub.f32 %v9350_v55, %v251_v26  ;;  %v9755_v29 = vsub.f32 %v9342_v12, %v253_v27  ;;  %v324_v27 = vrot.slane %v9801_v19, %v9804_v21 }
 0x1a6   : > { %v237_v30 = vpop.xlane.xlu0 %236  ;;  %v243_v31 = vpop.xlane.xlu1 %242 }
 0x1a7   : > { %v252_v32 = vmul.f32 0.03125, %v237_v30  ;;  %v254_v33 = vmul.f32 0.03125, %v243_v31  ;;  %v263_v34 = vmul.f32 %v9752_v28, %v9752_v28  ;;  %v265_v35 = vmul.f32 %v9755_v29, %v9755_v29 }
 0x1a9   : > { %v9762_v36 = vsub.f32 %v9346_v2, %v252_v32  ;;  %v9765_v37 = vsub.f32 %v9338_v57, %v254_v33  ;;  %v269_v38 = vsel %vm212_vm1, %v263_v34, 0.0  ;;  %v275_v40 = vsel %vm212_vm1, %v265_v35, 0.0 }
 0x1aa   : > { %270 = vadd.xlane.f32.xlu0 %v269_v38  ;;  %v246_v39 = vpop.xlane.xlu0 %245  ;;  %v249_v41 = vpop.xlane.xlu1 %248 }
 0x1ab   : > { %v255_v42 = vmul.f32 0.03125, %v246_v39  ;;  %v264_v43 = vmul.f32 %v9762_v36, %v9762_v36  ;;  %v256_v44 = vmul.f32 0.03125, %v249_v41  ;;  %v266_v45 = vmul.f32 %v9765_v37, %v9765_v37 }
 0x1ad   : > { %v9774_v46 = vsub.f32 %v9334_v3, %v255_v42  ;;  %v272_v47 = vsel %vm212_vm1, %v264_v43, 0.0  ;;  %v9778_v48 = vsub.f32 %v9330_v13, %v256_v44  ;;  %v278_v51 = vsel %vm212_vm1, %v266_v45, 0.0 }
 0x1ae   : > { %276 = vadd.xlane.f32.xlu0 %v275_v40  ;;  %273 = vadd.xlane.f32.xlu1 %v272_v47 }
 0x1af   : > { %v267_v49 = vmul.f32 %v9774_v46, %v9774_v46  ;;  %v268_v52 = vmul.f32 %v9778_v48, %v9778_v48 }
 0x1b1   : > { %v281_v53 = vsel %vm212_vm1, %v267_v49, 0.0  ;;  %v284_v54 = vsel %vm212_vm1, %v268_v52, 0.0 }
 0x1b2   : > { %282 = vadd.xlane.f32.xlu0 %v281_v53  ;;  %279 = vadd.xlane.f32.xlu1 %v278_v51 }
 0x1b6   : > { %285 = vadd.xlane.f32.xlu1 %v284_v54 }
 0x237   : > { %v271_v0 = vpop.xlane.xlu0 %270 }
 0x238   : > { %v287_v1 = vmul.f32 0.03125, %v271_v0 }
 0x23a   : > { %v293_v4 = vadd.f32 1e-06, %v287_v1 }
 0x23b   : > { %v277_v5 = vpop.xlane.xlu0 %276  ;;  %v274_v6 = vpop.xlane.xlu1 %273 }
 0x23c   : > { %8696 = vrsqrt.f32 %v293_v4  ;;  %v289_v7 = vmul.f32 0.03125, %v277_v5  ;;  %v288_v8 = vmul.f32 0.03125, %v274_v6 }
 0x23e   : > { %v295_v9 = vadd.f32 1e-06, %v289_v7  ;;  %v294_v10 = vadd.f32 1e-06, %v288_v8 }
 0x23f   : > { %v283_v11 = vpop.xlane.xlu0 %282  ;;  %v280_v14 = vpop.xlane.xlu1 %279 }
 0x240   : > { %8698 = vrsqrt.f32 %v295_v9  ;;  %v291_v15 = vmul.f32 0.03125, %v283_v11  ;;  %v290_v16 = vmul.f32 0.03125, %v280_v14 }
 0x241   : > { %8700 = vrsqrt.f32 %v294_v10 }
 0x242   : > { %v297_v17 = vadd.f32 1e-06, %v291_v15  ;;  %v296_v18 = vadd.f32 1e-06, %v290_v16 }
 0x243   : > { %v286_v20 = vpop.xlane.xlu1 %285 }
 0x244   : > { %8702 = vrsqrt.f32 %v297_v17  ;;  %v292_v22 = vmul.f32 0.03125, %v286_v20 }
 0x245   : > { %8704 = vrsqrt.f32 %v296_v18 }
 0x246   : > { %v8697_v24 = vpop.eup %8696  ;;  %v298_v25 = vadd.f32 1e-06, %v292_v22 }
 0x247   : > { %v305_v26 = vmul.f32 %v8697_v24, %v9752_v28 }
 0x248   : > { %8706 = vrsqrt.f32 %v298_v25 }
 0x249   : > { %v315_v30 = vmul.f32 %v314_v23, %v305_v26  ;;  %v9886_v26 = vld [vmem:[%s11629_s3 + $0x8] sm:$0xff] }
 0x24a   : > { %v8699_v31 = vpop.eup %8698 }
 0x24b   : > { %v8701_v32 = vpop.eup %8700  ;;  %v325_v33 = vadd.f32 %v324_v27, %v315_v30  ;;  %v307_v34 = vmul.f32 %v8699_v31, %v9755_v29  ;;  %v9891_v31 = vld [vmem:[%s11629_s3] sm:$0xff] }
 0x24c   : > { %v306_v35 = vmul.f32 %v8701_v32, %v9762_v36 }
 0x24d   : > { %7167 = vmatprep.mubr.msk.f32.mxu0 %vm212_vm1, %v325_v33  ;;  %v317_v38 = vmul.f32 %v314_v23, %v307_v34 }
 0x24e   : > { %v8703_v39 = vpop.eup %8702  ;;  %v316_v40 = vmul.f32 %v314_v23, %v306_v35 }
 0x24f   : > { %v8705_v41 = vpop.eup %8704  ;;  %v327_v42 = vadd.f32 %v324_v27, %v317_v38  ;;  %v309_v28 = vmul.f32 %v8703_v39, %v9774_v46  ;;  %v9898_v38 = vld [vmem:[%s11629_s3 + $0x18] sm:$0xff] }
 0x250   : > { %v326_v43 = vadd.f32 %v324_v27, %v316_v40  ;;  %v308_v44 = vmul.f32 %v8705_v41, %v9765_v37  ;;  %v6509_v37 = vld [vmem:[%s337_s19] ss:$0 sm:$0xff] }
 0x251   : > { %v319_v45 = vmul.f32 %v314_v23, %v309_v28 }
 0x252   : > { %v8707_v47 = vpop.eup %8706  ;;  %7168 = vmatmul.mubr.msk.f32.vlgmr.msra.gmra.mrb[0].mxu0 %vm212_vm1, %v326_v43  ;;  %v318_v29 = vmul.f32 %v314_v23, %v308_v44  ;;  %v9905_v43 = vld [vmem:[%s11629_s3 + $0x10] sm:$0xff] }
 0x253   : > { %7170 = vmatprep.mubr.msk.f32.mxu0 %vm212_vm1, %v327_v42  ;;  %v329_v36 = vadd.f32 %v324_v27, %v319_v45  ;;  %v310_v49 = vmul.f32 %v8707_v47, %v9778_v48 }
 0x254   : > { %v328_v51 = vadd.f32 %v324_v27, %v318_v29 }
 0x255   : > { %v320_v52 = vmul.f32 %v314_v23, %v310_v49 }
 0x256   : > { %7171 = vmatmul.mubr.msk.f32.gmra.mrb[2].mxu0 %vm212_vm1, %v328_v51  ;;  %v9913_v51 = vld [vmem:[%s11629_s3 + $0x20] sm:$0xff] }
 0x257   : > { %7173 = vmatprep.mubr.msk.f32.mxu0 %vm212_vm1, %v329_v36  ;;  %v330_v46 = vadd.f32 %v324_v27, %v320_v52 }
 0x25a   : > { %7174 = vmatmul.mubr.msk.f32.gmra.mrb[4].mxu0 %vm212_vm1, %v330_v46  ;;  %v9918_v46 = vld [vmem:[%s11629_s3 + $0x28] sm:$0xff] }
 0x325   : > { %v7169_v53 = vpop.f32.mrb[0].mxu0 }
 0x326   : > { %v9826_v54 = vadd.f32 %v7169_v53, %v6509_v37  ;;  %v429_v58 = vpop.f32.mrb[1].mxu0 }
 0x327   : > { %v9828_v48 = vadd.f32 %v6509_v37, %v429_v58 }
 0x329   : > { %v7172_v59 = vpop.f32.mrb[2].mxu0  ;;  %7188 = vmatprep.mubr.msk.f32.mxu1 %vm476_vm2, %v9828_v48  ;;  %v9834_v60 = vpack.i.bf16 %v9826_v54, %v9828_v48 }
 0x32a   : > { %v9836_v61 = vadd.f32 %v7172_v59, %v6509_v37  ;;  %v439_v62 = vpop.f32.mrb[3].mxu0 }
 0x32b   : > { %v9838_v63 = vadd.f32 %v6509_v37, %v439_v62  ;;  %8637 = vrot.lane.b32.xlu0 %v9834_v60, %s9441_s20 }
 0x32d   : > { %v7175_v0 = vpop.f32.mrb[4].mxu0  ;;  %v9843_v1 = vpack.i.bf16 %v9836_v61, %v9838_v63 }
 0x32e   : > { %v9845_v4 = vadd.f32 %v7175_v0, %v6509_v37  ;;  %v449_v5 = vpop.f32.mrb[5].mxu0 }
 0x32f   : > { %v9847_v6 = vadd.f32 %v6509_v37, %v449_v5  ;;  %8642 = vrot.lane.b32.xlu1 %v9843_v1, %s9441_s20 }
 0x331   : > { %v9852_v7 = vpack.i.bf16 %v9845_v4, %v9847_v6 }
 0x333   : > { %8647 = vrot.lane.b32.xlu1 %v9852_v7, %s9441_s20  ;;  %s1194_s20 = scalar_lea.vmem %s11632_s6, %s9788_s30  ;;  %s6565_s30 = sshll.u32 %s9354_s29, 7 }
 0x334   : > { %s10135_s2 = scalar_lea.vmem %s11636_s10, %s6565_s30  ;;  %s222_s29 = sadd.s32 1, %s9354_s29  }
 0x335   : > { %p219_p0 = scmp.ge.s32.totalorder %s222_s29, 3  }
 0x336   :  { %s10213_s18 = smov (%p219_p0), 3  }
 0x39d   : > { %v8638_v8 = vpop.permute.xlu0 %8637 }
 0x39e   : > { %v8640_v9 = vunpack.i.h.bf16 %v8638_v8  ;;  %v8639_v10 = vunpack.i.l.bf16 %v8638_v8 }
 0x3a0   : > { %v7907_v14 = vpack.c.bf16 %v8640_v9, %v8639_v10 }
 0x3a1   : > { %v8643_v15 = vpop.permute.xlu1 %8642 }
 0x3a2   : > { %v8645_v16 = vunpack.i.h.bf16 %v8643_v15  ;;  %v8644_v17 = vunpack.i.l.bf16 %v8643_v15  ;;  %7909 = vmatprep.subr.msk.bf16.mxu1 %vm9857_vm3, %v7907_v14 }
 0x3a3   : > { %7912 = vmatpush3.bf16.xpose.msk.msra.mxu1 %vm9857_vm3, %v7907_v14 }
 0x3a4   : > { %v7913_v18 = vpack.c.bf16 %v8645_v16, %v8644_v17 }
 0x3a5   : > { %v8648_v20 = vpop.permute.xlu1 %8647 }
 0x3a6   : > { %v8650_v22 = vunpack.i.h.bf16 %v8648_v20  ;;  %v8649_v23 = vunpack.i.l.bf16 %v8648_v20  ;;  %7915 = vmatprep.subr.msk.bf16.mxu1 %vm9857_vm3, %v7913_v18 }
 0x3a8   : > { %v7919_v24 = vpack.c.bf16 %v8650_v22, %v8649_v23 }
 0x3ab   : > { %7918 = vmatpush3.bf16.xpose.msk.msra.mxu1 %vm9857_vm3, %v7913_v18 }
 0x3ac   : > { %7921 = vmatprep.subr.msk.bf16.mxu1 %vm9857_vm3, %v7919_v24 }
 0x3b3   : > { %7924 = vmatpush3.bf16.xpose.msk.msra.mxu1 %vm9857_vm3, %v7919_v24 }
 0x3ba   : > { %7189 = vmatmul.mubr.msk.f32.vlgmr.msra.gmra.mrb[0].mxu1 %vm476_vm2, %v9826_v54 }
 0x3bb   : > { %7191 = vmatprep.mubr.msk.f32.mxu1 %vm476_vm2, %v9838_v63 }
 0x3be   : > { %7192 = vmatmul.mubr.msk.f32.gmra.mrb[2].mxu1 %vm476_vm2, %v9836_v61 }
 0x3bf   : > { %7194 = vmatprep.mubr.msk.f32.mxu1 %vm476_vm2, %v9847_v6 }
 0x3c2   : > { %7195 = vmatmul.mubr.msk.f32.gmra.mrb[4].mxu1 %vm476_vm2, %v9845_v4 }
 0x48d   : > { %v7190_v25 = vpop.f32.mrb[0].mxu1 }
 0x48e   : > { %v597_v27 = vmul.f32 0.25, %v7190_v25  ;;  %v567_v30 = vpop.f32.mrb[1].mxu1 }
 0x48f   : > { %v596_v32 = vmul.f32 0.25, %v567_v30 }
 0x490   : > { %v609_v33 = vadd.f32 %v9886_v26, %v597_v27 }
 0x491   : > { %v7193_v34 = vpop.f32.mrb[2].mxu1  ;;  %v608_v35 = vadd.f32 %v9891_v31, %v596_v32 }
 0x492   : > { %v599_v39 = vmul.f32 0.25, %v7193_v34  ;;  %v577_v40 = vpop.f32.mrb[3].mxu1  ;;  %v618_v41 = vsel %vm614_vm4, %v609_v33, -inf }
 0x493   : > { %v598_v42 = vmul.f32 0.25, %v577_v40  ;;  %619 = vmax.xlane.f32.xlu0 %v618_v41  ;;  %v615_v28 = vsel %vm614_vm4, %v608_v35, -inf }
 0x494   : > { %616 = vmax.xlane.f32.xlu1 %v615_v28  ;;  %v611_v44 = vadd.f32 %v9898_v38, %v599_v39 }
 0x495   : > { %v7196_v45 = vpop.f32.mrb[4].mxu1  ;;  %v610_v49 = vadd.f32 %v9905_v43, %v598_v42 }
 0x496   : > { %v601_v47 = vmul.f32 0.25, %v7196_v45  ;;  %v587_v29 = vpop.f32.mrb[5].mxu1  ;;  %v624_v36 = vsel %vm614_vm4, %v611_v44, -inf }
 0x497   : > { %v600_v52 = vmul.f32 0.25, %v587_v29  ;;  %625 = vmax.xlane.f32.xlu0 %v624_v36  ;;  %v621_v53 = vsel %vm614_vm4, %v610_v49, -inf }
 0x498   : > { %v613_v58 = vadd.f32 %v9918_v46, %v601_v47 }
 0x499   : > { %v612_v37 = vadd.f32 %v9913_v51, %v600_v52 }
 0x49a   : > { %v630_v62 = vsel %vm614_vm4, %v613_v58, -inf }
 0x49b   : > { %622 = vmax.xlane.f32.xlu0 %v621_v53  ;;  %v627_v59 = vsel %vm614_vm4, %v612_v37, -inf }
 0x49c   : > { %628 = vmax.xlane.f32.xlu1 %v627_v59 }
 0x49f   : > { %631 = vmax.xlane.f32.xlu0 %v630_v62 }
 0x4ad   : > { %8652 = vrot.lane.b32.xlu1 %v9834_v60, %s9442_s15 }
 0x4b1   : > { %8662 = vrot.lane.b32.xlu1 %v9852_v7, %s9442_s15 }
 0x4b5   : > { %8657 = vrot.lane.b32.xlu0 %v9843_v1, %s9442_s15 }
 0x520   : > { %v620_v0 = vpop.xlane.xlu0 %619 }
 0x521   : > { %v634_v5 = vsub.f32 %v609_v33, %v620_v0  ;;  %v617_v8 = vpop.xlane.xlu1 %616 }
 0x522   : > { %v633_v9 = vsub.f32 %v608_v35, %v617_v8 }
 0x523   : > { %v641_v10 = vmul.f32 1.442695, %v634_v5 }
 0x524   : > { %v639_v14 = vmul.f32 1.442695, %v633_v9  ;;  %v626_v15 = vpop.xlane.xlu0 %625 }
 0x525   : > { %8708 = vpow2.f32 %v641_v10  ;;  %v636_v16 = vsub.f32 %v611_v44, %v626_v15 }
 0x526   : > { %8710 = vpow2.f32 %v639_v14 }
 0x527   : > { %v645_v17 = vmul.f32 1.442695, %v636_v16 }
 0x528   : > { %v623_v18 = vpop.xlane.xlu0 %622 }
 0x529   : > { %8712 = vpow2.f32 %v645_v17  ;;  %v635_v20 = vsub.f32 %v610_v49, %v623_v18  ;;  %v629_v22 = vpop.xlane.xlu1 %628 }
 0x52a   : > { %v637_v24 = vsub.f32 %v612_v37, %v629_v22 }
 0x52b   : > { %v643_v23 = vmul.f32 1.442695, %v635_v20 }
 0x52c   : > { %v632_v25 = vpop.xlane.xlu0 %631  ;;  %v647_v35 = vmul.f32 1.442695, %v637_v24 }
 0x52d   : > { %8714 = vpow2.f32 %v643_v23  ;;  %v638_v27 = vsub.f32 %v613_v58, %v632_v25  ;;  %v8653_v30 = vpop.permute.xlu1 %8652 }
 0x52e   : > { %v8655_v32 = vunpack.i.h.bf16 %v8653_v30  ;;  %v8654_v33 = vunpack.i.l.bf16 %v8653_v30 }
 0x52f   : > { %v8709_v34 = vpop.eup %8708  ;;  %v649_v39 = vmul.f32 1.442695, %v638_v27 }
 0x530   : > { %v8711_v40 = vpop.eup %8710  ;;  %v7925_v41 = vpack.c.bf16 %v8655_v32, %v8654_v33  ;;  %v8658_v42 = vpop.permute.xlu0 %8657  ;;  %v654_v28 = vsel %vm614_vm4, %v8709_v34, 0.0 }
 0x531   : > { %8716 = vpow2.f32 %v649_v39  ;;  %v8660_v44 = vunpack.i.h.bf16 %v8658_v42  ;;  %v8659_v45 = vunpack.i.l.bf16 %v8658_v42  ;;  %655 = vadd.xlane.f32.xlu0 %v654_v28  ;;  %v8663_v47 = vpop.permute.xlu1 %8662  ;;  %v651_v29 = vsel %vm614_vm4, %v8711_v40, 0.0 }
 0x532   : > { %v8665_v36 = vunpack.i.h.bf16 %v8663_v47  ;;  %v8664_v49 = vunpack.i.l.bf16 %v8663_v47  ;;  %652 = vadd.xlane.f32.xlu1 %v651_v29  ;;  %7926 = vmatprep.subr.bf16.mxu0 %v7925_v41  ;;  %8718 = vpow2.f32 %v647_v35 }
 0x533   : > { %v8713_v52 = vpop.eup %8712  ;;  %v7929_v37 = vpack.c.bf16 %v8660_v44, %v8659_v45  ;;  %7928 = vmatpush3.bf16.msra.mxu0 %v7925_v41 }
 0x534   : > { %v660_v53 = vsel %vm614_vm4, %v8713_v52, 0.0  ;;  %v7933_v58 = vpack.c.bf16 %v8665_v36, %v8664_v49 }
 0x535   : > { %661 = vadd.xlane.f32.xlu0 %v660_v53  ;;  %7930 = vmatprep.subr.bf16.mxu0 %v7929_v37 }
 0x537   : > { %v8715_v59 = vpop.eup %8714  ;;  %7932 = vmatpush3.bf16.msra.mxu0 %v7929_v37 }
 0x538   : > { %7934 = vmatprep.subr.bf16.mxu0 %v7933_v58  ;;  %v657_v62 = vsel %vm614_vm4, %v8715_v59, 0.0 }
 0x539   : > { %658 = vadd.xlane.f32.xlu1 %v657_v62 }
 0x53b   : > { %v8717_v0 = vpop.eup %8716  ;;  %7936 = vmatpush3.bf16.msra.mxu0 %v7933_v58 }
 0x53c   : > { %v666_v5 = vsel %vm614_vm4, %v8717_v0, 0.0  ;;  %v8719_v8 = vpop.eup %8718 }
 0x53d   : > { %667 = vadd.xlane.f32.xlu0 %v666_v5  ;;  %v663_v9 = vsel %vm614_vm4, %v8719_v8, 0.0 }
 0x541   : > { %664 = vadd.xlane.f32.xlu0 %v663_v9 }
 0x54a   : > { %8672 = vrot.lane.b32.xlu1 %v9843_v1, %s9443_s0 }
 0x54e   : > { %8677 = vrot.lane.b32.xlu1 %v9852_v7, %s9443_s0 }
 0x552   : > { %812 = vrot.lane.b32.xlu1 %v9828_v48, %s9444_s16 }
 0x556   : > { %814 = vrot.lane.b32.xlu1 %v9826_v54, %s9444_s16 }
 0x557   : > { %8667 = vrot.lane.b32.xlu0 %v9834_v60, %s9443_s0 }
 0x55a   : > { %816 = vrot.lane.b32.xlu1 %v9838_v63, %s9444_s16 }
 0x55b   : > { %818 = vrot.lane.b32.xlu0 %v9836_v61, %s9444_s16 }
 0x55e   : > { %820 = vrot.lane.b32.xlu1 %v9847_v6, %s9444_s16 }
 0x55f   : > { %822 = vrot.lane.b32.xlu0 %v9845_v4, %s9444_s16 }
 0x5be   : > { %v656_v10 = vpop.xlane.xlu0 %655 }
 0x5bf   : > { %8720 = vrcp.f32 %v656_v10  ;;  %v653_v14 = vpop.xlane.xlu1 %652 }
 0x5c0   : > { %8722 = vrcp.f32 %v653_v14 }
 0x5c2   : > { %v662_v15 = vpop.xlane.xlu0 %661 }
 0x5c3   : > { %8724 = vrcp.f32 %v662_v15 }
 0x5c6   : > { %v659_v16 = vpop.xlane.xlu1 %658 }
 0x5c7   : > { %8726 = vrcp.f32 %v659_v16 }
 0x5c9   : > { %v8721_v48 = vpop.eup %8720 }
 0x5ca   : > { %v8723_v54 = vpop.eup %8722  ;;  %v668_v17 = vpop.xlane.xlu0 %667  ;;  %v672_v20 = vmul.f32 %v8721_v48, %v8709_v34 }
 0x5cb   : > { %v670_v18 = vmul.f32 %v8723_v54, %v8711_v40  ;;  %8728 = vrcp.f32 %v668_v17  ;;  %v8673_v63 = vpop.permute.xlu1 %8672 }
 0x5cc   : > { %v8675_v22 = vunpack.i.h.bf16 %v8673_v63  ;;  %v8674_v25 = vunpack.i.l.bf16 %v8673_v63 }
 0x5cd   : > { %7209 = vmatprep.mubr.msk.f32.mxu0 %vm614_vm4, %v670_v18  ;;  %v8725_v4 = vpop.eup %8724 }
 0x5ce   : > { %v665_v61 = vpop.xlane.xlu0 %664  ;;  %7210 = vmatmul.mubr.msk.f32.vlgmr.msra.gmra.mrb[6].mxu0 %vm614_vm4, %v672_v20  ;;  %v676_v32 = vmul.f32 %v8725_v4, %v8713_v52  ;;  %v7943_v34 = vpack.c.bf16 %v8675_v22, %v8674_v25 }
 0x5cf   : > { %8730 = vrcp.f32 %v665_v61  ;;  %v8678_v35 = vpop.permute.xlu1 %8677 }
 0x5d0   : > { %v8680_v42 = vunpack.i.h.bf16 %v8678_v35  ;;  %v8679_v28 = vunpack.i.l.bf16 %v8678_v35 }
 0x5d1   : > { %v8727_v6 = vpop.eup %8726 }
 0x5d2   : > { %v8668_v23 = vpop.permute.xlu0 %8667  ;;  %v674_v24 = vmul.f32 %v8727_v6, %v8715_v59  ;;  %v7949_v47 = vpack.c.bf16 %v8680_v42, %v8679_v28 }
 0x5d3   : > { %v8670_v27 = vunpack.i.h.bf16 %v8668_v23  ;;  %v8669_v30 = vunpack.i.l.bf16 %v8668_v23  ;;  %v813_v45 = vpop.permute.xlu1 %812 }
 0x5d4   : > { %7212 = vmatprep.mubr.msk.f32.mxu0 %vm614_vm4, %v674_v24 }
 0x5d5   : > { %v7937_v33 = vpack.c.bf16 %v8670_v27, %v8669_v30  ;;  %7213 = vmatmul.mubr.msk.f32.gmra.mrb[8].mxu0 %vm614_vm4, %v676_v32  ;;  %v8729_v39 = vpop.eup %8728 }
 0x5d6   : > { %v680_v44 = vmul.f32 %v8729_v39, %v8717_v0  ;;  %v819_v49 = vpop.permute.xlu0 %818 }
 0x5d7   : > { %7939 = vmatprep.subr.msk.bf16.mxu0 %vm9857_vm3, %v7937_v33  ;;  %v815_v29 = vpop.permute.xlu1 %814 }
 0x5d8   : > { %7942 = vmatpush3.bf16.xpose.msk.msra.mxu0 %vm9857_vm3, %v7937_v33 }
 0x5d9   : > { %v8731_v40 = vpop.eup %8730  ;;  %7945 = vmatprep.subr.msk.bf16.mxu0 %vm9857_vm3, %v7943_v34 }
 0x5da   : > { %v678_v41 = vmul.f32 %v8731_v40, %v8719_v8  ;;  %v823_v37 = vpop.permute.xlu0 %822 }
 0x5db   : > { %v817_v36 = vpop.permute.xlu1 %816 }
 0x5dc   : > { %7215 = vmatprep.mubr.msk.f32.mxu0 %vm614_vm4, %v678_v41 }
 0x5dd   : > { %7216 = vmatmul.mubr.msk.f32.gmra.mrb[10].mxu0 %vm614_vm4, %v680_v44 }
 0x5de   : > { %7230 = vmatprep.mubr.msk.f32.mxu0 %vm476_vm2, %v813_v45 }
 0x5df   : > { %v821_v52 = vpop.permute.xlu1 %820 }
 0x5e0   : > { %7948 = vmatpush3.bf16.xpose.msk.msra.mxu0 %vm9857_vm3, %v7943_v34 }
 0x5e1   : > { %7951 = vmatprep.subr.msk.bf16.mxu0 %vm9857_vm3, %v7949_v47 }
 0x5e8   : > { %7954 = vmatpush3.bf16.xpose.msk.msra.mxu0 %vm9857_vm3, %v7949_v47 }
 0x5ef   : > { %7231 = vmatmul.mubr.msk.f32.vlgmr.msra.gmra.mrb[12].mxu0 %vm476_vm2, %v815_v29 }
 0x5f0   : > { %7233 = vmatprep.mubr.msk.f32.mxu0 %vm476_vm2, %v817_v36 }
 0x5f3   : > { %7234 = vmatmul.mubr.msk.f32.gmra.mrb[14].mxu0 %vm476_vm2, %v819_v49 }
 0x5f4   : > { %7236 = vmatprep.mubr.msk.f32.mxu0 %vm476_vm2, %v821_v52 }
 0x5f7   : > { %7237 = vmatmul.mubr.msk.f32.gmra.mrb[16].mxu0 %vm476_vm2, %v823_v37 }
 0x6a1   : > { %v9967_v53 = vpop.f32.mrb[6].mxu0 }
 0x6a2   : > { %v9969_v58 = vpop.f32.mrb[7].mxu0 }
 0x6a8   : > { %v9971_v59 = vpop.f32.mrb[8].mxu0 }
 0x6a9   : > { %v9973_v62 = vpop.f32.mrb[9].mxu0 }
 0x6b0   : > { %v9975_v0 = vpop.f32.mrb[10].mxu0 }
 0x6b1   : > { %v9977_v5 = vpop.f32.mrb[11].mxu0 }
 0x6c2   : > { %v7232_v8 = vpop.f32.mrb[12].mxu0 }
 0x6c3   : > { %v956_v9 = vmul.f32 0.25, %v7232_v8  ;;  %v926_v10 = vpop.f32.mrb[13].mxu0 }
 0x6c4   : > { %v955_v14 = vmul.f32 0.25, %v926_v10 }
 0x6c5   : > { %v962_v15 = vadd.f32 %v956_v9, %v9886_v26 }
 0x6c6   : > { %v7235_v16 = vpop.f32.mrb[14].mxu0  ;;  %v961_v48 = vadd.f32 %v955_v14, %v9891_v31 }
 0x6c7   : > { %v936_v54 = vpop.f32.mrb[15].mxu0  ;;  %v970_v17 = vsel %vm614_vm4, %v962_v15, -inf  ;;  %v958_v18 = vmul.f32 0.25, %v7235_v16 }
 0x6c8   : > { %v957_v20 = vmul.f32 0.25, %v936_v54  ;;  %971 = vmax.xlane.f32.xlu0 %v970_v17  ;;  %v967_v61 = vsel %vm614_vm4, %v961_v48, -inf }
 0x6c9   : > { %968 = vmax.xlane.f32.xlu1 %v967_v61  ;;  %v964_v24 = vadd.f32 %v958_v18, %v9898_v38 }
 0x6ca   : > { %v7238_v63 = vpop.f32.mrb[16].mxu0  ;;  %v963_v4 = vadd.f32 %v957_v20, %v9905_v43 }
 0x6cb   : > { %v946_v6 = vpop.f32.mrb[17].mxu0  ;;  %v960_v22 = vmul.f32 0.25, %v7238_v63  ;;  %v976_v25 = vsel %vm614_vm4, %v964_v24, -inf }
 0x6cc   : > { %v959_v23 = vmul.f32 0.25, %v946_v6  ;;  %v973_v26 = vsel %vm614_vm4, %v963_v4, -inf }
 0x6cd   : > { %974 = vmax.xlane.f32.xlu0 %v973_v26  ;;  %v966_v30 = vadd.f32 %v960_v22, %v9918_v46 }
 0x6ce   : > { %v965_v31 = vadd.f32 %v959_v23, %v9913_v51 }
 0x6cf   : > { %v982_v43 = vsel %vm614_vm4, %v966_v30, -inf }
 0x6d0   : > { %v979_v27 = vsel %vm614_vm4, %v965_v31, -inf }
 0x6d1   : > { %977 = vmax.xlane.f32.xlu0 %v976_v25  ;;  %980 = vmax.xlane.f32.xlu1 %v979_v27 }
 0x6d5   : > { %983 = vmax.xlane.f32.xlu0 %v982_v43 }
 0x6e2   : > { %8682 = vrot.lane.b32.xlu1 %v9834_v60, %s9445_s1 }
 0x755   : > { %v972_v32 = vpop.xlane.xlu0 %971 }
 0x756   : > { %v986_v38 = vsub.f32 %v962_v15, %v972_v32  ;;  %v969_v33 = vpop.xlane.xlu1 %968 }
 0x757   : > { %v985_v34 = vsub.f32 %v961_v48, %v969_v33 }
 0x758   : > { %v993_v51 = vmul.f32 1.442695, %v986_v38 }
 0x759   : > { %v991_v35 = vmul.f32 1.442695, %v985_v34 }
 0x75a   : > { %8732 = vpow2.f32 %v993_v51  ;;  %v975_v39 = vpop.xlane.xlu0 %974 }
 0x75b   : > { %8734 = vpow2.f32 %v991_v35  ;;  %v987_v40 = vsub.f32 %v963_v4, %v975_v39 }
 0x75d   : > { %v995_v46 = vmul.f32 1.442695, %v987_v40 }
 0x75e   : > { %v978_v41 = vpop.xlane.xlu0 %977  ;;  %v981_v42 = vpop.xlane.xlu1 %980 }
 0x75f   : > { %8736 = vpow2.f32 %v995_v46  ;;  %v988_v28 = vsub.f32 %v964_v24, %v978_v41  ;;  %v989_v44 = vsub.f32 %v965_v31, %v981_v42 }
 0x761   : > { %v997_v45 = vmul.f32 1.442695, %v988_v28  ;;  %v999_v47 = vmul.f32 1.442695, %v989_v44 }
 0x762   : > { %v984_v29 = vpop.xlane.xlu0 %983  ;;  %v8683_v60 = vpop.permute.xlu1 %8682 }
 0x763   : > { %8738 = vpow2.f32 %v997_v45  ;;  %v990_v36 = vsub.f32 %v966_v30, %v984_v29  ;;  %v8685_v49 = vunpack.i.h.bf16 %v8683_v60  ;;  %v8684_v52 = vunpack.i.l.bf16 %v8683_v60  ;;  %v1195_v45 = vld [vmem:[%s1194_s20] sm:$0xff]  ;;  %v1197_v29 = vld [vmem:[%s1194_s20 + $0x10] sm:$0xff] }
 0x764   : > { %v8733_v37 = vpop.eup %8732  ;;  %8740 = vpow2.f32 %v999_v47  ;;  %v1196_v47 = vld [vmem:[%s1194_s20 + $0x8] sm:$0xff] }
 0x765   : > { %v8735_v8 = vpop.eup %8734  ;;  %v1001_v9 = vmul.f32 1.442695, %v990_v36  ;;  %v7955_v10 = vpack.c.bf16 %v8685_v49, %v8684_v52  ;;  %v1006_v14 = vsel %vm614_vm4, %v8733_v37, 0.0  ;;  %v7967_v60 = vpack.c.bf16 %v1196_v47, %v1195_v45  ;;  %v1198_v36 = vld [vmem:[%s1194_s20 + $0x18] sm:$0xff] }
 0x766   : > { %1007 = vadd.xlane.f32.xlu0 %v1006_v14  ;;  %v1003_v15 = vsel %vm614_vm4, %v8735_v8, 0.0  ;;  %v7971_v49 = vpack.c.bf16 %v1198_v36, %v1197_v29 }
 0x767   : > { %8742 = vpow2.f32 %v1001_v9  ;;  %1004 = vadd.xlane.f32.xlu1 %v1003_v15  ;;  %7956 = vmatprep.subr.bf16.mxu0 %v7955_v10 }
 0x768   : > { %7958 = vmatpush3.bf16.msra.mxu0 %v7955_v10  ;;  %7968 = vmatprep.subr.bf16.mxu1 %v7967_v60 }
 0x769   : > { %v8737_v16 = vpop.eup %8736  ;;  %7970 = vmatpush3.bf16.msra.mxu1 %v7967_v60 }
 0x76a   : > { %v1009_v48 = vsel %vm614_vm4, %v8737_v16, 0.0  ;;  %7972 = vmatprep.subr.bf16.mxu1 %v7971_v49 }
 0x76b   : > { %1010 = vadd.xlane.f32.xlu1 %v1009_v48 }
 0x76d   : > { %v8739_v54 = vpop.eup %8738  ;;  %7974 = vmatpush3.bf16.msra.mxu1 %v7971_v49 }
 0x76e   : > { %v8741_v17 = vpop.eup %8740  ;;  %v1012_v18 = vsel %vm614_vm4, %v8739_v54, 0.0 }
 0x76f   : > { %1013 = vadd.xlane.f32.xlu0 %v1012_v18  ;;  %v1015_v20 = vsel %vm614_vm4, %v8741_v17, 0.0 }
 0x770   : > { %1016 = vadd.xlane.f32.xlu1 %v1015_v20 }
 0x771   : > { %v8743_v61 = vpop.eup %8742 }
 0x772   : > { %v1018_v63 = vsel %vm614_vm4, %v8743_v61, 0.0 }
 0x773   : > { %1019 = vadd.xlane.f32.xlu0 %v1018_v63 }
 0x781   : > { %8692 = vrot.lane.b32.xlu1 %v9852_v7, %s9445_s1 }
 0x789   : > { %8687 = vrot.lane.b32.xlu0 %v9843_v1, %s9445_s1 }
 0x7f3   : > { %v1008_v6 = vpop.xlane.xlu0 %1007 }
 0x7f4   : > { %v1005_v4 = vpop.xlane.xlu1 %1004 }
 0x7f5   : > { %8744 = vrcp.f32 %v1005_v4  ;;  %v10032_v4 = vsub.s32 2, %v9663_v50 }
 0x7f6   : > { %8746 = vrcp.f32 %v1008_v6 }
 0x7f7   : > { %v1321_v6 = vrot.slane %v9801_v19, %v10032_v4 }
 0x7f8   : > { %v1011_v22 = vpop.xlane.xlu1 %1010 }
 0x7f9   : > { %8748 = vrcp.f32 %v1011_v22 }
 0x7fc   : > { %v1014_v23 = vpop.xlane.xlu0 %1013 }
 0x7fd   : > { %v1017_v26 = vpop.xlane.xlu1 %1016  ;;  %8750 = vrcp.f32 %v1014_v23 }
 0x7fe   : > { %8752 = vrcp.f32 %v1017_v26 }
 0x7ff   : > { %v8745_v24 = vpop.eup %8744 }
 0x800   : > { %v1020_v31 = vpop.xlane.xlu0 %1019  ;;  %v1022_v25 = vmul.f32 %v8745_v24, %v8735_v8  ;;  %v8747_v34 = vpop.eup %8746 }
 0x801   : > { %v8693_v27 = vpop.permute.xlu1 %8692  ;;  %8754 = vrcp.f32 %v1020_v31  ;;  %v1024_v35 = vmul.f32 %v8747_v34, %v8733_v37 }
 0x802   : > { %7251 = vmatprep.mubr.msk.f32.mxu0 %vm614_vm4, %v1022_v25  ;;  %v8695_v43 = vunpack.i.h.bf16 %v8693_v27  ;;  %v8694_v7 = vunpack.i.l.bf16 %v8693_v27 }
 0x803   : > { %v8749_v51 = vpop.eup %8748 }
 0x804   : > { %v8688_v30 = vpop.permute.xlu0 %8687  ;;  %v7963_v33 = vpack.c.bf16 %v8695_v43, %v8694_v7  ;;  %v1026_v40 = vmul.f32 %v8749_v51, %v8737_v16 }
 0x805   : > { %v8690_v32 = vunpack.i.h.bf16 %v8688_v30  ;;  %v8689_v38 = vunpack.i.l.bf16 %v8688_v30 }
 0x807   : > { %v7959_v1 = vpack.c.bf16 %v8690_v32, %v8689_v38  ;;  %v8751_v39 = vpop.eup %8750 }
 0x808   : > { %v8753_v46 = vpop.eup %8752  ;;  %v1028_v41 = vmul.f32 %v8751_v39, %v8739_v54 }
 0x809   : > { %7960 = vmatprep.subr.bf16.mxu0 %v7959_v1  ;;  %v1030_v28 = vmul.f32 %v8753_v46, %v8741_v17 }
 0x80a   : > { %7962 = vmatpush3.bf16.msra.mxu0 %v7959_v1 }
 0x80b   : > { %7964 = vmatprep.subr.bf16.mxu0 %v7963_v33  ;;  %v8755_v42 = vpop.eup %8754 }
 0x80c   : > { %v1032_v44 = vmul.f32 %v8755_v42, %v8743_v61 }
 0x80e   : > { %7966 = vmatpush3.bf16.msra.mxu0 %v7963_v33 }
 0x811   : > { %7252 = vmatmul.mubr.msk.f32.vlgmr.msra.gmra.mrb[18].mxu0 %vm614_vm4, %v1024_v35 }
 0x812   : > { %7254 = vmatprep.mubr.msk.f32.mxu0 %vm614_vm4, %v1026_v40 }
 0x815   : > { %7255 = vmatmul.mubr.msk.f32.gmra.mrb[20].mxu0 %vm614_vm4, %v1028_v41 }
 0x816   : > { %7257 = vmatprep.mubr.msk.f32.mxu0 %vm614_vm4, %v1030_v28 }
 0x819   : > { %7258 = vmatmul.mubr.msk.f32.gmra.mrb[22].mxu0 %vm614_vm4, %v1032_v44 }
 0x8e4   : > { %v7253_v52 = vpop.f32.mrb[18].mxu0 }
 0x8e5   : > { %v1135_v37 = vpop.f32.mrb[19].mxu0 }
 0x8e6   : > { %1170 = vrot.lane.b32.xlu1 %v1135_v37, %s9446_s21 }
 0x8e8   : > { %v7256_v8 = vpop.f32.mrb[20].mxu0 }
 0x8e9   : > { %v1145_v9 = vpop.f32.mrb[21].mxu0 }
 0x8ea   : > { %1172 = vrot.lane.b32.xlu1 %v7253_v52, %s9446_s21  ;;  %1174 = vrot.lane.b32.xlu0 %v1145_v9, %s9446_s21 }
 0x8ec   : > { %v7259_v10 = vpop.f32.mrb[22].mxu0 }
 0x8ed   : > { %v1155_v14 = vpop.f32.mrb[23].mxu0 }
 0x8ee   : > { %1176 = vrot.lane.b32.xlu1 %v7256_v8, %s9446_s21  ;;  %1178 = vrot.lane.b32.xlu0 %v1155_v14, %s9446_s21 }
 0x8f2   : > { %1180 = vrot.lane.b32.xlu1 %v7259_v10, %s9446_s21 }
 0x958   : > { %v1171_v15 = vpop.permute.xlu1 %1170 }
 0x959   : > { %v1188_v16 = vsel %vm476_vm2, %v9969_v58, %v1171_v15 }
 0x95a   : > { %7268 = vmatprep.mubr.msk.f32.mxu1 %vm212_vm1, %v1188_v16 }
 0x95c   : > { %v1173_v48 = vpop.permute.xlu1 %1172  ;;  %v1175_v54 = vpop.permute.xlu0 %1174 }
 0x95d   : > { %v1189_v17 = vsel %vm476_vm2, %v9967_v53, %v1173_v48  ;;  %v1190_v18 = vsel %vm476_vm2, %v9973_v62, %v1175_v54 }
 0x95e   : > { %7269 = vmatmul.mubr.msk.f32.vlgmr.msra.gmra.mrb[6].mxu1 %vm212_vm1, %v1189_v17 }
 0x95f   : > { %7271 = vmatprep.mubr.msk.f32.mxu1 %vm212_vm1, %v1190_v18 }
 0x960   : > { %v1177_v20 = vpop.permute.xlu1 %1176  ;;  %v1179_v61 = vpop.permute.xlu0 %1178 }
 0x961   : > { %v1191_v63 = vsel %vm476_vm2, %v9971_v59, %v1177_v20  ;;  %v1192_v58 = vsel %vm476_vm2, %v9977_v5, %v1179_v61 }
 0x962   : > { %7272 = vmatmul.mubr.msk.f32.gmra.mrb[8].mxu1 %vm212_vm1, %v1191_v63  ;;  %v1427_v63 = vld [vmem:[%s1426_s24] sm:$0xff] }
 0x963   : > { %7274 = vmatprep.mubr.msk.f32.mxu1 %vm212_vm1, %v1192_v58  ;;  %v1428_v58 = vld [vmem:[%s1426_s24 + $0x8] sm:$0xff] }
 0x964   : > { %v1181_v53 = vpop.permute.xlu1 %1180 }
 0x965   : > { %v1193_v62 = vsel %vm476_vm2, %v9975_v0, %v1181_v53  ;;  %v7975_v53 = vpack.c.bf16 %v1428_v58, %v1427_v63 }
 0x966   : > { %7275 = vmatmul.mubr.msk.f32.gmra.mrb[10].mxu1 %vm212_vm1, %v1193_v62  ;;  %v1429_v62 = vld [vmem:[%s1426_s24 + $0x10] sm:$0xff] }
 0x967   : > { %7976 = vmatprep.subr.bf16.mxu0 %v7975_v53 }
 0x968   : > { %7978 = vmatpush3.bf16.msra.mxu0 %v7975_v53 }
 0xa31   : > { %v7270_v59 = vpop.f32.mrb[6].mxu1 }
 0xa32   : > { %v1313_v22 = vadd.f32 %v9346_v2, %v7270_v59  ;;  %v1283_v5 = vpop.f32.mrb[7].mxu1 }
 0xa33   : > { %v1312_v23 = vadd.f32 %v9350_v55, %v1283_v5 }
 0xa34   : > { %v10038_v26 = vadd.f32 %v1321_v6, %v1313_v22 }
 0xa35   : > { %v10040_v24 = vadd.f32 %v1321_v6, %v1312_v23  ;;  %v7273_v31 = vpop.f32.mrb[8].mxu1 }
 0xa36   : > { %v1315_v0 = vadd.f32 %v9338_v57, %v7273_v31  ;;  %v1293_v25 = vpop.f32.mrb[9].mxu1  ;;  %v1331_v27 = vsel %vm212_vm1, %v10038_v26, 0.0 }
 0xa37   : > { %v1314_v30 = vadd.f32 %v9342_v12, %v1293_v25  ;;  %1332 = vadd.xlane.f32.xlu1 %v1331_v27  ;;  %v1328_v2 = vsel %vm212_vm1, %v10040_v24, 0.0 }
 0xa38   : > { %v10048_v19 = vadd.f32 %v1321_v6, %v1315_v0  ;;  %1329 = vadd.xlane.f32.xlu0 %v1328_v2 }
 0xa39   : > { %v7276_v55 = vpop.f32.mrb[10].mxu1  ;;  %v10053_v32 = vadd.f32 %v1321_v6, %v1314_v30 }
 0xa3a   : > { %v1317_v43 = vadd.f32 %v9330_v13, %v7276_v55  ;;  %v1303_v7 = vpop.f32.mrb[11].mxu1  ;;  %v1337_v57 = vsel %vm212_vm1, %v10048_v19, 0.0 }
 0xa3b   : > { %v1316_v38 = vadd.f32 %v9334_v3, %v1303_v7  ;;  %v1334_v13 = vsel %vm212_vm1, %v10053_v32, 0.0 }
 0xa3c   : > { %v10056_v1 = vadd.f32 %v1321_v6, %v1317_v43  ;;  %1338 = vadd.xlane.f32.xlu0 %v1337_v57 }
 0xa3d   : > { %v10060_v33 = vadd.f32 %v1321_v6, %v1316_v38  ;;  %v1430_v6 = vld [vmem:[%s1426_s24 + $0x18] sm:$0xff]  ;;  %v10107_v38 = vsub.s32 3, %v9663_v50 }
 0xa3e   : > { %v1343_v12 = vsel %vm212_vm1, %v10056_v1, 0.0  ;;  %v7979_v59 = vpack.c.bf16 %v1430_v6, %v1429_v62  ;;  %v1610_v62 = vld [vmem:[%s10135_s2 + $0x10] sm:$0xff]  ;;  %v1611_v6 = vld [vmem:[%s10135_s2 + $0x18] sm:$0xff] }
 0xa3f   : > { %1344 = vadd.xlane.f32.xlu1 %v1343_v12  ;;  %v1340_v34 = vsel %vm212_vm1, %v10060_v33, 0.0 }
 0xa40   : > { %1335 = vadd.xlane.f32.xlu0 %v1334_v13  ;;  %7980 = vmatprep.subr.bf16.mxu0 %v7979_v59 }
 0xa41   : > { %7982 = vmatpush3.bf16.msra.mxu0 %v7979_v59  ;;  %v7987_v59 = vpack.c.bf16 %v1611_v6, %v1610_v62 }
 0xa44   : > { %1341 = vadd.xlane.f32.xlu0 %v1340_v34 }
 0xac4   : > { %v1333_v51 = vpop.xlane.xlu1 %1332 }
 0xac5   : > { %v1347_v35 = vmul.f32 0.03125, %v1333_v51  ;;  %v1330_v3 = vpop.xlane.xlu0 %1329  ;;  %v10110_v51 = vsub.s32 4, %v9663_v50 }
 0xac6   : > { %v1346_v39 = vmul.f32 0.03125, %v1330_v3  ;;  %v10113_v3 = vld [vmem:[%s9798_s17] sm:$0x3f] }
 0xac7   : > { %v10067_v40 = vsub.f32 %v10038_v26, %v1347_v35 }
 0xac8   : > { %v10070_v46 = vsub.f32 %v10040_v24, %v1346_v39  ;;  %v1409_v39 = vrot.slane %v10113_v3, %v10107_v38 }
 0xac9   : > { %v1339_v41 = vpop.xlane.xlu0 %1338  ;;  %v1359_v42 = vmul.f32 %v10067_v40, %v10067_v40 }
 0xaca   : > { %v1349_v28 = vmul.f32 0.03125, %v1339_v41  ;;  %v1358_v44 = vmul.f32 %v10070_v46, %v10070_v46 }
 0xacb   : > { %v1367_v45 = vsel %vm212_vm1, %v1359_v42, 0.0 }
 0xacc   : > { %v10078_v47 = vsub.f32 %v10048_v19, %v1349_v28  ;;  %1368 = vadd.xlane.f32.xlu1 %v1367_v45  ;;  %v1345_v29 = vpop.xlane.xlu1 %1344  ;;  %v1364_v60 = vsel %vm212_vm1, %v1358_v44, 0.0 }
 0xacd   : > { %v1351_v36 = vmul.f32 0.03125, %v1345_v29  ;;  %1365 = vadd.xlane.f32.xlu0 %v1364_v60  ;;  %v1336_v49 = vpop.xlane.xlu0 %1335  ;;  %v1419_v29 = vrot.slane %v10113_v3, %v10110_v51 }
 0xace   : > { %v1348_v52 = vmul.f32 0.03125, %v1336_v49  ;;  %v1361_v37 = vmul.f32 %v10078_v47, %v10078_v47 }
 0xacf   : > { %v10084_v8 = vsub.f32 %v10056_v1, %v1351_v36 }
 0xad0   : > { %v10087_v9 = vsub.f32 %v10053_v32, %v1348_v52  ;;  %v1373_v10 = vsel %vm212_vm1, %v1361_v37, 0.0 }
 0xad1   : > { %1374 = vadd.xlane.f32.xlu1 %v1373_v10  ;;  %v1342_v14 = vpop.xlane.xlu0 %1341  ;;  %v1363_v15 = vmul.f32 %v10084_v8, %v10084_v8 }
 0xad2   : > { %v1350_v16 = vmul.f32 0.03125, %v1342_v14  ;;  %v1360_v48 = vmul.f32 %v10087_v9, %v10087_v9 }
 0xad3   : > { %v1379_v54 = vsel %vm212_vm1, %v1363_v15, 0.0 }
 0xad4   : > { %v10096_v17 = vsub.f32 %v10060_v33, %v1350_v16  ;;  %v1370_v18 = vsel %vm212_vm1, %v1360_v48, 0.0 }
 0xad5   : > { %1380 = vadd.xlane.f32.xlu1 %v1379_v54  ;;  %1371 = vadd.xlane.f32.xlu0 %v1370_v18 }
 0xad6   : > { %v1362_v20 = vmul.f32 %v10096_v17, %v10096_v17 }
 0xad8   : > { %v1376_v61 = vsel %vm212_vm1, %v1362_v20, 0.0 }
 0xad9   : > { %1377 = vadd.xlane.f32.xlu0 %v1376_v61 }
 0xb59   : > { %v1369_v22 = vpop.xlane.xlu1 %1368 }
 0xb5a   : > { %v1383_v5 = vmul.f32 0.03125, %v1369_v22  ;;  %v1366_v23 = vpop.xlane.xlu0 %1365  ;;  %v1612_v22 = vld [vmem:[%s10135_s2 + $0x20] sm:$0xff] }
 0xb5b   : > { %v1382_v31 = vmul.f32 0.03125, %v1366_v23 }
 0xb5c   : > { %v1389_v0 = vadd.f32 1e-06, %v1383_v5  ;;  %v1613_v5 = vld [vmem:[%s10135_s2 + $0x28] sm:$0xff] }
 0xb5d   : > { %v1388_v25 = vadd.f32 1e-06, %v1382_v31  ;;  %v7991_v23 = vpack.c.bf16 %v1613_v5, %v1612_v22  ;;  %v1614_v31 = vld [vmem:[%s10135_s2 + $0x30] sm:$0xff] }
 0xb5e   : > { %8756 = vrsqrt.f32 %v1389_v0  ;;  %v1375_v27 = vpop.xlane.xlu1 %1374  ;;  %v1615_v0 = vld [vmem:[%s10135_s2 + $0x38] sm:$0xff] }
 0xb5f   : > { %8758 = vrsqrt.f32 %v1388_v25  ;;  %v1385_v30 = vmul.f32 0.03125, %v1375_v27  ;;  %v7995_v25 = vpack.c.bf16 %v1615_v0, %v1614_v31  ;;  %v1616_v27 = vld [vmem:[%s10135_s2 + $0x40] sm:$0xff] }
 0xb61   : > { %v1391_v2 = vadd.f32 1e-06, %v1385_v30  ;;  %v1617_v30 = vld [vmem:[%s10135_s2 + $0x48] sm:$0xff] }
 0xb62   : > { %v1381_v55 = vpop.xlane.xlu1 %1380  ;;  %v1372_v43 = vpop.xlane.xlu0 %1371 }
 0xb63   : > { %8760 = vrsqrt.f32 %v1391_v2  ;;  %v1387_v7 = vmul.f32 0.03125, %v1381_v55  ;;  %v1384_v57 = vmul.f32 0.03125, %v1372_v43  ;;  %v7999_v2 = vpack.c.bf16 %v1617_v30, %v1616_v27  ;;  %v1618_v55 = vld [vmem:[%s10135_s2 + $0x50] sm:$0xff]  ;;  %v1619_v43 = vld [vmem:[%s10135_s2 + $0x58] sm:$0xff] }
 0xb65   : > { %v1393_v12 = vadd.f32 1e-06, %v1387_v7  ;;  %v1390_v13 = vadd.f32 1e-06, %v1384_v57  ;;  %v8003_v7 = vpack.c.bf16 %v1619_v43, %v1618_v55  ;;  %v1620_v57 = vld [vmem:[%s10135_s2 + $0x60] sm:$0xff] }
 0xb66   : > { %v1378_v34 = vpop.xlane.xlu0 %1377 }
 0xb67   : > { %8762 = vrsqrt.f32 %v1393_v12  ;;  %v1386_v35 = vmul.f32 0.03125, %v1378_v34  ;;  %v1621_v12 = vld [vmem:[%s10135_s2 + $0x68] sm:$0xff]  ;;  %v1622_v34 = vld [vmem:[%s10135_s2 + $0x70] sm:$0xff] }
 0xb68   : > { %v8757_v41 = vpop.eup %8756  ;;  %8764 = vrsqrt.f32 %v1390_v13  ;;  %v8007_v13 = vpack.c.bf16 %v1621_v12, %v1620_v57 }
 0xb69   : > { %v8759_v42 = vpop.eup %8758  ;;  %v1401_v28 = vmul.f32 %v8757_v41, %v10067_v40  ;;  %v1392_v44 = vadd.f32 1e-06, %v1386_v35  ;;  %v1623_v35 = vld [vmem:[%s10135_s2 + $0x78] sm:$0xff]  ;;  %v6558_v41 = vld [vmem:[%s1431_s28] ss:$0 sm:$0xff] }
 0xb6a   : > { %v1400_v45 = vmul.f32 %v8759_v42, %v10070_v46 }
 0xb6b   : > { %8766 = vrsqrt.f32 %v1392_v44  ;;  %v1411_v60 = vmul.f32 %v1409_v39, %v1401_v28 }
 0xb6c   : > { %v1410_v36 = vmul.f32 %v1409_v39, %v1400_v45 }
 0xb6d   : > { %v8761_v49 = vpop.eup %8760  ;;  %v1421_v37 = vadd.f32 %v1419_v29, %v1411_v60 }
 0xb6e   : > { %v1420_v52 = vadd.f32 %v1419_v29, %v1410_v36  ;;  %v1403_v10 = vmul.f32 %v8761_v49, %v10078_v47 }
 0xb70   : > { %7285 = vmatprep.mubr.msk.f32.mxu0 %vm212_vm1, %v1420_v52  ;;  %v1413_v46 = vmul.f32 %v1409_v39, %v1403_v10 }
 0xb71   : > { %v8763_v14 = vpop.eup %8762  ;;  %7286 = vmatmul.mubr.msk.f32.vlgmr.msra.gmra.mrb[24].mxu0 %vm212_vm1, %v1421_v37 }
 0xb72   : > { %v8765_v40 = vpop.eup %8764  ;;  %v1405_v16 = vmul.f32 %v8763_v14, %v10084_v8  ;;  %v1423_v61 = vadd.f32 %v1419_v29, %v1413_v46  ;;  %v1608_v8 = vld [vmem:[%s10135_s2] sm:$0xff] }
 0xb73   : > { %v1402_v15 = vmul.f32 %v8765_v40, %v10087_v9 }
 0xb74   : > { %v1415_v58 = vmul.f32 %v1409_v39, %v1405_v16 }
 0xb75   : > { %v8767_v48 = vpop.eup %8766  ;;  %v1412_v54 = vmul.f32 %v1409_v39, %v1402_v15 }
 0xb76   : > { %v1404_v18 = vmul.f32 %v8767_v48, %v10096_v17  ;;  %v1425_v9 = vadd.f32 %v1419_v29, %v1415_v58  ;;  %v1609_v17 = vld [vmem:[%s10135_s2 + $0x8] sm:$0xff] }
 0xb77   : > { %v1422_v20 = vadd.f32 %v1419_v29, %v1412_v54  ;;  %v7983_v53 = vpack.c.bf16 %v1609_v17, %v1608_v8 }
 0xb78   : > { %v1414_v63 = vmul.f32 %v1409_v39, %v1404_v18  ;;  %v8011_v39 = vpack.c.bf16 %v1623_v35, %v1622_v34 }
 0xb79   : > { %7288 = vmatprep.mubr.msk.f32.mxu0 %vm212_vm1, %v1422_v20  ;;  %7984 = vmatprep.subr.bf16.mxu1 %v7983_v53 }
 0xb7a   : > { %7289 = vmatmul.mubr.msk.f32.gmra.mrb[26].mxu0 %vm212_vm1, %v1423_v61  ;;  %v1424_v47 = vadd.f32 %v1419_v29, %v1414_v63  ;;  %7986 = vmatpush3.bf16.msra.mxu1 %v7983_v53 }
 0xb7b   : > { %7988 = vmatprep.subr.bf16.mxu1 %v7987_v59 }
 0xb7c   : > { %7291 = vmatprep.mubr.msk.f32.mxu0 %vm212_vm1, %v1424_v47 }
 0xb7e   : > { %7292 = vmatmul.mubr.msk.f32.gmra.mrb[28].mxu0 %vm212_vm1, %v1425_v9  ;;  %7990 = vmatpush3.bf16.msra.mxu1 %v7987_v59 }
 0xb7f   : > { %7992 = vmatprep.subr.bf16.mxu1 %v7991_v23 }
 0xb82   : > { %7994 = vmatpush3.bf16.msra.mxu1 %v7991_v23 }
 0xb83   : > { %7996 = vmatprep.subr.bf16.mxu1 %v7995_v25 }
 0xb86   : > { %7998 = vmatpush3.bf16.msra.mxu1 %v7995_v25 }
 0xb87   : > { %8000 = vmatprep.subr.bf16.mxu1 %v7999_v2 }
 0xb8a   : > { %8002 = vmatpush3.bf16.msra.mxu1 %v7999_v2 }
 0xb8b   : > { %8004 = vmatprep.subr.bf16.mxu1 %v8003_v7 }
 0xb8e   : > { %8006 = vmatpush3.bf16.msra.mxu1 %v8003_v7 }
 0xb8f   : > { %8008 = vmatprep.subr.bf16.mxu1 %v8007_v13 }
 0xb92   : > { %8010 = vmatpush3.bf16.msra.mxu1 %v8007_v13 }
 0xb93   : > { %8012 = vmatprep.subr.bf16.mxu1 %v8011_v39 }
 0xb96   : > { %8014 = vmatpush3.bf16.msra.mxu1 %v8011_v39 }
 0xc44   : > { %v7287_v42 = vpop.f32.mrb[24].mxu0 }
 0xc45   : > { %v1529_v28 = vadd.f32 %v7287_v42, %v6558_v41  ;;  %v1523_v44 = vpop.f32.mrb[25].mxu0 }
 0xc46   : > { %v1524_v45 = vadd.f32 %v6558_v41, %v1523_v44 }
 0xc47   : > { %v1553_v29 = vmul.f32 %v1529_v28, %v1529_v28 }
 0xc48   : > { %v1552_v60 = vmul.f32 %v1524_v45, %v1524_v45 }
 0xc49   : > { %v1559_v36 = vmul.f32 %v1553_v29, %v1529_v28 }
 0xc4a   : > { %v1558_v49 = vmul.f32 %v1552_v60, %v1524_v45 }
 0xc4b   : > { %v1565_v52 = vmul.f32 0.044715, %v1559_v36 }
 0xc4c   : > { %v1564_v37 = vmul.f32 0.044715, %v1558_v49 }
 0xc4d   : > { %v1571_v10 = vadd.f32 %v1565_v52, %v1529_v28  ;;  %v7290_v14 = vpop.f32.mrb[26].mxu0 }
 0xc4e   : > { %v1570_v40 = vadd.f32 %v1564_v37, %v1524_v45  ;;  %v1539_v15 = vadd.f32 %v7290_v14, %v6558_v41  ;;  %v1533_v46 = vpop.f32.mrb[27].mxu0 }
 0xc4f   : > { %v1577_v16 = vmul.f32 0.7978846, %v1571_v10  ;;  %v1534_v48 = vadd.f32 %v6558_v41, %v1533_v46 }
 0xc50   : > { %v1576_v54 = vmul.f32 0.7978846, %v1570_v40  ;;  %v1555_v18 = vmul.f32 %v1539_v15, %v1539_v15 }
 0xc51   : > { %8768 = vtanh.f32 %v1577_v16  ;;  %v1554_v20 = vmul.f32 %v1534_v48, %v1534_v48  ;;  %v7293_v61 = vpop.f32.mrb[28].mxu0 }
 0xc52   : > { %v1561_v63 = vmul.f32 %v1555_v18, %v1539_v15  ;;  %v1549_v58 = vadd.f32 %v7293_v61, %v6558_v41  ;;  %v1543_v47 = vpop.f32.mrb[29].mxu0  ;;  %8770 = vtanh.f32 %v1576_v54  ;;  %v10158_v18 = vsub.s32 5, %v9663_v50 }
 0xc53   : > { %v1560_v9 = vmul.f32 %v1554_v20, %v1534_v48  ;;  %v1544_v8 = vadd.f32 %v6558_v41, %v1543_v47 }
 0xc54   : > { %v1567_v17 = vmul.f32 0.044715, %v1561_v63  ;;  %v1557_v53 = vmul.f32 %v1549_v58, %v1549_v58  ;;  %v1728_v20 = vrot.slane %v10113_v3, %v10158_v18 }
 0xc55   : > { %v1566_v62 = vmul.f32 0.044715, %v1560_v9  ;;  %v1556_v6 = vmul.f32 %v1544_v8, %v1544_v8 }
 0xc56   : > { %v1573_v59 = vadd.f32 %v1567_v17, %v1539_v15  ;;  %v1563_v22 = vmul.f32 %v1557_v53, %v1549_v58 }
 0xc57   : > { %v1572_v5 = vadd.f32 %v1566_v62, %v1534_v48  ;;  %v1562_v23 = vmul.f32 %v1556_v6, %v1544_v8 }
 0xc58   : > { %v1579_v31 = vmul.f32 0.7978846, %v1573_v59  ;;  %v1569_v0 = vmul.f32 0.044715, %v1563_v22 }
 0xc59   : > { %v1578_v25 = vmul.f32 0.7978846, %v1572_v5  ;;  %v1568_v27 = vmul.f32 0.044715, %v1562_v23 }
 0xc5a   : > { %v1575_v30 = vadd.f32 %v1569_v0, %v1549_v58  ;;  %8772 = vtanh.f32 %v1579_v31 }
 0xc5b   : > { %v8769_v2 = vpop.eup %8768  ;;  %v1574_v55 = vadd.f32 %v1568_v27, %v1544_v8  ;;  %8774 = vtanh.f32 %v1578_v25 }
 0xc5c   : > { %v8771_v43 = vpop.eup %8770  ;;  %v1589_v7 = vadd.f32 1.0, %v8769_v2  ;;  %v1581_v57 = vmul.f32 0.7978846, %v1575_v30 }
 0xc5d   : > { %v1580_v12 = vmul.f32 0.7978846, %v1574_v55  ;;  %v1588_v13 = vadd.f32 1.0, %v8771_v43 }
 0xc5e   : > { %v1595_v34 = vmul.f32 0.5, %v1589_v7  ;;  %8776 = vtanh.f32 %v1581_v57 }
 0xc5f   : > { %v1594_v35 = vmul.f32 0.5, %v1588_v13  ;;  %8778 = vtanh.f32 %v1580_v12 }
 0xc60   : > { %v1601_v41 = vmul.f32 %v1595_v34, %v1529_v28 }
 0xc61   : > { %v1600_v39 = vmul.f32 %v1594_v35, %v1524_v45 }
 0xc63   : > { %7326 = vmatprep.mubr.f32.mxu1 %v1600_v39 }
 0xc64   : > { %v8773_v42 = vpop.eup %8772  ;;  %7327 = vmatmul.mubr.f32.vlgmr.msra.gmra.mrb[12].mxu1 %v1601_v41 }
 0xc65   : > { %v8775_v44 = vpop.eup %8774  ;;  %v1591_v29 = vadd.f32 1.0, %v8773_v42 }
 0xc66   : > { %v1590_v60 = vadd.f32 1.0, %v8775_v44 }
 0xc67   : > { %v1597_v36 = vmul.f32 0.5, %v1591_v29 }
 0xc68   : > { %v8777_v49 = vpop.eup %8776  ;;  %v1596_v52 = vmul.f32 0.5, %v1590_v60 }
 0xc69   : > { %v8779_v37 = vpop.eup %8778  ;;  %v1593_v10 = vadd.f32 1.0, %v8777_v49  ;;  %v1603_v46 = vmul.f32 %v1597_v36, %v1539_v15 }
 0xc6a   : > { %v1602_v14 = vmul.f32 %v1596_v52, %v1534_v48  ;;  %v1592_v40 = vadd.f32 1.0, %v8779_v37 }
 0xc6b   : > { %v1599_v16 = vmul.f32 0.5, %v1593_v10 }
 0xc6c   : > { %7329 = vmatprep.mubr.f32.mxu1 %v1602_v14  ;;  %v1598_v54 = vmul.f32 0.5, %v1592_v40 }
 0xc6d   : > { %7330 = vmatmul.mubr.f32.gmra.mrb[14].mxu1 %v1603_v46  ;;  %v1605_v28 = vmul.f32 %v1599_v16, %v1549_v58 }
 0xc6e   : > { %v1604_v45 = vmul.f32 %v1598_v54, %v1544_v8 }
 0xc70   : > { %7332 = vmatprep.mubr.f32.mxu1 %v1604_v45 }
 0xc71   : > { %7333 = vmatmul.mubr.f32.gmra.mrb[16].mxu1 %v1605_v28 }
 0xd37   : > { %v7328_v61 = vpop.f32.mrb[12].mxu1 }
 0xd38   : > { %v1720_v63 = vadd.f32 %v7328_v61, %v10038_v26  ;;  %v1690_v48 = vpop.f32.mrb[13].mxu1 }
 0xd39   : > { %v1719_v15 = vadd.f32 %v1690_v48, %v10040_v24 }
 0xd3a   : > { %v1730_v47 = vadd.f32 %v1728_v20, %v1720_v63  }
 0xd3b   : > { %v1729_v9 = vadd.f32 %v1728_v20, %v1719_v15  }
 0xd3c   : > { %v11647_v2 = vmov %v1730_v47 }
 0xd3d   : > { %v11648_v55 = vmov %v1729_v9  ;;  %v1738_v24 = vrot.slane (%p219_p0), %v1729_v9, %v9672_v56 }
 0xd40   : > { %v7331_v17 = vpop.f32.mrb[14].mxu1 }
 0xd41   : > { %v1722_v8 = vadd.f32 %v7331_v17, %v10048_v19  ;;  %v1700_v58 = vpop.f32.mrb[15].mxu1 }
 0xd42   : > { %v1721_v53 = vadd.f32 %v1700_v58, %v10053_v32  ;;  %v1739_v32 = vadd.f32 (%p219_p0), %v1738_v24, %v1730_v47 }
 0xd43   : > { %v1732_v62 = vadd.f32 %v1728_v20, %v1722_v8  }
 0xd44   : > { %v1731_v6 = vadd.f32 %v1728_v20, %v1721_v53   ;;  %v7334_v59 = vpop.f32.mrb[16].mxu1  ;;  %221 = sbr.rel (!%p219_p0) target bundleno = 276 (0x114), region = 124  ;;  %6566 = vst.msk [vmem:[%s11640_s11 + $0x20] sm:$0xff] (%p219_p0), %vm212_vm1, %v1739_v32 }
 0xd45   : > { %v1724_v22 = vadd.f32 %v7334_v59, %v10056_v1  ;;  %v1710_v3 = vpop.f32.mrb[17].mxu1  ;;  %v11645_v57 = vmov %v1732_v62  ;;  %v1744_v19 = vrot.slane (%p219_p0), %v1732_v62, %v9672_v56 }
 0xd46   : > { %v1723_v5 = vadd.f32 %v1710_v3, %v10060_v33  ;;  %v11646_v12 = vmov %v1731_v6  ;;  %v1740_v1 = vadd.f32 (%p219_p0), %v1738_v24, %v1731_v6 }
 0xd47   : > { %v1734_v26 = vadd.f32 %v1728_v20, %v1724_v22  }
 0xd48   : > { %v1733_v23 = vadd.f32 %v1728_v20, %v1723_v5   ;;  %6567 = vst.msk [vmem:[%s11640_s11 + $0x28] sm:$0xff] (%p219_p0), %vm212_vm1, %v1740_v1 }
 0xd49   : > { %v11643_v13 = vmov %v1734_v26  ;;  %v1746_v31 = vadd.f32 (%p219_p0), %v1744_v19, %v1734_v26 }
 0xd4a   : > { %v11644_v3 = vmov %v1733_v23  ;;  %v1745_v33 = vadd.f32 (%p219_p0), %v1744_v19, %v1733_v23 }
 0xd4b   :  { %6569 = vst.msk [vmem:[%s11640_s11 + $0x38] sm:$0xff] %vm212_vm1, %v1746_v31 }
 0xd4c   :  { %6568 = vst.msk [vmem:[%s11640_s11 + $0x30] sm:$0xff] %vm212_vm1, %v1745_v33 }
 0xd4d LB: > { %v1767_v50 = vsel %vm212_vm1, %v9378_v9, 0.0  ;;  %v1773_v0 = vsel %vm212_vm1, %v9370_v6, 0.0  ;;  %v1770_v25 = vsel %vm212_vm1, %v9374_v47, 0.0  ;;  %v1776_v27 = vsel %vm212_vm1, %v9366_v62, 0.0  ;;  %s10285_s19 = sshll.u32 %s9382_s18, 5  ;;  %s6570_s23 = sshll.u32 %s9382_s18, 3  ;;  %s9382_s18 = sphi %s10213_s18, %s1757_s18   ;;  %v9378_v9 = vphi %v1729_v9, %v11654_v9   ;;  %v9374_v47 = vphi %v1730_v47, %v11653_v47   ;;  %v9370_v6 = vphi %v1731_v6, %v11652_v6   ;;  %v9366_v62 = vphi %v1732_v62, %v11651_v62   ;;  %v9362_v23 = vphi %v1733_v23, %v11650_v23   ;;  %v9358_v26 = vphi %v1734_v26, %v11649_v26  }
 0xd4e   : > { %1768 = vadd.xlane.f32.xlu0 %v1767_v50  ;;  %1774 = vadd.xlane.f32.xlu1 %v1773_v0  ;;  %v1779_v30 = vsel %vm212_vm1, %v9362_v23, 0.0  ;;  %v1782_v2 = vsel %vm212_vm1, %v9358_v26, 0.0  ;;  %s1867_s22 = scalar_lea.vmem %s11630_s4, %s10285_s19  ;;  %s10295_s17 = scalar_lea.vmem %s11633_s7, %s6570_s23 }
 0xd4f   : > { %v1868_v15 = vld [vmem:[%s1867_s22] sm:$0xff]  ;;  %v1869_v17 = vld [vmem:[%s1867_s22 + $0x8] sm:$0xff]  ;;  %v1870_v58 = vld [vmem:[%s1867_s22 + $0x10] sm:$0xff]  ;;  %s1872_s26 = scalar_lea.vmem %s11631_s5, %s9382_s18  ;;  %s9447_s27 = smov 96  }
 0xd50   : > { %v8015_v8 = vpack.c.bf16 %v1869_v17, %v1868_v15  ;;  %v1871_v53 = vld [vmem:[%s1867_s22 + $0x18] sm:$0xff]  ;;  %s9448_s23 = smov 64   ;;  %s9449_s24 = smov 80  }
 0xd51   : > { %v8019_v59 = vpack.c.bf16 %v1871_v53, %v1870_v58  ;;  %s9450_s30 = smov 112   ;;  %s9451_s25 = smov 48  }
 0xd52   : > { %1771 = vadd.xlane.f32.xlu0 %v1770_v25  ;;  %1777 = vadd.xlane.f32.xlu1 %v1776_v27  ;;  %s9452_s28 = smov 16   ;;  %s2961_s14 = scalar_lea.vmem %s11634_s8, %s10285_s19 }
 0xd53   : > { %8016 = vmatprep.subr.bf16.mxu0 %v8015_v8  ;;  %s2966_s1 = scalar_lea.vmem %s11635_s9, %s9382_s18 }
 0xd54   : > { %8018 = vmatpush3.bf16.msra.mxu0 %v8015_v8 }
 0xd55   : > { %8020 = vmatprep.subr.bf16.mxu0 %v8019_v59 }
 0xd56   : > { %1780 = vadd.xlane.f32.xlu0 %v1779_v30  ;;  %1783 = vadd.xlane.f32.xlu1 %v1782_v2 }
 0xd58   : > { %8022 = vmatpush3.bf16.msra.mxu0 %v8019_v59 }
 0xddb   : > { %v1769_v55 = vpop.xlane.xlu0 %1768  ;;  %v1775_v43 = vpop.xlane.xlu1 %1774 }
 0xddc   : > { %v1786_v7 = vmul.f32 0.03125, %v1769_v55  ;;  %v1788_v57 = vmul.f32 0.03125, %v1775_v43  ;;  %v10298_v55 = vld [vmem:[%s10295_s17] sm:$0x3f] }
 0xdde   : > { %v10249_v12 = vsub.f32 %v9378_v9, %v1786_v7  ;;  %v10252_v13 = vsub.f32 %v9370_v6, %v1788_v57  ;;  %v1849_v57 = vrot.slane %v10298_v55, %v9672_v56 }
 0xddf   : > { %v1772_v34 = vpop.xlane.xlu0 %1771  ;;  %v1778_v35 = vpop.xlane.xlu1 %1777 }
 0xde0   : > { %v1787_v39 = vmul.f32 0.03125, %v1772_v34  ;;  %v1789_v41 = vmul.f32 0.03125, %v1778_v35  ;;  %v1798_v42 = vmul.f32 %v10249_v12, %v10249_v12  ;;  %v1800_v44 = vmul.f32 %v10252_v13, %v10252_v13 }
 0xde2   : > { %v10259_v29 = vsub.f32 %v9374_v47, %v1787_v39  ;;  %v10262_v60 = vsub.f32 %v9366_v62, %v1789_v41  ;;  %v1804_v36 = vsel %vm212_vm1, %v1798_v42, 0.0  ;;  %v1810_v52 = vsel %vm212_vm1, %v1800_v44, 0.0 }
 0xde3   : > { %1805 = vadd.xlane.f32.xlu0 %v1804_v36  ;;  %v1781_v49 = vpop.xlane.xlu0 %1780  ;;  %v1784_v37 = vpop.xlane.xlu1 %1783  ;;  %v1859_v41 = vrot.slane %v10298_v55, %v9804_v21 }
 0xde4   : > { %v1790_v10 = vmul.f32 0.03125, %v1781_v49  ;;  %v1799_v14 = vmul.f32 %v10259_v29, %v10259_v29  ;;  %v1791_v40 = vmul.f32 0.03125, %v1784_v37  ;;  %v1801_v46 = vmul.f32 %v10262_v60, %v10262_v60 }
 0xde6   : > { %v10271_v16 = vsub.f32 %v9362_v23, %v1790_v10  ;;  %v1807_v54 = vsel %vm212_vm1, %v1799_v14, 0.0  ;;  %v10275_v45 = vsub.f32 %v9358_v26, %v1791_v40  ;;  %v1813_v20 = vsel %vm212_vm1, %v1801_v46, 0.0 }
 0xde7   : > { %1811 = vadd.xlane.f32.xlu0 %v1810_v52  ;;  %1808 = vadd.xlane.f32.xlu1 %v1807_v54 }
 0xde8   : > { %v1802_v28 = vmul.f32 %v10271_v16, %v10271_v16  ;;  %v1803_v61 = vmul.f32 %v10275_v45, %v10275_v45 }
 0xdea   : > { %v1816_v63 = vsel %vm212_vm1, %v1802_v28, 0.0  ;;  %v1819_v48 = vsel %vm212_vm1, %v1803_v61, 0.0 }
 0xdeb   : > { %1817 = vadd.xlane.f32.xlu0 %v1816_v63  ;;  %1814 = vadd.xlane.f32.xlu1 %v1813_v20 }
 0xdef   : > { %1820 = vadd.xlane.f32.xlu1 %v1819_v48 }
 0xe70   : > { %v1806_v22 = vpop.xlane.xlu0 %1805 }
 0xe71   : > { %v1822_v3 = vmul.f32 0.03125, %v1806_v22 }
 0xe73   : > { %v1828_v5 = vadd.f32 1e-06, %v1822_v3 }
 0xe74   : > { %v1812_v24 = vpop.xlane.xlu0 %1811  ;;  %v1809_v19 = vpop.xlane.xlu1 %1808 }
 0xe75   : > { %8841 = vrsqrt.f32 %v1828_v5  ;;  %v1824_v32 = vmul.f32 0.03125, %v1812_v24  ;;  %v1823_v1 = vmul.f32 0.03125, %v1809_v19 }
 0xe77   : > { %v1830_v33 = vadd.f32 1e-06, %v1824_v32  ;;  %v1829_v31 = vadd.f32 1e-06, %v1823_v1 }
 0xe78   : > { %v1818_v50 = vpop.xlane.xlu0 %1817  ;;  %v1815_v0 = vpop.xlane.xlu1 %1814 }
 0xe79   : > { %8843 = vrsqrt.f32 %v1830_v33  ;;  %v1826_v25 = vmul.f32 0.03125, %v1818_v50  ;;  %v1825_v27 = vmul.f32 0.03125, %v1815_v0 }
 0xe7a   : > { %8845 = vrsqrt.f32 %v1829_v31 }
 0xe7b   : > { %v1832_v30 = vadd.f32 1e-06, %v1826_v25  ;;  %v1831_v2 = vadd.f32 1e-06, %v1825_v27 }
 0xe7c   : > { %v1821_v43 = vpop.xlane.xlu1 %1820 }
 0xe7d   : > { %8847 = vrsqrt.f32 %v1832_v30  ;;  %v1827_v7 = vmul.f32 0.03125, %v1821_v43 }
 0xe7e   : > { %8849 = vrsqrt.f32 %v1831_v2 }
 0xe7f   : > { %v8842_v34 = vpop.eup %8841  ;;  %v1833_v35 = vadd.f32 1e-06, %v1827_v7 }
 0xe80   : > { %v1840_v39 = vmul.f32 %v8842_v34, %v10249_v12 }
 0xe81   : > { %8851 = vrsqrt.f32 %v1833_v35 }
 0xe82   : > { %v1850_v42 = vmul.f32 %v1849_v57, %v1840_v39 }
 0xe83   : > { %v8844_v44 = vpop.eup %8843 }
 0xe84   : > { %v8846_v36 = vpop.eup %8845  ;;  %v1860_v49 = vadd.f32 %v1859_v41, %v1850_v42  ;;  %v1842_v52 = vmul.f32 %v8844_v44, %v10252_v13  ;;  %v10374_v44 = vld [vmem:[%s11629_s3 + $0x8] sm:$0xff] }
 0xe85   : > { %v1841_v37 = vmul.f32 %v8846_v36, %v10259_v29 }
 0xe86   : > { %7343 = vmatprep.mubr.msk.f32.mxu0 %vm212_vm1, %v1860_v49  ;;  %v1852_v10 = vmul.f32 %v1849_v57, %v1842_v52  ;;  %v10379_v52 = vld [vmem:[%s11629_s3] sm:$0xff] }
 0xe87   : > { %v8848_v14 = vpop.eup %8847  ;;  %v1851_v40 = vmul.f32 %v1849_v57, %v1841_v37 }
 0xe88   : > { %v8850_v46 = vpop.eup %8849  ;;  %v1862_v54 = vadd.f32 %v1859_v41, %v1852_v10  ;;  %v1844_v12 = vmul.f32 %v8848_v14, %v10271_v16 }
 0xe89   : > { %v1861_v28 = vadd.f32 %v1859_v41, %v1851_v40  ;;  %v1843_v20 = vmul.f32 %v8850_v46, %v10262_v60  ;;  %v6572_v60 = vld [vmem:[%s1872_s26] ss:$0 sm:$0xff]  ;;  %v10386_v46 = vld [vmem:[%s11629_s3 + $0x18] sm:$0xff] }
 0xe8a   : > { %v1854_v61 = vmul.f32 %v1849_v57, %v1844_v12 }
 0xe8b   : > { %v8852_v63 = vpop.eup %8851  ;;  %7344 = vmatmul.mubr.msk.f32.vlgmr.msra.gmra.mrb[0].mxu0 %vm212_vm1, %v1861_v28  ;;  %v1853_v13 = vmul.f32 %v1849_v57, %v1843_v20 }
 0xe8c   : > { %7346 = vmatprep.mubr.msk.f32.mxu0 %vm212_vm1, %v1862_v54  ;;  %v1864_v29 = vadd.f32 %v1859_v41, %v1854_v61  ;;  %v1845_v48 = vmul.f32 %v8852_v63, %v10275_v45  ;;  %v10393_v63 = vld [vmem:[%s11629_s3 + $0x10] sm:$0xff] }
 0xe8d   : > { %v1863_v15 = vadd.f32 %v1859_v41, %v1853_v13 }
 0xe8e   : > { %v1855_v17 = vmul.f32 %v1849_v57, %v1845_v48 }
 0xe8f   : > { %7347 = vmatmul.mubr.msk.f32.gmra.mrb[2].mxu0 %vm212_vm1, %v1863_v15 }
 0xe90   : > { %7349 = vmatprep.mubr.msk.f32.mxu0 %vm212_vm1, %v1864_v29  ;;  %v1865_v16 = vadd.f32 %v1859_v41, %v1855_v17 }
 0xe93   : > { %7350 = vmatmul.mubr.msk.f32.gmra.mrb[4].mxu0 %vm212_vm1, %v1865_v16 }
 0xf5e   : > { %v7345_v8 = vpop.f32.mrb[0].mxu0 }
 0xf5f   : > { %v10320_v58 = vadd.f32 %v7345_v8, %v6572_v60  ;;  %v1964_v53 = vpop.f32.mrb[1].mxu0 }
 0xf60   : > { %v10322_v59 = vadd.f32 %v6572_v60, %v1964_v53  ;;  %v10406_v53 = vld [vmem:[%s11629_s3 + $0x28] sm:$0xff] }
 0xf62   : > { %v7348_v45 = vpop.f32.mrb[2].mxu0  ;;  %7364 = vmatprep.mubr.msk.f32.mxu1 %vm476_vm2, %v10322_v59  ;;  %v10328_v22 = vpack.i.bf16 %v10320_v58, %v10322_v59 }
 0xf63   : > { %v10330_v3 = vadd.f32 %v7348_v45, %v6572_v60  ;;  %v1974_v5 = vpop.f32.mrb[3].mxu0 }
 0xf64   : > { %v10332_v24 = vadd.f32 %v6572_v60, %v1974_v5  ;;  %8782 = vrot.lane.b32.xlu0 %v10328_v22, %s9447_s27 }
 0xf66   : > { %v7351_v19 = vpop.f32.mrb[4].mxu0  ;;  %v10337_v32 = vpack.i.bf16 %v10330_v3, %v10332_v24 }
 0xf67   : > { %v10339_v1 = vadd.f32 %v7351_v19, %v6572_v60  ;;  %v1984_v33 = vpop.f32.mrb[5].mxu0 }
 0xf68   : > { %v10341_v31 = vadd.f32 %v6572_v60, %v1984_v33  ;;  %8787 = vrot.lane.b32.xlu1 %v10337_v32, %s9447_s27  ;;  %v10401_v60 = vld [vmem:[%s11629_s3 + $0x20] sm:$0xff] }
 0xf6a   : > { %v10346_v50 = vpack.i.bf16 %v10339_v1, %v10341_v31 }
 0xf6c   : > { %8792 = vrot.lane.b32.xlu1 %v10346_v50, %s9447_s27  ;;  %s2729_s27 = scalar_lea.vmem %s11632_s6, %s10285_s19  ;;  %s6628_s19 = sshll.u32 %s9382_s18, 7 }
 0xf6d   : > { %s10614_s29 = scalar_lea.vmem %s11636_s10, %s6628_s19  ;;  %s1757_s18 = sadd.s32 1, %s9382_s18  }
 0xf6e   : > { %p1754_p1 = scmp.ge.s32.totalorder %s1757_s18, 6  }
 0xf6f   :  { %s10689_s2 = smov (%p1754_p1), 6  }
 0xfd6   : > { %v8783_v0 = vpop.permute.xlu0 %8782 }
 0xfd7   : > { %v8785_v25 = vunpack.i.h.bf16 %v8783_v0  ;;  %v8784_v27 = vunpack.i.l.bf16 %v8783_v0 }
 0xfd9   : > { %v8023_v30 = vpack.c.bf16 %v8785_v25, %v8784_v27 }
 0xfda   : > { %v8788_v2 = vpop.permute.xlu1 %8787 }
 0xfdb   : > { %v8790_v43 = vunpack.i.h.bf16 %v8788_v2  ;;  %v8789_v7 = vunpack.i.l.bf16 %v8788_v2  ;;  %8025 = vmatprep.subr.msk.bf16.mxu1 %vm9857_vm3, %v8023_v30 }
 0xfdc   : > { %8028 = vmatpush3.bf16.xpose.msk.msra.mxu1 %vm9857_vm3, %v8023_v30 }
 0xfdd   : > { %v8029_v57 = vpack.c.bf16 %v8790_v43, %v8789_v7 }
 0xfde   : > { %v8793_v34 = vpop.permute.xlu1 %8792 }
 0xfdf   : > { %v8795_v35 = vunpack.i.h.bf16 %v8793_v34  ;;  %v8794_v39 = vunpack.i.l.bf16 %v8793_v34  ;;  %8031 = vmatprep.subr.msk.bf16.mxu1 %vm9857_vm3, %v8029_v57 }
 0xfe1   : > { %v8035_v41 = vpack.c.bf16 %v8795_v35, %v8794_v39 }
 0xfe4   : > { %8034 = vmatpush3.bf16.xpose.msk.msra.mxu1 %vm9857_vm3, %v8029_v57 }
 0xfe5   : > { %8037 = vmatprep.subr.msk.bf16.mxu1 %vm9857_vm3, %v8035_v41 }
 0xfec   : > { %8040 = vmatpush3.bf16.xpose.msk.msra.mxu1 %vm9857_vm3, %v8035_v41 }
 0xff3   : > { %7365 = vmatmul.mubr.msk.f32.vlgmr.msra.gmra.mrb[0].mxu1 %vm476_vm2, %v10320_v58 }
 0xff4   : > { %7367 = vmatprep.mubr.msk.f32.mxu1 %vm476_vm2, %v10332_v24 }
 0xff7   : > { %7368 = vmatmul.mubr.msk.f32.gmra.mrb[2].mxu1 %vm476_vm2, %v10330_v3 }
 0xff8   : > { %7370 = vmatprep.mubr.msk.f32.mxu1 %vm476_vm2, %v10341_v31 }
 0xffb   : > { %7371 = vmatmul.mubr.msk.f32.gmra.mrb[4].mxu1 %vm476_vm2, %v10339_v1 }
0x10c6   : > { %v7366_v42 = vpop.f32.mrb[0].mxu1 }
0x10c7   : > { %v2132_v36 = vmul.f32 0.25, %v7366_v42  ;;  %v2102_v49 = vpop.f32.mrb[1].mxu1 }
0x10c8   : > { %v2131_v37 = vmul.f32 0.25, %v2102_v49 }
0x10c9   : > { %v2144_v10 = vadd.f32 %v10374_v44, %v2132_v36 }
0x10ca   : > { %v7369_v14 = vpop.f32.mrb[2].mxu1  ;;  %v2143_v40 = vadd.f32 %v10379_v52, %v2131_v37 }
0x10cb   : > { %v2134_v54 = vmul.f32 0.25, %v7369_v14  ;;  %v2112_v12 = vpop.f32.mrb[3].mxu1  ;;  %v2153_v28 = vsel %vm614_vm4, %v2144_v10, -inf }
0x10cc   : > { %v2133_v20 = vmul.f32 0.25, %v2112_v12  ;;  %2154 = vmax.xlane.f32.xlu0 %v2153_v28  ;;  %v2150_v61 = vsel %vm614_vm4, %v2143_v40, -inf }
0x10cd   : > { %2151 = vmax.xlane.f32.xlu1 %v2150_v61  ;;  %v2146_v13 = vadd.f32 %v10386_v46, %v2134_v54 }
0x10ce   : > { %v7372_v29 = vpop.f32.mrb[4].mxu1  ;;  %v2145_v16 = vadd.f32 %v10393_v63, %v2133_v20 }
0x10cf   : > { %v2136_v48 = vmul.f32 0.25, %v7372_v29  ;;  %v2122_v15 = vpop.f32.mrb[5].mxu1  ;;  %v2159_v17 = vsel %vm614_vm4, %v2146_v13, -inf }
0x10d0   : > { %v2135_v8 = vmul.f32 0.25, %v2122_v15  ;;  %2160 = vmax.xlane.f32.xlu0 %v2159_v17  ;;  %v2156_v5 = vsel %vm614_vm4, %v2145_v16, -inf }
0x10d1   : > { %v2148_v19 = vadd.f32 %v10406_v53, %v2136_v48 }
0x10d2   : > { %v2147_v45 = vadd.f32 %v10401_v60, %v2135_v8 }
0x10d3   : > { %v2165_v0 = vsel %vm614_vm4, %v2148_v19, -inf }
0x10d4   : > { %2157 = vmax.xlane.f32.xlu0 %v2156_v5  ;;  %v2162_v33 = vsel %vm614_vm4, %v2147_v45, -inf }
0x10d5   : > { %2163 = vmax.xlane.f32.xlu1 %v2162_v33 }
0x10d8   : > { %2166 = vmax.xlane.f32.xlu0 %v2165_v0 }
0x10e6   : > { %8797 = vrot.lane.b32.xlu1 %v10328_v22, %s9448_s23 }
0x10ea   : > { %8807 = vrot.lane.b32.xlu1 %v10346_v50, %s9448_s23 }
0x10ee   : > { %8802 = vrot.lane.b32.xlu0 %v10337_v32, %s9448_s23 }
0x1159   : > { %v2155_v25 = vpop.xlane.xlu0 %2154 }
0x115a   : > { %v2169_v27 = vsub.f32 %v2144_v10, %v2155_v25  ;;  %v2152_v30 = vpop.xlane.xlu1 %2151 }
0x115b   : > { %v2168_v2 = vsub.f32 %v2143_v40, %v2152_v30 }
0x115c   : > { %v2176_v43 = vmul.f32 1.442695, %v2169_v27 }
0x115d   : > { %v2174_v7 = vmul.f32 1.442695, %v2168_v2  ;;  %v2161_v57 = vpop.xlane.xlu0 %2160 }
0x115e   : > { %8853 = vpow2.f32 %v2176_v43  ;;  %v2171_v34 = vsub.f32 %v2146_v13, %v2161_v57 }
0x115f   : > { %8855 = vpow2.f32 %v2174_v7 }
0x1160   : > { %v2180_v35 = vmul.f32 1.442695, %v2171_v34 }
0x1161   : > { %v2158_v39 = vpop.xlane.xlu0 %2157 }
0x1162   : > { %8857 = vpow2.f32 %v2180_v35  ;;  %v2170_v41 = vsub.f32 %v2145_v16, %v2158_v39  ;;  %v2164_v42 = vpop.xlane.xlu1 %2163 }
0x1163   : > { %v2172_v49 = vsub.f32 %v2147_v45, %v2164_v42 }
0x1164   : > { %v2178_v36 = vmul.f32 1.442695, %v2170_v41 }
0x1165   : > { %v2167_v37 = vpop.xlane.xlu0 %2166  ;;  %v2182_v28 = vmul.f32 1.442695, %v2172_v49 }
0x1166   : > { %8859 = vpow2.f32 %v2178_v36  ;;  %v2173_v14 = vsub.f32 %v2148_v19, %v2167_v37  ;;  %v8798_v54 = vpop.permute.xlu1 %8797 }
0x1167   : > { %v8800_v10 = vunpack.i.h.bf16 %v8798_v54  ;;  %v8799_v12 = vunpack.i.l.bf16 %v8798_v54 }
0x1168   : > { %v8854_v40 = vpop.eup %8853  ;;  %v2184_v20 = vmul.f32 1.442695, %v2173_v14 }
0x1169   : > { %v8856_v61 = vpop.eup %8855  ;;  %v8041_v29 = vpack.c.bf16 %v8800_v10, %v8799_v12  ;;  %v8803_v13 = vpop.permute.xlu0 %8802  ;;  %v2189_v48 = vsel %vm614_vm4, %v8854_v40, 0.0 }
0x116a   : > { %8861 = vpow2.f32 %v2184_v20  ;;  %v8805_v15 = vunpack.i.h.bf16 %v8803_v13  ;;  %v8804_v17 = vunpack.i.l.bf16 %v8803_v13  ;;  %2190 = vadd.xlane.f32.xlu0 %v2189_v48  ;;  %v8808_v16 = vpop.permute.xlu1 %8807  ;;  %v2186_v8 = vsel %vm614_vm4, %v8856_v61, 0.0 }
0x116b   : > { %v8810_v45 = vunpack.i.h.bf16 %v8808_v16  ;;  %v8809_v5 = vunpack.i.l.bf16 %v8808_v16  ;;  %2187 = vadd.xlane.f32.xlu1 %v2186_v8  ;;  %8042 = vmatprep.subr.bf16.mxu0 %v8041_v29  ;;  %8863 = vpow2.f32 %v2182_v28 }
0x116c   : > { %v8858_v19 = vpop.eup %8857  ;;  %v8045_v33 = vpack.c.bf16 %v8805_v15, %v8804_v17  ;;  %8044 = vmatpush3.bf16.msra.mxu0 %v8041_v29 }
0x116d   : > { %v2195_v0 = vsel %vm614_vm4, %v8858_v19, 0.0  ;;  %v8049_v25 = vpack.c.bf16 %v8810_v45, %v8809_v5 }
0x116e   : > { %2196 = vadd.xlane.f32.xlu0 %v2195_v0  ;;  %8046 = vmatprep.subr.bf16.mxu0 %v8045_v33 }
0x1170   : > { %v8860_v27 = vpop.eup %8859  ;;  %8048 = vmatpush3.bf16.msra.mxu0 %v8045_v33 }
0x1171   : > { %8050 = vmatprep.subr.bf16.mxu0 %v8049_v25  ;;  %v2192_v30 = vsel %vm614_vm4, %v8860_v27, 0.0 }
0x1172   : > { %2193 = vadd.xlane.f32.xlu1 %v2192_v30 }
0x1174   : > { %v8862_v2 = vpop.eup %8861  ;;  %8052 = vmatpush3.bf16.msra.mxu0 %v8049_v25 }
0x1175   : > { %v2201_v43 = vsel %vm614_vm4, %v8862_v2, 0.0  ;;  %v8864_v7 = vpop.eup %8863 }
0x1176   : > { %2202 = vadd.xlane.f32.xlu0 %v2201_v43  ;;  %v2198_v57 = vsel %vm614_vm4, %v8864_v7, 0.0 }
0x117a   : > { %2199 = vadd.xlane.f32.xlu0 %v2198_v57 }
0x1183   : > { %8817 = vrot.lane.b32.xlu1 %v10337_v32, %s9449_s24 }
0x1187   : > { %8822 = vrot.lane.b32.xlu1 %v10346_v50, %s9449_s24 }
0x118b   : > { %2347 = vrot.lane.b32.xlu1 %v10322_v59, %s9450_s30 }
0x118f   : > { %2349 = vrot.lane.b32.xlu1 %v10320_v58, %s9450_s30 }
0x1190   : > { %8812 = vrot.lane.b32.xlu0 %v10328_v22, %s9449_s24 }
0x1193   : > { %2351 = vrot.lane.b32.xlu1 %v10332_v24, %s9450_s30 }
0x1194   : > { %2353 = vrot.lane.b32.xlu0 %v10330_v3, %s9450_s30 }
0x1197   : > { %2355 = vrot.lane.b32.xlu1 %v10341_v31, %s9450_s30 }
0x1198   : > { %2357 = vrot.lane.b32.xlu0 %v10339_v1, %s9450_s30 }
0x11f7   : > { %v2191_v34 = vpop.xlane.xlu0 %2190 }
0x11f8   : > { %8865 = vrcp.f32 %v2191_v34  ;;  %v2188_v35 = vpop.xlane.xlu1 %2187 }
0x11f9   : > { %8867 = vrcp.f32 %v2188_v35 }
0x11fb   : > { %v2197_v39 = vpop.xlane.xlu0 %2196 }
0x11fc   : > { %8869 = vrcp.f32 %v2197_v39 }
0x11ff   : > { %v2194_v41 = vpop.xlane.xlu1 %2193 }
0x1200   : > { %8871 = vrcp.f32 %v2194_v41 }
0x1202   : > { %v8866_v59 = vpop.eup %8865 }
0x1203   : > { %v8868_v58 = vpop.eup %8867  ;;  %v2203_v42 = vpop.xlane.xlu0 %2202  ;;  %v2207_v49 = vmul.f32 %v8866_v59, %v8854_v40 }
0x1204   : > { %v2205_v36 = vmul.f32 %v8868_v58, %v8856_v61  ;;  %8873 = vrcp.f32 %v2203_v42  ;;  %v8818_v24 = vpop.permute.xlu1 %8817 }
0x1205   : > { %v8820_v37 = vunpack.i.h.bf16 %v8818_v24  ;;  %v8819_v10 = vunpack.i.l.bf16 %v8818_v24 }
0x1206   : > { %7385 = vmatprep.mubr.msk.f32.mxu0 %vm614_vm4, %v2205_v36  ;;  %v8870_v1 = vpop.eup %8869 }
0x1207   : > { %v2200_v3 = vpop.xlane.xlu0 %2199  ;;  %7386 = vmatmul.mubr.msk.f32.vlgmr.msra.gmra.mrb[6].mxu0 %vm614_vm4, %v2207_v49  ;;  %v2211_v20 = vmul.f32 %v8870_v1, %v8858_v19  ;;  %v8059_v61 = vpack.c.bf16 %v8820_v37, %v8819_v10 }
0x1208   : > { %8875 = vrcp.f32 %v2200_v3  ;;  %v8823_v29 = vpop.permute.xlu1 %8822 }
0x1209   : > { %v8825_v17 = vunpack.i.h.bf16 %v8823_v29  ;;  %v8824_v16 = vunpack.i.l.bf16 %v8823_v29 }
0x120a   : > { %v8872_v31 = vpop.eup %8871 }
0x120b   : > { %v8813_v14 = vpop.permute.xlu0 %8812  ;;  %v2209_v54 = vmul.f32 %v8872_v31, %v8860_v27  ;;  %v8065_v5 = vpack.c.bf16 %v8825_v17, %v8824_v16 }
0x120c   : > { %v8815_v12 = vunpack.i.h.bf16 %v8813_v14  ;;  %v8814_v28 = vunpack.i.l.bf16 %v8813_v14  ;;  %v2348_v45 = vpop.permute.xlu1 %2347 }
0x120d   : > { %7388 = vmatprep.mubr.msk.f32.mxu0 %vm614_vm4, %v2209_v54 }
0x120e   : > { %v8053_v40 = vpack.c.bf16 %v8815_v12, %v8814_v28  ;;  %7389 = vmatmul.mubr.msk.f32.gmra.mrb[8].mxu0 %vm614_vm4, %v2211_v20  ;;  %v8874_v13 = vpop.eup %8873 }
0x120f   : > { %v2215_v8 = vmul.f32 %v8874_v13, %v8862_v2  ;;  %v2354_v0 = vpop.permute.xlu0 %2353 }
0x1210   : > { %8055 = vmatprep.subr.msk.bf16.mxu0 %vm9857_vm3, %v8053_v40  ;;  %v2350_v19 = vpop.permute.xlu1 %2349 }
0x1211   : > { %8058 = vmatpush3.bf16.xpose.msk.msra.mxu0 %vm9857_vm3, %v8053_v40 }
0x1212   : > { %v8876_v48 = vpop.eup %8875  ;;  %8061 = vmatprep.subr.msk.bf16.mxu0 %vm9857_vm3, %v8059_v61 }
0x1213   : > { %v2213_v15 = vmul.f32 %v8876_v48, %v8864_v7  ;;  %v2358_v27 = vpop.permute.xlu0 %2357 }
0x1214   : > { %v2352_v33 = vpop.permute.xlu1 %2351 }
0x1215   : > { %7391 = vmatprep.mubr.msk.f32.mxu0 %vm614_vm4, %v2213_v15 }
0x1216   : > { %7392 = vmatmul.mubr.msk.f32.gmra.mrb[10].mxu0 %vm614_vm4, %v2215_v8 }
0x1217   : > { %7406 = vmatprep.mubr.msk.f32.mxu0 %vm476_vm2, %v2348_v45 }
0x1218   : > { %v2356_v25 = vpop.permute.xlu1 %2355 }
0x1219   : > { %8064 = vmatpush3.bf16.xpose.msk.msra.mxu0 %vm9857_vm3, %v8059_v61 }
0x121a   : > { %8067 = vmatprep.subr.msk.bf16.mxu0 %vm9857_vm3, %v8065_v5 }
0x1221   : > { %8070 = vmatpush3.bf16.xpose.msk.msra.mxu0 %vm9857_vm3, %v8065_v5 }
0x1228   : > { %7407 = vmatmul.mubr.msk.f32.vlgmr.msra.gmra.mrb[12].mxu0 %vm476_vm2, %v2350_v19 }
0x1229   : > { %7409 = vmatprep.mubr.msk.f32.mxu0 %vm476_vm2, %v2352_v33 }
0x122c   : > { %7410 = vmatmul.mubr.msk.f32.gmra.mrb[14].mxu0 %vm476_vm2, %v2354_v0 }
0x122d   : > { %7412 = vmatprep.mubr.msk.f32.mxu0 %vm476_vm2, %v2356_v25 }
0x1230   : > { %7413 = vmatmul.mubr.msk.f32.gmra.mrb[16].mxu0 %vm476_vm2, %v2358_v27 }
0x12da   : > { %v10455_v30 = vpop.f32.mrb[6].mxu0 }
0x12db   : > { %v10457_v2 = vpop.f32.mrb[7].mxu0 }
0x12e1   : > { %v10459_v43 = vpop.f32.mrb[8].mxu0 }
0x12e2   : > { %v10461_v7 = vpop.f32.mrb[9].mxu0 }
0x12e9   : > { %v10463_v57 = vpop.f32.mrb[10].mxu0 }
0x12ea   : > { %v10465_v34 = vpop.f32.mrb[11].mxu0 }
0x12fb   : > { %v7408_v35 = vpop.f32.mrb[12].mxu0 }
0x12fc   : > { %v2491_v39 = vmul.f32 0.25, %v7408_v35  ;;  %v2461_v41 = vpop.f32.mrb[13].mxu0 }
0x12fd   : > { %v2490_v59 = vmul.f32 0.25, %v2461_v41 }
0x12fe   : > { %v2497_v58 = vadd.f32 %v2491_v39, %v10374_v44 }
0x12ff   : > { %v7411_v42 = vpop.f32.mrb[14].mxu0  ;;  %v2496_v36 = vadd.f32 %v2490_v59, %v10379_v52 }
0x1300   : > { %v2471_v49 = vpop.f32.mrb[15].mxu0  ;;  %v2505_v3 = vsel %vm614_vm4, %v2497_v58, -inf  ;;  %v2493_v24 = vmul.f32 0.25, %v7411_v42 }
0x1301   : > { %v2492_v1 = vmul.f32 0.25, %v2471_v49  ;;  %2506 = vmax.xlane.f32.xlu0 %v2505_v3  ;;  %v2502_v31 = vsel %vm614_vm4, %v2496_v36, -inf }
0x1302   : > { %2503 = vmax.xlane.f32.xlu1 %v2502_v31  ;;  %v2499_v28 = vadd.f32 %v2493_v24, %v10386_v46 }
0x1303   : > { %v7414_v37 = vpop.f32.mrb[16].mxu0  ;;  %v2498_v14 = vadd.f32 %v2492_v1, %v10393_v63 }
0x1304   : > { %v2481_v54 = vpop.f32.mrb[17].mxu0  ;;  %v2495_v10 = vmul.f32 0.25, %v7414_v37  ;;  %v2511_v20 = vsel %vm614_vm4, %v2499_v28, -inf }
0x1305   : > { %v2494_v12 = vmul.f32 0.25, %v2481_v54  ;;  %v2508_v44 = vsel %vm614_vm4, %v2498_v14, -inf }
0x1306   : > { %2509 = vmax.xlane.f32.xlu0 %v2508_v44  ;;  %v2501_v61 = vadd.f32 %v2495_v10, %v10406_v53 }
0x1307   : > { %v2500_v52 = vadd.f32 %v2494_v12, %v10401_v60 }
0x1308   : > { %v2517_v63 = vsel %vm614_vm4, %v2501_v61, -inf }
0x1309   : > { %v2514_v40 = vsel %vm614_vm4, %v2500_v52, -inf }
0x130a   : > { %2512 = vmax.xlane.f32.xlu0 %v2511_v20  ;;  %2515 = vmax.xlane.f32.xlu1 %v2514_v40 }
0x130e   : > { %2518 = vmax.xlane.f32.xlu0 %v2517_v63 }
0x131b   : > { %8827 = vrot.lane.b32.xlu1 %v10328_v22, %s9451_s25 }
0x138e   : > { %v2507_v29 = vpop.xlane.xlu0 %2506 }
0x138f   : > { %v2521_v46 = vsub.f32 %v2497_v58, %v2507_v29  ;;  %v2504_v13 = vpop.xlane.xlu1 %2503 }
0x1390   : > { %v2520_v48 = vsub.f32 %v2496_v36, %v2504_v13 }
0x1391   : > { %v2528_v60 = vmul.f32 1.442695, %v2521_v46 }
0x1392   : > { %v2526_v15 = vmul.f32 1.442695, %v2520_v48 }
0x1393   : > { %8877 = vpow2.f32 %v2528_v60  ;;  %v2510_v17 = vpop.xlane.xlu0 %2509 }
0x1394   : > { %8879 = vpow2.f32 %v2526_v15  ;;  %v2522_v16 = vsub.f32 %v2498_v14, %v2510_v17 }
0x1396   : > { %v2530_v53 = vmul.f32 1.442695, %v2522_v16 }
0x1397   : > { %v2513_v8 = vpop.xlane.xlu0 %2512  ;;  %v2516_v45 = vpop.xlane.xlu1 %2515 }
0x1398   : > { %8881 = vpow2.f32 %v2530_v53  ;;  %v2523_v5 = vsub.f32 %v2499_v28, %v2513_v8  ;;  %v2524_v19 = vsub.f32 %v2500_v52, %v2516_v45 }
0x139a   : > { %v2532_v33 = vmul.f32 1.442695, %v2523_v5  ;;  %v2534_v0 = vmul.f32 1.442695, %v2524_v19 }
0x139b   : > { %v2519_v25 = vpop.xlane.xlu0 %2518  ;;  %v8828_v22 = vpop.permute.xlu1 %8827 }
0x139c   : > { %8883 = vpow2.f32 %v2532_v33  ;;  %v2525_v27 = vsub.f32 %v2501_v61, %v2519_v25  ;;  %v8830_v35 = vunpack.i.h.bf16 %v8828_v22  ;;  %v8829_v39 = vunpack.i.l.bf16 %v8828_v22  ;;  %v2730_v22 = vld [vmem:[%s2729_s27] sm:$0xff] }
0x139d   : > { %v8878_v41 = vpop.eup %8877  ;;  %8885 = vpow2.f32 %v2534_v0 }
0x139e   : > { %v8880_v59 = vpop.eup %8879  ;;  %v2536_v58 = vmul.f32 1.442695, %v2525_v27  ;;  %v8071_v42 = vpack.c.bf16 %v8830_v35, %v8829_v39  ;;  %v2541_v36 = vsel %vm614_vm4, %v8878_v41, 0.0  ;;  %v2731_v27 = vld [vmem:[%s2729_s27 + $0x8] sm:$0xff]  ;;  %v2732_v35 = vld [vmem:[%s2729_s27 + $0x10] sm:$0xff] }
0x139f   : > { %2542 = vadd.xlane.f32.xlu0 %v2541_v36  ;;  %v2538_v49 = vsel %vm614_vm4, %v8880_v59, 0.0  ;;  %v8083_v39 = vpack.c.bf16 %v2731_v27, %v2730_v22 }
0x13a0   : > { %8887 = vpow2.f32 %v2536_v58  ;;  %2539 = vadd.xlane.f32.xlu1 %v2538_v49  ;;  %8072 = vmatprep.subr.bf16.mxu0 %v8071_v42 }
0x13a1   : > { %8074 = vmatpush3.bf16.msra.mxu0 %v8071_v42  ;;  %8084 = vmatprep.subr.bf16.mxu1 %v8083_v39 }
0x13a2   : > { %v8882_v3 = vpop.eup %8881  ;;  %8086 = vmatpush3.bf16.msra.mxu1 %v8083_v39 }
0x13a3   : > { %v2544_v24 = vsel %vm614_vm4, %v8882_v3, 0.0 }
0x13a4   : > { %2545 = vadd.xlane.f32.xlu1 %v2544_v24 }
0x13a6   : > { %v8884_v1 = vpop.eup %8883 }
0x13a7   : > { %v8886_v31 = vpop.eup %8885  ;;  %v2547_v37 = vsel %vm614_vm4, %v8884_v1, 0.0 }
0x13a8   : > { %2548 = vadd.xlane.f32.xlu0 %v2547_v37  ;;  %v2550_v14 = vsel %vm614_vm4, %v8886_v31, 0.0 }
0x13a9   : > { %2551 = vadd.xlane.f32.xlu1 %v2550_v14 }
0x13aa   : > { %v8888_v54 = vpop.eup %8887 }
0x13ab   : > { %v2553_v10 = vsel %vm614_vm4, %v8888_v54, 0.0 }
0x13ac   : > { %2554 = vadd.xlane.f32.xlu0 %v2553_v10 }
0x13ba   : > { %8837 = vrot.lane.b32.xlu1 %v10346_v50, %s9451_s25 }
0x13c2   : > { %8832 = vrot.lane.b32.xlu0 %v10337_v32, %s9451_s25 }
0x142c   : > { %v2543_v44 = vpop.xlane.xlu0 %2542 }
0x142d   : > { %v2540_v12 = vpop.xlane.xlu1 %2539 }
0x142e   : > { %8889 = vrcp.f32 %v2540_v12 }
0x142f   : > { %8891 = vrcp.f32 %v2543_v44 }
0x1431   : > { %v2546_v28 = vpop.xlane.xlu1 %2545 }
0x1432   : > { %8893 = vrcp.f32 %v2546_v28 }
0x1435   : > { %v2549_v52 = vpop.xlane.xlu0 %2548 }
0x1436   : > { %v2552_v20 = vpop.xlane.xlu1 %2551  ;;  %8895 = vrcp.f32 %v2549_v52  ;;  %v2856_v52 = vrot.slane %v10298_v55, %v10032_v4 }
0x1437   : > { %8897 = vrcp.f32 %v2552_v20 }
0x1438   : > { %v8890_v40 = vpop.eup %8889 }
0x1439   : > { %v2555_v61 = vpop.xlane.xlu0 %2554  ;;  %v2557_v63 = vmul.f32 %v8890_v40, %v8880_v59  ;;  %v8892_v17 = vpop.eup %8891 }
0x143a   : > { %v8838_v29 = vpop.permute.xlu1 %8837  ;;  %8899 = vrcp.f32 %v2555_v61  ;;  %v2559_v53 = vmul.f32 %v8892_v17, %v8878_v41  ;;  %v2733_v41 = vld [vmem:[%s2729_s27 + $0x18] sm:$0xff] }
0x143b   : > { %7427 = vmatprep.mubr.msk.f32.mxu0 %vm614_vm4, %v2557_v63  ;;  %v8840_v13 = vunpack.i.h.bf16 %v8838_v29  ;;  %v8839_v50 = vunpack.i.l.bf16 %v8838_v29  ;;  %v8087_v59 = vpack.c.bf16 %v2733_v41, %v2732_v35 }
0x143c   : > { %v8894_v16 = vpop.eup %8893 }
0x143d   : > { %v8833_v46 = vpop.permute.xlu0 %8832  ;;  %v8079_v15 = vpack.c.bf16 %v8840_v13, %v8839_v50  ;;  %v2561_v45 = vmul.f32 %v8894_v16, %v8882_v3  ;;  %8088 = vmatprep.subr.bf16.mxu1 %v8087_v59 }
0x143e   : > { %v8835_v48 = vunpack.i.h.bf16 %v8833_v46  ;;  %v8834_v60 = vunpack.i.l.bf16 %v8833_v46  ;;  %8090 = vmatpush3.bf16.msra.mxu1 %v8087_v59 }
0x1440   : > { %v8075_v32 = vpack.c.bf16 %v8835_v48, %v8834_v60  ;;  %v8896_v8 = vpop.eup %8895 }
0x1441   : > { %v8898_v5 = vpop.eup %8897  ;;  %v2563_v19 = vmul.f32 %v8896_v8, %v8884_v1 }
0x1442   : > { %8076 = vmatprep.subr.bf16.mxu0 %v8075_v32  ;;  %v2565_v0 = vmul.f32 %v8898_v5, %v8886_v31 }
0x1443   : > { %8078 = vmatpush3.bf16.msra.mxu0 %v8075_v32 }
0x1444   : > { %8080 = vmatprep.subr.bf16.mxu0 %v8079_v15  ;;  %v8900_v33 = vpop.eup %8899 }
0x1445   : > { %v2567_v25 = vmul.f32 %v8900_v33, %v8888_v54 }
0x1447   : > { %8082 = vmatpush3.bf16.msra.mxu0 %v8079_v15 }
0x144a   : > { %7428 = vmatmul.mubr.msk.f32.vlgmr.msra.gmra.mrb[18].mxu0 %vm614_vm4, %v2559_v53 }
0x144b   : > { %7430 = vmatprep.mubr.msk.f32.mxu0 %vm614_vm4, %v2561_v45 }
0x144e   : > { %7431 = vmatmul.mubr.msk.f32.gmra.mrb[20].mxu0 %vm614_vm4, %v2563_v19 }
0x144f   : > { %7433 = vmatprep.mubr.msk.f32.mxu0 %vm614_vm4, %v2565_v0 }
0x1452   : > { %7434 = vmatmul.mubr.msk.f32.gmra.mrb[22].mxu0 %vm614_vm4, %v2567_v25 }
0x151d   : > { %v7429_v58 = vpop.f32.mrb[18].mxu0 }
0x151e   : > { %v2670_v42 = vpop.f32.mrb[19].mxu0 }
0x151f   : > { %2705 = vrot.lane.b32.xlu1 %v2670_v42, %s9452_s28 }
0x1521   : > { %v7432_v36 = vpop.f32.mrb[20].mxu0 }
0x1522   : > { %v2680_v49 = vpop.f32.mrb[21].mxu0 }
0x1523   : > { %2707 = vrot.lane.b32.xlu1 %v7429_v58, %s9452_s28  ;;  %2709 = vrot.lane.b32.xlu0 %v2680_v49, %s9452_s28 }
0x1525   : > { %v7435_v3 = vpop.f32.mrb[22].mxu0 }
0x1526   : > { %v2690_v24 = vpop.f32.mrb[23].mxu0 }
0x1527   : > { %2711 = vrot.lane.b32.xlu1 %v7432_v36, %s9452_s28  ;;  %2713 = vrot.lane.b32.xlu0 %v2690_v24, %s9452_s28 }
0x152b   : > { %2715 = vrot.lane.b32.xlu1 %v7435_v3, %s9452_s28 }
0x1591   : > { %v2706_v1 = vpop.permute.xlu1 %2705 }
0x1592   : > { %v2723_v31 = vsel %vm476_vm2, %v10457_v2, %v2706_v1 }
0x1593   : > { %7444 = vmatprep.mubr.msk.f32.mxu1 %vm212_vm1, %v2723_v31 }
0x1595   : > { %v2708_v37 = vpop.permute.xlu1 %2707  ;;  %v2710_v14 = vpop.permute.xlu0 %2709 }
0x1596   : > { %v2724_v54 = vsel %vm476_vm2, %v10455_v30, %v2708_v37  ;;  %v2725_v10 = vsel %vm476_vm2, %v10461_v7, %v2710_v14 }
0x1597   : > { %7445 = vmatmul.mubr.msk.f32.vlgmr.msra.gmra.mrb[6].mxu1 %vm212_vm1, %v2724_v54 }
0x1598   : > { %7447 = vmatprep.mubr.msk.f32.mxu1 %vm212_vm1, %v2725_v10 }
0x1599   : > { %v2712_v12 = vpop.permute.xlu1 %2711  ;;  %v2714_v44 = vpop.permute.xlu0 %2713 }
0x159a   : > { %v2726_v28 = vsel %vm476_vm2, %v10459_v43, %v2712_v12  ;;  %v2727_v2 = vsel %vm476_vm2, %v10465_v34, %v2714_v44 }
0x159b   : > { %7448 = vmatmul.mubr.msk.f32.gmra.mrb[8].mxu1 %vm212_vm1, %v2726_v28 }
0x159c   : > { %7450 = vmatprep.mubr.msk.f32.mxu1 %vm212_vm1, %v2727_v2 }
0x159d   : > { %v2716_v30 = vpop.permute.xlu1 %2715 }
0x159e   : > { %v2728_v7 = vsel %vm476_vm2, %v10463_v57, %v2716_v30  ;;  %v2962_v30 = vld [vmem:[%s2961_s14] sm:$0xff] }
0x159f   : > { %7451 = vmatmul.mubr.msk.f32.gmra.mrb[10].mxu1 %vm212_vm1, %v2728_v7  ;;  %v2963_v7 = vld [vmem:[%s2961_s14 + $0x8] sm:$0xff] }
0x166a   : > { %v7446_v20 = vpop.f32.mrb[6].mxu1 }
0x166b   : > { %v2848_v40 = vadd.f32 %v9374_v47, %v7446_v20  ;;  %v2818_v43 = vpop.f32.mrb[7].mxu1  ;;  %v2964_v20 = vld [vmem:[%s2961_s14 + $0x10] sm:$0xff] }
0x166c   : > { %v2847_v61 = vadd.f32 %v9378_v9, %v2818_v43 }
0x166d   : > { %v10523_v34 = vadd.f32 %v2856_v52, %v2848_v40  ;;  %v2965_v40 = vld [vmem:[%s2961_s14 + $0x18] sm:$0xff] }
0x166e   : > { %v10525_v63 = vadd.f32 %v2856_v52, %v2847_v61  ;;  %v7449_v29 = vpop.f32.mrb[8].mxu1  ;;  %v8095_v43 = vpack.c.bf16 %v2965_v40, %v2964_v20  ;;  %v3145_v20 = vld [vmem:[%s10614_s29 + $0x10] sm:$0xff]  ;;  %v3146_v40 = vld [vmem:[%s10614_s29 + $0x18] sm:$0xff] }
0x166f   : > { %v2850_v46 = vadd.f32 %v9366_v62, %v7449_v29  ;;  %v2828_v13 = vpop.f32.mrb[9].mxu1  ;;  %v2866_v57 = vsel %vm212_vm1, %v10523_v34, 0.0 }
0x1670   : > { %v2849_v50 = vadd.f32 %v9370_v6, %v2828_v13  ;;  %2867 = vadd.xlane.f32.xlu1 %v2866_v57  ;;  %v2863_v47 = vsel %vm212_vm1, %v10525_v63, 0.0 }
0x1671   : > { %v10533_v55 = vadd.f32 %v2856_v52, %v2850_v46  ;;  %2864 = vadd.xlane.f32.xlu0 %v2863_v47 }
0x1672   : > { %v7452_v9 = vpop.f32.mrb[10].mxu1  ;;  %v10538_v32 = vadd.f32 %v2856_v52, %v2849_v50 }
0x1673   : > { %v2852_v48 = vadd.f32 %v9358_v26, %v7452_v9  ;;  %v2838_v60 = vpop.f32.mrb[11].mxu1  ;;  %v2872_v62 = vsel %vm212_vm1, %v10533_v55, 0.0 }
0x1674   : > { %v2851_v15 = vadd.f32 %v9362_v23, %v2838_v60  ;;  %v2869_v26 = vsel %vm212_vm1, %v10538_v32, 0.0 }
0x1675   : > { %v10541_v17 = vadd.f32 %v2856_v52, %v2852_v48  ;;  %2873 = vadd.xlane.f32.xlu0 %v2872_v62 }
0x1676   : > { %v10545_v16 = vadd.f32 %v2856_v52, %v2851_v15  ;;  %v8091_v52 = vpack.c.bf16 %v2963_v7, %v2962_v30 }
0x1677   : > { %v2878_v6 = vsel %vm212_vm1, %v10541_v17, 0.0 }
0x1678   : > { %2879 = vadd.xlane.f32.xlu1 %v2878_v6  ;;  %v2875_v53 = vsel %vm212_vm1, %v10545_v16, 0.0  ;;  %8092 = vmatprep.subr.bf16.mxu0 %v8091_v52 }
0x1679   : > { %2870 = vadd.xlane.f32.xlu0 %v2869_v26  ;;  %8094 = vmatpush3.bf16.msra.mxu0 %v8091_v52 }
0x167a   : > { %8096 = vmatprep.subr.bf16.mxu0 %v8095_v43 }
0x167d   : > { %2876 = vadd.xlane.f32.xlu0 %v2875_v53  ;;  %8098 = vmatpush3.bf16.msra.mxu0 %v8095_v43  ;;  %v8103_v43 = vpack.c.bf16 %v3146_v40, %v3145_v20 }
0x16fd   : > { %v2868_v8 = vpop.xlane.xlu1 %2867 }
0x16fe   : > { %v2882_v45 = vmul.f32 0.03125, %v2868_v8  ;;  %v2865_v23 = vpop.xlane.xlu0 %2864 }
0x16ff   : > { %v2881_v5 = vmul.f32 0.03125, %v2865_v23  ;;  %v10592_v23 = vld [vmem:[%s10295_s17] sm:$0x3f] }
0x1700   : > { %v10552_v19 = vsub.f32 %v10523_v34, %v2882_v45 }
0x1701   : > { %v10555_v33 = vsub.f32 %v10525_v63, %v2881_v5  ;;  %v2944_v5 = vrot.slane %v10592_v23, %v10107_v38 }
0x1702   : > { %v2874_v0 = vpop.xlane.xlu0 %2873  ;;  %v2894_v25 = vmul.f32 %v10552_v19, %v10552_v19 }
0x1703   : > { %v2884_v22 = vmul.f32 0.03125, %v2874_v0  ;;  %v2893_v27 = vmul.f32 %v10555_v33, %v10555_v33 }
0x1704   : > { %v2902_v35 = vsel %vm212_vm1, %v2894_v25, 0.0 }
0x1705   : > { %v10563_v39 = vsub.f32 %v10533_v55, %v2884_v22  ;;  %2903 = vadd.xlane.f32.xlu1 %v2902_v35  ;;  %v2880_v41 = vpop.xlane.xlu1 %2879  ;;  %v2899_v59 = vsel %vm212_vm1, %v2893_v27, 0.0 }
0x1706   : > { %v2886_v58 = vmul.f32 0.03125, %v2880_v41  ;;  %2900 = vadd.xlane.f32.xlu0 %v2899_v59  ;;  %v2871_v42 = vpop.xlane.xlu0 %2870  ;;  %v2954_v41 = vrot.slane %v10592_v23, %v10110_v51 }
0x1707   : > { %v2883_v36 = vmul.f32 0.03125, %v2871_v42  ;;  %v2896_v49 = vmul.f32 %v10563_v39, %v10563_v39 }
0x1708   : > { %v10569_v3 = vsub.f32 %v10541_v17, %v2886_v58 }
0x1709   : > { %v10572_v24 = vsub.f32 %v10538_v32, %v2883_v36  ;;  %v2908_v1 = vsel %vm212_vm1, %v2896_v49, 0.0 }
0x170a   : > { %2909 = vadd.xlane.f32.xlu1 %v2908_v1  ;;  %v2877_v31 = vpop.xlane.xlu0 %2876  ;;  %v2898_v37 = vmul.f32 %v10569_v3, %v10569_v3 }
0x170b   : > { %v2885_v14 = vmul.f32 0.03125, %v2877_v31  ;;  %v2895_v54 = vmul.f32 %v10572_v24, %v10572_v24 }
0x170c   : > { %v2914_v10 = vsel %vm212_vm1, %v2898_v37, 0.0 }
0x170d   : > { %v10581_v12 = vsub.f32 %v10545_v16, %v2885_v14  ;;  %v2905_v44 = vsel %vm212_vm1, %v2895_v54, 0.0 }
0x170e   : > { %2915 = vadd.xlane.f32.xlu1 %v2914_v10  ;;  %2906 = vadd.xlane.f32.xlu0 %v2905_v44 }
0x170f   : > { %v2897_v28 = vmul.f32 %v10581_v12, %v10581_v12 }
0x1711   : > { %v2911_v2 = vsel %vm212_vm1, %v2897_v28, 0.0 }
0x1712   : > { %2912 = vadd.xlane.f32.xlu0 %v2911_v2 }
0x1792   : > { %v2904_v61 = vpop.xlane.xlu1 %2903 }
0x1793   : > { %v2918_v29 = vmul.f32 0.03125, %v2904_v61  ;;  %v2901_v46 = vpop.xlane.xlu0 %2900  ;;  %v3147_v61 = vld [vmem:[%s10614_s29 + $0x20] sm:$0xff] }
0x1794   : > { %v2917_v13 = vmul.f32 0.03125, %v2901_v46 }
0x1795   : > { %v2924_v57 = vadd.f32 1e-06, %v2918_v29  ;;  %v3148_v29 = vld [vmem:[%s10614_s29 + $0x28] sm:$0xff] }
0x1796   : > { %v2923_v50 = vadd.f32 1e-06, %v2917_v13  ;;  %v8107_v46 = vpack.c.bf16 %v3148_v29, %v3147_v61  ;;  %v3149_v13 = vld [vmem:[%s10614_s29 + $0x30] sm:$0xff] }
0x1797   : > { %8901 = vrsqrt.f32 %v2924_v57  ;;  %v2910_v47 = vpop.xlane.xlu1 %2909  ;;  %v3150_v57 = vld [vmem:[%s10614_s29 + $0x38] sm:$0xff] }
0x1798   : > { %8903 = vrsqrt.f32 %v2923_v50  ;;  %v2920_v9 = vmul.f32 0.03125, %v2910_v47  ;;  %v8111_v50 = vpack.c.bf16 %v3150_v57, %v3149_v13  ;;  %v3151_v47 = vld [vmem:[%s10614_s29 + $0x40] sm:$0xff] }
0x179a   : > { %v2926_v48 = vadd.f32 1e-06, %v2920_v9  ;;  %v3152_v9 = vld [vmem:[%s10614_s29 + $0x48] sm:$0xff] }
0x179b   : > { %v2916_v60 = vpop.xlane.xlu1 %2915  ;;  %v2907_v62 = vpop.xlane.xlu0 %2906 }
0x179c   : > { %8905 = vrsqrt.f32 %v2926_v48  ;;  %v2922_v15 = vmul.f32 0.03125, %v2916_v60  ;;  %v2919_v6 = vmul.f32 0.03125, %v2907_v62  ;;  %v8115_v48 = vpack.c.bf16 %v3152_v9, %v3151_v47  ;;  %v3153_v60 = vld [vmem:[%s10614_s29 + $0x50] sm:$0xff]  ;;  %v3154_v62 = vld [vmem:[%s10614_s29 + $0x58] sm:$0xff] }
0x179e   : > { %v2928_v26 = vadd.f32 1e-06, %v2922_v15  ;;  %v2925_v53 = vadd.f32 1e-06, %v2919_v6  ;;  %v8119_v15 = vpack.c.bf16 %v3154_v62, %v3153_v60  ;;  %v3155_v6 = vld [vmem:[%s10614_s29 + $0x60] sm:$0xff] }
0x179f   : > { %v2913_v8 = vpop.xlane.xlu0 %2912 }
0x17a0   : > { %8907 = vrsqrt.f32 %v2928_v26  ;;  %v2921_v45 = vmul.f32 0.03125, %v2913_v8  ;;  %v3156_v26 = vld [vmem:[%s10614_s29 + $0x68] sm:$0xff]  ;;  %v3157_v8 = vld [vmem:[%s10614_s29 + $0x70] sm:$0xff] }
0x17a1   : > { %v8902_v0 = vpop.eup %8901  ;;  %8909 = vrsqrt.f32 %v2925_v53  ;;  %v8123_v53 = vpack.c.bf16 %v3156_v26, %v3155_v6 }
0x17a2   : > { %v8904_v25 = vpop.eup %8903  ;;  %v2936_v22 = vmul.f32 %v8902_v0, %v10552_v19  ;;  %v2927_v27 = vadd.f32 1e-06, %v2921_v45  ;;  %v3158_v45 = vld [vmem:[%s10614_s29 + $0x78] sm:$0xff]  ;;  %v6621_v0 = vld [vmem:[%s2966_s1] ss:$0 sm:$0xff] }
0x17a3   : > { %v2935_v35 = vmul.f32 %v8904_v25, %v10555_v33 }
0x17a4   : > { %8911 = vrsqrt.f32 %v2927_v27  ;;  %v2946_v59 = vmul.f32 %v2944_v5, %v2936_v22 }
0x17a5   : > { %v2945_v58 = vmul.f32 %v2944_v5, %v2935_v35 }
0x17a6   : > { %v8906_v42 = vpop.eup %8905  ;;  %v2956_v49 = vadd.f32 %v2954_v41, %v2946_v59 }
0x17a7   : > { %v2955_v36 = vadd.f32 %v2954_v41, %v2945_v58  ;;  %v2938_v1 = vmul.f32 %v8906_v42, %v10563_v39 }
0x17a9   : > { %7461 = vmatprep.mubr.msk.f32.mxu0 %vm212_vm1, %v2955_v36  ;;  %v2948_v33 = vmul.f32 %v2944_v5, %v2938_v1 }
0x17aa   : > { %v8908_v31 = vpop.eup %8907  ;;  %7462 = vmatmul.mubr.msk.f32.vlgmr.msra.gmra.mrb[24].mxu0 %vm212_vm1, %v2956_v49 }
0x17ab   : > { %v8910_v19 = vpop.eup %8909  ;;  %v2940_v14 = vmul.f32 %v8908_v31, %v10569_v3  ;;  %v2958_v2 = vadd.f32 %v2954_v41, %v2948_v33  ;;  %v3143_v3 = vld [vmem:[%s10614_s29] sm:$0xff] }
0x17ac   : > { %v2937_v37 = vmul.f32 %v8910_v19, %v10572_v24 }
0x17ad   : > { %v2950_v7 = vmul.f32 %v2944_v5, %v2940_v14 }
0x17ae   : > { %v8912_v54 = vpop.eup %8911  ;;  %v2947_v10 = vmul.f32 %v2944_v5, %v2937_v37 }
0x17af   : > { %v2939_v44 = vmul.f32 %v8912_v54, %v10581_v12  ;;  %v2960_v24 = vadd.f32 %v2954_v41, %v2950_v7  ;;  %v3144_v12 = vld [vmem:[%s10614_s29 + $0x8] sm:$0xff] }
0x17b0   : > { %v2957_v28 = vadd.f32 %v2954_v41, %v2947_v10  ;;  %v8099_v52 = vpack.c.bf16 %v3144_v12, %v3143_v3 }
0x17b1   : > { %v2949_v30 = vmul.f32 %v2944_v5, %v2939_v44  ;;  %v8127_v5 = vpack.c.bf16 %v3158_v45, %v3157_v8 }
0x17b2   : > { %7464 = vmatprep.mubr.msk.f32.mxu0 %vm212_vm1, %v2957_v28  ;;  %8100 = vmatprep.subr.bf16.mxu1 %v8099_v52 }
0x17b3   : > { %7465 = vmatmul.mubr.msk.f32.gmra.mrb[26].mxu0 %vm212_vm1, %v2958_v2  ;;  %v2959_v39 = vadd.f32 %v2954_v41, %v2949_v30  ;;  %8102 = vmatpush3.bf16.msra.mxu1 %v8099_v52 }
0x17b4   : > { %8104 = vmatprep.subr.bf16.mxu1 %v8103_v43 }
0x17b5   : > { %7467 = vmatprep.mubr.msk.f32.mxu0 %vm212_vm1, %v2959_v39 }
0x17b7   : > { %7468 = vmatmul.mubr.msk.f32.gmra.mrb[28].mxu0 %vm212_vm1, %v2960_v24  ;;  %8106 = vmatpush3.bf16.msra.mxu1 %v8103_v43 }
0x17b8   : > { %8108 = vmatprep.subr.bf16.mxu1 %v8107_v46 }
0x17bb   : > { %8110 = vmatpush3.bf16.msra.mxu1 %v8107_v46 }
0x17bc   : > { %8112 = vmatprep.subr.bf16.mxu1 %v8111_v50 }
0x17bf   : > { %8114 = vmatpush3.bf16.msra.mxu1 %v8111_v50 }
0x17c0   : > { %8116 = vmatprep.subr.bf16.mxu1 %v8115_v48 }
0x17c3   : > { %8118 = vmatpush3.bf16.msra.mxu1 %v8115_v48 }
0x17c4   : > { %8120 = vmatprep.subr.bf16.mxu1 %v8119_v15 }
0x17c7   : > { %8122 = vmatpush3.bf16.msra.mxu1 %v8119_v15 }
0x17c8   : > { %8124 = vmatprep.subr.bf16.mxu1 %v8123_v53 }
0x17cb   : > { %8126 = vmatpush3.bf16.msra.mxu1 %v8123_v53 }
0x17cc   : > { %8128 = vmatprep.subr.bf16.mxu1 %v8127_v5 }
0x17cf   : > { %8130 = vmatpush3.bf16.msra.mxu1 %v8127_v5 }
0x187d   : > { %v7463_v25 = vpop.f32.mrb[24].mxu0 }
0x187e   : > { %v3064_v22 = vadd.f32 %v7463_v25, %v6621_v0  ;;  %v3058_v27 = vpop.f32.mrb[25].mxu0 }
0x187f   : > { %v3059_v35 = vadd.f32 %v6621_v0, %v3058_v27 }
0x1880   : > { %v3088_v41 = vmul.f32 %v3064_v22, %v3064_v22 }
0x1881   : > { %v3087_v59 = vmul.f32 %v3059_v35, %v3059_v35 }
0x1882   : > { %v3094_v58 = vmul.f32 %v3088_v41, %v3064_v22 }
0x1883   : > { %v3093_v42 = vmul.f32 %v3087_v59, %v3059_v35 }
0x1884   : > { %v3100_v36 = vmul.f32 0.044715, %v3094_v58 }
0x1885   : > { %v3099_v49 = vmul.f32 0.044715, %v3093_v42 }
0x1886   : > { %v3106_v1 = vadd.f32 %v3100_v36, %v3064_v22  ;;  %v7466_v31 = vpop.f32.mrb[26].mxu0 }
0x1887   : > { %v3105_v19 = vadd.f32 %v3099_v49, %v3059_v35  ;;  %v3074_v37 = vadd.f32 %v7466_v31, %v6621_v0  ;;  %v3068_v33 = vpop.f32.mrb[27].mxu0 }
0x1888   : > { %v3112_v14 = vmul.f32 0.7978846, %v3106_v1  ;;  %v3069_v54 = vadd.f32 %v6621_v0, %v3068_v33 }
0x1889   : > { %v3111_v10 = vmul.f32 0.7978846, %v3105_v19  ;;  %v3090_v44 = vmul.f32 %v3074_v37, %v3074_v37 }
0x188a   : > { %8913 = vtanh.f32 %v3112_v14  ;;  %v3089_v28 = vmul.f32 %v3069_v54, %v3069_v54  ;;  %v7469_v2 = vpop.f32.mrb[28].mxu0 }
0x188b   : > { %v3096_v30 = vmul.f32 %v3090_v44, %v3074_v37  ;;  %v3084_v7 = vadd.f32 %v7469_v2, %v6621_v0  ;;  %v3078_v39 = vpop.f32.mrb[29].mxu0  ;;  %8915 = vtanh.f32 %v3111_v10  ;;  %v3263_v44 = vrot.slane %v10592_v23, %v10158_v18 }
0x188c   : > { %v3095_v24 = vmul.f32 %v3089_v28, %v3069_v54  ;;  %v3079_v3 = vadd.f32 %v6621_v0, %v3078_v39 }
0x188d   : > { %v3102_v12 = vmul.f32 0.044715, %v3096_v30  ;;  %v3092_v52 = vmul.f32 %v3084_v7, %v3084_v7 }
0x188e   : > { %v3101_v20 = vmul.f32 0.044715, %v3095_v24  ;;  %v3091_v40 = vmul.f32 %v3079_v3, %v3079_v3 }
0x188f   : > { %v3108_v43 = vadd.f32 %v3102_v12, %v3074_v37  ;;  %v3098_v61 = vmul.f32 %v3092_v52, %v3084_v7 }
0x1890   : > { %v3107_v29 = vadd.f32 %v3101_v20, %v3069_v54  ;;  %v3097_v46 = vmul.f32 %v3091_v40, %v3079_v3 }
0x1891   : > { %v3114_v13 = vmul.f32 0.7978846, %v3108_v43  ;;  %v3104_v57 = vmul.f32 0.044715, %v3098_v61 }
0x1892   : > { %v3113_v50 = vmul.f32 0.7978846, %v3107_v29  ;;  %v3103_v47 = vmul.f32 0.044715, %v3097_v46 }
0x1893   : > { %v3110_v9 = vadd.f32 %v3104_v57, %v3084_v7  ;;  %8917 = vtanh.f32 %v3114_v13 }
0x1894   : > { %v8914_v48 = vpop.eup %8913  ;;  %v3109_v60 = vadd.f32 %v3103_v47, %v3079_v3  ;;  %8919 = vtanh.f32 %v3113_v50 }
0x1895   : > { %v8916_v62 = vpop.eup %8915  ;;  %v3124_v15 = vadd.f32 1.0, %v8914_v48  ;;  %v3116_v6 = vmul.f32 0.7978846, %v3110_v9 }
0x1896   : > { %v3115_v26 = vmul.f32 0.7978846, %v3109_v60  ;;  %v3123_v53 = vadd.f32 1.0, %v8916_v62 }
0x1897   : > { %v3130_v8 = vmul.f32 0.5, %v3124_v15  ;;  %8921 = vtanh.f32 %v3116_v6 }
0x1898   : > { %v3129_v45 = vmul.f32 0.5, %v3123_v53  ;;  %8923 = vtanh.f32 %v3115_v26 }
0x1899   : > { %v3136_v0 = vmul.f32 %v3130_v8, %v3064_v22 }
0x189a   : > { %v3135_v5 = vmul.f32 %v3129_v45, %v3059_v35 }
0x189c   : > { %7502 = vmatprep.mubr.f32.mxu1 %v3135_v5 }
0x189d   : > { %v8918_v25 = vpop.eup %8917  ;;  %7503 = vmatmul.mubr.f32.vlgmr.msra.gmra.mrb[12].mxu1 %v3136_v0 }
0x189e   : > { %v8920_v27 = vpop.eup %8919  ;;  %v3126_v41 = vadd.f32 1.0, %v8918_v25 }
0x189f   : > { %v3125_v59 = vadd.f32 1.0, %v8920_v27 }
0x18a0   : > { %v3132_v58 = vmul.f32 0.5, %v3126_v41 }
0x18a1   : > { %v8922_v42 = vpop.eup %8921  ;;  %v3131_v36 = vmul.f32 0.5, %v3125_v59 }
0x18a2   : > { %v8924_v49 = vpop.eup %8923  ;;  %v3128_v1 = vadd.f32 1.0, %v8922_v42  ;;  %v3138_v33 = vmul.f32 %v3132_v58, %v3074_v37 }
0x18a3   : > { %v3137_v31 = vmul.f32 %v3131_v36, %v3069_v54  ;;  %v3127_v19 = vadd.f32 1.0, %v8924_v49 }
0x18a4   : > { %v3134_v14 = vmul.f32 0.5, %v3128_v1 }
0x18a5   : > { %7505 = vmatprep.mubr.f32.mxu1 %v3137_v31  ;;  %v3133_v10 = vmul.f32 0.5, %v3127_v19 }
0x18a6   : > { %7506 = vmatmul.mubr.f32.gmra.mrb[14].mxu1 %v3138_v33  ;;  %v3140_v22 = vmul.f32 %v3134_v14, %v3084_v7 }
0x18a7   : > { %v3139_v35 = vmul.f32 %v3133_v10, %v3079_v3 }
0x18a9   : > { %7508 = vmatprep.mubr.f32.mxu1 %v3139_v35 }
0x18aa   : > { %7509 = vmatmul.mubr.f32.gmra.mrb[16].mxu1 %v3140_v22 }
0x1970   : > { %v7504_v28 = vpop.f32.mrb[12].mxu1 }
0x1971   : > { %v3255_v2 = vadd.f32 %v7504_v28, %v10523_v34  ;;  %v3225_v30 = vpop.f32.mrb[13].mxu1 }
0x1972   : > { %v3254_v39 = vadd.f32 %v3225_v30, %v10525_v63 }
0x1973   : > { %v3265_v54 = vadd.f32 %v3263_v44, %v3255_v2  }
0x1974   : > { %v3264_v24 = vadd.f32 %v3263_v44, %v3254_v39  }
0x1975   : > { %v11653_v47 = vmov %v3265_v54 }
0x1976   : > { %v11654_v9 = vmov %v3264_v24  ;;  %v3273_v63 = vrot.slane (%p1754_p1), %v3264_v24, %v9672_v56 }
0x1979   : > { %v7507_v37 = vpop.f32.mrb[14].mxu1 }
0x197a   : > { %v3257_v12 = vadd.f32 %v7507_v37, %v10533_v55  ;;  %v3235_v52 = vpop.f32.mrb[15].mxu1 }
0x197b   : > { %v3256_v3 = vadd.f32 %v3235_v52, %v10538_v32  ;;  %v3274_v32 = vadd.f32 (%p1754_p1), %v3273_v63, %v3265_v54 }
0x197c   : > { %v3267_v7 = vadd.f32 %v3263_v44, %v3257_v12  }
0x197d   : > { %v3266_v20 = vadd.f32 %v3263_v44, %v3256_v3   ;;  %v7510_v40 = vpop.f32.mrb[16].mxu1  ;;  %1756 = sbr.rel (!%p1754_p1) target bundleno = 3405 (0xd4d), region = 135  ;;  %6629 = vst.msk [vmem:[%s11640_s11 + $0x40] sm:$0xff] (%p1754_p1), %vm212_vm1, %v3274_v32 }
0x197e   : > { %v3259_v43 = vadd.f32 %v7510_v40, %v10541_v17  ;;  %v3245_v23 = vpop.f32.mrb[17].mxu1  ;;  %v11651_v62 = vmov %v3267_v7  ;;  %v3279_v55 = vrot.slane (%p1754_p1), %v3267_v7, %v9672_v56 }
0x197f   : > { %v3258_v61 = vadd.f32 %v3245_v23, %v10545_v16  ;;  %v11652_v6 = vmov %v3266_v20  ;;  %v3275_v17 = vadd.f32 (%p1754_p1), %v3273_v63, %v3266_v20 }
0x1980   : > { %v3269_v34 = vadd.f32 %v3263_v44, %v3259_v43  }
0x1981   : > { %v3268_v29 = vadd.f32 %v3263_v44, %v3258_v61   ;;  %6630 = vst.msk [vmem:[%s11640_s11 + $0x48] sm:$0xff] (%p1754_p1), %vm212_vm1, %v3275_v17 }
0x1982   : > { %v11649_v26 = vmov %v3269_v34  ;;  %v3281_v46 = vadd.f32 (%p1754_p1), %v3279_v55, %v3269_v34 }
0x1983   : > { %v11650_v23 = vmov %v3268_v29  ;;  %v3280_v16 = vadd.f32 (%p1754_p1), %v3279_v55, %v3268_v29 }
0x1984   :  { %6632 = vst.msk [vmem:[%s11640_s11 + $0x58] sm:$0xff] %vm212_vm1, %v3281_v46 }
0x1985   :  { %6631 = vst.msk [vmem:[%s11640_s11 + $0x50] sm:$0xff] %vm212_vm1, %v3280_v16 }
0x1986 LB: > { %v3302_v13 = vsel %vm212_vm1, %v9406_v24, 0.0  ;;  %v3308_v57 = vsel %vm212_vm1, %v9398_v20, 0.0  ;;  %v3305_v50 = vsel %vm212_vm1, %v9402_v54, 0.0  ;;  %v3311_v47 = vsel %vm212_vm1, %v9394_v7, 0.0  ;;  %s10761_s26 = sshll.u32 %s9410_s2, 5  ;;  %s6633_s13 = sshll.u32 %s9410_s2, 3  ;;  %s9410_s2 = sphi %s10689_s2, %s3292_s2   ;;  %v9406_v24 = vphi %v3264_v24, %v11660_v24   ;;  %v9402_v54 = vphi %v3265_v54, %v11659_v54   ;;  %v9398_v20 = vphi %v3266_v20, %v11658_v20   ;;  %v9394_v7 = vphi %v3267_v7, %v11657_v7   ;;  %v9390_v29 = vphi %v3268_v29, %v11656_v29   ;;  %v9386_v34 = vphi %v3269_v34, %v11655_v34  }
0x1987   : > { %3303 = vadd.xlane.f32.xlu0 %v3302_v13  ;;  %3309 = vadd.xlane.f32.xlu1 %v3308_v57  ;;  %v3314_v9 = vsel %vm212_vm1, %v9390_v29, 0.0  ;;  %v3317_v48 = vsel %vm212_vm1, %v9386_v34, 0.0  ;;  %s3402_s12 = scalar_lea.vmem %s11630_s4, %s10761_s26  ;;  %s10771_s17 = scalar_lea.vmem %s11633_s7, %s6633_s13 }
0x1988   : > { %v3403_v39 = vld [vmem:[%s3402_s12] sm:$0xff]  ;;  %v3404_v37 = vld [vmem:[%s3402_s12 + $0x8] sm:$0xff]  ;;  %v3405_v52 = vld [vmem:[%s3402_s12 + $0x10] sm:$0xff]  ;;  %s3407_s0 = scalar_lea.vmem %s11631_s5, %s9410_s2  ;;  %s9453_s16 = smov 96  }
0x1989   : > { %v8131_v12 = vpack.c.bf16 %v3404_v37, %v3403_v39  ;;  %v3406_v3 = vld [vmem:[%s3402_s12 + $0x18] sm:$0xff]  ;;  %s9454_s13 = smov 64   ;;  %s9455_s14 = smov 80  }
0x198a   : > { %v8135_v40 = vpack.c.bf16 %v3406_v3, %v3405_v52  ;;  %s9456_s19 = smov 112   ;;  %s9457_s15 = smov 48  }
0x198b   : > { %3306 = vadd.xlane.f32.xlu0 %v3305_v50  ;;  %3312 = vadd.xlane.f32.xlu1 %v3311_v47  ;;  %s9458_s1 = smov 16   ;;  %s4496_s22 = scalar_lea.vmem %s11634_s8, %s10761_s26 }
0x198c   : > { %8132 = vmatprep.subr.bf16.mxu0 %v8131_v12  ;;  %s4501_s25 = scalar_lea.vmem %s11635_s9, %s9410_s2 }
0x198d   : > { %8134 = vmatpush3.bf16.msra.mxu0 %v8131_v12 }
0x198e   : > { %8136 = vmatprep.subr.bf16.mxu0 %v8135_v40 }
0x198f   : > { %3315 = vadd.xlane.f32.xlu0 %v3314_v9  ;;  %3318 = vadd.xlane.f32.xlu1 %v3317_v48 }
0x1991   : > { %8138 = vmatpush3.bf16.msra.mxu0 %v8135_v40 }
0x1a14   : > { %v3304_v60 = vpop.xlane.xlu0 %3303  ;;  %v3310_v62 = vpop.xlane.xlu1 %3309 }
0x1a15   : > { %v3321_v15 = vmul.f32 0.03125, %v3304_v60  ;;  %v3323_v6 = vmul.f32 0.03125, %v3310_v62  ;;  %v10774_v60 = vld [vmem:[%s10771_s17] sm:$0x3f] }
0x1a17   : > { %v10725_v26 = vsub.f32 %v9406_v24, %v3321_v15  ;;  %v10728_v53 = vsub.f32 %v9398_v20, %v3323_v6  ;;  %v3384_v6 = vrot.slane %v10774_v60, %v9672_v56 }
0x1a18   : > { %v3307_v8 = vpop.xlane.xlu0 %3306  ;;  %v3313_v45 = vpop.xlane.xlu1 %3312 }
0x1a19   : > { %v3322_v5 = vmul.f32 0.03125, %v3307_v8  ;;  %v3324_v0 = vmul.f32 0.03125, %v3313_v45  ;;  %v3333_v25 = vmul.f32 %v10725_v26, %v10725_v26  ;;  %v3335_v27 = vmul.f32 %v10728_v53, %v10728_v53 }
0x1a1b   : > { %v10735_v41 = vsub.f32 %v9402_v54, %v3322_v5  ;;  %v10738_v59 = vsub.f32 %v9394_v7, %v3324_v0  ;;  %v3339_v58 = vsel %vm212_vm1, %v3333_v25, 0.0  ;;  %v3345_v36 = vsel %vm212_vm1, %v3335_v27, 0.0 }
0x1a1c   : > { %3340 = vadd.xlane.f32.xlu0 %v3339_v58  ;;  %v3316_v42 = vpop.xlane.xlu0 %3315  ;;  %v3319_v49 = vpop.xlane.xlu1 %3318  ;;  %v3394_v0 = vrot.slane %v10774_v60, %v9804_v21 }
0x1a1d   : > { %v3325_v1 = vmul.f32 0.03125, %v3316_v42  ;;  %v3334_v31 = vmul.f32 %v10735_v41, %v10735_v41  ;;  %v3326_v19 = vmul.f32 0.03125, %v3319_v49  ;;  %v3336_v33 = vmul.f32 %v10738_v59, %v10738_v59 }
0x1a1f   : > { %v10747_v14 = vsub.f32 %v9390_v29, %v3325_v1  ;;  %v3342_v10 = vsel %vm212_vm1, %v3334_v31, 0.0  ;;  %v10751_v35 = vsub.f32 %v9386_v34, %v3326_v19  ;;  %v3348_v44 = vsel %vm212_vm1, %v3336_v33, 0.0 }
0x1a20   : > { %3346 = vadd.xlane.f32.xlu0 %v3345_v36  ;;  %3343 = vadd.xlane.f32.xlu1 %v3342_v10 }
0x1a21   : > { %v3337_v22 = vmul.f32 %v10747_v14, %v10747_v14  ;;  %v3338_v28 = vmul.f32 %v10751_v35, %v10751_v35 }
0x1a23   : > { %v3351_v2 = vsel %vm212_vm1, %v3337_v22, 0.0  ;;  %v3354_v30 = vsel %vm212_vm1, %v3338_v28, 0.0 }
0x1a24   : > { %3352 = vadd.xlane.f32.xlu0 %v3351_v2  ;;  %3349 = vadd.xlane.f32.xlu1 %v3348_v44 }
0x1a28   : > { %3355 = vadd.xlane.f32.xlu1 %v3354_v30 }
0x1aa9   : > { %v3341_v43 = vpop.xlane.xlu0 %3340 }
0x1aaa   : > { %v3357_v23 = vmul.f32 0.03125, %v3341_v43 }
0x1aac   : > { %v3363_v61 = vadd.f32 1e-06, %v3357_v23 }
0x1aad   : > { %v3347_v63 = vpop.xlane.xlu0 %3346  ;;  %v3344_v55 = vpop.xlane.xlu1 %3343 }
0x1aae   : > { %8986 = vrsqrt.f32 %v3363_v61  ;;  %v3359_v32 = vmul.f32 0.03125, %v3347_v63  ;;  %v3358_v17 = vmul.f32 0.03125, %v3344_v55 }
0x1ab0   : > { %v3365_v16 = vadd.f32 1e-06, %v3359_v32  ;;  %v3364_v46 = vadd.f32 1e-06, %v3358_v17 }
0x1ab1   : > { %v3353_v13 = vpop.xlane.xlu0 %3352  ;;  %v3350_v57 = vpop.xlane.xlu1 %3349 }
0x1ab2   : > { %8988 = vrsqrt.f32 %v3365_v16  ;;  %v3361_v50 = vmul.f32 0.03125, %v3353_v13  ;;  %v3360_v47 = vmul.f32 0.03125, %v3350_v57 }
0x1ab3   : > { %8990 = vrsqrt.f32 %v3364_v46 }
0x1ab4   : > { %v3367_v9 = vadd.f32 1e-06, %v3361_v50  ;;  %v3366_v48 = vadd.f32 1e-06, %v3360_v47 }
0x1ab5   : > { %v3356_v62 = vpop.xlane.xlu1 %3355 }
0x1ab6   : > { %8992 = vrsqrt.f32 %v3367_v9  ;;  %v3362_v15 = vmul.f32 0.03125, %v3356_v62 }
0x1ab7   : > { %8994 = vrsqrt.f32 %v3366_v48 }
0x1ab8   : > { %v8987_v8 = vpop.eup %8986  ;;  %v3368_v45 = vadd.f32 1e-06, %v3362_v15 }
0x1ab9   : > { %v3375_v5 = vmul.f32 %v8987_v8, %v10725_v26 }
0x1aba   : > { %8996 = vrsqrt.f32 %v3368_v45 }
0x1abb   : > { %v3385_v25 = vmul.f32 %v3384_v6, %v3375_v5 }
0x1abc   : > { %v8989_v27 = vpop.eup %8988 }
0x1abd   : > { %v8991_v58 = vpop.eup %8990  ;;  %v3395_v42 = vadd.f32 %v3394_v0, %v3385_v25  ;;  %v3377_v36 = vmul.f32 %v8989_v27, %v10728_v53  ;;  %v10850_v27 = vld [vmem:[%s11629_s3 + $0x8] sm:$0xff] }
0x1abe   : > { %v3376_v49 = vmul.f32 %v8991_v58, %v10735_v41 }
0x1abf   : > { %7519 = vmatprep.mubr.msk.f32.mxu0 %vm212_vm1, %v3395_v42  ;;  %v3387_v1 = vmul.f32 %v3384_v6, %v3377_v36  ;;  %v10855_v36 = vld [vmem:[%s11629_s3] sm:$0xff] }
0x1ac0   : > { %v8993_v31 = vpop.eup %8992  ;;  %v3386_v19 = vmul.f32 %v3384_v6, %v3376_v49 }
0x1ac1   : > { %v8995_v33 = vpop.eup %8994  ;;  %v3397_v10 = vadd.f32 %v3394_v0, %v3387_v1  ;;  %v3379_v26 = vmul.f32 %v8993_v31, %v10747_v14 }
0x1ac2   : > { %v3396_v22 = vadd.f32 %v3394_v0, %v3386_v19  ;;  %v3378_v44 = vmul.f32 %v8995_v33, %v10738_v59  ;;  %v6635_v59 = vld [vmem:[%s3407_s0] ss:$0 sm:$0xff]  ;;  %v10862_v33 = vld [vmem:[%s11629_s3 + $0x18] sm:$0xff] }
0x1ac3   : > { %v3389_v28 = vmul.f32 %v3384_v6, %v3379_v26 }
0x1ac4   : > { %v8997_v2 = vpop.eup %8996  ;;  %7520 = vmatmul.mubr.msk.f32.vlgmr.msra.gmra.mrb[0].mxu0 %vm212_vm1, %v3396_v22  ;;  %v3388_v53 = vmul.f32 %v3384_v6, %v3378_v44 }
0x1ac5   : > { %7522 = vmatprep.mubr.msk.f32.mxu0 %vm212_vm1, %v3397_v10  ;;  %v3399_v41 = vadd.f32 %v3394_v0, %v3389_v28  ;;  %v3380_v30 = vmul.f32 %v8997_v2, %v10751_v35  ;;  %v10869_v2 = vld [vmem:[%s11629_s3 + $0x10] sm:$0xff] }
0x1ac6   : > { %v3398_v39 = vadd.f32 %v3394_v0, %v3388_v53 }
0x1ac7   : > { %v3390_v37 = vmul.f32 %v3384_v6, %v3380_v30 }
0x1ac8   : > { %7523 = vmatmul.mubr.msk.f32.gmra.mrb[2].mxu0 %vm212_vm1, %v3398_v39 }
0x1ac9   : > { %7525 = vmatprep.mubr.msk.f32.mxu0 %vm212_vm1, %v3399_v41  ;;  %v3400_v14 = vadd.f32 %v3394_v0, %v3390_v37 }
0x1acc   : > { %7526 = vmatmul.mubr.msk.f32.gmra.mrb[4].mxu0 %vm212_vm1, %v3400_v14 }
0x1b97   : > { %v7521_v12 = vpop.f32.mrb[0].mxu0 }
0x1b98   : > { %v10796_v52 = vadd.f32 %v7521_v12, %v6635_v59  ;;  %v3499_v3 = vpop.f32.mrb[1].mxu0 }
0x1b99   : > { %v10798_v40 = vadd.f32 %v6635_v59, %v3499_v3  ;;  %v10882_v3 = vld [vmem:[%s11629_s3 + $0x28] sm:$0xff] }
0x1b9b   : > { %v7524_v35 = vpop.f32.mrb[2].mxu0  ;;  %7540 = vmatprep.mubr.msk.f32.mxu1 %vm476_vm2, %v10798_v40  ;;  %v10804_v43 = vpack.i.bf16 %v10796_v52, %v10798_v40 }
0x1b9c   : > { %v10806_v23 = vadd.f32 %v7524_v35, %v6635_v59  ;;  %v3509_v61 = vpop.f32.mrb[3].mxu0 }
0x1b9d   : > { %v10808_v63 = vadd.f32 %v6635_v59, %v3509_v61  ;;  %8927 = vrot.lane.b32.xlu0 %v10804_v43, %s9453_s16 }
0x1b9f   : > { %v7527_v55 = vpop.f32.mrb[4].mxu0  ;;  %v10813_v32 = vpack.i.bf16 %v10806_v23, %v10808_v63 }
0x1ba0   : > { %v10815_v17 = vadd.f32 %v7527_v55, %v6635_v59  ;;  %v3519_v16 = vpop.f32.mrb[5].mxu0 }
0x1ba1   : > { %v10817_v46 = vadd.f32 %v6635_v59, %v3519_v16  ;;  %8932 = vrot.lane.b32.xlu1 %v10813_v32, %s9453_s16  ;;  %v10877_v59 = vld [vmem:[%s11629_s3 + $0x20] sm:$0xff] }
0x1ba3   : > { %v10822_v13 = vpack.i.bf16 %v10815_v17, %v10817_v46 }
0x1ba5   : > { %8937 = vrot.lane.b32.xlu1 %v10822_v13, %s9453_s16  ;;  %s4264_s16 = scalar_lea.vmem %s11632_s6, %s10761_s26  ;;  %s6691_s26 = sshll.u32 %s9410_s2, 7 }
0x1ba6   : > { %s11090_s18 = scalar_lea.vmem %s11636_s10, %s6691_s26  ;;  %s3292_s2 = sadd.s32 1, %s9410_s2  }
0x1ba7   : > { %p3289_p2 = scmp.ge.s32.totalorder %s3292_s2, 9  }
0x1ba8   :  { %s11165_s29 = smov (%p3289_p2), 9  }
0x1c0f   : > { %v8928_v57 = vpop.permute.xlu0 %8927 }
0x1c10   : > { %v8930_v50 = vunpack.i.h.bf16 %v8928_v57  ;;  %v8929_v47 = vunpack.i.l.bf16 %v8928_v57 }
0x1c12   : > { %v8139_v9 = vpack.c.bf16 %v8930_v50, %v8929_v47 }
0x1c13   : > { %v8933_v48 = vpop.permute.xlu1 %8932 }
0x1c14   : > { %v8935_v62 = vunpack.i.h.bf16 %v8933_v48  ;;  %v8934_v15 = vunpack.i.l.bf16 %v8933_v48  ;;  %8141 = vmatprep.subr.msk.bf16.mxu1 %vm9857_vm3, %v8139_v9 }
0x1c15   : > { %8144 = vmatpush3.bf16.xpose.msk.msra.mxu1 %vm9857_vm3, %v8139_v9 }
0x1c16   : > { %v8145_v6 = vpack.c.bf16 %v8935_v62, %v8934_v15 }
0x1c17   : > { %v8938_v8 = vpop.permute.xlu1 %8937 }
0x1c18   : > { %v8940_v45 = vunpack.i.h.bf16 %v8938_v8  ;;  %v8939_v5 = vunpack.i.l.bf16 %v8938_v8  ;;  %8147 = vmatprep.subr.msk.bf16.mxu1 %vm9857_vm3, %v8145_v6 }
0x1c1a   : > { %v8151_v0 = vpack.c.bf16 %v8940_v45, %v8939_v5 }
0x1c1d   : > { %8150 = vmatpush3.bf16.xpose.msk.msra.mxu1 %vm9857_vm3, %v8145_v6 }
0x1c1e   : > { %8153 = vmatprep.subr.msk.bf16.mxu1 %vm9857_vm3, %v8151_v0 }
0x1c25   : > { %8156 = vmatpush3.bf16.xpose.msk.msra.mxu1 %vm9857_vm3, %v8151_v0 }
0x1c2c   : > { %7541 = vmatmul.mubr.msk.f32.vlgmr.msra.gmra.mrb[0].mxu1 %vm476_vm2, %v10796_v52 }
0x1c2d   : > { %7543 = vmatprep.mubr.msk.f32.mxu1 %vm476_vm2, %v10808_v63 }
0x1c30   : > { %7544 = vmatmul.mubr.msk.f32.gmra.mrb[2].mxu1 %vm476_vm2, %v10806_v23 }
0x1c31   : > { %7546 = vmatprep.mubr.msk.f32.mxu1 %vm476_vm2, %v10817_v46 }
0x1c34   : > { %7547 = vmatmul.mubr.msk.f32.gmra.mrb[4].mxu1 %vm476_vm2, %v10815_v17 }
0x1cff   : > { %v7542_v25 = vpop.f32.mrb[0].mxu1 }
0x1d00   : > { %v3667_v58 = vmul.f32 0.25, %v7542_v25  ;;  %v3637_v42 = vpop.f32.mrb[1].mxu1 }
0x1d01   : > { %v3666_v49 = vmul.f32 0.25, %v3637_v42 }
0x1d02   : > { %v3679_v1 = vadd.f32 %v10850_v27, %v3667_v58 }
0x1d03   : > { %v7545_v31 = vpop.f32.mrb[2].mxu1  ;;  %v3678_v19 = vadd.f32 %v10855_v36, %v3666_v49 }
0x1d04   : > { %v3669_v10 = vmul.f32 0.25, %v7545_v31  ;;  %v3647_v26 = vpop.f32.mrb[3].mxu1  ;;  %v3688_v22 = vsel %vm614_vm4, %v3679_v1, -inf }
0x1d05   : > { %v3668_v44 = vmul.f32 0.25, %v3647_v26  ;;  %3689 = vmax.xlane.f32.xlu0 %v3688_v22  ;;  %v3685_v28 = vsel %vm614_vm4, %v3678_v19, -inf }
0x1d06   : > { %3686 = vmax.xlane.f32.xlu1 %v3685_v28  ;;  %v3681_v53 = vadd.f32 %v10862_v33, %v3669_v10 }
0x1d07   : > { %v7548_v41 = vpop.f32.mrb[4].mxu1  ;;  %v3680_v14 = vadd.f32 %v10869_v2, %v3668_v44 }
0x1d08   : > { %v3671_v30 = vmul.f32 0.25, %v7548_v41  ;;  %v3657_v39 = vpop.f32.mrb[5].mxu1  ;;  %v3694_v37 = vsel %vm614_vm4, %v3681_v53, -inf }
0x1d09   : > { %v3670_v12 = vmul.f32 0.25, %v3657_v39  ;;  %3695 = vmax.xlane.f32.xlu0 %v3694_v37  ;;  %v3691_v61 = vsel %vm614_vm4, %v3680_v14, -inf }
0x1d0a   : > { %v3683_v55 = vadd.f32 %v10882_v3, %v3671_v30 }
0x1d0b   : > { %v3682_v35 = vadd.f32 %v10877_v59, %v3670_v12 }
0x1d0c   : > { %v3700_v57 = vsel %vm614_vm4, %v3683_v55, -inf }
0x1d0d   : > { %3692 = vmax.xlane.f32.xlu0 %v3691_v61  ;;  %v3697_v16 = vsel %vm614_vm4, %v3682_v35, -inf }
0x1d0e   : > { %3698 = vmax.xlane.f32.xlu1 %v3697_v16 }
0x1d11   : > { %3701 = vmax.xlane.f32.xlu0 %v3700_v57 }
0x1d1f   : > { %8942 = vrot.lane.b32.xlu1 %v10804_v43, %s9454_s13 }
0x1d23   : > { %8952 = vrot.lane.b32.xlu1 %v10822_v13, %s9454_s13 }
0x1d27   : > { %8947 = vrot.lane.b32.xlu0 %v10813_v32, %s9454_s13 }
0x1d92   : > { %v3690_v50 = vpop.xlane.xlu0 %3689 }
0x1d93   : > { %v3704_v47 = vsub.f32 %v3679_v1, %v3690_v50  ;;  %v3687_v9 = vpop.xlane.xlu1 %3686 }
0x1d94   : > { %v3703_v48 = vsub.f32 %v3678_v19, %v3687_v9 }
0x1d95   : > { %v3711_v62 = vmul.f32 1.442695, %v3704_v47 }
0x1d96   : > { %v3709_v15 = vmul.f32 1.442695, %v3703_v48  ;;  %v3696_v6 = vpop.xlane.xlu0 %3695 }
0x1d97   : > { %8998 = vpow2.f32 %v3711_v62  ;;  %v3706_v8 = vsub.f32 %v3681_v53, %v3696_v6 }
0x1d98   : > { %9000 = vpow2.f32 %v3709_v15 }
0x1d99   : > { %v3715_v45 = vmul.f32 1.442695, %v3706_v8 }
0x1d9a   : > { %v3693_v5 = vpop.xlane.xlu0 %3692 }
0x1d9b   : > { %9002 = vpow2.f32 %v3715_v45  ;;  %v3705_v0 = vsub.f32 %v3680_v14, %v3693_v5  ;;  %v3699_v25 = vpop.xlane.xlu1 %3698 }
0x1d9c   : > { %v3707_v42 = vsub.f32 %v3682_v35, %v3699_v25 }
0x1d9d   : > { %v3713_v58 = vmul.f32 1.442695, %v3705_v0 }
0x1d9e   : > { %v3702_v49 = vpop.xlane.xlu0 %3701  ;;  %v3717_v22 = vmul.f32 1.442695, %v3707_v42 }
0x1d9f   : > { %9004 = vpow2.f32 %v3713_v58  ;;  %v3708_v31 = vsub.f32 %v3683_v55, %v3702_v49  ;;  %v8943_v10 = vpop.permute.xlu1 %8942 }
0x1da0   : > { %v8945_v1 = vunpack.i.h.bf16 %v8943_v10  ;;  %v8944_v26 = vunpack.i.l.bf16 %v8943_v10 }
0x1da1   : > { %v8999_v19 = vpop.eup %8998  ;;  %v3719_v44 = vmul.f32 1.442695, %v3708_v31 }
0x1da2   : > { %v9001_v28 = vpop.eup %9000  ;;  %v8157_v41 = vpack.c.bf16 %v8945_v1, %v8944_v26  ;;  %v8948_v53 = vpop.permute.xlu0 %8947  ;;  %v3724_v30 = vsel %vm614_vm4, %v8999_v19, 0.0 }
0x1da3   : > { %9006 = vpow2.f32 %v3719_v44  ;;  %v8950_v39 = vunpack.i.h.bf16 %v8948_v53  ;;  %v8949_v37 = vunpack.i.l.bf16 %v8948_v53  ;;  %3725 = vadd.xlane.f32.xlu0 %v3724_v30  ;;  %v8953_v14 = vpop.permute.xlu1 %8952  ;;  %v3721_v12 = vsel %vm614_vm4, %v9001_v28, 0.0 }
0x1da4   : > { %v8955_v35 = vunpack.i.h.bf16 %v8953_v14  ;;  %v8954_v61 = vunpack.i.l.bf16 %v8953_v14  ;;  %3722 = vadd.xlane.f32.xlu1 %v3721_v12  ;;  %8158 = vmatprep.subr.bf16.mxu0 %v8157_v41  ;;  %9008 = vpow2.f32 %v3717_v22 }
0x1da5   : > { %v9003_v55 = vpop.eup %9002  ;;  %v8161_v16 = vpack.c.bf16 %v8950_v39, %v8949_v37  ;;  %8160 = vmatpush3.bf16.msra.mxu0 %v8157_v41 }
0x1da6   : > { %v3730_v57 = vsel %vm614_vm4, %v9003_v55, 0.0  ;;  %v8165_v50 = vpack.c.bf16 %v8955_v35, %v8954_v61 }
0x1da7   : > { %3731 = vadd.xlane.f32.xlu0 %v3730_v57  ;;  %8162 = vmatprep.subr.bf16.mxu0 %v8161_v16 }
0x1da9   : > { %v9005_v47 = vpop.eup %9004  ;;  %8164 = vmatpush3.bf16.msra.mxu0 %v8161_v16 }
0x1daa   : > { %8166 = vmatprep.subr.bf16.mxu0 %v8165_v50  ;;  %v3727_v9 = vsel %vm614_vm4, %v9005_v47, 0.0 }
0x1dab   : > { %3728 = vadd.xlane.f32.xlu1 %v3727_v9 }
0x1dad   : > { %v9007_v48 = vpop.eup %9006  ;;  %8168 = vmatpush3.bf16.msra.mxu0 %v8165_v50 }
0x1dae   : > { %v3736_v62 = vsel %vm614_vm4, %v9007_v48, 0.0  ;;  %v9009_v15 = vpop.eup %9008 }
0x1daf   : > { %3737 = vadd.xlane.f32.xlu0 %v3736_v62  ;;  %v3733_v6 = vsel %vm614_vm4, %v9009_v15, 0.0 }
0x1db3   : > { %3734 = vadd.xlane.f32.xlu0 %v3733_v6 }
0x1dbc   : > { %8962 = vrot.lane.b32.xlu1 %v10813_v32, %s9455_s14 }
0x1dc0   : > { %8967 = vrot.lane.b32.xlu1 %v10822_v13, %s9455_s14 }
0x1dc4   : > { %3882 = vrot.lane.b32.xlu1 %v10798_v40, %s9456_s19 }
0x1dc8   : > { %3884 = vrot.lane.b32.xlu1 %v10796_v52, %s9456_s19 }
0x1dc9   : > { %8957 = vrot.lane.b32.xlu0 %v10804_v43, %s9455_s14 }
0x1dcc   : > { %3886 = vrot.lane.b32.xlu1 %v10808_v63, %s9456_s19 }
0x1dcd   : > { %3888 = vrot.lane.b32.xlu0 %v10806_v23, %s9456_s19 }
0x1dd0   : > { %3890 = vrot.lane.b32.xlu1 %v10817_v46, %s9456_s19 }
0x1dd1   : > { %3892 = vrot.lane.b32.xlu0 %v10815_v17, %s9456_s19 }
0x1e30   : > { %v3726_v8 = vpop.xlane.xlu0 %3725 }
0x1e31   : > { %9010 = vrcp.f32 %v3726_v8  ;;  %v3723_v45 = vpop.xlane.xlu1 %3722 }
0x1e32   : > { %9012 = vrcp.f32 %v3723_v45 }
0x1e34   : > { %v3732_v5 = vpop.xlane.xlu0 %3731 }
0x1e35   : > { %9014 = vrcp.f32 %v3732_v5 }
0x1e38   : > { %v3729_v0 = vpop.xlane.xlu1 %3728 }
0x1e39   : > { %9016 = vrcp.f32 %v3729_v0 }
0x1e3b   : > { %v9011_v40 = vpop.eup %9010 }
0x1e3c   : > { %v9013_v52 = vpop.eup %9012  ;;  %v3738_v25 = vpop.xlane.xlu0 %3737  ;;  %v3742_v42 = vmul.f32 %v9011_v40, %v8999_v19 }
0x1e3d   : > { %v3740_v58 = vmul.f32 %v9013_v52, %v9001_v28  ;;  %9018 = vrcp.f32 %v3738_v25  ;;  %v8963_v63 = vpop.permute.xlu1 %8962 }
0x1e3e   : > { %v8965_v49 = vunpack.i.h.bf16 %v8963_v63  ;;  %v8964_v1 = vunpack.i.l.bf16 %v8963_v63 }
0x1e3f   : > { %7561 = vmatprep.mubr.msk.f32.mxu0 %vm614_vm4, %v3740_v58  ;;  %v9015_v17 = vpop.eup %9014 }
0x1e40   : > { %v3735_v23 = vpop.xlane.xlu0 %3734  ;;  %7562 = vmatmul.mubr.msk.f32.vlgmr.msra.gmra.mrb[6].mxu0 %vm614_vm4, %v3742_v42  ;;  %v3746_v44 = vmul.f32 %v9015_v17, %v9003_v55  ;;  %v8175_v28 = vpack.c.bf16 %v8965_v49, %v8964_v1 }
0x1e41   : > { %9020 = vrcp.f32 %v3735_v23  ;;  %v8968_v41 = vpop.permute.xlu1 %8967 }
0x1e42   : > { %v8970_v37 = vunpack.i.h.bf16 %v8968_v41  ;;  %v8969_v14 = vunpack.i.l.bf16 %v8968_v41 }
0x1e43   : > { %v9017_v46 = vpop.eup %9016 }
0x1e44   : > { %v8958_v31 = vpop.permute.xlu0 %8957  ;;  %v3744_v10 = vmul.f32 %v9017_v46, %v9005_v47  ;;  %v8181_v61 = vpack.c.bf16 %v8970_v37, %v8969_v14 }
0x1e45   : > { %v8960_v26 = vunpack.i.h.bf16 %v8958_v31  ;;  %v8959_v22 = vunpack.i.l.bf16 %v8958_v31  ;;  %v3883_v35 = vpop.permute.xlu1 %3882 }
0x1e46   : > { %7564 = vmatprep.mubr.msk.f32.mxu0 %vm614_vm4, %v3744_v10 }
0x1e47   : > { %v8169_v19 = vpack.c.bf16 %v8960_v26, %v8959_v22  ;;  %7565 = vmatmul.mubr.msk.f32.gmra.mrb[8].mxu0 %vm614_vm4, %v3746_v44  ;;  %v9019_v53 = vpop.eup %9018 }
0x1e48   : > { %v3750_v12 = vmul.f32 %v9019_v53, %v9007_v48  ;;  %v3889_v57 = vpop.permute.xlu0 %3888 }
0x1e49   : > { %8171 = vmatprep.subr.msk.bf16.mxu0 %vm9857_vm3, %v8169_v19  ;;  %v3885_v55 = vpop.permute.xlu1 %3884 }
0x1e4a   : > { %8174 = vmatpush3.bf16.xpose.msk.msra.mxu0 %vm9857_vm3, %v8169_v19 }
0x1e4b   : > { %v9021_v30 = vpop.eup %9020  ;;  %8177 = vmatprep.subr.msk.bf16.mxu0 %vm9857_vm3, %v8175_v28 }
0x1e4c   : > { %v3748_v39 = vmul.f32 %v9021_v30, %v9009_v15  ;;  %v3893_v47 = vpop.permute.xlu0 %3892 }
0x1e4d   : > { %v3887_v16 = vpop.permute.xlu1 %3886 }
0x1e4e   : > { %7567 = vmatprep.mubr.msk.f32.mxu0 %vm614_vm4, %v3748_v39 }
0x1e4f   : > { %7568 = vmatmul.mubr.msk.f32.gmra.mrb[10].mxu0 %vm614_vm4, %v3750_v12 }
0x1e50   : > { %7582 = vmatprep.mubr.msk.f32.mxu0 %vm476_vm2, %v3883_v35 }
0x1e51   : > { %v3891_v50 = vpop.permute.xlu1 %3890 }
0x1e52   : > { %8180 = vmatpush3.bf16.xpose.msk.msra.mxu0 %vm9857_vm3, %v8175_v28 }
0x1e53   : > { %8183 = vmatprep.subr.msk.bf16.mxu0 %vm9857_vm3, %v8181_v61 }
0x1e5a   : > { %8186 = vmatpush3.bf16.xpose.msk.msra.mxu0 %vm9857_vm3, %v8181_v61 }
0x1e61   : > { %7583 = vmatmul.mubr.msk.f32.vlgmr.msra.gmra.mrb[12].mxu0 %vm476_vm2, %v3885_v55 }
0x1e62   : > { %7585 = vmatprep.mubr.msk.f32.mxu0 %vm476_vm2, %v3887_v16 }
0x1e65   : > { %7586 = vmatmul.mubr.msk.f32.gmra.mrb[14].mxu0 %vm476_vm2, %v3889_v57 }
0x1e66   : > { %7588 = vmatprep.mubr.msk.f32.mxu0 %vm476_vm2, %v3891_v50 }
0x1e69   : > { %7589 = vmatmul.mubr.msk.f32.gmra.mrb[16].mxu0 %vm476_vm2, %v3893_v47 }
0x1f13   : > { %v10931_v9 = vpop.f32.mrb[6].mxu0 }
0x1f14   : > { %v10933_v48 = vpop.f32.mrb[7].mxu0 }
0x1f1a   : > { %v10935_v62 = vpop.f32.mrb[8].mxu0 }
0x1f1b   : > { %v10937_v15 = vpop.f32.mrb[9].mxu0 }
0x1f22   : > { %v10939_v6 = vpop.f32.mrb[10].mxu0 }
0x1f23   : > { %v10941_v8 = vpop.f32.mrb[11].mxu0 }
0x1f34   : > { %v7584_v45 = vpop.f32.mrb[12].mxu0 }
0x1f35   : > { %v4026_v5 = vmul.f32 0.25, %v7584_v45  ;;  %v3996_v0 = vpop.f32.mrb[13].mxu0 }
0x1f36   : > { %v4025_v40 = vmul.f32 0.25, %v3996_v0 }
0x1f37   : > { %v4032_v52 = vadd.f32 %v4026_v5, %v10850_v27 }
0x1f38   : > { %v7587_v25 = vpop.f32.mrb[14].mxu0  ;;  %v4031_v58 = vadd.f32 %v4025_v40, %v10855_v36 }
0x1f39   : > { %v4006_v42 = vpop.f32.mrb[15].mxu0  ;;  %v4040_v23 = vsel %vm614_vm4, %v4032_v52, -inf  ;;  %v4028_v63 = vmul.f32 0.25, %v7587_v25 }
0x1f3a   : > { %v4027_v17 = vmul.f32 0.25, %v4006_v42  ;;  %4041 = vmax.xlane.f32.xlu0 %v4040_v23  ;;  %v4037_v46 = vsel %vm614_vm4, %v4031_v58, -inf }
0x1f3b   : > { %4038 = vmax.xlane.f32.xlu1 %v4037_v46  ;;  %v4034_v22 = vadd.f32 %v4028_v63, %v10862_v33 }
0x1f3c   : > { %v7590_v49 = vpop.f32.mrb[16].mxu0  ;;  %v4033_v31 = vadd.f32 %v4027_v17, %v10869_v2 }
0x1f3d   : > { %v4016_v10 = vpop.f32.mrb[17].mxu0  ;;  %v4030_v1 = vmul.f32 0.25, %v7590_v49  ;;  %v4046_v44 = vsel %vm614_vm4, %v4034_v22, -inf }
0x1f3e   : > { %v4029_v26 = vmul.f32 0.25, %v4016_v10  ;;  %v4043_v27 = vsel %vm614_vm4, %v4033_v31, -inf }
0x1f3f   : > { %4044 = vmax.xlane.f32.xlu0 %v4043_v27  ;;  %v4036_v28 = vadd.f32 %v4030_v1, %v10882_v3 }
0x1f40   : > { %v4035_v36 = vadd.f32 %v4029_v26, %v10877_v59 }
0x1f41   : > { %v4052_v2 = vsel %vm614_vm4, %v4036_v28, -inf }
0x1f42   : > { %v4049_v19 = vsel %vm614_vm4, %v4035_v36, -inf }
0x1f43   : > { %4047 = vmax.xlane.f32.xlu0 %v4046_v44  ;;  %4050 = vmax.xlane.f32.xlu1 %v4049_v19 }
0x1f47   : > { %4053 = vmax.xlane.f32.xlu0 %v4052_v2 }
0x1f54   : > { %8972 = vrot.lane.b32.xlu1 %v10804_v43, %s9457_s15 }
0x1fc7   : > { %v4042_v41 = vpop.xlane.xlu0 %4041 }
0x1fc8   : > { %v4056_v33 = vsub.f32 %v4032_v52, %v4042_v41  ;;  %v4039_v53 = vpop.xlane.xlu1 %4038 }
0x1fc9   : > { %v4055_v30 = vsub.f32 %v4031_v58, %v4039_v53 }
0x1fca   : > { %v4063_v59 = vmul.f32 1.442695, %v4056_v33 }
0x1fcb   : > { %v4061_v39 = vmul.f32 1.442695, %v4055_v30 }
0x1fcc   : > { %9022 = vpow2.f32 %v4063_v59  ;;  %v4045_v37 = vpop.xlane.xlu0 %4044 }
0x1fcd   : > { %9024 = vpow2.f32 %v4061_v39  ;;  %v4057_v14 = vsub.f32 %v4033_v31, %v4045_v37 }
0x1fcf   : > { %v4065_v3 = vmul.f32 1.442695, %v4057_v14 }
0x1fd0   : > { %v4048_v12 = vpop.xlane.xlu0 %4047  ;;  %v4051_v35 = vpop.xlane.xlu1 %4050 }
0x1fd1   : > { %9026 = vpow2.f32 %v4065_v3  ;;  %v4058_v61 = vsub.f32 %v4034_v22, %v4048_v12  ;;  %v4059_v55 = vsub.f32 %v4035_v36, %v4051_v35 }
0x1fd3   : > { %v4067_v16 = vmul.f32 1.442695, %v4058_v61  ;;  %v4069_v57 = vmul.f32 1.442695, %v4059_v55 }
0x1fd4   : > { %v4054_v50 = vpop.xlane.xlu0 %4053  ;;  %v8973_v43 = vpop.permute.xlu1 %8972 }
0x1fd5   : > { %9028 = vpow2.f32 %v4067_v16  ;;  %v4060_v47 = vsub.f32 %v4036_v28, %v4054_v50  ;;  %v8975_v45 = vunpack.i.h.bf16 %v8973_v43  ;;  %v8974_v5 = vunpack.i.l.bf16 %v8973_v43  ;;  %v4265_v43 = vld [vmem:[%s4264_s16] sm:$0xff] }
0x1fd6   : > { %v9023_v0 = vpop.eup %9022  ;;  %9030 = vpow2.f32 %v4069_v57 }
0x1fd7   : > { %v9025_v40 = vpop.eup %9024  ;;  %v4071_v52 = vmul.f32 1.442695, %v4060_v47  ;;  %v8187_v25 = vpack.c.bf16 %v8975_v45, %v8974_v5  ;;  %v4076_v58 = vsel %vm614_vm4, %v9023_v0, 0.0  ;;  %v4266_v47 = vld [vmem:[%s4264_s16 + $0x8] sm:$0xff]  ;;  %v4267_v45 = vld [vmem:[%s4264_s16 + $0x10] sm:$0xff] }
0x1fd8   : > { %4077 = vadd.xlane.f32.xlu0 %v4076_v58  ;;  %v4073_v42 = vsel %vm614_vm4, %v9025_v40, 0.0  ;;  %v8199_v5 = vpack.c.bf16 %v4266_v47, %v4265_v43 }
0x1fd9   : > { %9032 = vpow2.f32 %v4071_v52  ;;  %4074 = vadd.xlane.f32.xlu1 %v4073_v42  ;;  %8188 = vmatprep.subr.bf16.mxu0 %v8187_v25 }
0x1fda   : > { %8190 = vmatpush3.bf16.msra.mxu0 %v8187_v25  ;;  %8200 = vmatprep.subr.bf16.mxu1 %v8199_v5 }
0x1fdb   : > { %v9027_v23 = vpop.eup %9026  ;;  %8202 = vmatpush3.bf16.msra.mxu1 %v8199_v5 }
0x1fdc   : > { %v4079_v63 = vsel %vm614_vm4, %v9027_v23, 0.0 }
0x1fdd   : > { %4080 = vadd.xlane.f32.xlu1 %v4079_v63 }
0x1fdf   : > { %v9029_v17 = vpop.eup %9028 }
0x1fe0   : > { %v9031_v46 = vpop.eup %9030  ;;  %v4082_v49 = vsel %vm614_vm4, %v9029_v17, 0.0 }
0x1fe1   : > { %4083 = vadd.xlane.f32.xlu0 %v4082_v49  ;;  %v4085_v31 = vsel %vm614_vm4, %v9031_v46, 0.0 }
0x1fe2   : > { %4086 = vadd.xlane.f32.xlu1 %v4085_v31 }
0x1fe3   : > { %v9033_v10 = vpop.eup %9032 }
0x1fe4   : > { %v4088_v1 = vsel %vm614_vm4, %v9033_v10, 0.0 }
0x1fe5   : > { %4089 = vadd.xlane.f32.xlu0 %v4088_v1 }
0x1ff3   : > { %8982 = vrot.lane.b32.xlu1 %v10822_v13, %s9457_s15 }
0x1ffb   : > { %8977 = vrot.lane.b32.xlu0 %v10813_v32, %s9457_s15 }
0x2065   : > { %v4078_v27 = vpop.xlane.xlu0 %4077 }
0x2066   : > { %v4075_v26 = vpop.xlane.xlu1 %4074 }
0x2067   : > { %9034 = vrcp.f32 %v4075_v26 }
0x2068   : > { %9036 = vrcp.f32 %v4078_v27 }
0x206a   : > { %v4081_v22 = vpop.xlane.xlu1 %4080 }
0x206b   : > { %9038 = vrcp.f32 %v4081_v22 }
0x206e   : > { %v4084_v36 = vpop.xlane.xlu0 %4083 }
0x206f   : > { %v4087_v44 = vpop.xlane.xlu1 %4086  ;;  %9040 = vrcp.f32 %v4084_v36  ;;  %v4391_v36 = vrot.slane %v10774_v60, %v10032_v4 }
0x2070   : > { %9042 = vrcp.f32 %v4087_v44 }
0x2071   : > { %v9035_v19 = vpop.eup %9034 }
0x2072   : > { %v4090_v28 = vpop.xlane.xlu0 %4089  ;;  %v4092_v2 = vmul.f32 %v9035_v19, %v9025_v40  ;;  %v9037_v37 = vpop.eup %9036 }
0x2073   : > { %v8983_v41 = vpop.permute.xlu1 %8982  ;;  %9044 = vrcp.f32 %v4090_v28  ;;  %v4094_v3 = vmul.f32 %v9037_v37, %v9023_v0  ;;  %v4268_v0 = vld [vmem:[%s4264_s16 + $0x18] sm:$0xff] }
0x2074   : > { %7603 = vmatprep.mubr.msk.f32.mxu0 %vm614_vm4, %v4092_v2  ;;  %v8985_v53 = vunpack.i.h.bf16 %v8983_v41  ;;  %v8984_v13 = vunpack.i.l.bf16 %v8983_v41  ;;  %v8203_v40 = vpack.c.bf16 %v4268_v0, %v4267_v45 }
0x2075   : > { %v9039_v14 = vpop.eup %9038 }
0x2076   : > { %v8978_v33 = vpop.permute.xlu0 %8977  ;;  %v8195_v39 = vpack.c.bf16 %v8985_v53, %v8984_v13  ;;  %v4096_v35 = vmul.f32 %v9039_v14, %v9027_v23  ;;  %8204 = vmatprep.subr.bf16.mxu1 %v8203_v40 }
0x2077   : > { %v8980_v30 = vunpack.i.h.bf16 %v8978_v33  ;;  %v8979_v59 = vunpack.i.l.bf16 %v8978_v33  ;;  %8206 = vmatpush3.bf16.msra.mxu1 %v8203_v40 }
0x2079   : > { %v8191_v32 = vpack.c.bf16 %v8980_v30, %v8979_v59  ;;  %v9041_v12 = vpop.eup %9040 }
0x207a   : > { %v9043_v61 = vpop.eup %9042  ;;  %v4098_v55 = vmul.f32 %v9041_v12, %v9029_v17 }
0x207b   : > { %8192 = vmatprep.subr.bf16.mxu0 %v8191_v32  ;;  %v4100_v57 = vmul.f32 %v9043_v61, %v9031_v46 }
0x207c   : > { %8194 = vmatpush3.bf16.msra.mxu0 %v8191_v32 }
0x207d   : > { %8196 = vmatprep.subr.bf16.mxu0 %v8195_v39  ;;  %v9045_v16 = vpop.eup %9044 }
0x207e   : > { %v4102_v50 = vmul.f32 %v9045_v16, %v9033_v10 }
0x2080   : > { %8198 = vmatpush3.bf16.msra.mxu0 %v8195_v39 }
0x2083   : > { %7604 = vmatmul.mubr.msk.f32.vlgmr.msra.gmra.mrb[18].mxu0 %vm614_vm4, %v4094_v3 }
0x2084   : > { %7606 = vmatprep.mubr.msk.f32.mxu0 %vm614_vm4, %v4096_v35 }
0x2087   : > { %7607 = vmatmul.mubr.msk.f32.gmra.mrb[20].mxu0 %vm614_vm4, %v4098_v55 }
0x2088   : > { %7609 = vmatprep.mubr.msk.f32.mxu0 %vm614_vm4, %v4100_v57 }
0x208b   : > { %7610 = vmatmul.mubr.msk.f32.gmra.mrb[22].mxu0 %vm614_vm4, %v4102_v50 }
0x2156   : > { %v7605_v52 = vpop.f32.mrb[18].mxu0 }
0x2157   : > { %v4205_v25 = vpop.f32.mrb[19].mxu0 }
0x2158   : > { %4240 = vrot.lane.b32.xlu1 %v4205_v25, %s9458_s1 }
0x215a   : > { %v7608_v58 = vpop.f32.mrb[20].mxu0 }
0x215b   : > { %v4215_v42 = vpop.f32.mrb[21].mxu0 }
0x215c   : > { %4242 = vrot.lane.b32.xlu1 %v7605_v52, %s9458_s1  ;;  %4244 = vrot.lane.b32.xlu0 %v4215_v42, %s9458_s1 }
0x215e   : > { %v7611_v23 = vpop.f32.mrb[22].mxu0 }
0x215f   : > { %v4225_v63 = vpop.f32.mrb[23].mxu0 }
0x2160   : > { %4246 = vrot.lane.b32.xlu1 %v7608_v58, %s9458_s1  ;;  %4248 = vrot.lane.b32.xlu0 %v4225_v63, %s9458_s1 }
0x2164   : > { %4250 = vrot.lane.b32.xlu1 %v7611_v23, %s9458_s1 }
0x21ca   : > { %v4241_v17 = vpop.permute.xlu1 %4240 }
0x21cb   : > { %v4258_v46 = vsel %vm476_vm2, %v10933_v48, %v4241_v17 }
0x21cc   : > { %7620 = vmatprep.mubr.msk.f32.mxu1 %vm212_vm1, %v4258_v46 }
0x21ce   : > { %v4243_v49 = vpop.permute.xlu1 %4242  ;;  %v4245_v31 = vpop.permute.xlu0 %4244 }
0x21cf   : > { %v4259_v10 = vsel %vm476_vm2, %v10931_v9, %v4243_v49  ;;  %v4260_v1 = vsel %vm476_vm2, %v10937_v15, %v4245_v31 }
0x21d0   : > { %7621 = vmatmul.mubr.msk.f32.vlgmr.msra.gmra.mrb[6].mxu1 %vm212_vm1, %v4259_v10 }
0x21d1   : > { %7623 = vmatprep.mubr.msk.f32.mxu1 %vm212_vm1, %v4260_v1 }
0x21d2   : > { %v4247_v26 = vpop.permute.xlu1 %4246  ;;  %v4249_v27 = vpop.permute.xlu0 %4248 }
0x21d3   : > { %v4261_v22 = vsel %vm476_vm2, %v10935_v62, %v4247_v26  ;;  %v4262_v48 = vsel %vm476_vm2, %v10941_v8, %v4249_v27 }
0x21d4   : > { %7624 = vmatmul.mubr.msk.f32.gmra.mrb[8].mxu1 %vm212_vm1, %v4261_v22 }
0x21d5   : > { %7626 = vmatprep.mubr.msk.f32.mxu1 %vm212_vm1, %v4262_v48 }
0x21d6   : > { %v4251_v9 = vpop.permute.xlu1 %4250 }
0x21d7   : > { %v4263_v15 = vsel %vm476_vm2, %v10939_v6, %v4251_v9  ;;  %v4497_v9 = vld [vmem:[%s4496_s22] sm:$0xff] }
0x21d8   : > { %7627 = vmatmul.mubr.msk.f32.gmra.mrb[10].mxu1 %vm212_vm1, %v4263_v15  ;;  %v4498_v15 = vld [vmem:[%s4496_s22 + $0x8] sm:$0xff] }
0x22a3   : > { %v7622_v44 = vpop.f32.mrb[6].mxu1 }
0x22a4   : > { %v4383_v19 = vadd.f32 %v9402_v54, %v7622_v44  ;;  %v4353_v62 = vpop.f32.mrb[7].mxu1  ;;  %v4499_v44 = vld [vmem:[%s4496_s22 + $0x10] sm:$0xff] }
0x22a5   : > { %v4382_v28 = vadd.f32 %v9406_v24, %v4353_v62 }
0x22a6   : > { %v10999_v8 = vadd.f32 %v4391_v36, %v4383_v19  ;;  %v4500_v19 = vld [vmem:[%s4496_s22 + $0x18] sm:$0xff] }
0x22a7   : > { %v11001_v2 = vadd.f32 %v4391_v36, %v4382_v28  ;;  %v7625_v41 = vpop.f32.mrb[8].mxu1  ;;  %v8211_v62 = vpack.c.bf16 %v4500_v19, %v4499_v44  ;;  %v4680_v44 = vld [vmem:[%s11090_s18 + $0x10] sm:$0xff]  ;;  %v4681_v19 = vld [vmem:[%s11090_s18 + $0x18] sm:$0xff] }
0x22a8   : > { %v4385_v33 = vadd.f32 %v9394_v7, %v7625_v41  ;;  %v4363_v53 = vpop.f32.mrb[9].mxu1  ;;  %v4401_v6 = vsel %vm212_vm1, %v10999_v8, 0.0 }
0x22a9   : > { %v4384_v13 = vadd.f32 %v9398_v20, %v4363_v53  ;;  %4402 = vadd.xlane.f32.xlu1 %v4401_v6  ;;  %v4398_v54 = vsel %vm212_vm1, %v11001_v2, 0.0 }
0x22aa   : > { %v11009_v60 = vadd.f32 %v4391_v36, %v4385_v33  ;;  %4399 = vadd.xlane.f32.xlu0 %v4398_v54 }
0x22ab   : > { %v7628_v24 = vpop.f32.mrb[10].mxu1  ;;  %v11014_v32 = vadd.f32 %v4391_v36, %v4384_v13 }
0x22ac   : > { %v4387_v30 = vadd.f32 %v9386_v34, %v7628_v24  ;;  %v4373_v59 = vpop.f32.mrb[11].mxu1  ;;  %v4407_v7 = vsel %vm212_vm1, %v11009_v60, 0.0 }
0x22ad   : > { %v4386_v39 = vadd.f32 %v9390_v29, %v4373_v59  ;;  %v4404_v34 = vsel %vm212_vm1, %v11014_v32, 0.0 }
0x22ae   : > { %v11017_v37 = vadd.f32 %v4391_v36, %v4387_v30  ;;  %4408 = vadd.xlane.f32.xlu0 %v4407_v7 }
0x22af   : > { %v11021_v14 = vadd.f32 %v4391_v36, %v4386_v39  ;;  %v8207_v36 = vpack.c.bf16 %v4498_v15, %v4497_v9 }
0x22b0   : > { %v4413_v20 = vsel %vm212_vm1, %v11017_v37, 0.0 }
0x22b1   : > { %4414 = vadd.xlane.f32.xlu1 %v4413_v20  ;;  %v4410_v3 = vsel %vm212_vm1, %v11021_v14, 0.0  ;;  %8208 = vmatprep.subr.bf16.mxu0 %v8207_v36 }
0x22b2   : > { %4405 = vadd.xlane.f32.xlu0 %v4404_v34  ;;  %8210 = vmatpush3.bf16.msra.mxu0 %v8207_v36 }
0x22b3   : > { %8212 = vmatprep.subr.bf16.mxu0 %v8211_v62 }
0x22b6   : > { %4411 = vadd.xlane.f32.xlu0 %v4410_v3  ;;  %8214 = vmatpush3.bf16.msra.mxu0 %v8211_v62  ;;  %v8219_v62 = vpack.c.bf16 %v4681_v19, %v4680_v44 }
0x2336   : > { %v4403_v12 = vpop.xlane.xlu1 %4402 }
0x2337   : > { %v4417_v35 = vmul.f32 0.03125, %v4403_v12  ;;  %v4400_v29 = vpop.xlane.xlu0 %4399 }
0x2338   : > { %v4416_v61 = vmul.f32 0.03125, %v4400_v29  ;;  %v11068_v29 = vld [vmem:[%s10771_s17] sm:$0x3f] }
0x2339   : > { %v11028_v55 = vsub.f32 %v10999_v8, %v4417_v35 }
0x233a   : > { %v11031_v16 = vsub.f32 %v11001_v2, %v4416_v61  ;;  %v4479_v61 = vrot.slane %v11068_v29, %v10107_v38 }
0x233b   : > { %v4409_v57 = vpop.xlane.xlu0 %4408  ;;  %v4429_v50 = vmul.f32 %v11028_v55, %v11028_v55 }
0x233c   : > { %v4419_v43 = vmul.f32 0.03125, %v4409_v57  ;;  %v4428_v47 = vmul.f32 %v11031_v16, %v11031_v16 }
0x233d   : > { %v4437_v45 = vsel %vm212_vm1, %v4429_v50, 0.0 }
0x233e   : > { %v11039_v5 = vsub.f32 %v11009_v60, %v4419_v43  ;;  %4438 = vadd.xlane.f32.xlu1 %v4437_v45  ;;  %v4415_v0 = vpop.xlane.xlu1 %4414  ;;  %v4434_v40 = vsel %vm212_vm1, %v4428_v47, 0.0 }
0x233f   : > { %v4421_v52 = vmul.f32 0.03125, %v4415_v0  ;;  %4435 = vadd.xlane.f32.xlu0 %v4434_v40  ;;  %v4406_v25 = vpop.xlane.xlu0 %4405  ;;  %v4489_v0 = vrot.slane %v11068_v29, %v10110_v51 }
0x2340   : > { %v4418_v58 = vmul.f32 0.03125, %v4406_v25  ;;  %v4431_v42 = vmul.f32 %v11039_v5, %v11039_v5 }
0x2341   : > { %v11045_v23 = vsub.f32 %v11017_v37, %v4421_v52 }
0x2342   : > { %v11048_v63 = vsub.f32 %v11014_v32, %v4418_v58  ;;  %v4443_v17 = vsel %vm212_vm1, %v4431_v42, 0.0 }
0x2343   : > { %4444 = vadd.xlane.f32.xlu1 %v4443_v17  ;;  %v4412_v46 = vpop.xlane.xlu0 %4411  ;;  %v4433_v49 = vmul.f32 %v11045_v23, %v11045_v23 }
0x2344   : > { %v4420_v31 = vmul.f32 0.03125, %v4412_v46  ;;  %v4430_v10 = vmul.f32 %v11048_v63, %v11048_v63 }
0x2345   : > { %v4449_v1 = vsel %vm212_vm1, %v4433_v49, 0.0 }
0x2346   : > { %v11057_v26 = vsub.f32 %v11021_v14, %v4420_v31  ;;  %v4440_v27 = vsel %vm212_vm1, %v4430_v10, 0.0 }
0x2347   : > { %4450 = vadd.xlane.f32.xlu1 %v4449_v1  ;;  %4441 = vadd.xlane.f32.xlu0 %v4440_v27 }
0x2348   : > { %v4432_v22 = vmul.f32 %v11057_v26, %v11057_v26 }
0x234a   : > { %v4446_v48 = vsel %vm212_vm1, %v4432_v22, 0.0 }
0x234b   : > { %4447 = vadd.xlane.f32.xlu0 %v4446_v48 }
0x23cb   : > { %v4439_v28 = vpop.xlane.xlu1 %4438 }
0x23cc   : > { %v4453_v41 = vmul.f32 0.03125, %v4439_v28  ;;  %v4436_v33 = vpop.xlane.xlu0 %4435  ;;  %v4682_v28 = vld [vmem:[%s11090_s18 + $0x20] sm:$0xff] }
0x23cd   : > { %v4452_v53 = vmul.f32 0.03125, %v4436_v33 }
0x23ce   : > { %v4459_v6 = vadd.f32 1e-06, %v4453_v41  ;;  %v4683_v41 = vld [vmem:[%s11090_s18 + $0x28] sm:$0xff] }
0x23cf   : > { %v4458_v13 = vadd.f32 1e-06, %v4452_v53  ;;  %v8223_v33 = vpack.c.bf16 %v4683_v41, %v4682_v28  ;;  %v4684_v53 = vld [vmem:[%s11090_s18 + $0x30] sm:$0xff] }
0x23d0   : > { %9046 = vrsqrt.f32 %v4459_v6  ;;  %v4445_v54 = vpop.xlane.xlu1 %4444  ;;  %v4685_v6 = vld [vmem:[%s11090_s18 + $0x38] sm:$0xff] }
0x23d1   : > { %9048 = vrsqrt.f32 %v4458_v13  ;;  %v4455_v24 = vmul.f32 0.03125, %v4445_v54  ;;  %v8227_v13 = vpack.c.bf16 %v4685_v6, %v4684_v53  ;;  %v4686_v54 = vld [vmem:[%s11090_s18 + $0x40] sm:$0xff] }
0x23d3   : > { %v4461_v30 = vadd.f32 1e-06, %v4455_v24  ;;  %v4687_v24 = vld [vmem:[%s11090_s18 + $0x48] sm:$0xff] }
0x23d4   : > { %v4451_v59 = vpop.xlane.xlu1 %4450  ;;  %v4442_v7 = vpop.xlane.xlu0 %4441 }
0x23d5   : > { %9050 = vrsqrt.f32 %v4461_v30  ;;  %v4457_v39 = vmul.f32 0.03125, %v4451_v59  ;;  %v4454_v20 = vmul.f32 0.03125, %v4442_v7  ;;  %v8231_v30 = vpack.c.bf16 %v4687_v24, %v4686_v54  ;;  %v4688_v59 = vld [vmem:[%s11090_s18 + $0x50] sm:$0xff]  ;;  %v4689_v7 = vld [vmem:[%s11090_s18 + $0x58] sm:$0xff] }
0x23d7   : > { %v4463_v34 = vadd.f32 1e-06, %v4457_v39  ;;  %v4460_v3 = vadd.f32 1e-06, %v4454_v20  ;;  %v8235_v39 = vpack.c.bf16 %v4689_v7, %v4688_v59  ;;  %v4690_v20 = vld [vmem:[%s11090_s18 + $0x60] sm:$0xff] }
0x23d8   : > { %v4448_v12 = vpop.xlane.xlu0 %4447 }
0x23d9   : > { %9052 = vrsqrt.f32 %v4463_v34  ;;  %v4456_v35 = vmul.f32 0.03125, %v4448_v12  ;;  %v4691_v34 = vld [vmem:[%s11090_s18 + $0x68] sm:$0xff]  ;;  %v4692_v12 = vld [vmem:[%s11090_s18 + $0x70] sm:$0xff] }
0x23da   : > { %v9047_v57 = vpop.eup %9046  ;;  %9054 = vrsqrt.f32 %v4460_v3  ;;  %v8239_v3 = vpack.c.bf16 %v4691_v34, %v4690_v20 }
0x23db   : > { %v9049_v50 = vpop.eup %9048  ;;  %v4471_v43 = vmul.f32 %v9047_v57, %v11028_v55  ;;  %v4462_v47 = vadd.f32 1e-06, %v4456_v35  ;;  %v4693_v35 = vld [vmem:[%s11090_s18 + $0x78] sm:$0xff]  ;;  %v6684_v57 = vld [vmem:[%s4501_s25] ss:$0 sm:$0xff] }
0x23dc   : > { %v4470_v45 = vmul.f32 %v9049_v50, %v11031_v16 }
0x23dd   : > { %9056 = vrsqrt.f32 %v4462_v47  ;;  %v4481_v40 = vmul.f32 %v4479_v61, %v4471_v43 }
0x23de   : > { %v4480_v52 = vmul.f32 %v4479_v61, %v4470_v45 }
0x23df   : > { %v9051_v25 = vpop.eup %9050  ;;  %v4491_v42 = vadd.f32 %v4489_v0, %v4481_v40 }
0x23e0   : > { %v4490_v58 = vadd.f32 %v4489_v0, %v4480_v52  ;;  %v4473_v17 = vmul.f32 %v9051_v25, %v11039_v5 }
0x23e2   : > { %7637 = vmatprep.mubr.msk.f32.mxu0 %vm212_vm1, %v4490_v58  ;;  %v4483_v16 = vmul.f32 %v4479_v61, %v4473_v17 }
0x23e3   : > { %v9053_v46 = vpop.eup %9052  ;;  %7638 = vmatmul.mubr.msk.f32.vlgmr.msra.gmra.mrb[24].mxu0 %vm212_vm1, %v4491_v42 }
0x23e4   : > { %v9055_v55 = vpop.eup %9054  ;;  %v4475_v31 = vmul.f32 %v9053_v46, %v11045_v23  ;;  %v4493_v48 = vadd.f32 %v4489_v0, %v4483_v16  ;;  %v4678_v23 = vld [vmem:[%s11090_s18] sm:$0xff] }
0x23e5   : > { %v4472_v49 = vmul.f32 %v9055_v55, %v11048_v63 }
0x23e6   : > { %v4485_v15 = vmul.f32 %v4479_v61, %v4475_v31 }
0x23e7   : > { %v9057_v10 = vpop.eup %9056  ;;  %v4482_v1 = vmul.f32 %v4479_v61, %v4472_v49 }
0x23e8   : > { %v4474_v27 = vmul.f32 %v9057_v10, %v11057_v26  ;;  %v4495_v63 = vadd.f32 %v4489_v0, %v4485_v15  ;;  %v4679_v26 = vld [vmem:[%s11090_s18 + $0x8] sm:$0xff] }
0x23e9   : > { %v4492_v22 = vadd.f32 %v4489_v0, %v4482_v1  ;;  %v8215_v36 = vpack.c.bf16 %v4679_v26, %v4678_v23 }
0x23ea   : > { %v4484_v9 = vmul.f32 %v4479_v61, %v4474_v27  ;;  %v8243_v61 = vpack.c.bf16 %v4693_v35, %v4692_v12 }
0x23eb   : > { %7640 = vmatprep.mubr.msk.f32.mxu0 %vm212_vm1, %v4492_v22  ;;  %8216 = vmatprep.subr.bf16.mxu1 %v8215_v36 }
0x23ec   : > { %7641 = vmatmul.mubr.msk.f32.gmra.mrb[26].mxu0 %vm212_vm1, %v4493_v48  ;;  %v4494_v5 = vadd.f32 %v4489_v0, %v4484_v9  ;;  %8218 = vmatpush3.bf16.msra.mxu1 %v8215_v36 }
0x23ed   : > { %8220 = vmatprep.subr.bf16.mxu1 %v8219_v62 }
0x23ee   : > { %7643 = vmatprep.mubr.msk.f32.mxu0 %vm212_vm1, %v4494_v5 }
0x23f0   : > { %7644 = vmatmul.mubr.msk.f32.gmra.mrb[28].mxu0 %vm212_vm1, %v4495_v63  ;;  %8222 = vmatpush3.bf16.msra.mxu1 %v8219_v62 }
0x23f1   : > { %8224 = vmatprep.subr.bf16.mxu1 %v8223_v33 }
0x23f4   : > { %8226 = vmatpush3.bf16.msra.mxu1 %v8223_v33 }
0x23f5   : > { %8228 = vmatprep.subr.bf16.mxu1 %v8227_v13 }
0x23f8   : > { %8230 = vmatpush3.bf16.msra.mxu1 %v8227_v13 }
0x23f9   : > { %8232 = vmatprep.subr.bf16.mxu1 %v8231_v30 }
0x23fc   : > { %8234 = vmatpush3.bf16.msra.mxu1 %v8231_v30 }
0x23fd   : > { %8236 = vmatprep.subr.bf16.mxu1 %v8235_v39 }
0x2400   : > { %8238 = vmatpush3.bf16.msra.mxu1 %v8235_v39 }
0x2401   : > { %8240 = vmatprep.subr.bf16.mxu1 %v8239_v3 }
0x2404   : > { %8242 = vmatpush3.bf16.msra.mxu1 %v8239_v3 }
0x2405   : > { %8244 = vmatprep.subr.bf16.mxu1 %v8243_v61 }
0x2408   : > { %8246 = vmatpush3.bf16.msra.mxu1 %v8243_v61 }
0x24b6   : > { %v7639_v50 = vpop.f32.mrb[24].mxu0 }
0x24b7   : > { %v4599_v43 = vadd.f32 %v7639_v50, %v6684_v57  ;;  %v4593_v47 = vpop.f32.mrb[25].mxu0 }
0x24b8   : > { %v4594_v45 = vadd.f32 %v6684_v57, %v4593_v47 }
0x24b9   : > { %v4623_v0 = vmul.f32 %v4599_v43, %v4599_v43 }
0x24ba   : > { %v4622_v40 = vmul.f32 %v4594_v45, %v4594_v45 }
0x24bb   : > { %v4629_v52 = vmul.f32 %v4623_v0, %v4599_v43 }
0x24bc   : > { %v4628_v25 = vmul.f32 %v4622_v40, %v4594_v45 }
0x24bd   : > { %v4635_v58 = vmul.f32 0.044715, %v4629_v52 }
0x24be   : > { %v4634_v42 = vmul.f32 0.044715, %v4628_v25 }
0x24bf   : > { %v4641_v17 = vadd.f32 %v4635_v58, %v4599_v43  ;;  %v7642_v46 = vpop.f32.mrb[26].mxu0 }
0x24c0   : > { %v4640_v55 = vadd.f32 %v4634_v42, %v4594_v45  ;;  %v4609_v49 = vadd.f32 %v7642_v46, %v6684_v57  ;;  %v4603_v16 = vpop.f32.mrb[27].mxu0 }
0x24c1   : > { %v4647_v31 = vmul.f32 0.7978846, %v4641_v17  ;;  %v4604_v10 = vadd.f32 %v6684_v57, %v4603_v16 }
0x24c2   : > { %v4646_v1 = vmul.f32 0.7978846, %v4640_v55  ;;  %v4625_v27 = vmul.f32 %v4609_v49, %v4609_v49 }
0x24c3   : > { %9058 = vtanh.f32 %v4647_v31  ;;  %v4624_v22 = vmul.f32 %v4604_v10, %v4604_v10  ;;  %v7645_v48 = vpop.f32.mrb[28].mxu0 }
0x24c4   : > { %v4631_v9 = vmul.f32 %v4625_v27, %v4609_v49  ;;  %v4619_v15 = vadd.f32 %v7645_v48, %v6684_v57  ;;  %v4613_v5 = vpop.f32.mrb[29].mxu0  ;;  %9060 = vtanh.f32 %v4646_v1  ;;  %v4798_v27 = vrot.slane %v11068_v29, %v10158_v18 }
0x24c5   : > { %v4630_v63 = vmul.f32 %v4624_v22, %v4604_v10  ;;  %v4614_v23 = vadd.f32 %v6684_v57, %v4613_v5 }
0x24c6   : > { %v4637_v26 = vmul.f32 0.044715, %v4631_v9  ;;  %v4627_v36 = vmul.f32 %v4619_v15, %v4619_v15 }
0x24c7   : > { %v4636_v44 = vmul.f32 0.044715, %v4630_v63  ;;  %v4626_v19 = vmul.f32 %v4614_v23, %v4614_v23 }
0x24c8   : > { %v4643_v62 = vadd.f32 %v4637_v26, %v4609_v49  ;;  %v4633_v28 = vmul.f32 %v4627_v36, %v4619_v15 }
0x24c9   : > { %v4642_v41 = vadd.f32 %v4636_v44, %v4604_v10  ;;  %v4632_v33 = vmul.f32 %v4626_v19, %v4614_v23 }
0x24ca   : > { %v4649_v53 = vmul.f32 0.7978846, %v4643_v62  ;;  %v4639_v6 = vmul.f32 0.044715, %v4633_v28 }
0x24cb   : > { %v4648_v13 = vmul.f32 0.7978846, %v4642_v41  ;;  %v4638_v54 = vmul.f32 0.044715, %v4632_v33 }
0x24cc   : > { %v4645_v24 = vadd.f32 %v4639_v6, %v4619_v15  ;;  %9062 = vtanh.f32 %v4649_v53 }
0x24cd   : > { %v9059_v30 = vpop.eup %9058  ;;  %v4644_v59 = vadd.f32 %v4638_v54, %v4614_v23  ;;  %9064 = vtanh.f32 %v4648_v13 }
0x24ce   : > { %v9061_v7 = vpop.eup %9060  ;;  %v4659_v39 = vadd.f32 1.0, %v9059_v30  ;;  %v4651_v20 = vmul.f32 0.7978846, %v4645_v24 }
0x24cf   : > { %v4650_v34 = vmul.f32 0.7978846, %v4644_v59  ;;  %v4658_v3 = vadd.f32 1.0, %v9061_v7 }
0x24d0   : > { %v4665_v12 = vmul.f32 0.5, %v4659_v39  ;;  %9066 = vtanh.f32 %v4651_v20 }
0x24d1   : > { %v4664_v35 = vmul.f32 0.5, %v4658_v3  ;;  %9068 = vtanh.f32 %v4650_v34 }
0x24d2   : > { %v4671_v57 = vmul.f32 %v4665_v12, %v4599_v43 }
0x24d3   : > { %v4670_v61 = vmul.f32 %v4664_v35, %v4594_v45 }
0x24d5   : > { %7678 = vmatprep.mubr.f32.mxu1 %v4670_v61 }
0x24d6   : > { %v9063_v50 = vpop.eup %9062  ;;  %7679 = vmatmul.mubr.f32.vlgmr.msra.gmra.mrb[12].mxu1 %v4671_v57 }
0x24d7   : > { %v9065_v47 = vpop.eup %9064  ;;  %v4661_v0 = vadd.f32 1.0, %v9063_v50 }
0x24d8   : > { %v4660_v40 = vadd.f32 1.0, %v9065_v47 }
0x24d9   : > { %v4667_v52 = vmul.f32 0.5, %v4661_v0 }
0x24da   : > { %v9067_v25 = vpop.eup %9066  ;;  %v4666_v58 = vmul.f32 0.5, %v4660_v40 }
0x24db   : > { %v9069_v42 = vpop.eup %9068  ;;  %v4663_v17 = vadd.f32 1.0, %v9067_v25  ;;  %v4673_v16 = vmul.f32 %v4667_v52, %v4609_v49 }
0x24dc   : > { %v4672_v46 = vmul.f32 %v4666_v58, %v4604_v10  ;;  %v4662_v55 = vadd.f32 1.0, %v9069_v42 }
0x24dd   : > { %v4669_v31 = vmul.f32 0.5, %v4663_v17 }
0x24de   : > { %7681 = vmatprep.mubr.f32.mxu1 %v4672_v46  ;;  %v4668_v1 = vmul.f32 0.5, %v4662_v55 }
0x24df   : > { %7682 = vmatmul.mubr.f32.gmra.mrb[14].mxu1 %v4673_v16  ;;  %v4675_v43 = vmul.f32 %v4669_v31, %v4619_v15 }
0x24e0   : > { %v4674_v45 = vmul.f32 %v4668_v1, %v4614_v23 }
0x24e2   : > { %7684 = vmatprep.mubr.f32.mxu1 %v4674_v45 }
0x24e3   : > { %7685 = vmatmul.mubr.f32.gmra.mrb[16].mxu1 %v4675_v43 }
0x25a9   : > { %v7680_v22 = vpop.f32.mrb[12].mxu1 }
0x25aa   : > { %v4790_v48 = vadd.f32 %v7680_v22, %v10999_v8  ;;  %v4760_v9 = vpop.f32.mrb[13].mxu1 }
0x25ab   : > { %v4789_v5 = vadd.f32 %v4760_v9, %v11001_v2 }
0x25ac   : > { %v4800_v10 = vadd.f32 %v4798_v27, %v4790_v48  }
0x25ad   : > { %v4799_v63 = vadd.f32 %v4798_v27, %v4789_v5  }
0x25ae   : > { %v11659_v54 = vmov %v4800_v10 }
0x25af   : > { %v11660_v24 = vmov %v4799_v63  ;;  %v4808_v2 = vrot.slane (%p3289_p2), %v4799_v63, %v9672_v56 }
0x25b2   : > { %v7683_v49 = vpop.f32.mrb[14].mxu1 }
0x25b3   : > { %v4792_v26 = vadd.f32 %v7683_v49, %v11009_v60  ;;  %v4770_v36 = vpop.f32.mrb[15].mxu1 }
0x25b4   : > { %v4791_v23 = vadd.f32 %v4770_v36, %v11014_v32  ;;  %v4809_v32 = vadd.f32 (%p3289_p2), %v4808_v2, %v4800_v10 }
0x25b5   : > { %v4802_v15 = vadd.f32 %v4798_v27, %v4792_v26  }
0x25b6   : > { %v4801_v44 = vadd.f32 %v4798_v27, %v4791_v23   ;;  %v7686_v19 = vpop.f32.mrb[16].mxu1  ;;  %3291 = sbr.rel (!%p3289_p2) target bundleno = 6534 (0x1986), region = 146  ;;  %6692 = vst.msk [vmem:[%s11640_s11 + $0x60] sm:$0xff] (%p3289_p2), %vm212_vm1, %v4809_v32 }
0x25b7   : > { %v4794_v62 = vadd.f32 %v7686_v19, %v11017_v37  ;;  %v4780_v29 = vpop.f32.mrb[17].mxu1  ;;  %v11657_v7 = vmov %v4802_v15  ;;  %v4814_v60 = vrot.slane (%p3289_p2), %v4802_v15, %v9672_v56 }
0x25b8   : > { %v4793_v28 = vadd.f32 %v4780_v29, %v11021_v14  ;;  %v11658_v20 = vmov %v4801_v44  ;;  %v4810_v37 = vadd.f32 (%p3289_p2), %v4808_v2, %v4801_v44 }
0x25b9   : > { %v4804_v8 = vadd.f32 %v4798_v27, %v4794_v62  }
0x25ba   : > { %v4803_v41 = vadd.f32 %v4798_v27, %v4793_v28   ;;  %6693 = vst.msk [vmem:[%s11640_s11 + $0x68] sm:$0xff] (%p3289_p2), %vm212_vm1, %v4810_v37 }
0x25bb   : > { %v11655_v34 = vmov %v4804_v8  ;;  %v4816_v33 = vadd.f32 (%p3289_p2), %v4814_v60, %v4804_v8 }
0x25bc   : > { %v11656_v29 = vmov %v4803_v41  ;;  %v4815_v14 = vadd.f32 (%p3289_p2), %v4814_v60, %v4803_v41 }
0x25bd   :  { %6695 = vst.msk [vmem:[%s11640_s11 + $0x78] sm:$0xff] %vm212_vm1, %v4816_v33 }
0x25be   :  { %6694 = vst.msk [vmem:[%s11640_s11 + $0x70] sm:$0xff] %vm212_vm1, %v4815_v14 }
0x25bf LB: > { %v4837_v53 = vsel %vm212_vm1, %v9434_v63, 0.0  ;;  %v4843_v6 = vsel %vm212_vm1, %v9426_v44, 0.0  ;;  %v4840_v13 = vsel %vm212_vm1, %v9430_v10, 0.0  ;;  %v4846_v54 = vsel %vm212_vm1, %v9422_v15, 0.0  ;;  %s11237_s0 = sshll.u32 %s9438_s29, 5  ;;  %s6696_s21 = sshll.u32 %s9438_s29, 3  ;;  %s9438_s29 = sphi %s11165_s29, %s4827_s29   ;;  %v9434_v63 = vphi %v4799_v63, %v11666_v63   ;;  %v9430_v10 = vphi %v4800_v10, %v11665_v10   ;;  %v9426_v44 = vphi %v4801_v44, %v11664_v44   ;;  %v9422_v15 = vphi %v4802_v15, %v11663_v15   ;;  %v9418_v41 = vphi %v4803_v41, %v11662_v41   ;;  %v9414_v8 = vphi %v4804_v8, %v11661_v8  }
0x25c0   : > { %4838 = vadd.xlane.f32.xlu0 %v4837_v53  ;;  %4844 = vadd.xlane.f32.xlu1 %v4843_v6  ;;  %v4849_v24 = vsel %vm212_vm1, %v9418_v41, 0.0  ;;  %v4852_v30 = vsel %vm212_vm1, %v9414_v8, 0.0  ;;  %s4937_s20 = scalar_lea.vmem %s11630_s4, %s11237_s0  ;;  %s11247_s17 = scalar_lea.vmem %s11633_s7, %s6696_s21 }
0x25c1   : > { %v4938_v5 = vld [vmem:[%s4937_s20] sm:$0xff]  ;;  %v4939_v49 = vld [vmem:[%s4937_s20 + $0x8] sm:$0xff]  ;;  %v4940_v36 = vld [vmem:[%s4937_s20 + $0x10] sm:$0xff]  ;;  %s4942_s24 = scalar_lea.vmem %s11631_s5, %s9438_s29  ;;  %s9459_s30 = smov 96  }
0x25c2   : > { %v8247_v26 = vpack.c.bf16 %v4939_v49, %v4938_v5  ;;  %v4941_v23 = vld [vmem:[%s4937_s20 + $0x18] sm:$0xff]  ;;  %s9460_s21 = smov 64   ;;  %s9461_s22 = smov 80  }
0x25c3   : > { %v8251_v19 = vpack.c.bf16 %v4941_v23, %v4940_v36  ;;  %s9462_s26 = smov 112   ;;  %s9463_s23 = smov 48  }
0x25c4   : > { %4841 = vadd.xlane.f32.xlu0 %v4840_v13  ;;  %4847 = vadd.xlane.f32.xlu1 %v4846_v54  ;;  %s9464_s25 = smov 16   ;;  %s6031_s12 = scalar_lea.vmem %s11634_s8, %s11237_s0 }
0x25c5   : > { %8248 = vmatprep.subr.bf16.mxu0 %v8247_v26  ;;  %s6036_s15 = scalar_lea.vmem %s11635_s9, %s9438_s29 }
0x25c6   : > { %8250 = vmatpush3.bf16.msra.mxu0 %v8247_v26 }
0x25c7   : > { %8252 = vmatprep.subr.bf16.mxu0 %v8251_v19 }
0x25c8   : > { %4850 = vadd.xlane.f32.xlu0 %v4849_v24  ;;  %4853 = vadd.xlane.f32.xlu1 %v4852_v30 }
0x25ca   : > { %8254 = vmatpush3.bf16.msra.mxu0 %v8251_v19 }
0x264d   : > { %v4839_v59 = vpop.xlane.xlu0 %4838  ;;  %v4845_v7 = vpop.xlane.xlu1 %4844 }
0x264e   : > { %v4856_v39 = vmul.f32 0.03125, %v4839_v59  ;;  %v4858_v20 = vmul.f32 0.03125, %v4845_v7  ;;  %v11250_v59 = vld [vmem:[%s11247_s17] sm:$0x3f] }
0x2650   : > { %v11201_v34 = vsub.f32 %v9434_v63, %v4856_v39  ;;  %v11204_v3 = vsub.f32 %v9426_v44, %v4858_v20  ;;  %v4919_v20 = vrot.slane %v11250_v59, %v9672_v56 }
0x2651   : > { %v4842_v12 = vpop.xlane.xlu0 %4841  ;;  %v4848_v35 = vpop.xlane.xlu1 %4847 }
0x2652   : > { %v4857_v61 = vmul.f32 0.03125, %v4842_v12  ;;  %v4859_v57 = vmul.f32 0.03125, %v4848_v35  ;;  %v4868_v50 = vmul.f32 %v11201_v34, %v11201_v34  ;;  %v4870_v47 = vmul.f32 %v11204_v3, %v11204_v3 }
0x2654   : > { %v11211_v0 = vsub.f32 %v9430_v10, %v4857_v61  ;;  %v11214_v40 = vsub.f32 %v9422_v15, %v4859_v57  ;;  %v4874_v52 = vsel %vm212_vm1, %v4868_v50, 0.0  ;;  %v4880_v58 = vsel %vm212_vm1, %v4870_v47, 0.0 }
0x2655   : > { %4875 = vadd.xlane.f32.xlu0 %v4874_v52  ;;  %v4851_v25 = vpop.xlane.xlu0 %4850  ;;  %v4854_v42 = vpop.xlane.xlu1 %4853  ;;  %v4929_v57 = vrot.slane %v11250_v59, %v9804_v21 }
0x2656   : > { %v4860_v17 = vmul.f32 0.03125, %v4851_v25  ;;  %v4869_v46 = vmul.f32 %v11211_v0, %v11211_v0  ;;  %v4861_v55 = vmul.f32 0.03125, %v4854_v42  ;;  %v4871_v16 = vmul.f32 %v11214_v40, %v11214_v40 }
0x2658   : > { %v11223_v31 = vsub.f32 %v9418_v41, %v4860_v17  ;;  %v4877_v1 = vsel %vm212_vm1, %v4869_v46, 0.0  ;;  %v11227_v45 = vsub.f32 %v9414_v8, %v4861_v55  ;;  %v4883_v27 = vsel %vm212_vm1, %v4871_v16, 0.0 }
0x2659   : > { %4881 = vadd.xlane.f32.xlu0 %v4880_v58  ;;  %4878 = vadd.xlane.f32.xlu1 %v4877_v1 }
0x265a   : > { %v4872_v43 = vmul.f32 %v11223_v31, %v11223_v31  ;;  %v4873_v22 = vmul.f32 %v11227_v45, %v11227_v45 }
0x265c   : > { %v4886_v48 = vsel %vm212_vm1, %v4872_v43, 0.0  ;;  %v4889_v9 = vsel %vm212_vm1, %v4873_v22, 0.0 }
0x265d   : > { %4887 = vadd.xlane.f32.xlu0 %v4886_v48  ;;  %4884 = vadd.xlane.f32.xlu1 %v4883_v27 }
0x2661   : > { %4890 = vadd.xlane.f32.xlu1 %v4889_v9 }
0x26e2   : > { %v4876_v62 = vpop.xlane.xlu0 %4875 }
0x26e3   : > { %v4892_v29 = vmul.f32 0.03125, %v4876_v62 }
0x26e5   : > { %v4898_v28 = vadd.f32 1e-06, %v4892_v29 }
0x26e6   : > { %v4882_v2 = vpop.xlane.xlu0 %4881  ;;  %v4879_v60 = vpop.xlane.xlu1 %4878 }
0x26e7   : > { %9131 = vrsqrt.f32 %v4898_v28  ;;  %v4894_v32 = vmul.f32 0.03125, %v4882_v2  ;;  %v4893_v37 = vmul.f32 0.03125, %v4879_v60 }
0x26e9   : > { %v4900_v14 = vadd.f32 1e-06, %v4894_v32  ;;  %v4899_v33 = vadd.f32 1e-06, %v4893_v37 }
0x26ea   : > { %v4888_v53 = vpop.xlane.xlu0 %4887  ;;  %v4885_v6 = vpop.xlane.xlu1 %4884 }
0x26eb   : > { %9133 = vrsqrt.f32 %v4900_v14  ;;  %v4896_v13 = vmul.f32 0.03125, %v4888_v53  ;;  %v4895_v54 = vmul.f32 0.03125, %v4885_v6 }
0x26ec   : > { %9135 = vrsqrt.f32 %v4899_v33 }
0x26ed   : > { %v4902_v24 = vadd.f32 1e-06, %v4896_v13  ;;  %v4901_v30 = vadd.f32 1e-06, %v4895_v54 }
0x26ee   : > { %v4891_v7 = vpop.xlane.xlu1 %4890 }
0x26ef   : > { %9137 = vrsqrt.f32 %v4902_v24  ;;  %v4897_v39 = vmul.f32 0.03125, %v4891_v7 }
0x26f0   : > { %9139 = vrsqrt.f32 %v4901_v30 }
0x26f1   : > { %v9132_v12 = vpop.eup %9131  ;;  %v4903_v35 = vadd.f32 1e-06, %v4897_v39 }
0x26f2   : > { %v4910_v61 = vmul.f32 %v9132_v12, %v11201_v34 }
0x26f3   : > { %9141 = vrsqrt.f32 %v4903_v35 }
0x26f4   : > { %v4920_v50 = vmul.f32 %v4919_v20, %v4910_v61 }
0x26f5   : > { %v9134_v47 = vpop.eup %9133 }
0x26f6   : > { %v9136_v52 = vpop.eup %9135  ;;  %v4930_v25 = vadd.f32 %v4929_v57, %v4920_v50  ;;  %v4912_v58 = vmul.f32 %v9134_v47, %v11204_v3  ;;  %v11326_v47 = vld [vmem:[%s11629_s3 + $0x8] sm:$0xff] }
0x26f7   : > { %v4911_v42 = vmul.f32 %v9136_v52, %v11211_v0 }
0x26f8   : > { %7695 = vmatprep.mubr.msk.f32.mxu0 %vm212_vm1, %v4930_v25  ;;  %v4922_v17 = vmul.f32 %v4919_v20, %v4912_v58  ;;  %v11331_v58 = vld [vmem:[%s11629_s3] sm:$0xff] }
0x26f9   : > { %v9138_v46 = vpop.eup %9137  ;;  %v4921_v55 = vmul.f32 %v4919_v20, %v4911_v42 }
0x26fa   : > { %v9140_v16 = vpop.eup %9139  ;;  %v4932_v1 = vadd.f32 %v4929_v57, %v4922_v17  ;;  %v4914_v34 = vmul.f32 %v9138_v46, %v11223_v31 }
0x26fb   : > { %v4931_v43 = vadd.f32 %v4929_v57, %v4921_v55  ;;  %v4913_v27 = vmul.f32 %v9140_v16, %v11214_v40  ;;  %v6698_v40 = vld [vmem:[%s4942_s24] ss:$0 sm:$0xff]  ;;  %v11338_v16 = vld [vmem:[%s11629_s3 + $0x18] sm:$0xff] }
0x26fc   : > { %v4924_v22 = vmul.f32 %v4919_v20, %v4914_v34 }
0x26fd   : > { %v9142_v48 = vpop.eup %9141  ;;  %7696 = vmatmul.mubr.msk.f32.vlgmr.msra.gmra.mrb[0].mxu0 %vm212_vm1, %v4931_v43  ;;  %v4923_v3 = vmul.f32 %v4919_v20, %v4913_v27 }
0x26fe   : > { %7698 = vmatprep.mubr.msk.f32.mxu0 %vm212_vm1, %v4932_v1  ;;  %v4934_v0 = vadd.f32 %v4929_v57, %v4924_v22  ;;  %v4915_v9 = vmul.f32 %v9142_v48, %v11227_v45  ;;  %v11345_v48 = vld [vmem:[%s11629_s3 + $0x10] sm:$0xff] }
0x26ff   : > { %v4933_v5 = vadd.f32 %v4929_v57, %v4923_v3 }
0x2700   : > { %v4925_v49 = vmul.f32 %v4919_v20, %v4915_v9 }
0x2701   : > { %7699 = vmatmul.mubr.msk.f32.gmra.mrb[2].mxu0 %vm212_vm1, %v4933_v5 }
0x2702   : > { %7701 = vmatprep.mubr.msk.f32.mxu0 %vm212_vm1, %v4934_v0  ;;  %v4935_v31 = vadd.f32 %v4929_v57, %v4925_v49 }
0x2705   : > { %7702 = vmatmul.mubr.msk.f32.gmra.mrb[4].mxu0 %vm212_vm1, %v4935_v31 }
0x27d0   : > { %v7697_v26 = vpop.f32.mrb[0].mxu0 }
0x27d1   : > { %v11272_v36 = vadd.f32 %v7697_v26, %v6698_v40  ;;  %v5034_v23 = vpop.f32.mrb[1].mxu0 }
0x27d2   : > { %v11274_v19 = vadd.f32 %v6698_v40, %v5034_v23  ;;  %v11358_v23 = vld [vmem:[%s11629_s3 + $0x28] sm:$0xff] }
0x27d4   : > { %v7700_v45 = vpop.f32.mrb[2].mxu0  ;;  %7716 = vmatprep.mubr.msk.f32.mxu1 %vm476_vm2, %v11274_v19  ;;  %v11280_v62 = vpack.i.bf16 %v11272_v36, %v11274_v19 }
0x27d5   : > { %v11282_v29 = vadd.f32 %v7700_v45, %v6698_v40  ;;  %v5044_v28 = vpop.f32.mrb[3].mxu0 }
0x27d6   : > { %v11284_v2 = vadd.f32 %v6698_v40, %v5044_v28  ;;  %9072 = vrot.lane.b32.xlu0 %v11280_v62, %s9459_s30 }
0x27d8   : > { %v7703_v60 = vpop.f32.mrb[4].mxu0  ;;  %v11289_v32 = vpack.i.bf16 %v11282_v29, %v11284_v2 }
0x27d9   : > { %v11291_v37 = vadd.f32 %v7703_v60, %v6698_v40  ;;  %v5054_v14 = vpop.f32.mrb[5].mxu0 }
0x27da   : > { %v11293_v33 = vadd.f32 %v6698_v40, %v5054_v14  ;;  %9077 = vrot.lane.b32.xlu1 %v11289_v32, %s9459_s30  ;;  %v11353_v40 = vld [vmem:[%s11629_s3 + $0x20] sm:$0xff] }
0x27dc   : > { %v11298_v53 = vpack.i.bf16 %v11291_v37, %v11293_v33 }
0x27de   : > { %9082 = vrot.lane.b32.xlu1 %v11298_v53, %s9459_s30  ;;  %s5799_s30 = scalar_lea.vmem %s11632_s6, %s11237_s0  ;;  %s6754_s0 = sshll.u32 %s9438_s29, 7 }
0x27df   : > { %s11566_s2 = scalar_lea.vmem %s11636_s10, %s6754_s0  ;;  %s4827_s29 = sadd.s32 1, %s9438_s29  }
0x27e0   : > { %p4824_p3 = scmp.ge.s32.totalorder %s4827_s29, 12  }
0x2848   : > { %v9073_v6 = vpop.permute.xlu0 %9072 }
0x2849   : > { %v9075_v13 = vunpack.i.h.bf16 %v9073_v6  ;;  %v9074_v54 = vunpack.i.l.bf16 %v9073_v6 }
0x284b   : > { %v8255_v24 = vpack.c.bf16 %v9075_v13, %v9074_v54 }
0x284c   : > { %v9078_v30 = vpop.permute.xlu1 %9077 }
0x284d   : > { %v9080_v7 = vunpack.i.h.bf16 %v9078_v30  ;;  %v9079_v39 = vunpack.i.l.bf16 %v9078_v30  ;;  %8257 = vmatprep.subr.msk.bf16.mxu1 %vm9857_vm3, %v8255_v24 }
0x284e   : > { %8260 = vmatpush3.bf16.xpose.msk.msra.mxu1 %vm9857_vm3, %v8255_v24 }
0x284f   : > { %v8261_v20 = vpack.c.bf16 %v9080_v7, %v9079_v39 }
0x2850   : > { %v9083_v12 = vpop.permute.xlu1 %9082 }
0x2851   : > { %v9085_v35 = vunpack.i.h.bf16 %v9083_v12  ;;  %v9084_v61 = vunpack.i.l.bf16 %v9083_v12  ;;  %8263 = vmatprep.subr.msk.bf16.mxu1 %vm9857_vm3, %v8261_v20 }
0x2853   : > { %v8267_v57 = vpack.c.bf16 %v9085_v35, %v9084_v61 }
0x2856   : > { %8266 = vmatpush3.bf16.xpose.msk.msra.mxu1 %vm9857_vm3, %v8261_v20 }
0x2857   : > { %8269 = vmatprep.subr.msk.bf16.mxu1 %vm9857_vm3, %v8267_v57 }
0x285e   : > { %8272 = vmatpush3.bf16.xpose.msk.msra.mxu1 %vm9857_vm3, %v8267_v57 }
0x2865   : > { %7717 = vmatmul.mubr.msk.f32.vlgmr.msra.gmra.mrb[0].mxu1 %vm476_vm2, %v11272_v36 }
0x2866   : > { %7719 = vmatprep.mubr.msk.f32.mxu1 %vm476_vm2, %v11284_v2 }
0x2869   : > { %7720 = vmatmul.mubr.msk.f32.gmra.mrb[2].mxu1 %vm476_vm2, %v11282_v29 }
0x286a   : > { %7722 = vmatprep.mubr.msk.f32.mxu1 %vm476_vm2, %v11293_v33 }
0x286d   : > { %7723 = vmatmul.mubr.msk.f32.gmra.mrb[4].mxu1 %vm476_vm2, %v11291_v37 }
0x2938   : > { %v7718_v50 = vpop.f32.mrb[0].mxu1 }
0x2939   : > { %v5202_v52 = vmul.f32 0.25, %v7718_v50  ;;  %v5172_v25 = vpop.f32.mrb[1].mxu1 }
0x293a   : > { %v5201_v42 = vmul.f32 0.25, %v5172_v25 }
0x293b   : > { %v5214_v17 = vadd.f32 %v11326_v47, %v5202_v52 }
0x293c   : > { %v7721_v46 = vpop.f32.mrb[2].mxu1  ;;  %v5213_v55 = vadd.f32 %v11331_v58, %v5201_v42 }
0x293d   : > { %v5204_v1 = vmul.f32 0.25, %v7721_v46  ;;  %v5182_v34 = vpop.f32.mrb[3].mxu1  ;;  %v5223_v43 = vsel %vm614_vm4, %v5214_v17, -inf }
0x293e   : > { %v5203_v27 = vmul.f32 0.25, %v5182_v34  ;;  %5224 = vmax.xlane.f32.xlu0 %v5223_v43  ;;  %v5220_v22 = vsel %vm614_vm4, %v5213_v55, -inf }
0x293f   : > { %5221 = vmax.xlane.f32.xlu1 %v5220_v22  ;;  %v5216_v3 = vadd.f32 %v11338_v16, %v5204_v1 }
0x2940   : > { %v7724_v0 = vpop.f32.mrb[4].mxu1  ;;  %v5215_v31 = vadd.f32 %v11345_v48, %v5203_v27 }
0x2941   : > { %v5206_v9 = vmul.f32 0.25, %v7724_v0  ;;  %v5192_v5 = vpop.f32.mrb[5].mxu1  ;;  %v5229_v49 = vsel %vm614_vm4, %v5216_v3, -inf }
0x2942   : > { %v5205_v26 = vmul.f32 0.25, %v5192_v5  ;;  %5230 = vmax.xlane.f32.xlu0 %v5229_v49  ;;  %v5226_v28 = vsel %vm614_vm4, %v5215_v31, -inf }
0x2943   : > { %v5218_v60 = vadd.f32 %v11358_v23, %v5206_v9 }
0x2944   : > { %v5217_v45 = vadd.f32 %v11353_v40, %v5205_v26 }
0x2945   : > { %v5235_v6 = vsel %vm614_vm4, %v5218_v60, -inf }
0x2946   : > { %5227 = vmax.xlane.f32.xlu0 %v5226_v28  ;;  %v5232_v14 = vsel %vm614_vm4, %v5217_v45, -inf }
0x2947   : > { %5233 = vmax.xlane.f32.xlu1 %v5232_v14 }
0x294a   : > { %5236 = vmax.xlane.f32.xlu0 %v5235_v6 }
0x2958   : > { %9087 = vrot.lane.b32.xlu1 %v11280_v62, %s9460_s21 }
0x295c   : > { %9097 = vrot.lane.b32.xlu1 %v11298_v53, %s9460_s21 }
0x2960   : > { %9092 = vrot.lane.b32.xlu0 %v11289_v32, %s9460_s21 }
0x29cb   : > { %v5225_v13 = vpop.xlane.xlu0 %5224 }
0x29cc   : > { %v5239_v54 = vsub.f32 %v5214_v17, %v5225_v13  ;;  %v5222_v24 = vpop.xlane.xlu1 %5221 }
0x29cd   : > { %v5238_v30 = vsub.f32 %v5213_v55, %v5222_v24 }
0x29ce   : > { %v5246_v7 = vmul.f32 1.442695, %v5239_v54 }
0x29cf   : > { %v5244_v39 = vmul.f32 1.442695, %v5238_v30  ;;  %v5231_v20 = vpop.xlane.xlu0 %5230 }
0x29d0   : > { %9143 = vpow2.f32 %v5246_v7  ;;  %v5241_v12 = vsub.f32 %v5216_v3, %v5231_v20 }
0x29d1   : > { %9145 = vpow2.f32 %v5244_v39 }
0x29d2   : > { %v5250_v35 = vmul.f32 1.442695, %v5241_v12 }
0x29d3   : > { %v5228_v61 = vpop.xlane.xlu0 %5227 }
0x29d4   : > { %9147 = vpow2.f32 %v5250_v35  ;;  %v5240_v57 = vsub.f32 %v5215_v31, %v5228_v61  ;;  %v5234_v50 = vpop.xlane.xlu1 %5233 }
0x29d5   : > { %v5242_v25 = vsub.f32 %v5217_v45, %v5234_v50 }
0x29d6   : > { %v5248_v52 = vmul.f32 1.442695, %v5240_v57 }
0x29d7   : > { %v5237_v42 = vpop.xlane.xlu0 %5236  ;;  %v5252_v43 = vmul.f32 1.442695, %v5242_v25 }
0x29d8   : > { %9149 = vpow2.f32 %v5248_v52  ;;  %v5243_v46 = vsub.f32 %v5218_v60, %v5237_v42  ;;  %v9088_v1 = vpop.permute.xlu1 %9087 }
0x29d9   : > { %v9090_v17 = vunpack.i.h.bf16 %v9088_v1  ;;  %v9089_v34 = vunpack.i.l.bf16 %v9088_v1 }
0x29da   : > { %v9144_v55 = vpop.eup %9143  ;;  %v5254_v27 = vmul.f32 1.442695, %v5243_v46 }
0x29db   : > { %v9146_v22 = vpop.eup %9145  ;;  %v8273_v0 = vpack.c.bf16 %v9090_v17, %v9089_v34  ;;  %v9093_v3 = vpop.permute.xlu0 %9092  ;;  %v5259_v9 = vsel %vm614_vm4, %v9144_v55, 0.0 }
0x29dc   : > { %9151 = vpow2.f32 %v5254_v27  ;;  %v9095_v5 = vunpack.i.h.bf16 %v9093_v3  ;;  %v9094_v49 = vunpack.i.l.bf16 %v9093_v3  ;;  %5260 = vadd.xlane.f32.xlu0 %v5259_v9  ;;  %v9098_v31 = vpop.permute.xlu1 %9097  ;;  %v5256_v26 = vsel %vm614_vm4, %v9146_v22, 0.0 }
0x29dd   : > { %v9100_v45 = vunpack.i.h.bf16 %v9098_v31  ;;  %v9099_v28 = vunpack.i.l.bf16 %v9098_v31  ;;  %5257 = vadd.xlane.f32.xlu1 %v5256_v26  ;;  %8274 = vmatprep.subr.bf16.mxu0 %v8273_v0  ;;  %9153 = vpow2.f32 %v5252_v43 }
0x29de   : > { %v9148_v60 = vpop.eup %9147  ;;  %v8277_v14 = vpack.c.bf16 %v9095_v5, %v9094_v49  ;;  %8276 = vmatpush3.bf16.msra.mxu0 %v8273_v0 }
0x29df   : > { %v5265_v6 = vsel %vm614_vm4, %v9148_v60, 0.0  ;;  %v8281_v13 = vpack.c.bf16 %v9100_v45, %v9099_v28 }
0x29e0   : > { %5266 = vadd.xlane.f32.xlu0 %v5265_v6  ;;  %8278 = vmatprep.subr.bf16.mxu0 %v8277_v14 }
0x29e2   : > { %v9150_v54 = vpop.eup %9149  ;;  %8280 = vmatpush3.bf16.msra.mxu0 %v8277_v14 }
0x29e3   : > { %8282 = vmatprep.subr.bf16.mxu0 %v8281_v13  ;;  %v5262_v24 = vsel %vm614_vm4, %v9150_v54, 0.0 }
0x29e4   : > { %5263 = vadd.xlane.f32.xlu1 %v5262_v24 }
0x29e6   : > { %v9152_v30 = vpop.eup %9151  ;;  %8284 = vmatpush3.bf16.msra.mxu0 %v8281_v13 }
0x29e7   : > { %v5271_v7 = vsel %vm614_vm4, %v9152_v30, 0.0  ;;  %v9154_v39 = vpop.eup %9153 }
0x29e8   : > { %5272 = vadd.xlane.f32.xlu0 %v5271_v7  ;;  %v5268_v20 = vsel %vm614_vm4, %v9154_v39, 0.0 }
0x29ec   : > { %5269 = vadd.xlane.f32.xlu0 %v5268_v20 }
0x29f5   : > { %9107 = vrot.lane.b32.xlu1 %v11289_v32, %s9461_s22 }
0x29f9   : > { %9112 = vrot.lane.b32.xlu1 %v11298_v53, %s9461_s22 }
0x29fd   : > { %5417 = vrot.lane.b32.xlu1 %v11274_v19, %s9462_s26 }
0x2a01   : > { %5419 = vrot.lane.b32.xlu1 %v11272_v36, %s9462_s26 }
0x2a02   : > { %9102 = vrot.lane.b32.xlu0 %v11280_v62, %s9461_s22 }
0x2a05   : > { %5421 = vrot.lane.b32.xlu1 %v11284_v2, %s9462_s26 }
0x2a06   : > { %5423 = vrot.lane.b32.xlu0 %v11282_v29, %s9462_s26 }
0x2a09   : > { %5425 = vrot.lane.b32.xlu1 %v11293_v33, %s9462_s26 }
0x2a0a   : > { %5427 = vrot.lane.b32.xlu0 %v11291_v37, %s9462_s26 }
0x2a69   : > { %v5261_v12 = vpop.xlane.xlu0 %5260 }
0x2a6a   : > { %9155 = vrcp.f32 %v5261_v12  ;;  %v5258_v35 = vpop.xlane.xlu1 %5257 }
0x2a6b   : > { %9157 = vrcp.f32 %v5258_v35 }
0x2a6d   : > { %v5267_v61 = vpop.xlane.xlu0 %5266 }
0x2a6e   : > { %9159 = vrcp.f32 %v5267_v61 }
0x2a71   : > { %v5264_v57 = vpop.xlane.xlu1 %5263 }
0x2a72   : > { %9161 = vrcp.f32 %v5264_v57 }
0x2a74   : > { %v9156_v19 = vpop.eup %9155 }
0x2a75   : > { %v9158_v36 = vpop.eup %9157  ;;  %v5273_v50 = vpop.xlane.xlu0 %5272  ;;  %v5277_v25 = vmul.f32 %v9156_v19, %v9144_v55 }
0x2a76   : > { %v5275_v52 = vmul.f32 %v9158_v36, %v9146_v22  ;;  %9163 = vrcp.f32 %v5273_v50  ;;  %v9108_v2 = vpop.permute.xlu1 %9107 }
0x2a77   : > { %v9110_v42 = vunpack.i.h.bf16 %v9108_v2  ;;  %v9109_v17 = vunpack.i.l.bf16 %v9108_v2 }
0x2a78   : > { %7737 = vmatprep.mubr.msk.f32.mxu0 %vm614_vm4, %v5275_v52  ;;  %v9160_v37 = vpop.eup %9159 }
0x2a79   : > { %v5270_v29 = vpop.xlane.xlu0 %5269  ;;  %7738 = vmatmul.mubr.msk.f32.vlgmr.msra.gmra.mrb[6].mxu0 %vm614_vm4, %v5277_v25  ;;  %v5281_v27 = vmul.f32 %v9160_v37, %v9148_v60  ;;  %v8291_v22 = vpack.c.bf16 %v9110_v42, %v9109_v17 }
0x2a7a   : > { %9165 = vrcp.f32 %v5270_v29  ;;  %v9113_v0 = vpop.permute.xlu1 %9112 }
0x2a7b   : > { %v9115_v49 = vunpack.i.h.bf16 %v9113_v0  ;;  %v9114_v31 = vunpack.i.l.bf16 %v9113_v0 }
0x2a7c   : > { %v9162_v33 = vpop.eup %9161 }
0x2a7d   : > { %v9103_v46 = vpop.permute.xlu0 %9102  ;;  %v5279_v1 = vmul.f32 %v9162_v33, %v9150_v54  ;;  %v8297_v28 = vpack.c.bf16 %v9115_v49, %v9114_v31 }
0x2a7e   : > { %v9105_v34 = vunpack.i.h.bf16 %v9103_v46  ;;  %v9104_v43 = vunpack.i.l.bf16 %v9103_v46  ;;  %v5418_v45 = vpop.permute.xlu1 %5417 }
0x2a7f   : > { %7740 = vmatprep.mubr.msk.f32.mxu0 %vm614_vm4, %v5279_v1 }
0x2a80   : > { %v8285_v55 = vpack.c.bf16 %v9105_v34, %v9104_v43  ;;  %7741 = vmatmul.mubr.msk.f32.gmra.mrb[8].mxu0 %vm614_vm4, %v5281_v27  ;;  %v9164_v3 = vpop.eup %9163 }
0x2a81   : > { %v5285_v26 = vmul.f32 %v9164_v3, %v9152_v30  ;;  %v5424_v6 = vpop.permute.xlu0 %5423 }
0x2a82   : > { %8287 = vmatprep.subr.msk.bf16.mxu0 %vm9857_vm3, %v8285_v55  ;;  %v5420_v60 = vpop.permute.xlu1 %5419 }
0x2a83   : > { %8290 = vmatpush3.bf16.xpose.msk.msra.mxu0 %vm9857_vm3, %v8285_v55 }
0x2a84   : > { %v9166_v9 = vpop.eup %9165  ;;  %8293 = vmatprep.subr.msk.bf16.mxu0 %vm9857_vm3, %v8291_v22 }
0x2a85   : > { %v5283_v5 = vmul.f32 %v9166_v9, %v9154_v39  ;;  %v5428_v54 = vpop.permute.xlu0 %5427 }
0x2a86   : > { %v5422_v14 = vpop.permute.xlu1 %5421 }
0x2a87   : > { %7743 = vmatprep.mubr.msk.f32.mxu0 %vm614_vm4, %v5283_v5 }
0x2a88   : > { %7744 = vmatmul.mubr.msk.f32.gmra.mrb[10].mxu0 %vm614_vm4, %v5285_v26 }
0x2a89   : > { %7758 = vmatprep.mubr.msk.f32.mxu0 %vm476_vm2, %v5418_v45 }
0x2a8a   : > { %v5426_v13 = vpop.permute.xlu1 %5425 }
0x2a8b   : > { %8296 = vmatpush3.bf16.xpose.msk.msra.mxu0 %vm9857_vm3, %v8291_v22 }
0x2a8c   : > { %8299 = vmatprep.subr.msk.bf16.mxu0 %vm9857_vm3, %v8297_v28 }
0x2a93   : > { %8302 = vmatpush3.bf16.xpose.msk.msra.mxu0 %vm9857_vm3, %v8297_v28 }
0x2a9a   : > { %7759 = vmatmul.mubr.msk.f32.vlgmr.msra.gmra.mrb[12].mxu0 %vm476_vm2, %v5420_v60 }
0x2a9b   : > { %7761 = vmatprep.mubr.msk.f32.mxu0 %vm476_vm2, %v5422_v14 }
0x2a9e   : > { %7762 = vmatmul.mubr.msk.f32.gmra.mrb[14].mxu0 %vm476_vm2, %v5424_v6 }
0x2a9f   : > { %7764 = vmatprep.mubr.msk.f32.mxu0 %vm476_vm2, %v5426_v13 }
0x2aa2   : > { %7765 = vmatmul.mubr.msk.f32.gmra.mrb[16].mxu0 %vm476_vm2, %v5428_v54 }
0x2b4c   : > { %v11407_v24 = vpop.f32.mrb[6].mxu0 }
0x2b4d   : > { %v11409_v30 = vpop.f32.mrb[7].mxu0 }
0x2b53   : > { %v11411_v7 = vpop.f32.mrb[8].mxu0 }
0x2b54   : > { %v11413_v39 = vpop.f32.mrb[9].mxu0 }
0x2b5b   : > { %v11415_v20 = vpop.f32.mrb[10].mxu0 }
0x2b5c   : > { %v11417_v12 = vpop.f32.mrb[11].mxu0 }
0x2b6d   : > { %v7760_v35 = vpop.f32.mrb[12].mxu0 }
0x2b6e   : > { %v5561_v61 = vmul.f32 0.25, %v7760_v35  ;;  %v5531_v57 = vpop.f32.mrb[13].mxu0 }
0x2b6f   : > { %v5560_v19 = vmul.f32 0.25, %v5531_v57 }
0x2b70   : > { %v5567_v36 = vadd.f32 %v5561_v61, %v11326_v47 }
0x2b71   : > { %v7763_v50 = vpop.f32.mrb[14].mxu0  ;;  %v5566_v52 = vadd.f32 %v5560_v19, %v11331_v58 }
0x2b72   : > { %v5541_v25 = vpop.f32.mrb[15].mxu0  ;;  %v5575_v29 = vsel %vm614_vm4, %v5567_v36, -inf  ;;  %v5563_v2 = vmul.f32 0.25, %v7763_v50 }
0x2b73   : > { %v5562_v37 = vmul.f32 0.25, %v5541_v25  ;;  %5576 = vmax.xlane.f32.xlu0 %v5575_v29  ;;  %v5572_v33 = vsel %vm614_vm4, %v5566_v52, -inf }
0x2b74   : > { %5573 = vmax.xlane.f32.xlu1 %v5572_v33  ;;  %v5569_v43 = vadd.f32 %v5563_v2, %v11338_v16 }
0x2b75   : > { %v7766_v42 = vpop.f32.mrb[16].mxu0  ;;  %v5568_v46 = vadd.f32 %v5562_v37, %v11345_v48 }
0x2b76   : > { %v5551_v1 = vpop.f32.mrb[17].mxu0  ;;  %v5565_v17 = vmul.f32 0.25, %v7766_v42  ;;  %v5581_v27 = vsel %vm614_vm4, %v5569_v43, -inf }
0x2b77   : > { %v5564_v34 = vmul.f32 0.25, %v5551_v1  ;;  %v5578_v47 = vsel %vm614_vm4, %v5568_v46, -inf }
0x2b78   : > { %5579 = vmax.xlane.f32.xlu0 %v5578_v47  ;;  %v5571_v22 = vadd.f32 %v5565_v17, %v11358_v23 }
0x2b79   : > { %v5570_v58 = vadd.f32 %v5564_v34, %v11353_v40 }
0x2b7a   : > { %v5587_v48 = vsel %vm614_vm4, %v5571_v22, -inf }
0x2b7b   : > { %v5584_v55 = vsel %vm614_vm4, %v5570_v58, -inf }
0x2b7c   : > { %5582 = vmax.xlane.f32.xlu0 %v5581_v27  ;;  %5585 = vmax.xlane.f32.xlu1 %v5584_v55 }
0x2b80   : > { %5588 = vmax.xlane.f32.xlu0 %v5587_v48 }
0x2b8d   : > { %9117 = vrot.lane.b32.xlu1 %v11280_v62, %s9463_s23 }
0x2c00   : > { %v5577_v0 = vpop.xlane.xlu0 %5576 }
0x2c01   : > { %v5591_v16 = vsub.f32 %v5567_v36, %v5577_v0  ;;  %v5574_v3 = vpop.xlane.xlu1 %5573 }
0x2c02   : > { %v5590_v9 = vsub.f32 %v5566_v52, %v5574_v3 }
0x2c03   : > { %v5598_v40 = vmul.f32 1.442695, %v5591_v16 }
0x2c04   : > { %v5596_v5 = vmul.f32 1.442695, %v5590_v9 }
0x2c05   : > { %9167 = vpow2.f32 %v5598_v40  ;;  %v5580_v49 = vpop.xlane.xlu0 %5579 }
0x2c06   : > { %9169 = vpow2.f32 %v5596_v5  ;;  %v5592_v31 = vsub.f32 %v5568_v46, %v5580_v49 }
0x2c08   : > { %v5600_v23 = vmul.f32 1.442695, %v5592_v31 }
0x2c09   : > { %v5583_v26 = vpop.xlane.xlu0 %5582  ;;  %v5586_v45 = vpop.xlane.xlu1 %5585 }
0x2c0a   : > { %9171 = vpow2.f32 %v5600_v23  ;;  %v5593_v28 = vsub.f32 %v5569_v43, %v5583_v26  ;;  %v5594_v60 = vsub.f32 %v5570_v58, %v5586_v45 }
0x2c0c   : > { %v5602_v14 = vmul.f32 1.442695, %v5593_v28  ;;  %v5604_v6 = vmul.f32 1.442695, %v5594_v60 }
0x2c0d   : > { %v5589_v13 = vpop.xlane.xlu0 %5588  ;;  %v9118_v62 = vpop.permute.xlu1 %9117 }
0x2c0e   : > { %9173 = vpow2.f32 %v5602_v14  ;;  %v5595_v54 = vsub.f32 %v5571_v22, %v5589_v13  ;;  %v9120_v35 = vunpack.i.h.bf16 %v9118_v62  ;;  %v9119_v61 = vunpack.i.l.bf16 %v9118_v62  ;;  %v5800_v62 = vld [vmem:[%s5799_s30] sm:$0xff] }
0x2c0f   : > { %v9168_v57 = vpop.eup %9167  ;;  %9175 = vpow2.f32 %v5604_v6 }
0x2c10   : > { %v9170_v19 = vpop.eup %9169  ;;  %v5606_v36 = vmul.f32 1.442695, %v5595_v54  ;;  %v8303_v50 = vpack.c.bf16 %v9120_v35, %v9119_v61  ;;  %v5611_v52 = vsel %vm614_vm4, %v9168_v57, 0.0  ;;  %v5801_v54 = vld [vmem:[%s5799_s30 + $0x8] sm:$0xff]  ;;  %v5802_v35 = vld [vmem:[%s5799_s30 + $0x10] sm:$0xff] }
0x2c11   : > { %5612 = vadd.xlane.f32.xlu0 %v5611_v52  ;;  %v5608_v25 = vsel %vm614_vm4, %v9170_v19, 0.0  ;;  %v8315_v61 = vpack.c.bf16 %v5801_v54, %v5800_v62 }
0x2c12   : > { %9177 = vpow2.f32 %v5606_v36  ;;  %5609 = vadd.xlane.f32.xlu1 %v5608_v25  ;;  %8304 = vmatprep.subr.bf16.mxu0 %v8303_v50 }
0x2c13   : > { %8306 = vmatpush3.bf16.msra.mxu0 %v8303_v50  ;;  %8316 = vmatprep.subr.bf16.mxu1 %v8315_v61 }
0x2c14   : > { %v9172_v29 = vpop.eup %9171  ;;  %8318 = vmatpush3.bf16.msra.mxu1 %v8315_v61 }
0x2c15   : > { %v5614_v2 = vsel %vm614_vm4, %v9172_v29, 0.0 }
0x2c16   : > { %5615 = vadd.xlane.f32.xlu1 %v5614_v2 }
0x2c18   : > { %v9174_v37 = vpop.eup %9173 }
0x2c19   : > { %v9176_v33 = vpop.eup %9175  ;;  %v5617_v42 = vsel %vm614_vm4, %v9174_v37, 0.0 }
0x2c1a   : > { %5618 = vadd.xlane.f32.xlu0 %v5617_v42  ;;  %v5620_v46 = vsel %vm614_vm4, %v9176_v33, 0.0 }
0x2c1b   : > { %5621 = vadd.xlane.f32.xlu1 %v5620_v46 }
0x2c1c   : > { %v9178_v1 = vpop.eup %9177 }
0x2c1d   : > { %v5623_v17 = vsel %vm614_vm4, %v9178_v1, 0.0 }
0x2c1e   : > { %5624 = vadd.xlane.f32.xlu0 %v5623_v17 }
0x2c2c   : > { %9127 = vrot.lane.b32.xlu1 %v11298_v53, %s9463_s23 }
0x2c34   : > { %9122 = vrot.lane.b32.xlu0 %v11289_v32, %s9463_s23 }
0x2c9e   : > { %v5613_v47 = vpop.xlane.xlu0 %5612 }
0x2c9f   : > { %v5610_v34 = vpop.xlane.xlu1 %5609 }
0x2ca0   : > { %9179 = vrcp.f32 %v5610_v34 }
0x2ca1   : > { %9181 = vrcp.f32 %v5613_v47 }
0x2ca3   : > { %v5616_v43 = vpop.xlane.xlu1 %5615 }
0x2ca4   : > { %9183 = vrcp.f32 %v5616_v43 }
0x2ca7   : > { %v5619_v58 = vpop.xlane.xlu0 %5618 }
0x2ca8   : > { %v5622_v27 = vpop.xlane.xlu1 %5621  ;;  %9185 = vrcp.f32 %v5619_v58  ;;  %v5926_v58 = vrot.slane %v11250_v59, %v10032_v4 }
0x2ca9   : > { %9187 = vrcp.f32 %v5622_v27 }
0x2caa   : > { %v9180_v55 = vpop.eup %9179 }
0x2cab   : > { %v5625_v22 = vpop.xlane.xlu0 %5624  ;;  %v5627_v48 = vmul.f32 %v9180_v55, %v9170_v19  ;;  %v9182_v49 = vpop.eup %9181 }
0x2cac   : > { %v9128_v0 = vpop.permute.xlu1 %9127  ;;  %9189 = vrcp.f32 %v5625_v22  ;;  %v5629_v23 = vmul.f32 %v9182_v49, %v9168_v57  ;;  %v5803_v57 = vld [vmem:[%s5799_s30 + $0x18] sm:$0xff] }
0x2cad   : > { %7779 = vmatprep.mubr.msk.f32.mxu0 %vm614_vm4, %v5627_v48  ;;  %v9130_v3 = vunpack.i.h.bf16 %v9128_v0  ;;  %v9129_v53 = vunpack.i.l.bf16 %v9128_v0  ;;  %v8319_v19 = vpack.c.bf16 %v5803_v57, %v5802_v35 }
0x2cae   : > { %v9184_v31 = vpop.eup %9183 }
0x2caf   : > { %v9123_v16 = vpop.permute.xlu0 %9122  ;;  %v8311_v5 = vpack.c.bf16 %v9130_v3, %v9129_v53  ;;  %v5631_v45 = vmul.f32 %v9184_v31, %v9172_v29  ;;  %8320 = vmatprep.subr.bf16.mxu1 %v8319_v19 }
0x2cb0   : > { %v9125_v9 = vunpack.i.h.bf16 %v9123_v16  ;;  %v9124_v40 = vunpack.i.l.bf16 %v9123_v16  ;;  %8322 = vmatpush3.bf16.msra.mxu1 %v8319_v19 }
0x2cb2   : > { %v8307_v32 = vpack.c.bf16 %v9125_v9, %v9124_v40  ;;  %v9186_v26 = vpop.eup %9185 }
0x2cb3   : > { %v9188_v28 = vpop.eup %9187  ;;  %v5633_v60 = vmul.f32 %v9186_v26, %v9174_v37 }
0x2cb4   : > { %8308 = vmatprep.subr.bf16.mxu0 %v8307_v32  ;;  %v5635_v6 = vmul.f32 %v9188_v28, %v9176_v33 }
0x2cb5   : > { %8310 = vmatpush3.bf16.msra.mxu0 %v8307_v32 }
0x2cb6   : > { %8312 = vmatprep.subr.bf16.mxu0 %v8311_v5  ;;  %v9190_v14 = vpop.eup %9189 }
0x2cb7   : > { %v5637_v13 = vmul.f32 %v9190_v14, %v9178_v1 }
0x2cb9   : > { %8314 = vmatpush3.bf16.msra.mxu0 %v8311_v5 }
0x2cbc   : > { %7780 = vmatmul.mubr.msk.f32.vlgmr.msra.gmra.mrb[18].mxu0 %vm614_vm4, %v5629_v23 }
0x2cbd   : > { %7782 = vmatprep.mubr.msk.f32.mxu0 %vm614_vm4, %v5631_v45 }
0x2cc0   : > { %7783 = vmatmul.mubr.msk.f32.gmra.mrb[20].mxu0 %vm614_vm4, %v5633_v60 }
0x2cc1   : > { %7785 = vmatprep.mubr.msk.f32.mxu0 %vm614_vm4, %v5635_v6 }
0x2cc4   : > { %7786 = vmatmul.mubr.msk.f32.gmra.mrb[22].mxu0 %vm614_vm4, %v5637_v13 }
0x2d8f   : > { %v7781_v36 = vpop.f32.mrb[18].mxu0 }
0x2d90   : > { %v5740_v50 = vpop.f32.mrb[19].mxu0 }
0x2d91   : > { %5775 = vrot.lane.b32.xlu1 %v5740_v50, %s9464_s25 }
0x2d93   : > { %v7784_v52 = vpop.f32.mrb[20].mxu0 }
0x2d94   : > { %v5750_v25 = vpop.f32.mrb[21].mxu0 }
0x2d95   : > { %5777 = vrot.lane.b32.xlu1 %v7781_v36, %s9464_s25  ;;  %5779 = vrot.lane.b32.xlu0 %v5750_v25, %s9464_s25 }
0x2d97   : > { %v7787_v29 = vpop.f32.mrb[22].mxu0 }
0x2d98   : > { %v5760_v2 = vpop.f32.mrb[23].mxu0 }
0x2d99   : > { %5781 = vrot.lane.b32.xlu1 %v7784_v52, %s9464_s25  ;;  %5783 = vrot.lane.b32.xlu0 %v5760_v2, %s9464_s25 }
0x2d9d   : > { %5785 = vrot.lane.b32.xlu1 %v7787_v29, %s9464_s25 }
0x2e03   : > { %v5776_v37 = vpop.permute.xlu1 %5775 }
0x2e04   : > { %v5793_v33 = vsel %vm476_vm2, %v11409_v30, %v5776_v37 }
0x2e05   : > { %7796 = vmatprep.mubr.msk.f32.mxu1 %vm212_vm1, %v5793_v33 }
0x2e07   : > { %v5778_v42 = vpop.permute.xlu1 %5777  ;;  %v5780_v46 = vpop.permute.xlu0 %5779 }
0x2e08   : > { %v5794_v1 = vsel %vm476_vm2, %v11407_v24, %v5778_v42  ;;  %v5795_v17 = vsel %vm476_vm2, %v11413_v39, %v5780_v46 }
0x2e09   : > { %7797 = vmatmul.mubr.msk.f32.vlgmr.msra.gmra.mrb[6].mxu1 %vm212_vm1, %v5794_v1 }
0x2e0a   : > { %7799 = vmatprep.mubr.msk.f32.mxu1 %vm212_vm1, %v5795_v17 }
0x2e0b   : > { %v5782_v34 = vpop.permute.xlu1 %5781  ;;  %v5784_v47 = vpop.permute.xlu0 %5783 }
0x2e0c   : > { %v5796_v43 = vsel %vm476_vm2, %v11411_v7, %v5782_v34  ;;  %v5797_v30 = vsel %vm476_vm2, %v11417_v12, %v5784_v47 }
0x2e0d   : > { %7800 = vmatmul.mubr.msk.f32.gmra.mrb[8].mxu1 %vm212_vm1, %v5796_v43 }
0x2e0e   : > { %7802 = vmatprep.mubr.msk.f32.mxu1 %vm212_vm1, %v5797_v30 }
0x2e0f   : > { %v5786_v24 = vpop.permute.xlu1 %5785 }
0x2e10   : > { %v5798_v39 = vsel %vm476_vm2, %v11415_v20, %v5786_v24  ;;  %v6032_v24 = vld [vmem:[%s6031_s12] sm:$0xff] }
0x2e11   : > { %7803 = vmatmul.mubr.msk.f32.gmra.mrb[10].mxu1 %vm212_vm1, %v5798_v39  ;;  %v6033_v39 = vld [vmem:[%s6031_s12 + $0x8] sm:$0xff] }
0x2edc   : > { %v7798_v27 = vpop.f32.mrb[6].mxu1 }
0x2edd   : > { %v5918_v55 = vadd.f32 %v9430_v10, %v7798_v27  ;;  %v5888_v7 = vpop.f32.mrb[7].mxu1  ;;  %v6034_v27 = vld [vmem:[%s6031_s12 + $0x10] sm:$0xff] }
0x2ede   : > { %v5917_v22 = vadd.f32 %v9434_v63, %v5888_v7 }
0x2edf   : > { %v11475_v12 = vadd.f32 %v5926_v58, %v5918_v55  ;;  %v6035_v55 = vld [vmem:[%s6031_s12 + $0x18] sm:$0xff] }
0x2ee0   : > { %v11477_v48 = vadd.f32 %v5926_v58, %v5917_v22  ;;  %v7801_v0 = vpop.f32.mrb[8].mxu1  ;;  %v8327_v7 = vpack.c.bf16 %v6035_v55, %v6034_v27  ;;  %v6215_v27 = vld [vmem:[%s11566_s2 + $0x10] sm:$0xff]  ;;  %v6216_v55 = vld [vmem:[%s11566_s2 + $0x18] sm:$0xff] }
0x2ee1   : > { %v5920_v16 = vadd.f32 %v9422_v15, %v7801_v0  ;;  %v5898_v3 = vpop.f32.mrb[9].mxu1  ;;  %v5936_v20 = vsel %vm212_vm1, %v11475_v12, 0.0 }
0x2ee2   : > { %v5919_v53 = vadd.f32 %v9426_v44, %v5898_v3  ;;  %5937 = vadd.xlane.f32.xlu1 %v5936_v20  ;;  %v5933_v10 = vsel %vm212_vm1, %v11477_v48, 0.0 }
0x2ee3   : > { %v11485_v59 = vadd.f32 %v5926_v58, %v5920_v16  ;;  %5934 = vadd.xlane.f32.xlu0 %v5933_v10 }
0x2ee4   : > { %v7804_v63 = vpop.f32.mrb[10].mxu1  ;;  %v11490_v32 = vadd.f32 %v5926_v58, %v5919_v53 }
0x2ee5   : > { %v5922_v9 = vadd.f32 %v9414_v8, %v7804_v63  ;;  %v5908_v40 = vpop.f32.mrb[11].mxu1  ;;  %v5942_v15 = vsel %vm212_vm1, %v11485_v59, 0.0 }
0x2ee6   : > { %v5921_v5 = vadd.f32 %v9418_v41, %v5908_v40  ;;  %v5939_v8 = vsel %vm212_vm1, %v11490_v32, 0.0 }
0x2ee7   : > { %v11493_v49 = vadd.f32 %v5926_v58, %v5922_v9  ;;  %5943 = vadd.xlane.f32.xlu0 %v5942_v15 }
0x2ee8   : > { %v11497_v31 = vadd.f32 %v5926_v58, %v5921_v5  ;;  %v8323_v58 = vpack.c.bf16 %v6033_v39, %v6032_v24 }
0x2ee9   : > { %v5948_v44 = vsel %vm212_vm1, %v11493_v49, 0.0 }
0x2eea   : > { %5949 = vadd.xlane.f32.xlu1 %v5948_v44  ;;  %v5945_v23 = vsel %vm212_vm1, %v11497_v31, 0.0  ;;  %8324 = vmatprep.subr.bf16.mxu0 %v8323_v58 }
0x2eeb   : > { %5940 = vadd.xlane.f32.xlu0 %v5939_v8  ;;  %8326 = vmatpush3.bf16.msra.mxu0 %v8323_v58 }
0x2eec   : > { %8328 = vmatprep.subr.bf16.mxu0 %v8327_v7 }
0x2eef   : > { %5946 = vadd.xlane.f32.xlu0 %v5945_v23  ;;  %8330 = vmatpush3.bf16.msra.mxu0 %v8327_v7  ;;  %v8335_v7 = vpack.c.bf16 %v6216_v55, %v6215_v27 }
0x2f6f   : > { %v5938_v26 = vpop.xlane.xlu1 %5937 }
0x2f70   : > { %v5952_v45 = vmul.f32 0.03125, %v5938_v26  ;;  %v5935_v41 = vpop.xlane.xlu0 %5934 }
0x2f71   : > { %v5951_v28 = vmul.f32 0.03125, %v5935_v41  ;;  %v11544_v41 = vld [vmem:[%s11247_s17] sm:$0x3f] }
0x2f72   : > { %v11504_v60 = vsub.f32 %v11475_v12, %v5952_v45 }
0x2f73   : > { %v11507_v14 = vsub.f32 %v11477_v48, %v5951_v28  ;;  %v6014_v28 = vrot.slane %v11544_v41, %v10107_v38 }
0x2f74   : > { %v5944_v6 = vpop.xlane.xlu0 %5943  ;;  %v5964_v13 = vmul.f32 %v11504_v60, %v11504_v60 }
0x2f75   : > { %v5954_v62 = vmul.f32 0.03125, %v5944_v6  ;;  %v5963_v54 = vmul.f32 %v11507_v14, %v11507_v14 }
0x2f76   : > { %v5972_v35 = vsel %vm212_vm1, %v5964_v13, 0.0 }
0x2f77   : > { %v11515_v61 = vsub.f32 %v11485_v59, %v5954_v62  ;;  %5973 = vadd.xlane.f32.xlu1 %v5972_v35  ;;  %v5950_v57 = vpop.xlane.xlu1 %5949  ;;  %v5969_v19 = vsel %vm212_vm1, %v5963_v54, 0.0 }
0x2f78   : > { %v5956_v36 = vmul.f32 0.03125, %v5950_v57  ;;  %5970 = vadd.xlane.f32.xlu0 %v5969_v19  ;;  %v5941_v50 = vpop.xlane.xlu0 %5940  ;;  %v6024_v57 = vrot.slane %v11544_v41, %v10110_v51 }
0x2f79   : > { %v5953_v52 = vmul.f32 0.03125, %v5941_v50  ;;  %v5966_v25 = vmul.f32 %v11515_v61, %v11515_v61 }
0x2f7a   : > { %v11521_v29 = vsub.f32 %v11493_v49, %v5956_v36 }
0x2f7b   : > { %v11524_v2 = vsub.f32 %v11490_v32, %v5953_v52  ;;  %v5978_v37 = vsel %vm212_vm1, %v5966_v25, 0.0 }
0x2f7c   : > { %5979 = vadd.xlane.f32.xlu1 %v5978_v37  ;;  %v5947_v33 = vpop.xlane.xlu0 %5946  ;;  %v5968_v42 = vmul.f32 %v11521_v29, %v11521_v29 }
0x2f7d   : > { %v5955_v46 = vmul.f32 0.03125, %v5947_v33  ;;  %v5965_v1 = vmul.f32 %v11524_v2, %v11524_v2 }
0x2f7e   : > { %v5984_v17 = vsel %vm212_vm1, %v5968_v42, 0.0 }
0x2f7f   : > { %v11533_v34 = vsub.f32 %v11497_v31, %v5955_v46  ;;  %v5975_v47 = vsel %vm212_vm1, %v5965_v1, 0.0 }
0x2f80   : > { %5985 = vadd.xlane.f32.xlu1 %v5984_v17  ;;  %5976 = vadd.xlane.f32.xlu0 %v5975_v47 }
0x2f81   : > { %v5967_v43 = vmul.f32 %v11533_v34, %v11533_v34 }
0x2f83   : > { %v5981_v30 = vsel %vm212_vm1, %v5967_v43, 0.0 }
0x2f84   : > { %5982 = vadd.xlane.f32.xlu0 %v5981_v30 }
0x3004   : > { %v5974_v22 = vpop.xlane.xlu1 %5973 }
0x3005   : > { %v5988_v0 = vmul.f32 0.03125, %v5974_v22  ;;  %v5971_v16 = vpop.xlane.xlu0 %5970  ;;  %v6217_v22 = vld [vmem:[%s11566_s2 + $0x20] sm:$0xff] }
0x3006   : > { %v5987_v3 = vmul.f32 0.03125, %v5971_v16 }
0x3007   : > { %v5994_v20 = vadd.f32 1e-06, %v5988_v0  ;;  %v6218_v0 = vld [vmem:[%s11566_s2 + $0x28] sm:$0xff] }
0x3008   : > { %v5993_v53 = vadd.f32 1e-06, %v5987_v3  ;;  %v8339_v16 = vpack.c.bf16 %v6218_v0, %v6217_v22  ;;  %v6219_v3 = vld [vmem:[%s11566_s2 + $0x30] sm:$0xff] }
0x3009   : > { %9191 = vrsqrt.f32 %v5994_v20  ;;  %v5980_v10 = vpop.xlane.xlu1 %5979  ;;  %v6220_v20 = vld [vmem:[%s11566_s2 + $0x38] sm:$0xff] }
0x300a   : > { %9193 = vrsqrt.f32 %v5993_v53  ;;  %v5990_v63 = vmul.f32 0.03125, %v5980_v10  ;;  %v8343_v53 = vpack.c.bf16 %v6220_v20, %v6219_v3  ;;  %v6221_v10 = vld [vmem:[%s11566_s2 + $0x40] sm:$0xff] }
0x300c   : > { %v5996_v9 = vadd.f32 1e-06, %v5990_v63  ;;  %v6222_v63 = vld [vmem:[%s11566_s2 + $0x48] sm:$0xff] }
0x300d   : > { %v5986_v40 = vpop.xlane.xlu1 %5985  ;;  %v5977_v15 = vpop.xlane.xlu0 %5976 }
0x300e   : > { %9195 = vrsqrt.f32 %v5996_v9  ;;  %v5992_v5 = vmul.f32 0.03125, %v5986_v40  ;;  %v5989_v44 = vmul.f32 0.03125, %v5977_v15  ;;  %v8347_v9 = vpack.c.bf16 %v6222_v63, %v6221_v10  ;;  %v6223_v40 = vld [vmem:[%s11566_s2 + $0x50] sm:$0xff]  ;;  %v6224_v15 = vld [vmem:[%s11566_s2 + $0x58] sm:$0xff] }
0x3010   : > { %v5998_v8 = vadd.f32 1e-06, %v5992_v5  ;;  %v5995_v23 = vadd.f32 1e-06, %v5989_v44  ;;  %v8351_v5 = vpack.c.bf16 %v6224_v15, %v6223_v40  ;;  %v6225_v44 = vld [vmem:[%s11566_s2 + $0x60] sm:$0xff] }
0x3011   : > { %v5983_v26 = vpop.xlane.xlu0 %5982 }
0x3012   : > { %9197 = vrsqrt.f32 %v5998_v8  ;;  %v5991_v45 = vmul.f32 0.03125, %v5983_v26  ;;  %v6226_v8 = vld [vmem:[%s11566_s2 + $0x68] sm:$0xff]  ;;  %v6227_v26 = vld [vmem:[%s11566_s2 + $0x70] sm:$0xff] }
0x3013   : > { %v9192_v6 = vpop.eup %9191  ;;  %9199 = vrsqrt.f32 %v5995_v23  ;;  %v8355_v23 = vpack.c.bf16 %v6226_v8, %v6225_v44 }
0x3014   : > { %v9194_v13 = vpop.eup %9193  ;;  %v6006_v62 = vmul.f32 %v9192_v6, %v11504_v60  ;;  %v5997_v54 = vadd.f32 1e-06, %v5991_v45  ;;  %v6228_v45 = vld [vmem:[%s11566_s2 + $0x78] sm:$0xff]  ;;  %v6747_v6 = vld [vmem:[%s6036_s15] ss:$0 sm:$0xff] }
0x3015   : > { %v6005_v35 = vmul.f32 %v9194_v13, %v11507_v14 }
0x3016   : > { %9201 = vrsqrt.f32 %v5997_v54  ;;  %v6016_v19 = vmul.f32 %v6014_v28, %v6006_v62 }
0x3017   : > { %v6015_v36 = vmul.f32 %v6014_v28, %v6005_v35 }
0x3018   : > { %v9196_v50 = vpop.eup %9195  ;;  %v6026_v25 = vadd.f32 %v6024_v57, %v6016_v19 }
0x3019   : > { %v6025_v52 = vadd.f32 %v6024_v57, %v6015_v36  ;;  %v6008_v37 = vmul.f32 %v9196_v50, %v11515_v61 }
0x301b   : > { %7813 = vmatprep.mubr.msk.f32.mxu0 %vm212_vm1, %v6025_v52  ;;  %v6018_v14 = vmul.f32 %v6014_v28, %v6008_v37 }
0x301c   : > { %v9198_v33 = vpop.eup %9197  ;;  %7814 = vmatmul.mubr.msk.f32.vlgmr.msra.gmra.mrb[24].mxu0 %vm212_vm1, %v6026_v25 }
0x301d   : > { %v9200_v60 = vpop.eup %9199  ;;  %v6010_v46 = vmul.f32 %v9198_v33, %v11521_v29  ;;  %v6028_v30 = vadd.f32 %v6024_v57, %v6018_v14  ;;  %v6213_v29 = vld [vmem:[%s11566_s2] sm:$0xff] }
0x301e   : > { %v6007_v42 = vmul.f32 %v9200_v60, %v11524_v2 }
0x301f   : > { %v6020_v39 = vmul.f32 %v6014_v28, %v6010_v46 }
0x3020   : > { %v9202_v1 = vpop.eup %9201  ;;  %v6017_v17 = vmul.f32 %v6014_v28, %v6007_v42 }
0x3021   : > { %v6009_v47 = vmul.f32 %v9202_v1, %v11533_v34  ;;  %v6030_v2 = vadd.f32 %v6024_v57, %v6020_v39  ;;  %v6214_v34 = vld [vmem:[%s11566_s2 + $0x8] sm:$0xff] }
0x3022   : > { %v6027_v43 = vadd.f32 %v6024_v57, %v6017_v17  ;;  %v8331_v58 = vpack.c.bf16 %v6214_v34, %v6213_v29 }
0x3023   : > { %v6019_v24 = vmul.f32 %v6014_v28, %v6009_v47  ;;  %v8359_v28 = vpack.c.bf16 %v6228_v45, %v6227_v26 }
0x3024   : > { %7816 = vmatprep.mubr.msk.f32.mxu0 %vm212_vm1, %v6027_v43  ;;  %8332 = vmatprep.subr.bf16.mxu1 %v8331_v58 }
0x3025   : > { %7817 = vmatmul.mubr.msk.f32.gmra.mrb[26].mxu0 %vm212_vm1, %v6028_v30  ;;  %v6029_v61 = vadd.f32 %v6024_v57, %v6019_v24  ;;  %8334 = vmatpush3.bf16.msra.mxu1 %v8331_v58 }
0x3026   : > { %8336 = vmatprep.subr.bf16.mxu1 %v8335_v7 }
0x3027   : > { %7819 = vmatprep.mubr.msk.f32.mxu0 %vm212_vm1, %v6029_v61 }
0x3029   : > { %7820 = vmatmul.mubr.msk.f32.gmra.mrb[28].mxu0 %vm212_vm1, %v6030_v2  ;;  %8338 = vmatpush3.bf16.msra.mxu1 %v8335_v7 }
0x302a   : > { %8340 = vmatprep.subr.bf16.mxu1 %v8339_v16 }
0x302d   : > { %8342 = vmatpush3.bf16.msra.mxu1 %v8339_v16 }
0x302e   : > { %8344 = vmatprep.subr.bf16.mxu1 %v8343_v53 }
0x3031   : > { %8346 = vmatpush3.bf16.msra.mxu1 %v8343_v53 }
0x3032   : > { %8348 = vmatprep.subr.bf16.mxu1 %v8347_v9 }
0x3035   : > { %8350 = vmatpush3.bf16.msra.mxu1 %v8347_v9 }
0x3036   : > { %8352 = vmatprep.subr.bf16.mxu1 %v8351_v5 }
0x3039   : > { %8354 = vmatpush3.bf16.msra.mxu1 %v8351_v5 }
0x303a   : > { %8356 = vmatprep.subr.bf16.mxu1 %v8355_v23 }
0x303d   : > { %8358 = vmatpush3.bf16.msra.mxu1 %v8355_v23 }
0x303e   : > { %8360 = vmatprep.subr.bf16.mxu1 %v8359_v28 }
0x3041   : > { %8362 = vmatpush3.bf16.msra.mxu1 %v8359_v28 }
0x30ef   : > { %v7815_v13 = vpop.f32.mrb[24].mxu0 }
0x30f0   : > { %v6134_v62 = vadd.f32 %v7815_v13, %v6747_v6  ;;  %v6128_v54 = vpop.f32.mrb[25].mxu0 }
0x30f1   : > { %v6129_v35 = vadd.f32 %v6747_v6, %v6128_v54 }
0x30f2   : > { %v6158_v57 = vmul.f32 %v6134_v62, %v6134_v62 }
0x30f3   : > { %v6157_v19 = vmul.f32 %v6129_v35, %v6129_v35 }
0x30f4   : > { %v6164_v36 = vmul.f32 %v6158_v57, %v6134_v62 }
0x30f5   : > { %v6163_v50 = vmul.f32 %v6157_v19, %v6129_v35 }
0x30f6   : > { %v6170_v52 = vmul.f32 0.044715, %v6164_v36 }
0x30f7   : > { %v6169_v25 = vmul.f32 0.044715, %v6163_v50 }
0x30f8   : > { %v6176_v37 = vadd.f32 %v6170_v52, %v6134_v62  ;;  %v7818_v33 = vpop.f32.mrb[26].mxu0 }
0x30f9   : > { %v6175_v60 = vadd.f32 %v6169_v25, %v6129_v35  ;;  %v6144_v42 = vadd.f32 %v7818_v33, %v6747_v6  ;;  %v6138_v14 = vpop.f32.mrb[27].mxu0 }
0x30fa   : > { %v6182_v46 = vmul.f32 0.7978846, %v6176_v37  ;;  %v6139_v1 = vadd.f32 %v6747_v6, %v6138_v14 }
0x30fb   : > { %v6181_v17 = vmul.f32 0.7978846, %v6175_v60  ;;  %v6160_v47 = vmul.f32 %v6144_v42, %v6144_v42 }
0x30fc   : > { %9203 = vtanh.f32 %v6182_v46  ;;  %v6159_v43 = vmul.f32 %v6139_v1, %v6139_v1  ;;  %v7821_v30 = vpop.f32.mrb[28].mxu0 }
0x30fd   : > { %v6166_v24 = vmul.f32 %v6160_v47, %v6144_v42  ;;  %v6154_v39 = vadd.f32 %v7821_v30, %v6747_v6  ;;  %v6148_v61 = vpop.f32.mrb[29].mxu0  ;;  %9205 = vtanh.f32 %v6181_v17  ;;  %v6333_v47 = vrot.slane %v11544_v41, %v10158_v18 }
0x30fe   : > { %v6165_v2 = vmul.f32 %v6159_v43, %v6139_v1  ;;  %v6149_v29 = vadd.f32 %v6747_v6, %v6148_v61 }
0x30ff   : > { %v6172_v34 = vmul.f32 0.044715, %v6166_v24  ;;  %v6162_v58 = vmul.f32 %v6154_v39, %v6154_v39 }
0x3100   : > { %v6171_v27 = vmul.f32 0.044715, %v6165_v2  ;;  %v6161_v55 = vmul.f32 %v6149_v29, %v6149_v29 }
0x3101   : > { %v6178_v7 = vadd.f32 %v6172_v34, %v6144_v42  ;;  %v6168_v22 = vmul.f32 %v6162_v58, %v6154_v39 }
0x3102   : > { %v6177_v0 = vadd.f32 %v6171_v27, %v6139_v1  ;;  %v6167_v16 = vmul.f32 %v6161_v55, %v6149_v29 }
0x3103   : > { %v6184_v3 = vmul.f32 0.7978846, %v6178_v7  ;;  %v6174_v20 = vmul.f32 0.044715, %v6168_v22 }
0x3104   : > { %v6183_v53 = vmul.f32 0.7978846, %v6177_v0  ;;  %v6173_v10 = vmul.f32 0.044715, %v6167_v16 }
0x3105   : > { %v6180_v63 = vadd.f32 %v6174_v20, %v6154_v39  ;;  %9207 = vtanh.f32 %v6184_v3 }
0x3106   : > { %v9204_v9 = vpop.eup %9203  ;;  %v6179_v40 = vadd.f32 %v6173_v10, %v6149_v29  ;;  %9209 = vtanh.f32 %v6183_v53 }
0x3107   : > { %v9206_v15 = vpop.eup %9205  ;;  %v6194_v5 = vadd.f32 1.0, %v9204_v9  ;;  %v6186_v44 = vmul.f32 0.7978846, %v6180_v63 }
0x3108   : > { %v6185_v8 = vmul.f32 0.7978846, %v6179_v40  ;;  %v6193_v23 = vadd.f32 1.0, %v9206_v15 }
0x3109   : > { %v6200_v26 = vmul.f32 0.5, %v6194_v5  ;;  %9211 = vtanh.f32 %v6186_v44 }
0x310a   : > { %v6199_v45 = vmul.f32 0.5, %v6193_v23  ;;  %9213 = vtanh.f32 %v6185_v8 }
0x310b   : > { %v6206_v6 = vmul.f32 %v6200_v26, %v6134_v62 }
0x310c   : > { %v6205_v28 = vmul.f32 %v6199_v45, %v6129_v35 }
0x310e   : > { %7854 = vmatprep.mubr.f32.mxu1 %v6205_v28 }
0x310f   : > { %v9208_v13 = vpop.eup %9207  ;;  %7855 = vmatmul.mubr.f32.vlgmr.msra.gmra.mrb[12].mxu1 %v6206_v6 }
0x3110   : > { %v9210_v54 = vpop.eup %9209  ;;  %v6196_v57 = vadd.f32 1.0, %v9208_v13 }
0x3111   : > { %v6195_v19 = vadd.f32 1.0, %v9210_v54 }
0x3112   : > { %v6202_v36 = vmul.f32 0.5, %v6196_v57 }
0x3113   : > { %v9212_v50 = vpop.eup %9211  ;;  %v6201_v52 = vmul.f32 0.5, %v6195_v19 }
0x3114   : > { %v9214_v25 = vpop.eup %9213  ;;  %v6198_v37 = vadd.f32 1.0, %v9212_v50  ;;  %v6208_v14 = vmul.f32 %v6202_v36, %v6144_v42 }
0x3115   : > { %v6207_v33 = vmul.f32 %v6201_v52, %v6139_v1  ;;  %v6197_v60 = vadd.f32 1.0, %v9214_v25 }
0x3116   : > { %v6204_v46 = vmul.f32 0.5, %v6198_v37 }
0x3117   : > { %7857 = vmatprep.mubr.f32.mxu1 %v6207_v33  ;;  %v6203_v17 = vmul.f32 0.5, %v6197_v60 }
0x3118   : > { %7858 = vmatmul.mubr.f32.gmra.mrb[14].mxu1 %v6208_v14  ;;  %v6210_v62 = vmul.f32 %v6204_v46, %v6154_v39 }
0x3119   : > { %v6209_v35 = vmul.f32 %v6203_v17, %v6149_v29 }
0x311b   : > { %7860 = vmatprep.mubr.f32.mxu1 %v6209_v35 }
0x311c   : > { %7861 = vmatmul.mubr.f32.gmra.mrb[16].mxu1 %v6210_v62 }
0x31e2   : > { %v7856_v43 = vpop.f32.mrb[12].mxu1 }
0x31e3   : > { %v6325_v30 = vadd.f32 %v7856_v43, %v11475_v12  ;;  %v6295_v24 = vpop.f32.mrb[13].mxu1 }
0x31e4   : > { %v6324_v61 = vadd.f32 %v6295_v24, %v11477_v48 }
0x31e5   : > { %v6335_v1 = vadd.f32 %v6333_v47, %v6325_v30  }
0x31e6   : > { %v6334_v2 = vadd.f32 %v6333_v47, %v6324_v61  }
0x31e7   : > { %v11665_v10 = vmov %v6335_v1 }
0x31e8   : > { %v11666_v63 = vmov %v6334_v2  ;;  %v6343_v48 = vrot.slane (%p4824_p3), %v6334_v2, %v9672_v56 }
0x31eb   : > { %v7859_v42 = vpop.f32.mrb[14].mxu1 }
0x31ec   : > { %v6327_v34 = vadd.f32 %v7859_v42, %v11485_v59  ;;  %v6305_v58 = vpop.f32.mrb[15].mxu1 }
0x31ed   : > { %v6326_v29 = vadd.f32 %v6305_v58, %v11490_v32  ;;  %v6344_v32 = vadd.f32 (%p4824_p3), %v6343_v48, %v6335_v1 }
0x31ee   : > { %v6337_v39 = vadd.f32 %v6333_v47, %v6327_v34  }
0x31ef   : > { %v6336_v27 = vadd.f32 %v6333_v47, %v6326_v29   ;;  %v7862_v55 = vpop.f32.mrb[16].mxu1  ;;  %4826 = sbr.rel (!%p4824_p3) target bundleno = 9663 (0x25bf), region = 157  ;;  %6755 = vst.msk [vmem:[%s11640_s11 + $0x80] sm:$0xff] (%p4824_p3), %vm212_vm1, %v6344_v32 }
0x31f0   : > { %v6329_v7 = vadd.f32 %v7862_v55, %v11493_v49  ;;  %v6315_v41 = vpop.f32.mrb[17].mxu1  ;;  %v11663_v15 = vmov %v6337_v39  ;;  %v6349_v59 = vrot.slane (%p4824_p3), %v6337_v39, %v9672_v56 }
0x31f1   : > { %v6328_v22 = vadd.f32 %v6315_v41, %v11497_v31  ;;  %v11664_v44 = vmov %v6336_v27  ;;  %v6345_v49 = vadd.f32 (%p4824_p3), %v6343_v48, %v6336_v27 }
0x31f2   : > { %v6339_v12 = vadd.f32 %v6333_v47, %v6329_v7  }
0x31f3   : > { %v6338_v0 = vadd.f32 %v6333_v47, %v6328_v22   ;;  %6756 = vst.msk [vmem:[%s11640_s11 + $0x88] sm:$0xff] (%p4824_p3), %vm212_vm1, %v6345_v49 }
0x31f4   : > { %v11661_v8 = vmov %v6339_v12  ;;  %v6351_v16 = vadd.f32 (%p4824_p3), %v6349_v59, %v6339_v12 }
0x31f5   : > { %v11662_v41 = vmov %v6338_v0  ;;  %v6350_v31 = vadd.f32 (%p4824_p3), %v6349_v59, %v6338_v0 }
0x31f6   :  { %6758 = vst.msk [vmem:[%s11640_s11 + $0x98] sm:$0xff] %vm212_vm1, %v6351_v16 }
0x31f7   :  { %6757 = vst.msk [vmem:[%s11640_s11 + $0x90] sm:$0xff] %vm212_vm1, %v6350_v31 }

</bundles_post_ra>
